<compile_context>
chip_gen: v7x
topology: tpu7x:2x2x1
jax: 0.10.0
libtpu: 0.0.40
codegen_flags: <defaults>
</compile_context>

<pallas_src>
import functools

import jax
import jax.numpy as jnp
from jax.experimental import pallas as pl
from jax.experimental.pallas import tpu as pltpu


# ---------------------------------------------------------------------------
# Fused kernel: one batch-block (Bb rows) per grid point.
#   QKV matmul (all heads, M = Bb*T) -> per-head causal softmax attention ->
#   head outputs streamed into a VMEM slab -> output projection,
#   all in VMEM, single lane-dense (Bb, T, E) store.
# ---------------------------------------------------------------------------
def _mha_fused_kernel(x_ref, wqkv_ref, wp_ref, bp_ref, o_ref, concat_ref, *,
                      num_heads, head_size):
    # x_ref:      (Bb, T, C)  f32
    # wqkv_ref:   (C, 3*H*Hs) bf16, columns = [q heads | k heads | v heads],
    #                               1/sqrt(Hs) already folded into q columns
    # wp_ref:     (H*Hs, E)   bf16 (already W^T)
    # bp_ref:     (1, E)      f32
    # o_ref:      (Bb, T, E)
    # concat_ref: (Bb*T, H*Hs) bf16 VMEM scratch slab
    Bb, T, C = x_ref.shape
    D = num_heads * head_size

    # All-head QKV projection as one lane-dense bf16 MXU matmul, M = Bb*T.
    x = x_ref[...].reshape(Bb * T, C).astype(jnp.bfloat16)
    qkv = jnp.dot(x, wqkv_ref[...],
                  preferred_element_type=jnp.float32)          # (Bb*T, 3D) f32
    qkv = qkv.reshape(Bb, T, 3 * D)

    # Causal mask shared by all heads / batch rows.
    row = jax.lax.broadcasted_iota(jnp.int32, (T, T), 0)
    col = jax.lax.broadcasted_iota(jnp.int32, (T, T), 1)
    causal = (row >= col)[None]                                # (1, T, T)
    neg_big = jnp.float32(-1e30)

    for h in range(num_heads):                                 # static unroll, H small
        lo = h * head_size
        q_h = qkv[:, :, lo:lo + head_size].astype(jnp.bfloat16)              # (Bb,T,Hs)
        k_h = qkv[:, :, D + lo:D + lo + head_size].astype(jnp.bfloat16)
        v_h = qkv[:, :, 2 * D + lo:2 * D + lo + head_size].astype(jnp.bfloat16)

        # q @ k^T (batched over Bb); scale already folded into the q weights.
        s = jnp.einsum('btd,bsd->bts', q_h, k_h,
                       preferred_element_type=jnp.float32)                   # (Bb,T,T)
        s = jnp.where(causal, s, neg_big)

        # Numerically stable f32 softmax; reciprocal goes to the EUP slot.
        # (approx reciprocal is eval-mode accuracy; use exact for training.)
        m = jnp.max(s, axis=-1, keepdims=True)
        e = jnp.exp(s - m)
        denom = jnp.sum(e, axis=-1, keepdims=True)
        p = (e * pl.reciprocal(denom, approx=True)).astype(jnp.bfloat16)

        o_h = jnp.einsum('bts,bsd->btd', p, v_h,
                         preferred_element_type=jnp.float32)                 # (Bb,T,Hs)

        # Stream the head output into the lane-dense slab right away
        # (frees vregs each iteration; no end-of-loop concat).
        concat_ref[:, lo:lo + head_size] = (
            o_h.reshape(Bb * T, head_size).astype(jnp.bfloat16))

    # Fused output projection: one K = D bf16 matmul from the slab.
    y = jnp.dot(concat_ref[...], wp_ref[...],
                preferred_element_type=jnp.float32)                          # (Bb*T, E)
    y = y + bp_ref[...]                                                      # (1, E) broadcast
    o_ref[...] = y.reshape(Bb, T, -1).astype(o_ref.dtype)


def multi_head_attention(x, params, *, block_b=None):
    """Fused multi-head causal self-attention + output projection.

    x: (B, T, C)
    params (PyTorch layout):
      "q","k","v": (H, Hs, C)   per-head nn.Linear weights (out_features, in_features)
      "proj_w":    (E, H*Hs)    nn.Linear(H*Hs, E) weight
      "proj_b":    (E,)
    returns: (B, T, E)
    """
    B, T, C = x.shape
    H, Hs, _ = params["q"].shape
    D = H * Hs
    E = params["proj_w"].shape[0]

    # Block as many batch rows per grid step as keeps tiles modest, so the
    # projection matmuls see >= 128 MXU rows and step overhead is amortised.
    if block_b is None:
        block_b = 1
        for bb in range(1, B + 1):
            if B % bb == 0 and bb * T <= 512:
                block_b = bb

    # ---- one-time weight packing (pure JAX, outside the kernel) ----
    def to_dense(w):  # (H, Hs, C) -> (C, H*Hs), head h occupies cols [h*Hs,(h+1)*Hs)
        return jnp.transpose(w, (2, 0, 1)).reshape(C, H * Hs)

    scale = Hs ** -0.5
    wqkv = jnp.concatenate(
        [to_dense(params["q"]) * scale,        # fold 1/sqrt(Hs) into q columns
         to_dense(params["k"]),
         to_dense(params["v"])],
        axis=-1).astype(jnp.bfloat16)          # (C, 3D) bf16
    wp = params["proj_w"].T.astype(jnp.bfloat16)         # (D, E) bf16
    bp = params["proj_b"].reshape(1, E).astype(jnp.float32)

    kernel = functools.partial(_mha_fused_kernel, num_heads=H, head_size=Hs)

    return pl.pallas_call(
        kernel,
        out_shape=jax.ShapeDtypeStruct((B, T, E), x.dtype),
        grid_spec=pltpu.PrefetchScalarGridSpec(
            num_scalar_prefetch=0,
            grid=(B // block_b,),
            in_specs=[
                pl.BlockSpec((block_b, T, C), lambda b: (b, 0, 0)),   # x block
                pl.BlockSpec((C, 3 * D), lambda b: (0, 0)),           # fused QKV weight (resident)
                pl.BlockSpec((D, E), lambda b: (0, 0)),               # proj weight (resident)
                pl.BlockSpec((1, E), lambda b: (0, 0)),               # proj bias (resident)
            ],
            out_specs=pl.BlockSpec((block_b, T, E), lambda b: (b, 0, 0)),
            scratch_shapes=[pltpu.VMEM((block_b * T, D), jnp.bfloat16)],
        ),
        compiler_params=pltpu.CompilerParams(
            dimension_semantics=("parallel",)),
    )(x, wqkv, wp, bp)


# ---------------------------------------------------------------------------
# Pure-JAX reference (PyTorch semantics, eval mode: dropout = identity)
# ---------------------------------------------------------------------------
def reference(x, params):
    H, Hs, C = params["q"].shape
    T = x.shape[1]
    mask = jnp.tril(jnp.ones((T, T), dtype=bool))
    outs = []
    for h in range(H):
        q = x @ params["q"][h].T                      # (B, T, Hs)
        k = x @ params["k"][h].T
        v = x @ params["v"][h].T
        s = (q @ jnp.swapaxes(k, -1, -2)) * (Hs ** -0.5)
        s = jnp.where(mask, s, -jnp.inf)
        w = jax.nn.softmax(s, axis=-1)
        outs.append(w @ v)
    concat = jnp.concatenate(outs, axis=-1)           # (B, T, H*Hs)
    return concat @ params["proj_w"].T + params["proj_b"]


if __name__ == "__main__":
    # Small shapes consistent with the module (n_embd = 384, GPT-style head split).
    B, T = 2, 64
    n_embd = 384
    num_heads = 6
    head_size = 64          # num_heads * head_size = 384 feeds proj back to n_embd

    key = jax.random.PRNGKey(0)
    kx, kq, kk, kv, kpw, kpb = jax.random.split(key, 6)

    x = jax.random.normal(kx, (B, T, n_embd), dtype=jnp.float32)

    in_scale = n_embd ** -0.5
    D = num_heads * head_size
    params = {
        # PyTorch nn.Linear weight layout: (out_features, in_features)
        "q": jax.random.normal(kq, (num_heads, head_size, n_embd), jnp.float32) * in_scale,
        "k": jax.random.normal(kk, (num_heads, head_size, n_embd), jnp.float32) * in_scale,
        "v": jax.random.normal(kv, (num_heads, head_size, n_embd), jnp.float32) * in_scale,
        "proj_w": jax.random.normal(kpw, (n_embd, D), jnp.float32) * (D ** -0.5),
        "proj_b": jax.random.normal(kpb, (n_embd,), jnp.float32) * 0.01,
    }

    out = multi_head_attention(x, params)
    out = jax.block_until_ready(out)

    ref = reference(x, params)
    assert out.shape == (B, T, n_embd)
    # Tolerance loosened for bf16 MXU operands + EUP approx reciprocal vs the
    # f32 reference (expected, not a bug).
    err = float(jnp.max(jnp.abs(out - ref)))
    assert err < 5e-2, f"mismatch vs reference, max abs err = {err}"

    print("KERNEL_OK")
</pallas_src>

<mosaic_0001>
module attributes {stable_mosaic.version = 11 : i64} {
  func.func @_mha_fused_kernel(%arg0: i32, %arg1: memref<2x64x384xf32, #tpu.memory_space<vmem>>, %arg2: memref<384x1152xbf16, #tpu.memory_space<vmem>>, %arg3: memref<384x384xbf16, #tpu.memory_space<vmem>>, %arg4: memref<1x384xf32, #tpu.memory_space<vmem>>, %arg5: memref<2x64x384xf32, #tpu.memory_space<vmem>>, %arg6: memref<128x384xbf16, #tpu.memory_space<vmem>>) attributes {dimension_semantics = [#tpu.dimension_semantics<parallel>], iteration_bounds = array<i64: 1>, scalar_prefetch = 0 : i64, scratch_operands = 1 : i64, tpu.core_type = #tpu.core_type<tc>, window_params = [{transform_indices = @transform_0, window_bounds = array<i64: 2, 64, 384>}, {pipeline_mode = #tpu.pipeline_mode<synchronous>, transform_indices = @transform_1, window_bounds = array<i64: 384, 1152>}, {pipeline_mode = #tpu.pipeline_mode<synchronous>, transform_indices = @transform_2, window_bounds = array<i64: 384, 384>}, {pipeline_mode = #tpu.pipeline_mode<synchronous>, transform_indices = @transform_3, window_bounds = array<i64: 1, 384>}, {transform_indices = @transform_4, window_bounds = array<i64: 2, 64, 384>}]} {
    %c0 = arith.constant 0 : index
    %c0_0 = arith.constant 0 : index
    %c0_1 = arith.constant 0 : index
    %0 = vector.load %arg1[%c0, %c0_0, %c0_1] : memref<2x64x384xf32, #tpu.memory_space<vmem>>, vector<2x64x384xf32>
    %1 = vector.shape_cast %0 : vector<2x64x384xf32> to vector<128x384xf32>
    %2 = arith.truncf %1 : vector<128x384xf32> to vector<128x384xbf16>
    %c0_2 = arith.constant 0 : index
    %c0_3 = arith.constant 0 : index
    %3 = vector.load %arg2[%c0_2, %c0_3] : memref<384x1152xbf16, #tpu.memory_space<vmem>>, vector<384x1152xbf16>
    %cst = arith.constant dense<0.000000e+00> : vector<128x1152xf32>
    %4 = tpu.matmul %2, %3, %cst {dimension_numbers = #tpu.dot_dimension_numbers<[1], [0], [0], [1], [0, 0, 1, 1], [], []>} : vector<128x384xbf16>, vector<384x1152xbf16>, vector<128x1152xf32> -> vector<128x1152xf32>
    %5 = vector.shape_cast %4 : vector<128x1152xf32> to vector<2x64x1152xf32>
    %6 = tpu.iota {dimensions = array<i32: 0>} : vector<64x64xi32>
    %7 = tpu.iota {dimensions = array<i32: 1>} : vector<64x64xi32>
    %8 = arith.cmpi sge, %6, %7 : vector<64x64xi32>
    %9 = vector.shape_cast %8 : vector<64x64xi1> to vector<1x64x64xi1>
    %10 = vector.extract_strided_slice %5 {offsets = [0, 0, 0], sizes = [2, 64, 64], strides = [1, 1, 1]} : vector<2x64x1152xf32> to vector<2x64x64xf32>
    %11 = arith.truncf %10 : vector<2x64x64xf32> to vector<2x64x64xbf16>
    %12 = vector.extract_strided_slice %5 {offsets = [0, 0, 384], sizes = [2, 64, 64], strides = [1, 1, 1]} : vector<2x64x1152xf32> to vector<2x64x64xf32>
    %13 = arith.truncf %12 : vector<2x64x64xf32> to vector<2x64x64xbf16>
    %14 = vector.extract_strided_slice %5 {offsets = [0, 0, 768], sizes = [2, 64, 64], strides = [1, 1, 1]} : vector<2x64x1152xf32> to vector<2x64x64xf32>
    %15 = arith.truncf %14 : vector<2x64x64xf32> to vector<2x64x64xbf16>
    "tpu.trace_start"() <{level = 10 : i32, message = "btd,bsd->bts"}> : () -> ()
    %cst_4 = arith.constant dense<0.000000e+00> : vector<2x64x64xf32>
    %16 = tpu.matmul %11, %13, %cst_4 {dimension_numbers = #tpu.dot_dimension_numbers<[2], [2], [1], [1], [0, 0, 0, 1, 1, 1], [0], [0]>} : vector<2x64x64xbf16>, vector<2x64x64xbf16>, vector<2x64x64xf32> -> vector<2x64x64xf32>
    %cst_5 = arith.constant -1.000000e+30 : f32
    "tpu.trace_stop"() : () -> ()
    %17 = vector.shape_cast %9 : vector<1x64x64xi1> to vector<1x64x64xi1>
    %18 = vector.broadcast %17 : vector<1x64x64xi1> to vector<2x64x64xi1>
    %19 = vector.broadcast %cst_5 : f32 to vector<2x64x64xf32>
    %20 = arith.select %18, %16, %19 : vector<2x64x64xi1>, vector<2x64x64xf32>
    %cst_6 = arith.constant dense<0xFF800000> : vector<2x64xf32>
    %21 = vector.multi_reduction <maximumf>, %20, %cst_6 [2] : vector<2x64x64xf32> to vector<2x64xf32>
    %22 = vector.shape_cast %21 : vector<2x64xf32> to vector<2x64x1xf32>
    %23 = vector.broadcast %22 : vector<2x64x1xf32> to vector<2x64x64xf32>
    %24 = arith.subf %20, %23 : vector<2x64x64xf32>
    %25 = math.exp %24 : vector<2x64x64xf32>
    %cst_7 = arith.constant dense<0.000000e+00> : vector<2x64xf32>
    %26 = vector.multi_reduction <add>, %25, %cst_7 [2] : vector<2x64x64xf32> to vector<2x64xf32>
    %27 = vector.shape_cast %26 : vector<2x64xf32> to vector<2x64x1xf32>
    %28 = tpu.reciprocal %27 {approx = true} : vector<2x64x1xf32> -> vector<2x64x1xf32>
    %29 = vector.broadcast %28 : vector<2x64x1xf32> to vector<2x64x64xf32>
    %30 = arith.mulf %25, %29 : vector<2x64x64xf32>
    %31 = arith.truncf %30 : vector<2x64x64xf32> to vector<2x64x64xbf16>
    "tpu.trace_start"() <{level = 10 : i32, message = "bts,bsd->btd"}> : () -> ()
    %cst_8 = arith.constant dense<0.000000e+00> : vector<2x64x64xf32>
    %32 = tpu.matmul %31, %15, %cst_8 {dimension_numbers = #tpu.dot_dimension_numbers<[2], [1], [1], [2], [0, 0, 0, 1, 1, 2], [0], [0]>} : vector<2x64x64xbf16>, vector<2x64x64xbf16>, vector<2x64x64xf32> -> vector<2x64x64xf32>
    "tpu.trace_stop"() : () -> ()
    %33 = vector.shape_cast %32 : vector<2x64x64xf32> to vector<128x64xf32>
    %34 = arith.truncf %33 : vector<128x64xf32> to vector<128x64xbf16>
    %c0_9 = arith.constant 0 : index
    %c0_10 = arith.constant 0 : index
    %35 = vector.load %arg6[%c0_9, %c0_10] : memref<128x384xbf16, #tpu.memory_space<vmem>>, vector<128x64xbf16>
    tpu.vector_store %arg6[%c0_9, %c0_10], %34 {strides = array<i32>} : memref<128x384xbf16, #tpu.memory_space<vmem>>, vector<128x64xbf16>,
    %36 = vector.extract_strided_slice %5 {offsets = [0, 0, 64], sizes = [2, 64, 64], strides = [1, 1, 1]} : vector<2x64x1152xf32> to vector<2x64x64xf32>
    %37 = arith.truncf %36 : vector<2x64x64xf32> to vector<2x64x64xbf16>
    %38 = vector.extract_strided_slice %5 {offsets = [0, 0, 448], sizes = [2, 64, 64], strides = [1, 1, 1]} : vector<2x64x1152xf32> to vector<2x64x64xf32>
    %39 = arith.truncf %38 : vector<2x64x64xf32> to vector<2x64x64xbf16>
    %40 = vector.extract_strided_slice %5 {offsets = [0, 0, 832], sizes = [2, 64, 64], strides = [1, 1, 1]} : vector<2x64x1152xf32> to vector<2x64x64xf32>
    %41 = arith.truncf %40 : vector<2x64x64xf32> to vector<2x64x64xbf16>
    "tpu.trace_start"() <{level = 10 : i32, message = "btd,bsd->bts"}> : () -> ()
    %cst_11 = arith.constant dense<0.000000e+00> : vector<2x64x64xf32>
    %42 = tpu.matmul %37, %39, %cst_11 {dimension_numbers = #tpu.dot_dimension_numbers<[2], [2], [1], [1], [0, 0, 0, 1, 1, 1], [0], [0]>} : vector<2x64x64xbf16>, vector<2x64x64xbf16>, vector<2x64x64xf32> -> vector<2x64x64xf32>
    %cst_12 = arith.constant -1.000000e+30 : f32
    "tpu.trace_stop"() : () -> ()
    %43 = vector.shape_cast %9 : vector<1x64x64xi1> to vector<1x64x64xi1>
    %44 = vector.broadcast %43 : vector<1x64x64xi1> to vector<2x64x64xi1>
    %45 = vector.broadcast %cst_12 : f32 to vector<2x64x64xf32>
    %46 = arith.select %44, %42, %45 : vector<2x64x64xi1>, vector<2x64x64xf32>
    %cst_13 = arith.constant dense<0xFF800000> : vector<2x64xf32>
    %47 = vector.multi_reduction <maximumf>, %46, %cst_13 [2] : vector<2x64x64xf32> to vector<2x64xf32>
    %48 = vector.shape_cast %47 : vector<2x64xf32> to vector<2x64x1xf32>
    %49 = vector.broadcast %48 : vector<2x64x1xf32> to vector<2x64x64xf32>
    %50 = arith.subf %46, %49 : vector<2x64x64xf32>
    %51 = math.exp %50 : vector<2x64x64xf32>
    %cst_14 = arith.constant dense<0.000000e+00> : vector<2x64xf32>
    %52 = vector.multi_reduction <add>, %51, %cst_14 [2] : vector<2x64x64xf32> to vector<2x64xf32>
    %53 = vector.shape_cast %52 : vector<2x64xf32> to vector<2x64x1xf32>
    %54 = tpu.reciprocal %53 {approx = true} : vector<2x64x1xf32> -> vector<2x64x1xf32>
    %55 = vector.broadcast %54 : vector<2x64x1xf32> to vector<2x64x64xf32>
    %56 = arith.mulf %51, %55 : vector<2x64x64xf32>
    %57 = arith.truncf %56 : vector<2x64x64xf32> to vector<2x64x64xbf16>
    "tpu.trace_start"() <{level = 10 : i32, message = "bts,bsd->btd"}> : () -> ()
    %cst_15 = arith.constant dense<0.000000e+00> : vector<2x64x64xf32>
    %58 = tpu.matmul %57, %41, %cst_15 {dimension_numbers = #tpu.dot_dimension_numbers<[2], [1], [1], [2], [0, 0, 0, 1, 1, 2], [0], [0]>} : vector<2x64x64xbf16>, vector<2x64x64xbf16>, vector<2x64x64xf32> -> vector<2x64x64xf32>
    "tpu.trace_stop"() : () -> ()
    %59 = vector.shape_cast %58 : vector<2x64x64xf32> to vector<128x64xf32>
    %60 = arith.truncf %59 : vector<128x64xf32> to vector<128x64xbf16>
    %c0_16 = arith.constant 0 : index
    %c64 = arith.constant 64 : index
    %61 = vector.load %arg6[%c0_16, %c64] : memref<128x384xbf16, #tpu.memory_space<vmem>>, vector<128x64xbf16>
    tpu.vector_store %arg6[%c0_16, %c64], %60 {strides = array<i32>} : memref<128x384xbf16, #tpu.memory_space<vmem>>, vector<128x64xbf16>,
    %62 = vector.extract_strided_slice %5 {offsets = [0, 0, 128], sizes = [2, 64, 64], strides = [1, 1, 1]} : vector<2x64x1152xf32> to vector<2x64x64xf32>
    %63 = arith.truncf %62 : vector<2x64x64xf32> to vector<2x64x64xbf16>
    %64 = vector.extract_strided_slice %5 {offsets = [0, 0, 512], sizes = [2, 64, 64], strides = [1, 1, 1]} : vector<2x64x1152xf32> to vector<2x64x64xf32>
    %65 = arith.truncf %64 : vector<2x64x64xf32> to vector<2x64x64xbf16>
    %66 = vector.extract_strided_slice %5 {offsets = [0, 0, 896], sizes = [2, 64, 64], strides = [1, 1, 1]} : vector<2x64x1152xf32> to vector<2x64x64xf32>
    %67 = arith.truncf %66 : vector<2x64x64xf32> to vector<2x64x64xbf16>
    "tpu.trace_start"() <{level = 10 : i32, message = "btd,bsd->bts"}> : () -> ()
    %cst_17 = arith.constant dense<0.000000e+00> : vector<2x64x64xf32>
    %68 = tpu.matmul %63, %65, %cst_17 {dimension_numbers = #tpu.dot_dimension_numbers<[2], [2], [1], [1], [0, 0, 0, 1, 1, 1], [0], [0]>} : vector<2x64x64xbf16>, vector<2x64x64xbf16>, vector<2x64x64xf32> -> vector<2x64x64xf32>
    %cst_18 = arith.constant -1.000000e+30 : f32
    "tpu.trace_stop"() : () -> ()
    %69 = vector.shape_cast %9 : vector<1x64x64xi1> to vector<1x64x64xi1>
    %70 = vector.broadcast %69 : vector<1x64x64xi1> to vector<2x64x64xi1>
    %71 = vector.broadcast %cst_18 : f32 to vector<2x64x64xf32>
    %72 = arith.select %70, %68, %71 : vector<2x64x64xi1>, vector<2x64x64xf32>
    %cst_19 = arith.constant dense<0xFF800000> : vector<2x64xf32>
    %73 = vector.multi_reduction <maximumf>, %72, %cst_19 [2] : vector<2x64x64xf32> to vector<2x64xf32>
    %74 = vector.shape_cast %73 : vector<2x64xf32> to vector<2x64x1xf32>
    %75 = vector.broadcast %74 : vector<2x64x1xf32> to vector<2x64x64xf32>
    %76 = arith.subf %72, %75 : vector<2x64x64xf32>
    %77 = math.exp %76 : vector<2x64x64xf32>
    %cst_20 = arith.constant dense<0.000000e+00> : vector<2x64xf32>
    %78 = vector.multi_reduction <add>, %77, %cst_20 [2] : vector<2x64x64xf32> to vector<2x64xf32>
    %79 = vector.shape_cast %78 : vector<2x64xf32> to vector<2x64x1xf32>
    %80 = tpu.reciprocal %79 {approx = true} : vector<2x64x1xf32> -> vector<2x64x1xf32>
    %81 = vector.broadcast %80 : vector<2x64x1xf32> to vector<2x64x64xf32>
    %82 = arith.mulf %77, %81 : vector<2x64x64xf32>
    %83 = arith.truncf %82 : vector<2x64x64xf32> to vector<2x64x64xbf16>
    "tpu.trace_start"() <{level = 10 : i32, message = "bts,bsd->btd"}> : () -> ()
    %cst_21 = arith.constant dense<0.000000e+00> : vector<2x64x64xf32>
    %84 = tpu.matmul %83, %67, %cst_21 {dimension_numbers = #tpu.dot_dimension_numbers<[2], [1], [1], [2], [0, 0, 0, 1, 1, 2], [0], [0]>} : vector<2x64x64xbf16>, vector<2x64x64xbf16>, vector<2x64x64xf32> -> vector<2x64x64xf32>
    "tpu.trace_stop"() : () -> ()
    %85 = vector.shape_cast %84 : vector<2x64x64xf32> to vector<128x64xf32>
    %86 = arith.truncf %85 : vector<128x64xf32> to vector<128x64xbf16>
    %c0_22 = arith.constant 0 : index
    %c128 = arith.constant 128 : index
    %87 = vector.load %arg6[%c0_22, %c128] : memref<128x384xbf16, #tpu.memory_space<vmem>>, vector<128x64xbf16>
    tpu.vector_store %arg6[%c0_22, %c128], %86 {strides = array<i32>} : memref<128x384xbf16, #tpu.memory_space<vmem>>, vector<128x64xbf16>,
    %88 = vector.extract_strided_slice %5 {offsets = [0, 0, 192], sizes = [2, 64, 64], strides = [1, 1, 1]} : vector<2x64x1152xf32> to vector<2x64x64xf32>
    %89 = arith.truncf %88 : vector<2x64x64xf32> to vector<2x64x64xbf16>
    %90 = vector.extract_strided_slice %5 {offsets = [0, 0, 576], sizes = [2, 64, 64], strides = [1, 1, 1]} : vector<2x64x1152xf32> to vector<2x64x64xf32>
    %91 = arith.truncf %90 : vector<2x64x64xf32> to vector<2x64x64xbf16>
    %92 = vector.extract_strided_slice %5 {offsets = [0, 0, 960], sizes = [2, 64, 64], strides = [1, 1, 1]} : vector<2x64x1152xf32> to vector<2x64x64xf32>
    %93 = arith.truncf %92 : vector<2x64x64xf32> to vector<2x64x64xbf16>
    "tpu.trace_start"() <{level = 10 : i32, message = "btd,bsd->bts"}> : () -> ()
    %cst_23 = arith.constant dense<0.000000e+00> : vector<2x64x64xf32>
    %94 = tpu.matmul %89, %91, %cst_23 {dimension_numbers = #tpu.dot_dimension_numbers<[2], [2], [1], [1], [0, 0, 0, 1, 1, 1], [0], [0]>} : vector<2x64x64xbf16>, vector<2x64x64xbf16>, vector<2x64x64xf32> -> vector<2x64x64xf32>
    %cst_24 = arith.constant -1.000000e+30 : f32
    "tpu.trace_stop"() : () -> ()
    %95 = vector.shape_cast %9 : vector<1x64x64xi1> to vector<1x64x64xi1>
    %96 = vector.broadcast %95 : vector<1x64x64xi1> to vector<2x64x64xi1>
    %97 = vector.broadcast %cst_24 : f32 to vector<2x64x64xf32>
    %98 = arith.select %96, %94, %97 : vector<2x64x64xi1>, vector<2x64x64xf32>
    %cst_25 = arith.constant dense<0xFF800000> : vector<2x64xf32>
    %99 = vector.multi_reduction <maximumf>, %98, %cst_25 [2] : vector<2x64x64xf32> to vector<2x64xf32>
    %100 = vector.shape_cast %99 : vector<2x64xf32> to vector<2x64x1xf32>
    %101 = vector.broadcast %100 : vector<2x64x1xf32> to vector<2x64x64xf32>
    %102 = arith.subf %98, %101 : vector<2x64x64xf32>
    %103 = math.exp %102 : vector<2x64x64xf32>
    %cst_26 = arith.constant dense<0.000000e+00> : vector<2x64xf32>
    %104 = vector.multi_reduction <add>, %103, %cst_26 [2] : vector<2x64x64xf32> to vector<2x64xf32>
    %105 = vector.shape_cast %104 : vector<2x64xf32> to vector<2x64x1xf32>
    %106 = tpu.reciprocal %105 {approx = true} : vector<2x64x1xf32> -> vector<2x64x1xf32>
    %107 = vector.broadcast %106 : vector<2x64x1xf32> to vector<2x64x64xf32>
    %108 = arith.mulf %103, %107 : vector<2x64x64xf32>
    %109 = arith.truncf %108 : vector<2x64x64xf32> to vector<2x64x64xbf16>
    "tpu.trace_start"() <{level = 10 : i32, message = "bts,bsd->btd"}> : () -> ()
    %cst_27 = arith.constant dense<0.000000e+00> : vector<2x64x64xf32>
    %110 = tpu.matmul %109, %93, %cst_27 {dimension_numbers = #tpu.dot_dimension_numbers<[2], [1], [1], [2], [0, 0, 0, 1, 1, 2], [0], [0]>} : vector<2x64x64xbf16>, vector<2x64x64xbf16>, vector<2x64x64xf32> -> vector<2x64x64xf32>
    "tpu.trace_stop"() : () -> ()
    %111 = vector.shape_cast %110 : vector<2x64x64xf32> to vector<128x64xf32>
    %112 = arith.truncf %111 : vector<128x64xf32> to vector<128x64xbf16>
    %c0_28 = arith.constant 0 : index
    %c192 = arith.constant 192 : index
    %113 = vector.load %arg6[%c0_28, %c192] : memref<128x384xbf16, #tpu.memory_space<vmem>>, vector<128x64xbf16>
    tpu.vector_store %arg6[%c0_28, %c192], %112 {strides = array<i32>} : memref<128x384xbf16, #tpu.memory_space<vmem>>, vector<128x64xbf16>,
    %114 = vector.extract_strided_slice %5 {offsets = [0, 0, 256], sizes = [2, 64, 64], strides = [1, 1, 1]} : vector<2x64x1152xf32> to vector<2x64x64xf32>
    %115 = arith.truncf %114 : vector<2x64x64xf32> to vector<2x64x64xbf16>
    %116 = vector.extract_strided_slice %5 {offsets = [0, 0, 640], sizes = [2, 64, 64], strides = [1, 1, 1]} : vector<2x64x1152xf32> to vector<2x64x64xf32>
    %117 = arith.truncf %116 : vector<2x64x64xf32> to vector<2x64x64xbf16>
    %118 = vector.extract_strided_slice %5 {offsets = [0, 0, 1024], sizes = [2, 64, 64], strides = [1, 1, 1]} : vector<2x64x1152xf32> to vector<2x64x64xf32>
    %119 = arith.truncf %118 : vector<2x64x64xf32> to vector<2x64x64xbf16>
    "tpu.trace_start"() <{level = 10 : i32, message = "btd,bsd->bts"}> : () -> ()
    %cst_29 = arith.constant dense<0.000000e+00> : vector<2x64x64xf32>
    %120 = tpu.matmul %115, %117, %cst_29 {dimension_numbers = #tpu.dot_dimension_numbers<[2], [2], [1], [1], [0, 0, 0, 1, 1, 1], [0], [0]>} : vector<2x64x64xbf16>, vector<2x64x64xbf16>, vector<2x64x64xf32> -> vector<2x64x64xf32>
    %cst_30 = arith.constant -1.000000e+30 : f32
    "tpu.trace_stop"() : () -> ()
    %121 = vector.shape_cast %9 : vector<1x64x64xi1> to vector<1x64x64xi1>
    %122 = vector.broadcast %121 : vector<1x64x64xi1> to vector<2x64x64xi1>
    %123 = vector.broadcast %cst_30 : f32 to vector<2x64x64xf32>
    %124 = arith.select %122, %120, %123 : vector<2x64x64xi1>, vector<2x64x64xf32>
    %cst_31 = arith.constant dense<0xFF800000> : vector<2x64xf32>
    %125 = vector.multi_reduction <maximumf>, %124, %cst_31 [2] : vector<2x64x64xf32> to vector<2x64xf32>
    %126 = vector.shape_cast %125 : vector<2x64xf32> to vector<2x64x1xf32>
    %127 = vector.broadcast %126 : vector<2x64x1xf32> to vector<2x64x64xf32>
    %128 = arith.subf %124, %127 : vector<2x64x64xf32>
    %129 = math.exp %128 : vector<2x64x64xf32>
    %cst_32 = arith.constant dense<0.000000e+00> : vector<2x64xf32>
    %130 = vector.multi_reduction <add>, %129, %cst_32 [2] : vector<2x64x64xf32> to vector<2x64xf32>
    %131 = vector.shape_cast %130 : vector<2x64xf32> to vector<2x64x1xf32>
    %132 = tpu.reciprocal %131 {approx = true} : vector<2x64x1xf32> -> vector<2x64x1xf32>
    %133 = vector.broadcast %132 : vector<2x64x1xf32> to vector<2x64x64xf32>
    %134 = arith.mulf %129, %133 : vector<2x64x64xf32>
    %135 = arith.truncf %134 : vector<2x64x64xf32> to vector<2x64x64xbf16>
    "tpu.trace_start"() <{level = 10 : i32, message = "bts,bsd->btd"}> : () -> ()
    %cst_33 = arith.constant dense<0.000000e+00> : vector<2x64x64xf32>
    %136 = tpu.matmul %135, %119, %cst_33 {dimension_numbers = #tpu.dot_dimension_numbers<[2], [1], [1], [2], [0, 0, 0, 1, 1, 2], [0], [0]>} : vector<2x64x64xbf16>, vector<2x64x64xbf16>, vector<2x64x64xf32> -> vector<2x64x64xf32>
    "tpu.trace_stop"() : () -> ()
    %137 = vector.shape_cast %136 : vector<2x64x64xf32> to vector<128x64xf32>
    %138 = arith.truncf %137 : vector<128x64xf32> to vector<128x64xbf16>
    %c0_34 = arith.constant 0 : index
    %c256 = arith.constant 256 : index
    %139 = vector.load %arg6[%c0_34, %c256] : memref<128x384xbf16, #tpu.memory_space<vmem>>, vector<128x64xbf16>
    tpu.vector_store %arg6[%c0_34, %c256], %138 {strides = array<i32>} : memref<128x384xbf16, #tpu.memory_space<vmem>>, vector<128x64xbf16>,
    %140 = vector.extract_strided_slice %5 {offsets = [0, 0, 320], sizes = [2, 64, 64], strides = [1, 1, 1]} : vector<2x64x1152xf32> to vector<2x64x64xf32>
    %141 = arith.truncf %140 : vector<2x64x64xf32> to vector<2x64x64xbf16>
    %142 = vector.extract_strided_slice %5 {offsets = [0, 0, 704], sizes = [2, 64, 64], strides = [1, 1, 1]} : vector<2x64x1152xf32> to vector<2x64x64xf32>
    %143 = arith.truncf %142 : vector<2x64x64xf32> to vector<2x64x64xbf16>
    %144 = vector.extract_strided_slice %5 {offsets = [0, 0, 1088], sizes = [2, 64, 64], strides = [1, 1, 1]} : vector<2x64x1152xf32> to vector<2x64x64xf32>
    %145 = arith.truncf %144 : vector<2x64x64xf32> to vector<2x64x64xbf16>
    "tpu.trace_start"() <{level = 10 : i32, message = "btd,bsd->bts"}> : () -> ()
    %cst_35 = arith.constant dense<0.000000e+00> : vector<2x64x64xf32>
    %146 = tpu.matmul %141, %143, %cst_35 {dimension_numbers = #tpu.dot_dimension_numbers<[2], [2], [1], [1], [0, 0, 0, 1, 1, 1], [0], [0]>} : vector<2x64x64xbf16>, vector<2x64x64xbf16>, vector<2x64x64xf32> -> vector<2x64x64xf32>
    %cst_36 = arith.constant -1.000000e+30 : f32
    "tpu.trace_stop"() : () -> ()
    %147 = vector.shape_cast %9 : vector<1x64x64xi1> to vector<1x64x64xi1>
    %148 = vector.broadcast %147 : vector<1x64x64xi1> to vector<2x64x64xi1>
    %149 = vector.broadcast %cst_36 : f32 to vector<2x64x64xf32>
    %150 = arith.select %148, %146, %149 : vector<2x64x64xi1>, vector<2x64x64xf32>
    %cst_37 = arith.constant dense<0xFF800000> : vector<2x64xf32>
    %151 = vector.multi_reduction <maximumf>, %150, %cst_37 [2] : vector<2x64x64xf32> to vector<2x64xf32>
    %152 = vector.shape_cast %151 : vector<2x64xf32> to vector<2x64x1xf32>
    %153 = vector.broadcast %152 : vector<2x64x1xf32> to vector<2x64x64xf32>
    %154 = arith.subf %150, %153 : vector<2x64x64xf32>
    %155 = math.exp %154 : vector<2x64x64xf32>
    %cst_38 = arith.constant dense<0.000000e+00> : vector<2x64xf32>
    %156 = vector.multi_reduction <add>, %155, %cst_38 [2] : vector<2x64x64xf32> to vector<2x64xf32>
    %157 = vector.shape_cast %156 : vector<2x64xf32> to vector<2x64x1xf32>
    %158 = tpu.reciprocal %157 {approx = true} : vector<2x64x1xf32> -> vector<2x64x1xf32>
    %159 = vector.broadcast %158 : vector<2x64x1xf32> to vector<2x64x64xf32>
    %160 = arith.mulf %155, %159 : vector<2x64x64xf32>
    %161 = arith.truncf %160 : vector<2x64x64xf32> to vector<2x64x64xbf16>
    "tpu.trace_start"() <{level = 10 : i32, message = "bts,bsd->btd"}> : () -> ()
    %cst_39 = arith.constant dense<0.000000e+00> : vector<2x64x64xf32>
    %162 = tpu.matmul %161, %145, %cst_39 {dimension_numbers = #tpu.dot_dimension_numbers<[2], [1], [1], [2], [0, 0, 0, 1, 1, 2], [0], [0]>} : vector<2x64x64xbf16>, vector<2x64x64xbf16>, vector<2x64x64xf32> -> vector<2x64x64xf32>
    "tpu.trace_stop"() : () -> ()
    %163 = vector.shape_cast %162 : vector<2x64x64xf32> to vector<128x64xf32>
    %164 = arith.truncf %163 : vector<128x64xf32> to vector<128x64xbf16>
    %c0_40 = arith.constant 0 : index
    %c320 = arith.constant 320 : index
    %165 = vector.load %arg6[%c0_40, %c320] : memref<128x384xbf16, #tpu.memory_space<vmem>>, vector<128x64xbf16>
    tpu.vector_store %arg6[%c0_40, %c320], %164 {strides = array<i32>} : memref<128x384xbf16, #tpu.memory_space<vmem>>, vector<128x64xbf16>,
    %c0_41 = arith.constant 0 : index
    %c0_42 = arith.constant 0 : index
    %166 = vector.load %arg6[%c0_41, %c0_42] : memref<128x384xbf16, #tpu.memory_space<vmem>>, vector<128x384xbf16>
    %c0_43 = arith.constant 0 : index
    %c0_44 = arith.constant 0 : index
    %167 = vector.load %arg3[%c0_43, %c0_44] : memref<384x384xbf16, #tpu.memory_space<vmem>>, vector<384x384xbf16>
    %cst_45 = arith.constant dense<0.000000e+00> : vector<128x384xf32>
    %168 = tpu.matmul %166, %167, %cst_45 {dimension_numbers = #tpu.dot_dimension_numbers<[1], [0], [0], [1], [0, 0, 1, 1], [], []>} : vector<128x384xbf16>, vector<384x384xbf16>, vector<128x384xf32> -> vector<128x384xf32>
    %c0_46 = arith.constant 0 : index
    %c0_47 = arith.constant 0 : index
    %169 = vector.load %arg4[%c0_46, %c0_47] : memref<1x384xf32, #tpu.memory_space<vmem>>, vector<1x384xf32>
    %170 = vector.broadcast %169 : vector<1x384xf32> to vector<128x384xf32>
    %171 = arith.addf %168, %170 : vector<128x384xf32>
    %172 = vector.shape_cast %171 : vector<128x384xf32> to vector<2x64x384xf32>
    %c0_48 = arith.constant 0 : index
    %c0_49 = arith.constant 0 : index
    %c0_50 = arith.constant 0 : index
    %173 = vector.load %arg5[%c0_48, %c0_49, %c0_50] : memref<2x64x384xf32, #tpu.memory_space<vmem>>, vector<2x64x384xf32>
    tpu.vector_store %arg5[%c0_48, %c0_49, %c0_50], %172 {strides = array<i32>} : memref<2x64x384xf32, #tpu.memory_space<vmem>>, vector<2x64x384xf32>,
    return
  }
  func.func @transform_0(%arg0: i32) -> (i32, i32, i32) {
    %c0_i32 = arith.constant 0 : i32
    %c0_i32_0 = arith.constant 0 : i32
    %c0_i32_1 = arith.constant 0 : i32
    return %arg0, %c0_i32, %c0_i32_0 : i32, i32, i32
  }
  func.func @transform_1(%arg0: i32) -> (i32, i32) {
    %c0_i32 = arith.constant 0 : i32
    %c0_i32_0 = arith.constant 0 : i32
    %c0_i32_1 = arith.constant 0 : i32
    return %c0_i32, %c0_i32_0 : i32, i32
  }
  func.func @transform_2(%arg0: i32) -> (i32, i32) {
    %c0_i32 = arith.constant 0 : i32
    %c0_i32_0 = arith.constant 0 : i32
    %c0_i32_1 = arith.constant 0 : i32
    return %c0_i32, %c0_i32_0 : i32, i32
  }
  func.func @transform_3(%arg0: i32) -> (i32, i32) {
    %c0_i32 = arith.constant 0 : i32
    %c0_i32_0 = arith.constant 0 : i32
    %c0_i32_1 = arith.constant 0 : i32
    return %c0_i32, %c0_i32_0 : i32, i32
  }
  func.func @transform_4(%arg0: i32) -> (i32, i32, i32) {
    %c0_i32 = arith.constant 0 : i32
    %c0_i32_0 = arith.constant 0 : i32
    %c0_i32_1 = arith.constant 0 : i32
    return %arg0, %c0_i32, %c0_i32_0 : i32, i32, i32
  }
}

</mosaic_0001>

<bundles_post_ra>
// kernel: tpu_custom_call.1
= control target key start
LH: loop header
LB: loop body
LE: loop exit
PB: predicated region body
PF: predicated region fallthrough
CT: control target
= control target key end

     0   :  { %9 = vsyncpa [#allocation4], 0  ;;  %s12243_s0 = inlined_call_operand.hbm [shape: f32[2,64,384], index: 0, kind: input, shape index: {}]   ;;  %s12244_s1 = inlined_call_operand.hbm [shape: bf16[384,1152], index: 1, kind: input, shape index: {}]   ;;  %s12245_s2 = inlined_call_operand.hbm [shape: bf16[384,384], index: 2, kind: input, shape index: {}]   ;;  %s12246_s3 = inlined_call_operand.vmem [shape: f32[1,384], index: 3, kind: input, shape index: {}]   ;;  %s12247_s4 = inlined_call_operand.hbm [shape: f32[2,64,384], index: 4, kind: output, shape index: {}]  }
   0x1   :  { %10 = vsyncpa [#allocation7], 0 }
   0x2   :  { %11 = vsyncpa [#allocation5], 0  ;;  %s9636_s15 = smov [#allocation6]   ;;  %s9542_s19 = scalar_lea.hbm %s12244_s1, 27648 }
   0x3   :  { %s29_s16 = sshll.u32 %s9636_s15, 4  ;;  %p9543_p0 = scmp.ne.s32.totalorder %s12244_s1, %s9542_s19  ;;  %s30_s16 = int_to_ptr.vmem [resolvable:$true] %s29_s16 }
   0x4   :  { %p9546_p1 = scmp.lt.u32.totalorder %s9542_s19, %s12244_s1 }
   0x6   :  { %p9548_p2 = pnand %p9546_p1, %p9543_p0 }
   0x8   :  { %9551 = shalt.err (!%p9548_p2)
}
   0x9   :  { %s9552_s24 = scalar_lea.vmem %s30_s16, 27648  ;;  %p9557_p4 = scmp.lt.s32.totalorder %s30_s16, %s30_s16 }
   0xa   :  { %p9553_p3 = scmp.ne.s32.totalorder %s30_s16, %s9552_s24  ;;  %p9558_p5 = scmp.lt.s32.totalorder %s9552_s24, %s9552_s24 }
   0xc   :  { %p9559_p6 = por %p9558_p5, %p9557_p4 }
   0xe   :  { %p9560_p7 = pnand %p9559_p6, %p9553_p3 }
  0x10   :  { %9563 = shalt.err (!%p9560_p7)
}
  0x11   :  { %s9637_s25 = smov 576   ;;  %s9638_s26 = smov 36  }
  0x12   :  { %35 = dma.hbm_to_vmem [thread:$0]  %s12244_s1, 27648, %s30_s16, [#allocation7], %s9637_s25, %s9637_s25, %s9638_s26  }
  0x13   :  { %s9639_s29 = smov [#allocation3]   ;;  %s9564_s7 = scalar_lea.hbm %s12243_s0, 6144 }
  0x14   :  { %s17_s30 = sshll.u32 %s9639_s29, 4  ;;  %p9565_p8 = scmp.ne.s32.totalorder %s12243_s0, %s9564_s7  ;;  %s18_s30 = int_to_ptr.vmem [resolvable:$true] %s17_s30 }
  0x15   :  { %p9568_p9 = scmp.lt.u32.totalorder %s9564_s7, %s12243_s0 }
  0x17   :  { %p9570_p10 = pnand %p9568_p9, %p9565_p8 }
  0x19   :  { %9573 = shalt.err (!%p9570_p10)
}
  0x1a   :  { %s9574_s12 = scalar_lea.vmem %s18_s30, 6144  ;;  %p9579_p12 = scmp.lt.s32.totalorder %s18_s30, %s18_s30 }
  0x1b   :  { %p9575_p11 = scmp.ne.s32.totalorder %s18_s30, %s9574_s12  ;;  %p9580_p13 = scmp.lt.s32.totalorder %s9574_s12, %s9574_s12 }
  0x1d   :  { %p9581_p0 = por %p9580_p13, %p9579_p12 }
  0x1f   :  { %p9582_p1 = pnand %p9581_p0, %p9575_p11 }
  0x21   :  { %9585 = shalt.err (!%p9582_p1)
}
  0x22   :  { %s9640_s1 = smov 384   ;;  %s9641_s13 = smov 24  }
  0x23   :  { %23 = dma.hbm_to_vmem [thread:$0]  %s12243_s0, 6144, %s18_s30, [#allocation4], %s9640_s1, %s9640_s1, %s9641_s13  }
  0x24   :  { %s9642_s16 = smov [#allocation8]   ;;  %s9586_s20 = scalar_lea.hbm %s12245_s2, 9216 }
  0x25   :  { %s41_s17 = sshll.u32 %s9642_s16, 4  ;;  %p9587_p2 = scmp.ne.s32.totalorder %s12245_s2, %s9586_s20  ;;  %s42_s17 = int_to_ptr.vmem [resolvable:$true] %s41_s17 }
  0x26   :  { %p9590_p3 = scmp.lt.u32.totalorder %s9586_s20, %s12245_s2 }
  0x28   :  { %p9592_p4 = pnand %p9590_p3, %p9587_p2 }
  0x2a   :  { %9595 = shalt.err (!%p9592_p4)
}
  0x2b   :  { %s9596_s25 = scalar_lea.vmem %s42_s17, 9216  ;;  %p9601_p6 = scmp.lt.s32.totalorder %s42_s17, %s42_s17 }
  0x2c   :  { %p9597_p5 = scmp.ne.s32.totalorder %s42_s17, %s9596_s25  ;;  %p9602_p7 = scmp.lt.s32.totalorder %s9596_s25, %s9596_s25 }
  0x2e   :  { %p9603_p8 = por %p9602_p7, %p9601_p6 }
  0x30   :  { %p9604_p9 = pnand %p9603_p8, %p9597_p5 }
  0x32   :  { %9607 = shalt.err (!%p9604_p9)
}
  0x33   :  { %s9643_s0 = smov 192   ;;  %s9644_s26 = smov 12  }
  0x34   :  { %47 = dma.hbm_to_vmem [thread:$0]  %s12245_s2, 9216, %s42_s17, [#allocation7], %s9643_s0, %s9643_s0, %s9644_s26  }
  0x35   :  { %9630 = dma.done.wait [#allocation4], 6144  }
  0x36   :  { %9631 = vsyncadd [#allocation4], 4294961152 }
  0x37   :  { %9632 = dma.done.wait [#allocation7], 36864  }
  0x38   :  { %9633 = vsyncadd [#allocation7], 4294930432  ;;  %v12248_v0 = vmov 0   ;;  %v8750_v1 = vld [vmem:[#allocation6 + $0x4] ss:$36 sps:$4 sm:$0xff]   ;;  %v62_v34 = vld [vmem:[#allocation3 + $0x10] sm:$0xff] }
  0x39   :  { %1621 = vmatprep.mubr.bf16.mxu1 %v12248_v0  ;;  %v8752_v2 = vld [vmem:[#allocation6 + $0x484] ss:$36 sps:$4 sm:$0xff]   ;;  %1476 = vmatprep.subr.bf16.mxu0 %v8750_v1  ;;  %v8756_v5 = vld [vmem:[#allocation6 + $0x4c] ss:$36 sps:$4 sm:$0xff]   ;;  %v8762_v9 = vld [vmem:[#allocation6 + $0x94] ss:$36 sps:$4 sm:$0xff]  }
  0x3a   :  { %v8754_v3 = vld [vmem:[#allocation6] ss:$36 sps:$4 sm:$0xff]   ;;  %1589 = vmatprep.subr.bf16.mxu1 %v8752_v2  ;;  %v8758_v6 = vld [vmem:[#allocation6 + $0x4cc] ss:$36 sps:$4 sm:$0xff]   ;;  %v8764_v10 = vld [vmem:[#allocation6 + $0x514] ss:$36 sps:$4 sm:$0xff]  }
  0x3b   :  { %v8755_v4 = vld [vmem:[#allocation6 + $0x480] ss:$36 sps:$4 sm:$0xff]   ;;  %1477 = vmatpush1.bf16.msra.mxu0 %v8754_v3  ;;  %v8760_v7 = vld [vmem:[#allocation6 + $0x48] ss:$36 sps:$4 sm:$0xff]   ;;  %v8766_v11 = vld [vmem:[#allocation6 + $0x90] ss:$36 sps:$4 sm:$0xff]  }
  0x3c   :  { %1590 = vmatpush1.bf16.msra.mxu1 %v8755_v4  ;;  %1478 = vmatprep.subr.bf16.mxu0 %v8756_v5  ;;  %v8761_v8 = vld [vmem:[#allocation6 + $0x4c8] ss:$36 sps:$4 sm:$0xff]   ;;  %v8767_v12 = vld [vmem:[#allocation6 + $0x510] ss:$36 sps:$4 sm:$0xff]   ;;  %v8768_v13 = vld [vmem:[#allocation6 + $0xdc] ss:$36 sps:$4 sm:$0xff]  }
  0x3d   :  { %1591 = vmatprep.subr.bf16.mxu1 %v8758_v6  ;;  %v8770_v14 = vld [vmem:[#allocation6 + $0x55c] ss:$36 sps:$4 sm:$0xff]   ;;  %v8774_v17 = vld [vmem:[#allocation6 + $0x124] ss:$36 sps:$4 sm:$0xff]   ;;  %v8780_v21 = vld [vmem:[#allocation6 + $0x16c] ss:$36 sps:$4 sm:$0xff]  }
  0x3e   :  { %v8772_v15 = vld [vmem:[#allocation6 + $0xd8] ss:$36 sps:$4 sm:$0xff]   ;;  %v8776_v18 = vld [vmem:[#allocation6 + $0x5a4] ss:$36 sps:$4 sm:$0xff]   ;;  %v8782_v22 = vld [vmem:[#allocation6 + $0x5ec] ss:$36 sps:$4 sm:$0xff]  }
  0x3f   :  { %1479 = vmatpush1.bf16.msra.mxu0 %v8760_v7  ;;  %v8773_v16 = vld [vmem:[#allocation6 + $0x558] ss:$36 sps:$4 sm:$0xff]   ;;  %v8778_v19 = vld [vmem:[#allocation6 + $0x120] ss:$36 sps:$4 sm:$0xff]   ;;  %v8784_v23 = vld [vmem:[#allocation6 + $0x168] ss:$36 sps:$4 sm:$0xff]  }
  0x40   :  { %1592 = vmatpush1.bf16.msra.mxu1 %v8761_v8  ;;  %1480 = vmatprep.subr.bf16.mxu0 %v8762_v9  ;;  %v8779_v20 = vld [vmem:[#allocation6 + $0x5a0] ss:$36 sps:$4 sm:$0xff]   ;;  %v8785_v24 = vld [vmem:[#allocation6 + $0x5e8] ss:$36 sps:$4 sm:$0xff]   ;;  %v8786_v25 = vld [vmem:[#allocation6 + $0x1b4] ss:$36 sps:$4 sm:$0xff]  }
  0x41   :  { %1593 = vmatprep.subr.bf16.mxu1 %v8764_v10  ;;  %v8788_v26 = vld [vmem:[#allocation6 + $0x634] ss:$36 sps:$4 sm:$0xff]   ;;  %v8792_v29 = vld [vmem:[#allocation6 + $0x1fc] ss:$36 sps:$4 sm:$0xff]   ;;  %v8798_v33 = vld [vmem:[#allocation6 + $0x244] ss:$36 sps:$4 sm:$0xff]  }
  0x42   :  { %v8790_v27 = vld [vmem:[#allocation6 + $0x1b0] ss:$36 sps:$4 sm:$0xff]   ;;  %v8794_v30 = vld [vmem:[#allocation6 + $0x67c] ss:$36 sps:$4 sm:$0xff]   ;;  %v65_v35 = vld [vmem:[#allocation3 + $0x28] sm:$0xff]  ;;  %vm2617_vm0 = vcmask 523264  }
  0x43   :  { %1481 = vmatpush1.bf16.msra.mxu0 %v8766_v11  ;;  %v8791_v28 = vld [vmem:[#allocation6 + $0x630] ss:$36 sps:$4 sm:$0xff]   ;;  %v8796_v31 = vld [vmem:[#allocation6 + $0x1f8] ss:$36 sps:$4 sm:$0xff]   ;;  %v9713_v37 = vpack.c.bf16 %v65_v35, %v62_v34  ;;  %v8800_v38 = vld [vmem:[#allocation6 + $0x8] ss:$36 sps:$4 sm:$0xff]  }
  0x44   :  { %1594 = vmatpush1.bf16.msra.mxu1 %v8767_v12  ;;  %1482 = vmatprep.subr.bf16.mxu0 %v8768_v13  ;;  %v8797_v32 = vld [vmem:[#allocation6 + $0x678] ss:$36 sps:$4 sm:$0xff]   ;;  %v8802_v36 = vld [vmem:[#allocation6 + $0xc] ss:$36 sps:$4 sm:$0xff]   ;;  %v8803_v39 = vld [vmem:[#allocation6 + $0x240] ss:$36 sps:$4 sm:$0xff]  }
  0x45   :  { %1595 = vmatprep.subr.bf16.mxu1 %v8770_v14  ;;  %v8804_v40 = vld [vmem:[#allocation6 + $0x28c] ss:$36 sps:$4 sm:$0xff]   ;;  %v8808_v41 = vld [vmem:[#allocation6 + $0x54] ss:$36 sps:$4 sm:$0xff]   ;;  %v68_v45 = vld [vmem:[#allocation3 + $0x40] sm:$0xff]  ;;  %s9646_s2 = smov 64  }
  0x46   :  { %v8806_v42 = vld [vmem:[#allocation6 + $0x50] ss:$36 sps:$4 sm:$0xff]   ;;  %v8809_v43 = vld [vmem:[#allocation6 + $0x288] ss:$36 sps:$4 sm:$0xff]   ;;  %v71_v46 = vld [vmem:[#allocation3 + $0x58] sm:$0xff]  ;;  %vm3834_vm9 = vcmask 1048064  }
  0x47   :  { %1483 = vmatpush1.bf16.msra.mxu0 %v8772_v15  ;;  %v8810_v44 = vld [vmem:[#allocation6 + $0x2d4] ss:$36 sps:$4 sm:$0xff]   ;;  %v8814_v47 = vld [vmem:[#allocation6 + $0x9c] ss:$36 sps:$4 sm:$0xff]   ;;  %v9717_v48 = vpack.c.bf16 %v71_v46, %v68_v45  ;;  %v8820_v52 = vld [vmem:[#allocation6 + $0xe4] ss:$36 sps:$4 sm:$0xff]  }
  0x48   :  { %1596 = vmatpush1.bf16.msra.mxu1 %v8773_v16  ;;  %1484 = vmatprep.subr.bf16.mxu0 %v8774_v17  ;;  %v8812_v49 = vld [vmem:[#allocation6 + $0x98] ss:$36 sps:$4 sm:$0xff]   ;;  %v8815_v50 = vld [vmem:[#allocation6 + $0x2d0] ss:$36 sps:$4 sm:$0xff]   ;;  %v8818_v53 = vld [vmem:[#allocation6 + $0xe0] ss:$36 sps:$4 sm:$0xff]  }
  0x49   :  { %1597 = vmatprep.subr.bf16.mxu1 %v8776_v18  ;;  %v8816_v51 = vld [vmem:[#allocation6 + $0x31c] ss:$36 sps:$4 sm:$0xff]   ;;  %v8822_v55 = vld [vmem:[#allocation6 + $0x364] ss:$36 sps:$4 sm:$0xff]   ;;  %v74_v56 = vld [vmem:[#allocation3 + $0x70] sm:$0xff] }
  0x4a   :  { %v8821_v54 = vld [vmem:[#allocation6 + $0x318] ss:$36 sps:$4 sm:$0xff]   ;;  %v77_v57 = vld [vmem:[#allocation3 + $0x88] sm:$0xff]  ;;  %v64_v60 = vld [vmem:[#allocation3 + $0x20] sm:$0xff] }
  0x4b   :  { %1485 = vmatpush1.bf16.msra.mxu0 %v8778_v19  ;;  %v8826_v58 = vld [vmem:[#allocation6 + $0x12c] ss:$36 sps:$4 sm:$0xff]   ;;  %v9723_v62 = vpack.c.bf16 %v77_v57, %v74_v56  ;;  %v8827_v1 = vld [vmem:[#allocation6 + $0x360] ss:$36 sps:$4 sm:$0xff]   ;;  %v8832_v3 = vld [vmem:[#allocation6 + $0x174] ss:$36 sps:$4 sm:$0xff]  }
  0x4c   :  { %1598 = vmatpush1.bf16.msra.mxu1 %v8779_v20  ;;  %1486 = vmatprep.subr.bf16.mxu0 %v8780_v21  ;;  %v61_v59 = vld [vmem:[#allocation3 + $0x8] sm:$0xff]  ;;  %v8830_v4 = vld [vmem:[#allocation6 + $0x170] ss:$36 sps:$4 sm:$0xff]   ;;  %v80_v6 = vld [vmem:[#allocation3 + $0xa0] sm:$0xff] }
  0x4d   :  { %1599 = vmatprep.subr.bf16.mxu1 %v8782_v22  ;;  %v9721_v61 = vpack.c.bf16 %v64_v60, %v61_v59  ;;  %v8824_v63 = vld [vmem:[#allocation6 + $0x128] ss:$36 sps:$4 sm:$0xff]   ;;  %v83_v7 = vld [vmem:[#allocation3 + $0xb8] sm:$0xff]  ;;  %v8839_v12 = vld [vmem:[#allocation6 + $0x3f0] ss:$36 sps:$4 sm:$0xff]  }
  0x4e   :  { %v8828_v2 = vld [vmem:[#allocation6 + $0x3ac] ss:$36 sps:$4 sm:$0xff]   ;;  %v8834_v8 = vld [vmem:[#allocation6 + $0x3f4] ss:$36 sps:$4 sm:$0xff]   ;;  %v8838_v9 = vld [vmem:[#allocation6 + $0x1bc] ss:$36 sps:$4 sm:$0xff]   ;;  %v9728_v10 = vpack.c.bf16 %v83_v7, %v80_v6 }
  0x4f   :  { %1487 = vmatpush1.bf16.msra.mxu0 %v8784_v23  ;;  %1508 = vmatprep.mubr.bf16.mxu0 %v9721_v61  ;;  %v8833_v5 = vld [vmem:[#allocation6 + $0x3a8] ss:$36 sps:$4 sm:$0xff]   ;;  %v8836_v11 = vld [vmem:[#allocation6 + $0x1b8] ss:$36 sps:$4 sm:$0xff]   ;;  %v8842_v15 = vld [vmem:[#allocation6 + $0x200] ss:$36 sps:$4 sm:$0xff]  }
  0x50   :  { %1600 = vmatpush1.bf16.msra.mxu1 %v8785_v24  ;;  %1488 = vmatprep.subr.bf16.mxu0 %v8786_v25  ;;  %v8840_v13 = vld [vmem:[#allocation6 + $0x43c] ss:$36 sps:$4 sm:$0xff]   ;;  %v8844_v14 = vld [vmem:[#allocation6 + $0x204] ss:$36 sps:$4 sm:$0xff]   ;;  %v86_v19 = vld [vmem:[#allocation3 + $0xd0] sm:$0xff] }
  0x51   :  { %1601 = vmatprep.subr.bf16.mxu1 %v8788_v26  ;;  %v8845_v16 = vld [vmem:[#allocation6 + $0x438] ss:$36 sps:$4 sm:$0xff]   ;;  %v60_v17 = vld [vmem:[#allocation3] sm:$0xff]  ;;  %v89_v20 = vld [vmem:[#allocation3 + $0xe8] sm:$0xff] }
  0x52   :  { %v63_v18 = vld [vmem:[#allocation3 + $0x18] sm:$0xff]  ;;  %v8848_v21 = vld [vmem:[#allocation6 + $0x24c] ss:$36 sps:$4 sm:$0xff]   ;;  %v9734_v25 = vpack.c.bf16 %v89_v20, %v86_v19  ;;  %v76_v46 = vld [vmem:[#allocation3 + $0x80] sm:$0xff] }
  0x53   :  { %1489 = vmatpush1.bf16.msra.mxu0 %v8790_v27  ;;  %v8851_v22 = vld [vmem:[#allocation6 + $0x14] ss:$36 sps:$4 sm:$0xff]   ;;  %v9732_v24 = vpack.c.bf16 %v63_v18, %v60_v17  ;;  %v8846_v27 = vld [vmem:[#allocation6 + $0x248] ss:$36 sps:$4 sm:$0xff]   ;;  %v8885_v19 = vld [vmem:[#allocation6 + $0x1c0] ss:$36 sps:$4 sm:$0xff]  }
  0x54   :  { %1602 = vmatpush1.bf16.msra.mxu1 %v8791_v28  ;;  %1490 = vmatprep.subr.bf16.mxu0 %v8792_v29  ;;  %v67_v23 = vld [vmem:[#allocation3 + $0x38] sm:$0xff]  ;;  %v70_v26 = vld [vmem:[#allocation3 + $0x50] sm:$0xff]  ;;  %v69_v35 = vld [vmem:[#allocation3 + $0x48] sm:$0xff] }
  0x55   :  { %1603 = vmatprep.subr.bf16.mxu1 %v8794_v30  ;;  %v8849_v28 = vld [vmem:[#allocation6 + $0x10] ss:$36 sps:$4 sm:$0xff]   ;;  %v8857_v30 = vld [vmem:[#allocation6 + $0x5c] ss:$36 sps:$4 sm:$0xff]   ;;  %v73_v45 = vld [vmem:[#allocation3 + $0x68] sm:$0xff] }
  0x56   :  { %v8854_v29 = vld [vmem:[#allocation6 + $0x294] ss:$36 sps:$4 sm:$0xff]   ;;  %v101_v56 = vld [vmem:[#allocation3 + $0x148] sm:$0xff] }
  0x57   :  { %1491 = vmatpush1.bf16.msra.mxu0 %v8796_v31  ;;  %v8852_v31 = vld [vmem:[#allocation6 + $0x290] ss:$36 sps:$4 sm:$0xff]   ;;  %v8870_v59 = vld [vmem:[#allocation6 + $0x368] ss:$36 sps:$4 sm:$0xff]   ;;  %v8879_v7 = vld [vmem:[#allocation6 + $0x178] ss:$36 sps:$4 sm:$0xff]  }
  0x58   :  { %1604 = vmatpush1.bf16.msra.mxu1 %v8797_v32  ;;  %1492 = vmatprep.subr.bf16.mxu0 %v8798_v33  ;;  %v9736_v32 = vpack.c.bf16 %v70_v26, %v67_v23  ;;  %v8855_v33 = vld [vmem:[#allocation6 + $0x58] ss:$36 sps:$4 sm:$0xff]   ;;  %v66_v34 = vld [vmem:[#allocation3 + $0x30] sm:$0xff]  ;;  %v85_v20 = vld [vmem:[#allocation3 + $0xc8] sm:$0xff] }
  0x59   :  { %1702 = vmatprep.subr.bf16.mxu1 %v8802_v36  ;;  %v92_v36 = vld [vmem:[#allocation3 + $0x100] sm:$0xff]  ;;  %v8872_v57 = vld [vmem:[#allocation6 + $0x36c] ss:$36 sps:$4 sm:$0xff]  }
  0x5a   :  { %v8876_v6 = vld [vmem:[#allocation6 + $0x3b0] ss:$36 sps:$4 sm:$0xff]   ;;  %v8888_v26 = vld [vmem:[#allocation6 + $0x440] ss:$36 sps:$4 sm:$0xff]  }
  0x5b   :  { %1622 = vmatmul.mubr.bf16.vlgmr.msra.gmra.mrb[0].mxu1 %v9713_v37  ;;  %1493 = vmatpush1.bf16.msra.mxu0 %v8803_v39  ;;  %v8860_v39 = vld [vmem:[#allocation6 + $0x2dc] ss:$36 sps:$4 sm:$0xff]   ;;  %v8893_v23 = vld [vmem:[#allocation6 + $0x20c] ss:$36 sps:$4 sm:$0xff]  }
  0x5c   :  { %1703 = vmatpush1.bf16.msra.mxu1 %v8800_v38  ;;  %1494 = vmatprep.subr.bf16.mxu0 %v8804_v40  ;;  %v95_v38 = vld [vmem:[#allocation3 + $0x118] sm:$0xff]  ;;  %v8863_v40 = vld [vmem:[#allocation6 + $0xa4] ss:$36 sps:$4 sm:$0xff]  }
  0x5d   :  { %1704 = vmatprep.subr.bf16.mxu1 %v8808_v41  ;;  %1631 = vmatprep.mubr.bf16.mxu1 %v12248_v0  ;;  %v8858_v41 = vld [vmem:[#allocation6 + $0x2d8] ss:$36 sps:$4 sm:$0xff]  }
  0x5f   :  { %1495 = vmatpush1.bf16.msra.mxu0 %v8809_v43  ;;  %v9742_v43 = vpack.c.bf16 %v69_v35, %v66_v34  ;;  %v94_v34 = vld [vmem:[#allocation3 + $0x110] sm:$0xff] }
  0x60   :  { %1705 = vmatpush1.bf16.msra.mxu1 %v8806_v42  ;;  %1496 = vmatprep.subr.bf16.mxu0 %v8810_v44  ;;  %v8861_v42 = vld [vmem:[#allocation6 + $0xa0] ss:$36 sps:$4 sm:$0xff]   ;;  %v9744_v44 = vpack.c.bf16 %v95_v38, %v92_v36  ;;  %v8920_v35 = vld [vmem:[#allocation6 + $0x48c] ss:$36 sps:$4 sm:$0xff]  }
  0x61   :  { %1706 = vmatprep.subr.bf16.mxu1 %v8814_v47  ;;  %v8866_v47 = vld [vmem:[#allocation6 + $0x324] ss:$36 sps:$4 sm:$0xff]   ;;  %v8894_v38 = vld [vmem:[#allocation6 + $0x250] ss:$36 sps:$4 sm:$0xff]  }
  0x63   :  { %1632 = vmatmul.mubr.bf16.gmra.mrb[4].mxu1 %v9717_v48  ;;  %1497 = vmatpush1.bf16.msra.mxu0 %v8815_v50  ;;  %v8864_v50 = vld [vmem:[#allocation6 + $0x320] ss:$36 sps:$4 sm:$0xff]  }
  0x64   :  { %1707 = vmatpush1.bf16.msra.mxu1 %v8812_v49  ;;  %1498 = vmatprep.subr.bf16.mxu0 %v8816_v51  ;;  %v8869_v49 = vld [vmem:[#allocation6 + $0xec] ss:$36 sps:$4 sm:$0xff]  }
  0x65   :  { %1708 = vmatprep.subr.bf16.mxu1 %v8820_v52  ;;  %1641 = vmatprep.mubr.bf16.mxu1 %v12248_v0  ;;  %v8867_v51 = vld [vmem:[#allocation6 + $0xe8] ss:$36 sps:$4 sm:$0xff]   ;;  %v9746_v52 = vpack.c.bf16 %v76_v46, %v73_v45 }
  0x66   :  { %v93_v45 = vld [vmem:[#allocation3 + $0x108] sm:$0xff] }
  0x67   :  { %1499 = vmatpush1.bf16.msra.mxu0 %v8821_v54  ;;  %v75_v54 = vld [vmem:[#allocation3 + $0x78] sm:$0xff]  ;;  %v8918_v46 = vld [vmem:[#allocation6 + $0x488] ss:$36 sps:$4 sm:$0xff]  }
  0x68   :  { %1709 = vmatpush1.bf16.msra.mxu1 %v8818_v53  ;;  %1500 = vmatprep.subr.bf16.mxu0 %v8822_v55  ;;  %v72_v53 = vld [vmem:[#allocation3 + $0x60] sm:$0xff]  ;;  %v98_v55 = vld [vmem:[#allocation3 + $0x130] sm:$0xff] }
  0x69   :  { %1710 = vmatprep.subr.bf16.mxu1 %v8826_v58  ;;  %v8875_v58 = vld [vmem:[#allocation6 + $0x134] ss:$36 sps:$4 sm:$0xff]   ;;  %v9752_v60 = vpack.c.bf16 %v75_v54, %v72_v53 }
  0x6a   :  { %v8921_v53 = vld [vmem:[#allocation6 + $0x4d0] ss:$36 sps:$4 sm:$0xff]  }
  0x6b   :  { %1642 = vmatmul.mubr.bf16.gmra.mrb[8].mxu1 %v9723_v62  ;;  %1501 = vmatpush1.bf16.msra.mxu0 %v8827_v1  ;;  %v8873_v1 = vld [vmem:[#allocation6 + $0x130] ss:$36 sps:$4 sm:$0xff]  }
  0x6c   :  { %1711 = vmatpush1.bf16.msra.mxu1 %v8824_v63  ;;  %1502 = vmatprep.subr.bf16.mxu0 %v8828_v2  ;;  %v9754_v63 = vpack.c.bf16 %v101_v56, %v98_v55  ;;  %v79_v2 = vld [vmem:[#allocation3 + $0x98] sm:$0xff]  ;;  %v8900_v55 = vld [vmem:[#allocation6 + $0x2e0] ss:$36 sps:$4 sm:$0xff]  }
  0x6d   :  { %1712 = vmatprep.subr.bf16.mxu1 %v8832_v3  ;;  %1651 = vmatprep.mubr.bf16.mxu1 %v12248_v0  ;;  %v82_v3 = vld [vmem:[#allocation3 + $0xb0] sm:$0xff] }
  0x6f   :  { %1503 = vmatpush1.bf16.msra.mxu0 %v8833_v5  ;;  %v8881_v5 = vld [vmem:[#allocation6 + $0x17c] ss:$36 sps:$4 sm:$0xff]  }
  0x70   :  { %1713 = vmatpush1.bf16.msra.mxu1 %v8830_v4  ;;  %1504 = vmatprep.subr.bf16.mxu0 %v8834_v8  ;;  %v8878_v4 = vld [vmem:[#allocation6 + $0x3b4] ss:$36 sps:$4 sm:$0xff]   ;;  %v9756_v8 = vpack.c.bf16 %v82_v3, %v79_v2  ;;  %v8926_v2 = vld [vmem:[#allocation6 + $0x51c] ss:$36 sps:$4 sm:$0xff]  }
  0x71   :  { %1714 = vmatprep.subr.bf16.mxu1 %v8838_v9  ;;  %v78_v9 = vld [vmem:[#allocation3 + $0x90] sm:$0xff] }
  0x72   :  { %v8908_v3 = vld [vmem:[#allocation6 + $0x374] ss:$36 sps:$4 sm:$0xff]  }
  0x73   :  { %1652 = vmatmul.mubr.bf16.gmra.mrb[12].mxu1 %v9728_v10  ;;  %1505 = vmatpush1.bf16.msra.mxu0 %v8839_v12  ;;  %v104_v12 = vld [vmem:[#allocation3 + $0x160] sm:$0xff] }
  0x74   :  { %1715 = vmatpush1.bf16.msra.mxu1 %v8836_v11  ;;  %1506 = vmatprep.subr.bf16.mxu0 %v8840_v13  ;;  %v81_v11 = vld [vmem:[#allocation3 + $0xa8] sm:$0xff]  ;;  %v107_v13 = vld [vmem:[#allocation3 + $0x178] sm:$0xff] }
  0x75   :  { %1716 = vmatprep.subr.bf16.mxu1 %v8844_v14  ;;  %1661 = vmatprep.mubr.bf16.mxu1 %v12248_v0  ;;  %v8884_v14 = vld [vmem:[#allocation6 + $0x3fc] ss:$36 sps:$4 sm:$0xff]   ;;  %v9762_v17 = vpack.c.bf16 %v81_v11, %v78_v9  ;;  %v9764_v18 = vpack.c.bf16 %v107_v13, %v104_v12  ;;  %v8906_v11 = vld [vmem:[#allocation6 + $0x370] ss:$36 sps:$4 sm:$0xff]  }
  0x76   :  { %v8911_v13 = vld [vmem:[#allocation6 + $0x3bc] ss:$36 sps:$4 sm:$0xff]  }
  0x77   :  { %1507 = vmatpush1.bf16.msra.mxu0 %v8845_v16  ;;  %v8882_v16 = vld [vmem:[#allocation6 + $0x3f8] ss:$36 sps:$4 sm:$0xff]  }
  0x78   :  { %1717 = vmatpush1.bf16.msra.mxu1 %v8842_v15  ;;  %1928 = vmatprep.subr.bf16.mxu0 %v8851_v22  ;;  %v8887_v15 = vld [vmem:[#allocation6 + $0x1c4] ss:$36 sps:$4 sm:$0xff]  }
  0x79   :  { %1718 = vmatprep.subr.bf16.mxu1 %v8848_v21  ;;  %v88_v21 = vld [vmem:[#allocation3 + $0xe0] sm:$0xff] }
  0x7a   :  { %1509 = vmatmul.mubr.bf16.vlgmr.msra.gmra.mrb[0].mxu0 %v9732_v24  ;;  %v8890_v22 = vld [vmem:[#allocation6 + $0x444] ss:$36 sps:$4 sm:$0xff]  }
  0x7b   :  { %1662 = vmatmul.mubr.bf16.gmra.mrb[16].mxu1 %v9734_v25  ;;  %1929 = vmatpush1.bf16.msra.mxu0 %v8849_v28  ;;  %v9766_v28 = vpack.c.bf16 %v88_v21, %v85_v20  ;;  %v105_v20 = vld [vmem:[#allocation3 + $0x168] sm:$0xff] }
  0x7c   :  { %1719 = vmatpush1.bf16.msra.mxu1 %v8846_v27  ;;  %1930 = vmatprep.subr.bf16.mxu0 %v8857_v30  ;;  %v8891_v27 = vld [vmem:[#allocation6 + $0x208] ss:$36 sps:$4 sm:$0xff]   ;;  %v87_v30 = vld [vmem:[#allocation3 + $0xd8] sm:$0xff] }
  0x7d   :  { %1720 = vmatprep.subr.bf16.mxu1 %v8854_v29  ;;  %1518 = vmatprep.mubr.bf16.mxu0 %v9736_v32  ;;  %v84_v29 = vld [vmem:[#allocation3 + $0xc0] sm:$0xff] }
  0x7e   :  { %1671 = vmatprep.mubr.bf16.mxu1 %v12248_v0  ;;  %v9772_v36 = vpack.c.bf16 %v87_v30, %v84_v29  ;;  %v8914_v21 = vld [vmem:[#allocation6 + $0x404] ss:$36 sps:$4 sm:$0xff]   ;;  %v8935_v29 = vld [vmem:[#allocation6 + $0x5f4] ss:$36 sps:$4 sm:$0xff]  }
  0x7f   :  { %1931 = vmatpush1.bf16.msra.mxu0 %v8855_v33  ;;  %v91_v33 = vld [vmem:[#allocation3 + $0xf8] sm:$0xff]  ;;  %v8915_v30 = vld [vmem:[#allocation6 + $0x448] ss:$36 sps:$4 sm:$0xff]  }
  0x80   :  { %1721 = vmatpush1.bf16.msra.mxu1 %v8852_v31  ;;  %1932 = vmatprep.subr.bf16.mxu0 %v8863_v40  ;;  %v8896_v31 = vld [vmem:[#allocation6 + $0x254] ss:$36 sps:$4 sm:$0xff]   ;;  %v8899_v40 = vld [vmem:[#allocation6 + $0x29c] ss:$36 sps:$4 sm:$0xff]  }
  0x81   :  { %1722 = vmatprep.subr.bf16.mxu1 %v8860_v39  ;;  %v9774_v39 = vpack.c.bf16 %v94_v34, %v91_v33  ;;  %v8938_v33 = vld [vmem:[#allocation6 + $0x63c] ss:$36 sps:$4 sm:$0xff]   ;;  %v8947_v34 = vld [vmem:[#allocation6 + $0x494] ss:$36 sps:$4 sm:$0xff]  }
  0x82   :  { %1519 = vmatmul.mubr.bf16.gmra.mrb[4].mxu0 %v9742_v43 }
  0x83   :  { %1672 = vmatmul.mubr.bf16.gmra.mrb[20].mxu1 %v9744_v44  ;;  %1933 = vmatpush1.bf16.msra.mxu0 %v8861_v42  ;;  %v90_v42 = vld [vmem:[#allocation3 + $0xf0] sm:$0xff] }
  0x84   :  { %1723 = vmatpush1.bf16.msra.mxu1 %v8858_v41  ;;  %1934 = vmatprep.subr.bf16.mxu0 %v8869_v49  ;;  %v8897_v41 = vld [vmem:[#allocation6 + $0x298] ss:$36 sps:$4 sm:$0xff]   ;;  %v9780_v54 = vpack.c.bf16 %v93_v45, %v90_v42  ;;  %v8939_v42 = vld [vmem:[#allocation6 + $0x680] ss:$36 sps:$4 sm:$0xff]  }
  0x85   :  { %1724 = vmatprep.subr.bf16.mxu1 %v8866_v47  ;;  %1528 = vmatprep.mubr.bf16.mxu0 %v9746_v52  ;;  %v8902_v47 = vld [vmem:[#allocation6 + $0x2e4] ss:$36 sps:$4 sm:$0xff]   ;;  %v8923_v49 = vld [vmem:[#allocation6 + $0x4d4] ss:$36 sps:$4 sm:$0xff]   ;;  %v8944_v45 = vld [vmem:[#allocation6 + $0x1c] ss:$36 sps:$4 sm:$0xff]  }
  0x86   :  { %1681 = vmatprep.mubr.bf16.mxu1 %v12248_v0 }
  0x87   :  { %1935 = vmatpush1.bf16.msra.mxu0 %v8867_v51  ;;  %v100_v51 = vld [vmem:[#allocation3 + $0x140] sm:$0xff] }
  0x88   :  { %1725 = vmatpush1.bf16.msra.mxu1 %v8864_v50  ;;  %1936 = vmatprep.subr.bf16.mxu0 %v8875_v58  ;;  %v97_v50 = vld [vmem:[#allocation3 + $0x128] sm:$0xff] }
  0x89   :  { %1726 = vmatprep.subr.bf16.mxu1 %v8872_v57  ;;  %v9782_v56 = vpack.c.bf16 %v100_v51, %v97_v50  ;;  %v8905_v57 = vld [vmem:[#allocation6 + $0x32c] ss:$36 sps:$4 sm:$0xff]  }
  0x8a   :  { %1529 = vmatmul.mubr.bf16.gmra.mrb[8].mxu0 %v9752_v60  ;;  %v8903_v58 = vld [vmem:[#allocation6 + $0x328] ss:$36 sps:$4 sm:$0xff]  }
  0x8b   :  { %1682 = vmatmul.mubr.bf16.gmra.mrb[24].mxu1 %v9754_v63  ;;  %1937 = vmatpush1.bf16.msra.mxu0 %v8873_v1  ;;  %v99_v1 = vld [vmem:[#allocation3 + $0x138] sm:$0xff]  ;;  %v8965_v50 = vld [vmem:[#allocation6 + $0x56c] ss:$36 sps:$4 sm:$0xff]  }
  0x8c   :  { %1727 = vmatpush1.bf16.msra.mxu1 %v8870_v59  ;;  %1938 = vmatprep.subr.bf16.mxu0 %v8881_v5  ;;  %v96_v59 = vld [vmem:[#allocation3 + $0x120] sm:$0xff]  ;;  %v8924_v5 = vld [vmem:[#allocation6 + $0x518] ss:$36 sps:$4 sm:$0xff]   ;;  %v8963_v51 = vld [vmem:[#allocation6 + $0x568] ss:$36 sps:$4 sm:$0xff]  }
  0x8d   :  { %1728 = vmatprep.subr.bf16.mxu1 %v8878_v4  ;;  %1538 = vmatprep.mubr.bf16.mxu0 %v9756_v8  ;;  %v103_v4 = vld [vmem:[#allocation3 + $0x158] sm:$0xff]  ;;  %v9788_v9 = vpack.c.bf16 %v99_v1, %v96_v59  ;;  %v8983_v59 = vld [vmem:[#allocation6 + $0x644] ss:$36 sps:$4 sm:$0xff]  }
  0x8e   :  { %1691 = vmatprep.mubr.bf16.mxu1 %v12248_v0  ;;  %v8981_v1 = vld [vmem:[#allocation6 + $0x640] ss:$36 sps:$4 sm:$0xff]  }
  0x8f   :  { %1939 = vmatpush1.bf16.msra.mxu0 %v8879_v7  ;;  %v106_v7 = vld [vmem:[#allocation3 + $0x170] sm:$0xff] }
  0x90   :  { %1729 = vmatpush1.bf16.msra.mxu1 %v8876_v6  ;;  %1940 = vmatprep.subr.bf16.mxu0 %v8887_v15  ;;  %v8929_v6 = vld [vmem:[#allocation6 + $0x564] ss:$36 sps:$4 sm:$0xff]   ;;  %v9790_v12 = vpack.c.bf16 %v106_v7, %v103_v4 }
  0x91   :  { %1730 = vmatprep.subr.bf16.mxu1 %v8884_v14  ;;  %v8909_v14 = vld [vmem:[#allocation6 + $0x3b8] ss:$36 sps:$4 sm:$0xff]   ;;  %v8927_v15 = vld [vmem:[#allocation6 + $0x560] ss:$36 sps:$4 sm:$0xff]  }
  0x92   :  { %1539 = vmatmul.mubr.bf16.gmra.mrb[12].mxu0 %v9762_v17  ;;  %v9014_v4 = vld [vmem:[#allocation6 + $0x260] ss:$36 sps:$4 sm:$0xff]  }
  0x93   :  { %1692 = vmatmul.mubr.bf16.gmra.mrb[28].mxu1 %v9764_v18  ;;  %1941 = vmatpush1.bf16.msra.mxu0 %v8885_v19  ;;  %v8932_v19 = vld [vmem:[#allocation6 + $0x5ac] ss:$36 sps:$4 sm:$0xff]   ;;  %v8948_v7 = vld [vmem:[#allocation6 + $0x60] ss:$36 sps:$4 sm:$0xff]  }
  0x94   :  { %1731 = vmatpush1.bf16.msra.mxu1 %v8882_v16  ;;  %1942 = vmatprep.subr.bf16.mxu0 %v8893_v23  ;;  %v102_v16 = vld [vmem:[#allocation3 + $0x150] sm:$0xff] }
  0x95   :  { %1732 = vmatprep.subr.bf16.mxu1 %v8890_v22  ;;  %1548 = vmatprep.mubr.bf16.mxu0 %v9766_v28  ;;  %v8930_v22 = vld [vmem:[#allocation6 + $0x5a8] ss:$36 sps:$4 sm:$0xff]   ;;  %v9796_v23 = vpack.c.bf16 %v105_v20, %v102_v16  ;;  %v8968_v16 = vld [vmem:[#allocation6 + $0x13c] ss:$36 sps:$4 sm:$0xff]  }
  0x96   :  { %1734 = vmatprep.mubr.bf16.mxu1 %v9721_v61  ;;  %v8974_v20 = vld [vmem:[#allocation6 + $0x184] ss:$36 sps:$4 sm:$0xff]  }
  0x97   :  { %1943 = vmatpush1.bf16.msra.mxu0 %v8891_v27  ;;  %v8917_v27 = vld [vmem:[#allocation6 + $0x44c] ss:$36 sps:$4 sm:$0xff]  }
  0x98   :  { %1733 = vmatpush1.bf16.msra.mxu1 %v8888_v26  ;;  %1944 = vmatprep.subr.bf16.mxu0 %v8896_v31  ;;  %v8912_v26 = vld [vmem:[#allocation6 + $0x400] ss:$36 sps:$4 sm:$0xff]   ;;  %v8933_v31 = vld [vmem:[#allocation6 + $0x5f0] ss:$36 sps:$4 sm:$0xff]  }
  0x99   :  { %1815 = vmatprep.subr.bf16.mxu1 %v8920_v35  ;;  %v8936_v35 = vld [vmem:[#allocation6 + $0x638] ss:$36 sps:$4 sm:$0xff]  }
  0x9a   :  { %1549 = vmatmul.mubr.bf16.gmra.mrb[16].mxu0 %v9772_v36 }
  0x9b   :  { %1735 = vmatmul.mubr.bf16.vlgmr.msra.gmra.mrb[32].mxu1 %v9732_v24  ;;  %1945 = vmatpush1.bf16.msra.mxu0 %v8894_v38  ;;  %v8945_v38 = vld [vmem:[#allocation6 + $0x490] ss:$36 sps:$4 sm:$0xff]  }
  0x9c   :  { %1558 = vmatprep.mubr.bf16.mxu0 %v9774_v39  ;;  %1946 = vmatprep.subr.bf16.mxu0 %v8899_v40  ;;  %v8941_v40 = vld [vmem:[#allocation6 + $0x684] ss:$36 sps:$4 sm:$0xff]  }
  0x9d   :  { %1744 = vmatprep.mubr.bf16.mxu1 %v9736_v32  ;;  %1816 = vmatpush1.bf16.msra.mxu1 %v8918_v46  ;;  %v8951_v46 = vld [vmem:[#allocation6 + $0x4d8] ss:$36 sps:$4 sm:$0xff]  }
  0x9e   :  { %1817 = vmatprep.subr.bf16.mxu1 %v8923_v49  ;;  %v8957_v49 = vld [vmem:[#allocation6 + $0x520] ss:$36 sps:$4 sm:$0xff]  }
  0x9f   :  { %1947 = vmatpush1.bf16.msra.mxu0 %v8897_v41  ;;  %v8953_v41 = vld [vmem:[#allocation6 + $0x4dc] ss:$36 sps:$4 sm:$0xff]  }
  0xa0   :  { %1948 = vmatprep.subr.bf16.mxu0 %v8902_v47  ;;  %v8959_v47 = vld [vmem:[#allocation6 + $0x524] ss:$36 sps:$4 sm:$0xff]  }
  0xa1   :  { %1818 = vmatpush1.bf16.msra.mxu1 %v8921_v53  ;;  %v8971_v53 = vld [vmem:[#allocation6 + $0x5b4] ss:$36 sps:$4 sm:$0xff]  }
  0xa2   :  { %1559 = vmatmul.mubr.bf16.gmra.mrb[20].mxu0 %v9780_v54  ;;  %1819 = vmatprep.subr.bf16.mxu1 %v8926_v2  ;;  %v8989_v2 = vld [vmem:[#allocation6 + $0x68c] ss:$36 sps:$4 sm:$0xff]  }
  0xa3   :  { %1745 = vmatmul.mubr.bf16.gmra.mrb[36].mxu1 %v9742_v43  ;;  %1949 = vmatpush1.bf16.msra.mxu0 %v8900_v55  ;;  %v8969_v55 = vld [vmem:[#allocation6 + $0x5b0] ss:$36 sps:$4 sm:$0xff]  }
  0xa4   :  { %1568 = vmatprep.mubr.bf16.mxu0 %v9782_v56  ;;  %1950 = vmatprep.subr.bf16.mxu0 %v8905_v57  ;;  %v8977_v57 = vld [vmem:[#allocation6 + $0x5fc] ss:$36 sps:$4 sm:$0xff]  }
  0xa5   :  { %1754 = vmatprep.mubr.bf16.mxu1 %v9746_v52  ;;  %1820 = vmatpush1.bf16.msra.mxu1 %v8924_v5  ;;  %v8942_v5 = vld [vmem:[#allocation6 + $0x18] ss:$36 sps:$4 sm:$0xff]  }
  0xa6   :  { %1821 = vmatprep.subr.bf16.mxu1 %v8929_v6  ;;  %v8950_v6 = vld [vmem:[#allocation6 + $0x64] ss:$36 sps:$4 sm:$0xff]  }
  0xa7   :  { %1951 = vmatpush1.bf16.msra.mxu0 %v8903_v58  ;;  %v8975_v58 = vld [vmem:[#allocation6 + $0x5f8] ss:$36 sps:$4 sm:$0xff]  }
  0xa8   :  { %1952 = vmatprep.subr.bf16.mxu0 %v8908_v3  ;;  %v8987_v3 = vld [vmem:[#allocation6 + $0x688] ss:$36 sps:$4 sm:$0xff]  }
  0xa9   :  { %1822 = vmatpush1.bf16.msra.mxu1 %v8927_v15  ;;  %v8960_v15 = vld [vmem:[#allocation6 + $0xf0] ss:$36 sps:$4 sm:$0xff]  }
  0xaa   :  { %1569 = vmatmul.mubr.bf16.gmra.mrb[24].mxu0 %v9788_v9  ;;  %1823 = vmatprep.subr.bf16.mxu1 %v8932_v19  ;;  %v8966_v19 = vld [vmem:[#allocation6 + $0x138] ss:$36 sps:$4 sm:$0xff]  }
  0xab   :  { %1755 = vmatmul.mubr.bf16.gmra.mrb[40].mxu1 %v9752_v60  ;;  %1953 = vmatpush1.bf16.msra.mxu0 %v8906_v11  ;;  %v8956_v11 = vld [vmem:[#allocation6 + $0xac] ss:$36 sps:$4 sm:$0xff]  }
  0xac   :  { %1578 = vmatprep.mubr.bf16.mxu0 %v9790_v12  ;;  %1954 = vmatprep.subr.bf16.mxu0 %v8911_v13  ;;  %v8954_v13 = vld [vmem:[#allocation6 + $0xa8] ss:$36 sps:$4 sm:$0xff]  }
  0xad   :  { %1764 = vmatprep.mubr.bf16.mxu1 %v9756_v8  ;;  %1824 = vmatpush1.bf16.msra.mxu1 %v8930_v22  ;;  %v8980_v22 = vld [vmem:[#allocation6 + $0x1cc] ss:$36 sps:$4 sm:$0xff]  }
  0xae   :  { %1825 = vmatprep.subr.bf16.mxu1 %v8935_v29  ;;  %v8984_v29 = vld [vmem:[#allocation6 + $0x210] ss:$36 sps:$4 sm:$0xff]  }
  0xaf   :  { %1955 = vmatpush1.bf16.msra.mxu0 %v8909_v14  ;;  %v8962_v14 = vld [vmem:[#allocation6 + $0xf4] ss:$36 sps:$4 sm:$0xff]  }
  0xb0   :  { %1956 = vmatprep.subr.bf16.mxu0 %v8914_v21  ;;  %v8972_v21 = vld [vmem:[#allocation6 + $0x180] ss:$36 sps:$4 sm:$0xff]  }
  0xb1   :  { %1826 = vmatpush1.bf16.msra.mxu1 %v8933_v31  ;;  %v8990_v31 = vld [vmem:[#allocation6 + $0x258] ss:$36 sps:$4 sm:$0xff]  }
  0xb2   :  { %1579 = vmatmul.mubr.bf16.gmra.mrb[28].mxu0 %v9796_v23  ;;  %1827 = vmatprep.subr.bf16.mxu1 %v8938_v33  ;;  %v8995_v33 = vld [vmem:[#allocation6 + $0x2a4] ss:$36 sps:$4 sm:$0xff]  }
  0xb3   :  { %1765 = vmatmul.mubr.bf16.gmra.mrb[44].mxu1 %v9762_v17  ;;  %1957 = vmatpush1.bf16.msra.mxu0 %v8912_v26  ;;  %v8978_v26 = vld [vmem:[#allocation6 + $0x1c8] ss:$36 sps:$4 sm:$0xff]  }
  0xb4   :  { %1774 = vmatprep.mubr.bf16.mxu1 %v9766_v28  ;;  %1958 = vmatprep.subr.bf16.mxu0 %v8917_v27  ;;  %v8986_v27 = vld [vmem:[#allocation6 + $0x214] ss:$36 sps:$4 sm:$0xff]  }
  0xb5   :  { %1960 = vmatprep.mubr.bf16.mxu0 %v9721_v61  ;;  %1828 = vmatpush1.bf16.msra.mxu1 %v8936_v35  ;;  %v9016_v35 = vld [vmem:[#allocation6 + $0x2a8] ss:$36 sps:$4 sm:$0xff]  }
  0xb6   :  { %1829 = vmatprep.subr.bf16.mxu1 %v8941_v40  ;;  %v8998_v40 = vld [vmem:[#allocation6 + $0x2ec] ss:$36 sps:$4 sm:$0xff]  }
  0xb7   :  { %1959 = vmatpush1.bf16.msra.mxu0 %v8915_v30  ;;  %v8992_v30 = vld [vmem:[#allocation6 + $0x25c] ss:$36 sps:$4 sm:$0xff]  }
  0xb8   :  { %2041 = vmatprep.subr.bf16.mxu0 %v8947_v34  ;;  %v9015_v34 = vld [vmem:[#allocation6 + $0x20] ss:$36 sps:$4 sm:$0xff]  }
  0xb9   :  { %1830 = vmatpush1.bf16.msra.mxu1 %v8939_v42  ;;  %v8996_v42 = vld [vmem:[#allocation6 + $0x2e8] ss:$36 sps:$4 sm:$0xff]  }
  0xba   :  { %1961 = vmatmul.mubr.bf16.vlgmr.msra.gmra.mrb[32].mxu0 %v9732_v24  ;;  %2154 = vmatprep.subr.bf16.mxu1 %v8944_v45  ;;  %v9001_v45 = vld [vmem:[#allocation6 + $0x334] ss:$36 sps:$4 sm:$0xff]  }
  0xbb   :  { %1775 = vmatmul.mubr.bf16.gmra.mrb[48].mxu1 %v9772_v36  ;;  %1970 = vmatprep.mubr.bf16.mxu0 %v9736_v32 }
  0xbc   :  { %1784 = vmatprep.mubr.bf16.mxu1 %v9774_v39  ;;  %2042 = vmatpush1.bf16.msra.mxu0 %v8945_v38  ;;  %v8993_v38 = vld [vmem:[#allocation6 + $0x2a0] ss:$36 sps:$4 sm:$0xff]  }
  0xbd   :  { %2043 = vmatprep.subr.bf16.mxu0 %v8953_v41  ;;  %v9017_v41 = vld [vmem:[#allocation6 + $0x68] ss:$36 sps:$4 sm:$0xff]  }
  0xc0   :  { %2044 = vmatpush1.bf16.msra.mxu0 %v8951_v46  ;;  %v9018_v46 = vld [vmem:[#allocation6 + $0x2f0] ss:$36 sps:$4 sm:$0xff]  }
  0xc1   :  { %2045 = vmatprep.subr.bf16.mxu0 %v8959_v47  ;;  %v9019_v47 = vld [vmem:[#allocation6 + $0xb0] ss:$36 sps:$4 sm:$0xff]  }
  0xc2   :  { %1971 = vmatmul.mubr.bf16.gmra.mrb[36].mxu0 %v9742_v43 }
  0xc3   :  { %1785 = vmatmul.mubr.bf16.gmra.mrb[52].mxu1 %v9780_v54  ;;  %1980 = vmatprep.mubr.bf16.mxu0 %v9746_v52 }
  0xc4   :  { %1794 = vmatprep.mubr.bf16.mxu1 %v9782_v56  ;;  %2046 = vmatpush1.bf16.msra.mxu0 %v8957_v49  ;;  %v8999_v49 = vld [vmem:[#allocation6 + $0x330] ss:$36 sps:$4 sm:$0xff]  }
  0xc5   :  { %2047 = vmatprep.subr.bf16.mxu0 %v8965_v50  ;;  %v9020_v50 = vld [vmem:[#allocation6 + $0x338] ss:$36 sps:$4 sm:$0xff]  }
  0xc8   :  { %2048 = vmatpush1.bf16.msra.mxu0 %v8963_v51  ;;  %v9004_v51 = vld [vmem:[#allocation6 + $0x37c] ss:$36 sps:$4 sm:$0xff]  }
  0xc9   :  { %2049 = vmatprep.subr.bf16.mxu0 %v8971_v53  ;;  %v9002_v53 = vld [vmem:[#allocation6 + $0x378] ss:$36 sps:$4 sm:$0xff]  }
  0xca   :  { %1981 = vmatmul.mubr.bf16.gmra.mrb[40].mxu0 %v9752_v60 }
  0xcb   :  { %1795 = vmatmul.mubr.bf16.gmra.mrb[56].mxu1 %v9788_v9  ;;  %1990 = vmatprep.mubr.bf16.mxu0 %v9756_v8 }
  0xcc   :  { %1804 = vmatprep.mubr.bf16.mxu1 %v9790_v12  ;;  %2050 = vmatpush1.bf16.msra.mxu0 %v8969_v55  ;;  %v9007_v55 = vld [vmem:[#allocation6 + $0x3c4] ss:$36 sps:$4 sm:$0xff]  }
  0xcd   :  { %2051 = vmatprep.subr.bf16.mxu0 %v8977_v57  ;;  %v9021_v57 = vld [vmem:[#allocation6 + $0xf8] ss:$36 sps:$4 sm:$0xff]  }
  0xd0   :  { %2052 = vmatpush1.bf16.msra.mxu0 %v8975_v58  ;;  %v9022_v58 = vld [vmem:[#allocation6 + $0x380] ss:$36 sps:$4 sm:$0xff]  }
  0xd1   :  { %2053 = vmatprep.subr.bf16.mxu0 %v8983_v59  ;;  %v9005_v59 = vld [vmem:[#allocation6 + $0x3c0] ss:$36 sps:$4 sm:$0xff]  }
  0xd2   :  { %1991 = vmatmul.mubr.bf16.gmra.mrb[44].mxu0 %v9762_v17 }
  0xd3   :  { %1805 = vmatmul.mubr.bf16.gmra.mrb[60].mxu1 %v9796_v23  ;;  %2000 = vmatprep.mubr.bf16.mxu0 %v9766_v28 }
  0xd4   :  { %1847 = vmatprep.mubr.bf16.mxu1 %v12248_v0  ;;  %2054 = vmatpush1.bf16.msra.mxu0 %v8981_v1  ;;  %v9010_v1 = vld [vmem:[#allocation6 + $0x40c] ss:$36 sps:$4 sm:$0xff]  }
  0xd5   :  { %2055 = vmatprep.subr.bf16.mxu0 %v8989_v2  ;;  %v9023_v2 = vld [vmem:[#allocation6 + $0x140] ss:$36 sps:$4 sm:$0xff]  }
  0xd8   :  { %2056 = vmatpush1.bf16.msra.mxu0 %v8987_v3  ;;  %v9008_v3 = vld [vmem:[#allocation6 + $0x408] ss:$36 sps:$4 sm:$0xff]  }
  0xd9   :  { %7698 = vmatprep.subr.bf16.mxu0 %v9014_v4  ;;  %v9013_v4 = vld [vmem:[#allocation6 + $0x454] ss:$36 sps:$4 sm:$0xff]  }
  0xda   :  { %2001 = vmatmul.mubr.bf16.gmra.mrb[48].mxu0 %v9772_v36 }
  0xdb   :  { %1848 = vmatmul.mubr.bf16.vlgmr.msra.gmra.mrb[32].mxu1 %v9713_v37  ;;  %2010 = vmatprep.mubr.bf16.mxu0 %v9774_v39 }
  0xdc   :  { %2155 = vmatpush1.bf16.msra.mxu1 %v8942_v5  ;;  %1857 = vmatprep.mubr.bf16.mxu1 %v12248_v0  ;;  %v9024_v5 = vld [vmem:[#allocation6 + $0x3c8] ss:$36 sps:$4 sm:$0xff]  }
  0xdd   :  { %2156 = vmatprep.subr.bf16.mxu1 %v8950_v6  ;;  %v9025_v6 = vld [vmem:[#allocation6 + $0x188] ss:$36 sps:$4 sm:$0xff]  }
  0xe0   :  { %2157 = vmatpush1.bf16.msra.mxu1 %v8948_v7  ;;  %v9011_v7 = vld [vmem:[#allocation6 + $0x450] ss:$36 sps:$4 sm:$0xff]  }
  0xe1   :  { %2158 = vmatprep.subr.bf16.mxu1 %v8956_v11  ;;  %v9026_v11 = vld [vmem:[#allocation6 + $0x410] ss:$36 sps:$4 sm:$0xff]  }
  0xe2   :  { %2011 = vmatmul.mubr.bf16.gmra.mrb[52].mxu0 %v9780_v54 }
  0xe3   :  { %1858 = vmatmul.mubr.bf16.gmra.mrb[36].mxu1 %v9717_v48  ;;  %2020 = vmatprep.mubr.bf16.mxu0 %v9782_v56 }
  0xe4   :  { %2159 = vmatpush1.bf16.msra.mxu1 %v8954_v13  ;;  %1867 = vmatprep.mubr.bf16.mxu1 %v12248_v0  ;;  %v9032_v13 = vld [vmem:[#allocation6 + $0x49c] ss:$36 sps:$4 sm:$0xff]  }
  0xe5   :  { %2160 = vmatprep.subr.bf16.mxu1 %v8962_v14  ;;  %v9027_v14 = vld [vmem:[#allocation6 + $0x1d0] ss:$36 sps:$4 sm:$0xff]  }
  0xe8   :  { %2161 = vmatpush1.bf16.msra.mxu1 %v8960_v15  ;;  %v9030_v15 = vld [vmem:[#allocation6 + $0x498] ss:$36 sps:$4 sm:$0xff]  }
  0xe9   :  { %2162 = vmatprep.subr.bf16.mxu1 %v8968_v16  ;;  %v9028_v16 = vld [vmem:[#allocation6 + $0x458] ss:$36 sps:$4 sm:$0xff]  }
  0xea   :  { %2021 = vmatmul.mubr.bf16.gmra.mrb[56].mxu0 %v9788_v9 }
  0xeb   :  { %1868 = vmatmul.mubr.bf16.gmra.mrb[40].mxu1 %v9723_v62  ;;  %2030 = vmatprep.mubr.bf16.mxu0 %v9790_v12 }
  0xec   :  { %2163 = vmatpush1.bf16.msra.mxu1 %v8966_v19  ;;  %1877 = vmatprep.mubr.bf16.mxu1 %v12248_v0  ;;  %v9035_v19 = vld [vmem:[#allocation6 + $0x4e4] ss:$36 sps:$4 sm:$0xff]  }
  0xed   :  { %2164 = vmatprep.subr.bf16.mxu1 %v8974_v20  ;;  %v9029_v20 = vld [vmem:[#allocation6 + $0x218] ss:$36 sps:$4 sm:$0xff]  }
  0xf0   :  { %2165 = vmatpush1.bf16.msra.mxu1 %v8972_v21  ;;  %v9033_v21 = vld [vmem:[#allocation6 + $0x4e0] ss:$36 sps:$4 sm:$0xff]  }
  0xf1   :  { %2166 = vmatprep.subr.bf16.mxu1 %v8980_v22  ;;  %v9038_v22 = vld [vmem:[#allocation6 + $0x52c] ss:$36 sps:$4 sm:$0xff]  }
  0xf2   :  { %2031 = vmatmul.mubr.bf16.gmra.mrb[60].mxu0 %v9796_v23 }
  0xf3   :  { %1878 = vmatmul.mubr.bf16.gmra.mrb[44].mxu1 %v9728_v10  ;;  %2073 = vmatprep.mubr.bf16.mxu0 %v12248_v0 }
  0xf4   :  { %2167 = vmatpush1.bf16.msra.mxu1 %v8978_v26  ;;  %1887 = vmatprep.mubr.bf16.mxu1 %v12248_v0  ;;  %v9036_v26 = vld [vmem:[#allocation6 + $0x528] ss:$36 sps:$4 sm:$0xff]  }
  0xf5   :  { %2168 = vmatprep.subr.bf16.mxu1 %v8986_v27  ;;  %v9041_v27 = vld [vmem:[#allocation6 + $0x574] ss:$36 sps:$4 sm:$0xff]  }
  0xf8   :  { %2169 = vmatpush1.bf16.msra.mxu1 %v8984_v29  ;;  %v9039_v29 = vld [vmem:[#allocation6 + $0x570] ss:$36 sps:$4 sm:$0xff]  }
  0xf9   :  { %2170 = vmatprep.subr.bf16.mxu1 %v8992_v30  ;;  %v9044_v30 = vld [vmem:[#allocation6 + $0x5bc] ss:$36 sps:$4 sm:$0xff]  }
  0xfa   :  { %2074 = vmatmul.mubr.bf16.vlgmr.msra.gmra.mrb[32].mxu0 %v9713_v37 }
  0xfb   :  { %1888 = vmatmul.mubr.bf16.gmra.mrb[48].mxu1 %v9734_v25  ;;  %2083 = vmatprep.mubr.bf16.mxu0 %v12248_v0 }
  0xfc   :  { %2171 = vmatpush1.bf16.msra.mxu1 %v8990_v31  ;;  %1897 = vmatprep.mubr.bf16.mxu1 %v12248_v0  ;;  %v9042_v31 = vld [vmem:[#allocation6 + $0x5b8] ss:$36 sps:$4 sm:$0xff]  }
  0xfd   :  { %2172 = vmatprep.subr.bf16.mxu1 %v8995_v33  ;;  %7699 = vmatpush3.bf16.msra.mxu0 %v9015_v34  ;;  %v9047_v33 = vld [vmem:[#allocation6 + $0x604] ss:$36 sps:$4 sm:$0xff]  }
  0xfe   :  { %7700 = vmatprep.subr.bf16.mxu0 %v9016_v35  ;;  %v9045_v34 = vld [vmem:[#allocation6 + $0x600] ss:$36 sps:$4 sm:$0xff]  }
 0x100   :  { %2173 = vmatpush1.bf16.msra.mxu1 %v8993_v38  ;;  %v9050_v38 = vld [vmem:[#allocation6 + $0x64c] ss:$36 sps:$4 sm:$0xff]  }
 0x101   :  { %2174 = vmatprep.subr.bf16.mxu1 %v8998_v40  ;;  %7701 = vmatpush3.bf16.msra.mxu0 %v9017_v41 }
 0x102   :  { %2084 = vmatmul.mubr.bf16.gmra.mrb[36].mxu0 %v9717_v48  ;;  %7702 = vmatprep.subr.bf16.mxu0 %v9018_v46  ;;  %v9053_v46 = vld [vmem:[#allocation6 + $0x694] ss:$36 sps:$4 sm:$0xff]  }
 0x103   :  { %1898 = vmatmul.mubr.bf16.gmra.mrb[52].mxu1 %v9744_v44  ;;  %2093 = vmatprep.mubr.bf16.mxu0 %v12248_v0 }
 0x104   :  { %2175 = vmatpush1.bf16.msra.mxu1 %v8996_v42  ;;  %1907 = vmatprep.mubr.bf16.mxu1 %v12248_v0 }
 0x105   :  { %2176 = vmatprep.subr.bf16.mxu1 %v9001_v45  ;;  %7703 = vmatpush3.bf16.msra.mxu0 %v9019_v47  ;;  %v9048_v45 = vld [vmem:[#allocation6 + $0x648] ss:$36 sps:$4 sm:$0xff]   ;;  %v9051_v47 = vld [vmem:[#allocation6 + $0x690] ss:$36 sps:$4 sm:$0xff]  }
 0x106   :  { %7704 = vmatprep.subr.bf16.mxu0 %v9020_v50  ;;  %v9054_v50 = vld [vmem:[#allocation6 + $0x4a0] ss:$36 sps:$4 sm:$0xff]  }
 0x108   :  { %2177 = vmatpush1.bf16.msra.mxu1 %v8999_v49 }
 0x109   :  { %2178 = vmatprep.subr.bf16.mxu1 %v9004_v51  ;;  %7705 = vmatpush3.bf16.msra.mxu0 %v9021_v57 }
 0x10a   :  { %2094 = vmatmul.mubr.bf16.gmra.mrb[40].mxu0 %v9723_v62  ;;  %7706 = vmatprep.subr.bf16.mxu0 %v9022_v58 }
 0x10b   :  { %1908 = vmatmul.mubr.bf16.gmra.mrb[56].mxu1 %v9754_v63  ;;  %2103 = vmatprep.mubr.bf16.mxu0 %v12248_v0 }
 0x10c   :  { %2179 = vmatpush1.bf16.msra.mxu1 %v9002_v53  ;;  %1917 = vmatprep.mubr.bf16.mxu1 %v12248_v0 }
 0x10d   :  { %2180 = vmatprep.subr.bf16.mxu1 %v9007_v55  ;;  %7707 = vmatpush3.bf16.msra.mxu0 %v9023_v2 }
 0x10e   :  { %7708 = vmatprep.subr.bf16.mxu0 %v9024_v5 }
 0x110   :  { %2181 = vmatpush1.bf16.msra.mxu1 %v9005_v59 }
 0x111   :  { %2182 = vmatprep.subr.bf16.mxu1 %v9010_v1  ;;  %7709 = vmatpush3.bf16.msra.mxu0 %v9025_v6 }
 0x112   :  { %2104 = vmatmul.mubr.bf16.gmra.mrb[44].mxu0 %v9728_v10  ;;  %7710 = vmatprep.subr.bf16.mxu0 %v9026_v11 }
 0x113   :  { %1918 = vmatmul.mubr.bf16.gmra.mrb[60].mxu1 %v9764_v18  ;;  %2113 = vmatprep.mubr.bf16.mxu0 %v12248_v0 }
 0x114   :  { %2183 = vmatpush1.bf16.msra.mxu1 %v9008_v3  ;;  %2186 = vmatprep.mubr.bf16.mxu1 %v9721_v61 }
 0x115   :  { %2184 = vmatprep.subr.bf16.mxu1 %v9013_v4  ;;  %7711 = vmatpush3.bf16.msra.mxu0 %v9027_v14 }
 0x116   :  { %7712 = vmatprep.subr.bf16.mxu0 %v9028_v16 }
 0x118   :  { %2185 = vmatpush1.bf16.msra.mxu1 %v9011_v7 }
 0x119   :  { %2267 = vmatprep.subr.bf16.mxu1 %v9032_v13  ;;  %7713 = vmatpush3.bf16.msra.mxu0 %v9029_v20 }
 0x11a   :  { %2114 = vmatmul.mubr.bf16.gmra.mrb[48].mxu0 %v9734_v25 }
 0x11b   :  { %2187 = vmatmul.mubr.bf16.vlgmr.msra.gmra.mrb[64].mxu1 %v9732_v24  ;;  %2123 = vmatprep.mubr.bf16.mxu0 %v12248_v0 }
 0x11c   :  { %2196 = vmatprep.mubr.bf16.mxu1 %v9736_v32  ;;  %2268 = vmatpush1.bf16.msra.mxu1 %v9030_v15 }
 0x11d   :  { %2269 = vmatprep.subr.bf16.mxu1 %v9035_v19 }
 0x120   :  { %2270 = vmatpush1.bf16.msra.mxu1 %v9033_v21 }
 0x121   :  { %2271 = vmatprep.subr.bf16.mxu1 %v9038_v22 }
 0x122   :  { %2124 = vmatmul.mubr.bf16.gmra.mrb[52].mxu0 %v9744_v44 }
 0x123   :  { %2197 = vmatmul.mubr.bf16.gmra.mrb[68].mxu1 %v9742_v43  ;;  %2133 = vmatprep.mubr.bf16.mxu0 %v12248_v0 }
 0x124   :  { %2206 = vmatprep.mubr.bf16.mxu1 %v9746_v52  ;;  %2272 = vmatpush1.bf16.msra.mxu1 %v9036_v26 }
 0x125   :  { %2273 = vmatprep.subr.bf16.mxu1 %v9041_v27 }
 0x128   :  { %2274 = vmatpush1.bf16.msra.mxu1 %v9039_v29 }
 0x129   :  { %2275 = vmatprep.subr.bf16.mxu1 %v9044_v30 }
 0x12a   :  { %2134 = vmatmul.mubr.bf16.gmra.mrb[56].mxu0 %v9754_v63 }
 0x12b   :  { %2207 = vmatmul.mubr.bf16.gmra.mrb[72].mxu1 %v9752_v60  ;;  %2143 = vmatprep.mubr.bf16.mxu0 %v12248_v0 }
 0x12c   :  { %2216 = vmatprep.mubr.bf16.mxu1 %v9756_v8  ;;  %2276 = vmatpush1.bf16.msra.mxu1 %v9042_v31 }
 0x12d   :  { %2277 = vmatprep.subr.bf16.mxu1 %v9047_v33 }
 0x12e   :  { %v1623_v35 = vpop.f32.mrb[0].mxu1 }
 0x12f   :  { %v1625_v40 = vpop.f32.mrb[1].mxu1 }
 0x130   :  { %v1627_v41 = vpop.f32.mrb[2].mxu1  ;;  %2278 = vmatpush1.bf16.msra.mxu1 %v9045_v34 }
 0x131   :  { %v1629_v42 = vpop.f32.mrb[3].mxu1  ;;  %2279 = vmatprep.subr.bf16.mxu1 %v9050_v38 }
 0x132   :  { %2144 = vmatmul.mubr.bf16.gmra.mrb[60].mxu0 %v9764_v18 }
 0x133   :  { %2217 = vmatmul.mubr.bf16.gmra.mrb[76].mxu1 %v9762_v17  ;;  %2412 = vmatprep.mubr.bf16.mxu0 %v9721_v61 }
 0x134   :  { %2226 = vmatprep.mubr.bf16.mxu1 %v9766_v28  ;;  %2280 = vmatpush1.bf16.msra.mxu1 %v9048_v45 }
 0x135   :  { %2281 = vmatprep.subr.bf16.mxu1 %v9053_v46 }
 0x136   :  { %v1633_v49 = vpop.f32.mrb[4].mxu1 }
 0x137   :  { %v1635_v51 = vpop.f32.mrb[5].mxu1 }
 0x138   :  { %v1637_v53 = vpop.f32.mrb[6].mxu1  ;;  %2282 = vmatpush1.bf16.msra.mxu1 %v9051_v47 }
 0x139   :  { %v1639_v55 = vpop.f32.mrb[7].mxu1  ;;  %8050 = vmatprep.subr.bf16.mxu1 %v9054_v50 }
 0x13a   :  { %2413 = vmatmul.mubr.bf16.vlgmr.msra.gmra.mrb[64].mxu0 %v9732_v24 }
 0x13b   :  { %2227 = vmatmul.mubr.bf16.gmra.mrb[80].mxu1 %v9772_v36  ;;  %2420 = vmatprep.mubr.bf16.mxu0 %v9736_v32 }
 0x13c   :  { %2236 = vmatprep.mubr.bf16.mxu1 %v9774_v39 }
 0x13e   :  { %v1643_v57 = vpop.f32.mrb[8].mxu1 }
 0x13f   :  { %v1645_v61 = vpop.f32.mrb[9].mxu1 }
 0x140   :  { %v1647_v58 = vpop.f32.mrb[10].mxu1 }
 0x141   :  { %v9870_v59 = vpop.f32.mrb[11].mxu1 }
 0x142   :  { %2421 = vmatmul.mubr.bf16.gmra.mrb[68].mxu0 %v9742_v43 }
 0x143   :  { %2237 = vmatmul.mubr.bf16.gmra.mrb[84].mxu1 %v9780_v54  ;;  %2428 = vmatprep.mubr.bf16.mxu0 %v9746_v52 }
 0x144   :  { %2246 = vmatprep.mubr.bf16.mxu1 %v9782_v56 }
 0x146   :  { %v9876_v1 = vpop.f32.mrb[12].mxu1 }
 0x147   :  { %v9878_v24 = vpop.f32.mrb[13].mxu1 }
 0x148   :  { %v9880_v2 = vpop.f32.mrb[14].mxu1 }
 0x149   :  { %v9882_v32 = vpop.f32.mrb[15].mxu1 }
 0x14a   :  { %2429 = vmatmul.mubr.bf16.gmra.mrb[72].mxu0 %v9752_v60 }
 0x14b   :  { %2247 = vmatmul.mubr.bf16.gmra.mrb[88].mxu1 %v9788_v9  ;;  %2436 = vmatprep.mubr.bf16.mxu0 %v9756_v8 }
 0x14c   :  { %2256 = vmatprep.mubr.bf16.mxu1 %v9790_v12 }
 0x14d   :  { %v1510_v43 = vpop.f32.mrb[0].mxu0 }
 0x14e   :  { %v9888_v3 = vpop.f32.mrb[16].mxu1  ;;  %v1624_v52 = vadd.f32 %v1623_v35, %v1510_v43  ;;  %v1512_v4 = vpop.f32.mrb[1].mxu0  ;;  %v9055_v35 = vld [vmem:[#allocation6 + $0x4e8] ss:$36 sps:$4 sm:$0xff]  }
 0x14f   :  { %v9890_v5 = vpop.f32.mrb[17].mxu1  ;;  %v1626_v6 = vadd.f32 %v1625_v40, %v1512_v4  ;;  %v1514_v7 = vpop.f32.mrb[2].mxu0 }
 0x150   :  { %v9892_v11 = vpop.f32.mrb[18].mxu1  ;;  %v1628_v13 = vadd.f32 %v1627_v41, %v1514_v7  ;;  %v1516_v14 = vpop.f32.mrb[3].mxu0 }
 0x151   :  { %v9894_v15 = vpop.f32.mrb[19].mxu1  ;;  %v1630_v60 = vadd.f32 %v1629_v42, %v1516_v14  ;;  %v9056_v42 = vld [vmem:[#allocation6 + $0x530] ss:$36 sps:$4 sm:$0xff]  }
 0x152   :  { %v9896_v16 = vpack.c.bf16 %v1628_v13, %v1624_v52  ;;  %2437 = vmatmul.mubr.bf16.gmra.mrb[76].mxu0 %v9762_v17 }
 0x153   :  { %2257 = vmatmul.mubr.bf16.gmra.mrb[92].mxu1 %v9796_v23  ;;  %v9900_v8 = vpack.c.bf16 %v1630_v60, %v1626_v6  ;;  %2444 = vmatprep.mubr.bf16.mxu0 %v9766_v28 }
 0x154   :  { %2299 = vmatprep.mubr.bf16.mxu1 %v12248_v0 }
 0x155   :  { %v1520_v19 = vpop.f32.mrb[4].mxu0 }
 0x156   :  { %v9904_v20 = vpop.f32.mrb[20].mxu1  ;;  %v1634_v21 = vadd.f32 %v1633_v49, %v1520_v19  ;;  %v1522_v22 = vpop.f32.mrb[5].mxu0 }
 0x157   :  { %v9906_v26 = vpop.f32.mrb[21].mxu1  ;;  %v1636_v27 = vadd.f32 %v1635_v51, %v1522_v22  ;;  %v1524_v29 = vpop.f32.mrb[6].mxu0  ;;  %v9059_v22 = vld [vmem:[#allocation6 + $0x608] ss:$36 sps:$4 sm:$0xff]  }
 0x158   :  { %v9908_v30 = vpop.f32.mrb[22].mxu1  ;;  %v1638_v31 = vadd.f32 %v1637_v53, %v1524_v29  ;;  %v1526_v33 = vpop.f32.mrb[7].mxu0 }
 0x159   :  { %v9910_v17 = vpop.f32.mrb[23].mxu1  ;;  %v1640_v34 = vadd.f32 %v1639_v55, %v1526_v33 }
 0x15a   :  { %v9912_v38 = vpack.c.bf16 %v1638_v31, %v1634_v21  ;;  %2445 = vmatmul.mubr.bf16.gmra.mrb[80].mxu0 %v9772_v36 }
 0x15b   :  { %2300 = vmatmul.mubr.bf16.vlgmr.msra.gmra.mrb[64].mxu1 %v9713_v37  ;;  %v9916_v28 = vpack.c.bf16 %v1640_v34, %v1636_v27  ;;  %2452 = vmatprep.mubr.bf16.mxu0 %v9774_v39 }
 0x15c   :  { %2309 = vmatprep.mubr.bf16.mxu1 %v12248_v0  ;;  %8051 = vmatpush3.bf16.msra.mxu1 %v9054_v50  ;;  %v9057_v50 = vld [vmem:[#allocation6 + $0x578] ss:$36 sps:$4 sm:$0xff]  }
 0x15d   :  { %12322 = vst [vmem:[#allocation13_spill] sm:$0xff] %v9916_v28  ;;  %v1530_v40 = vpop.f32.mrb[8].mxu0  ;;  %8052 = vmatprep.subr.bf16.mxu1 %v9055_v35 }
 0x15e   :  { %v9920_v41 = vpop.f32.mrb[24].mxu1  ;;  %v1644_v45 = vadd.f32 %v1643_v57, %v1530_v40  ;;  %v1532_v46 = vpop.f32.mrb[9].mxu0  ;;  %v9061_v40 = vld [vmem:[#allocation6 + $0x698] ss:$36 sps:$4 sm:$0xff]  }
 0x15f   :  { %v9922_v47 = vpop.f32.mrb[25].mxu1  ;;  %v1646_v49 = vadd.f32 %v1645_v61, %v1532_v46  ;;  %v1534_v51 = vpop.f32.mrb[10].mxu0 }
 0x160   :  { %v9924_v53 = vpop.f32.mrb[26].mxu1  ;;  %v1648_v36 = vadd.f32 %v1647_v58, %v1534_v51  ;;  %v1536_v55 = vpop.f32.mrb[11].mxu0  ;;  %8053 = vmatpush3.bf16.msra.mxu1 %v9055_v35 }
 0x161   :  { %v9926_v43 = vpop.f32.mrb[27].mxu1  ;;  %v1650_v39 = vadd.f32 %v9870_v59, %v1536_v55  ;;  %8054 = vmatprep.subr.bf16.mxu1 %v9056_v42  ;;  %v9058_v59 = vld [vmem:[#allocation6 + $0x5c0] ss:$36 sps:$4 sm:$0xff]  }
 0x162   :  { %v9929_v52 = vpack.c.bf16 %v1648_v36, %v1644_v45  ;;  %2453 = vmatmul.mubr.bf16.gmra.mrb[84].mxu0 %v9780_v54 }
 0x163   :  { %2310 = vmatmul.mubr.bf16.gmra.mrb[68].mxu1 %v9717_v48  ;;  %v9933_v57 = vpack.c.bf16 %v1650_v39, %v1646_v49  ;;  %2460 = vmatprep.mubr.bf16.mxu0 %v9782_v56 }
 0x164   :  { %2319 = vmatprep.mubr.bf16.mxu1 %v12248_v0  ;;  %8055 = vmatpush3.bf16.msra.mxu1 %v9056_v42 }
 0x165   :  { %12323 = vst [vmem:[#allocation14_spill] sm:$0xff] %v9933_v57  ;;  %v1540_v61 = vpop.f32.mrb[12].mxu0  ;;  %8056 = vmatprep.subr.bf16.mxu1 %v9057_v50 }
 0x166   :  { %v9937_v58 = vpop.f32.mrb[28].mxu1  ;;  %v1654_v4 = vadd.f32 %v9876_v1, %v1540_v61  ;;  %v1542_v6 = vpop.f32.mrb[13].mxu0 }
 0x167   :  { %v9940_v7 = vpop.f32.mrb[29].mxu1  ;;  %v1656_v13 = vadd.f32 %v9878_v24, %v1542_v6  ;;  %v1544_v54 = vpop.f32.mrb[14].mxu0 }
 0x168   :  { %v9943_v14 = vpop.f32.mrb[30].mxu1  ;;  %v1658_v60 = vadd.f32 %v9880_v2, %v1544_v54  ;;  %v1546_v19 = vpop.f32.mrb[15].mxu0  ;;  %8057 = vmatpush3.bf16.msra.mxu1 %v9057_v50  ;;  %v9060_v2 = vld [vmem:[#allocation6 + $0x650] ss:$36 sps:$4 sm:$0xff]  }
 0x169   :  { %v9946_v56 = vpop.f32.mrb[31].mxu1  ;;  %v1660_v21 = vadd.f32 %v9882_v32, %v1546_v19  ;;  %8058 = vmatprep.subr.bf16.mxu1 %v9058_v59 }
 0x16a   :  { %v9949_v27 = vpack.c.bf16 %v1658_v60, %v1654_v4  ;;  %2461 = vmatmul.mubr.bf16.gmra.mrb[88].mxu0 %v9788_v9 }
 0x16b   :  { %2320 = vmatmul.mubr.bf16.gmra.mrb[72].mxu1 %v9723_v62  ;;  %v9953_v1 = vpack.c.bf16 %v1660_v21, %v1656_v13  ;;  %2468 = vmatprep.mubr.bf16.mxu0 %v9790_v12 }
 0x16c   :  { %2329 = vmatprep.mubr.bf16.mxu1 %v12248_v0  ;;  %8059 = vmatpush3.bf16.msra.mxu1 %v9058_v59 }
 0x16d   :  { %12324 = vst [vmem:[#allocation15_spill] sm:$0xff] %v9953_v1  ;;  %v1550_v24 = vpop.f32.mrb[16].mxu0  ;;  %8060 = vmatprep.subr.bf16.mxu1 %v9059_v22 }
 0x16e   :  { %v1664_v32 = vadd.f32 %v9888_v3, %v1550_v24  ;;  %v1552_v29 = vpop.f32.mrb[17].mxu0 }
 0x16f   :  { %v1666_v31 = vadd.f32 %v9890_v5, %v1552_v29  ;;  %v1554_v33 = vpop.f32.mrb[18].mxu0 }
 0x170   :  { %v1668_v34 = vadd.f32 %v9892_v11, %v1554_v33  ;;  %v1556_v35 = vpop.f32.mrb[19].mxu0  ;;  %8061 = vmatpush3.bf16.msra.mxu1 %v9059_v22 }
 0x171   :  { %v1670_v9 = vadd.f32 %v9894_v15, %v1556_v35  ;;  %8062 = vmatprep.subr.bf16.mxu1 %v9060_v2 }
 0x172   :  { %v9961_v12 = vpack.c.bf16 %v1668_v34, %v1664_v32  ;;  %2469 = vmatmul.mubr.bf16.gmra.mrb[92].mxu0 %v9796_v23 }
 0x173   :  { %2330 = vmatmul.mubr.bf16.gmra.mrb[76].mxu1 %v9728_v10  ;;  %v9965_v3 = vpack.c.bf16 %v1670_v9, %v1666_v31 }
 0x174   :  { %2339 = vmatprep.mubr.bf16.mxu1 %v12248_v0  ;;  %8106 = vmatprep.mubr.msk.bf16.mxu0 %vm2617_vm0, %v9961_v12 }
 0x175   :  { %12325 = vst [vmem:[#allocation16_spill] sm:$0xff] %v9965_v3  ;;  %8063 = vmatpush3.bf16.msra.mxu1 %v9060_v2  ;;  %v1560_v5 = vpop.f32.mrb[20].mxu0 }
 0x176   :  { %8064 = vmatprep.subr.bf16.mxu1 %v9061_v40  ;;  %v1674_v11 = vadd.f32 %v9904_v20, %v1560_v5  ;;  %v1562_v15 = vpop.f32.mrb[21].mxu0 }
 0x177   :  { %v1676_v42 = vadd.f32 %v9906_v26, %v1562_v15  ;;  %v1564_v45 = vpop.f32.mrb[22].mxu0 }
 0x178   :  { %v1678_v46 = vadd.f32 %v9908_v30, %v1564_v45  ;;  %v1566_v49 = vpop.f32.mrb[23].mxu0 }
 0x179   :  { %8065 = vmatpush3.bf16.msra.mxu1 %v9061_v40  ;;  %v1680_v23 = vadd.f32 %v9910_v17, %v1566_v49 }
 0x17a   :  { %v9974_v51 = vpack.c.bf16 %v1678_v46, %v1674_v11 }
 0x17b   :  { %2340 = vmatmul.mubr.bf16.gmra.mrb[80].mxu1 %v9734_v25  ;;  %v9977_v36 = vpack.c.bf16 %v1680_v23, %v1676_v42 }
 0x17c   :  { %2349 = vmatprep.mubr.bf16.mxu1 %v12248_v0 }
 0x17d   :  { %12326 = vst [vmem:[#allocation17_spill] sm:$0xff] %v9977_v36  ;;  %v1570_v55 = vpop.f32.mrb[24].mxu0 }
 0x17e   :  { %v1684_v20 = vadd.f32 %v9920_v41, %v1570_v55  ;;  %v1572_v39 = vpop.f32.mrb[25].mxu0 }
 0x17f   :  { %v1686_v26 = vadd.f32 %v9922_v47, %v1572_v39  ;;  %v1574_v50 = vpop.f32.mrb[26].mxu0 }
 0x180   :  { %v1688_v30 = vadd.f32 %v9924_v53, %v1574_v50  ;;  %v1576_v61 = vpop.f32.mrb[27].mxu0 }
 0x181   :  { %v1690_v17 = vadd.f32 %v9926_v43, %v1576_v61 }
 0x182   :  { %v9984_v59 = vpack.c.bf16 %v1688_v30, %v1684_v20 }
 0x183   :  { %2350 = vmatmul.mubr.bf16.gmra.mrb[84].mxu1 %v9744_v44  ;;  %v9987_v4 = vpack.c.bf16 %v1690_v17, %v1686_v26 }
 0x184   :  { %2359 = vmatprep.mubr.bf16.mxu1 %v12248_v0 }
 0x185   :  { %12327 = vst [vmem:[#allocation18_spill] sm:$0xff] %v9987_v4  ;;  %v1580_v6 = vpop.f32.mrb[28].mxu0 }
 0x186   :  { %v1694_v41 = vadd.f32 %v9937_v58, %v1580_v6  ;;  %v1582_v13 = vpop.f32.mrb[29].mxu0 }
 0x187   :  { %v1696_v47 = vadd.f32 %v9940_v7, %v1582_v13  ;;  %v1584_v54 = vpop.f32.mrb[30].mxu0 }
 0x188   :  { %v1698_v53 = vadd.f32 %v9943_v14, %v1584_v54  ;;  %v1586_v60 = vpop.f32.mrb[31].mxu0 }
 0x189   :  { %v1700_v43 = vadd.f32 %v9946_v56, %v1586_v60 }
 0x18a   :  { %v9994_v19 = vpack.c.bf16 %v1698_v53, %v1694_v41 }
 0x18b   :  { %2360 = vmatmul.mubr.bf16.gmra.mrb[88].mxu1 %v9754_v63  ;;  %v9997_v21 = vpack.c.bf16 %v1700_v43, %v1696_v47 }
 0x18c   :  { %2369 = vmatprep.mubr.bf16.mxu1 %v12248_v0 }
 0x18d   :  { %12328 = vst [vmem:[#allocation19_spill] sm:$0xff] %v9997_v21 }
 0x193   :  { %2370 = vmatmul.mubr.bf16.gmra.mrb[92].mxu1 %v9764_v18 }
 0x194   :  { %8066 = vmatprep.mubr.bf16.mxu1 %v9713_v37 }
 0x19b   :  { %8067 = vmatmul.mubr.bf16.vlgmr.msra.gmra.mrb[96].mxu1 %v9717_v48 }
 0x19c   :  { %8070 = vmatprep.mubr.bf16.mxu1 %v9723_v62 }
 0x1a3   :  { %8071 = vmatmul.mubr.bf16.gmra.mrb[100].mxu1 %v9728_v10 }
 0x1a4   :  { %8074 = vmatprep.mubr.bf16.mxu1 %v9734_v25 }
 0x1ab   :  { %8075 = vmatmul.mubr.bf16.gmra.mrb[104].mxu1 %v9744_v44 }
 0x1ac   :  { %8078 = vmatprep.mubr.bf16.mxu1 %v9754_v63 }
 0x1ae   :  { %v1849_v58 = vpop.f32.mrb[32].mxu1 }
 0x1af   :  { %v1851_v7 = vpop.f32.mrb[33].mxu1 }
 0x1b0   :  { %v1853_v14 = vpop.f32.mrb[34].mxu1 }
 0x1b1   :  { %v10008_v56 = vpack.c.bf16 %v1853_v14, %v1849_v58  ;;  %v1855_v22 = vpop.f32.mrb[35].mxu1 }
 0x1b2   :  { %v2601_v24 = vpack.c.bf16 %v1855_v22, %v1851_v7 }
 0x1b3   :  { %12329 = vst [vmem:[#allocation20_spill] sm:$0xff] %v10008_v56  ;;  %8079 = vmatmul.mubr.bf16.gmra.mrb[108].mxu1 %v9764_v18 }
 0x1b4   :  { %3198 = vrot.lane.b32.xlu0 %v2601_v24, %s9646_s2  ;;  %8690 = vmatprep.subr.msk.bf16.mxu1 %vm2617_vm0, %v2601_v24  ;;  %v2631_v37 = vsel %vm2617_vm0, %v2601_v24, 0 }
 0x1b5   :  { %8090 = vmatprep.mubr.msk.bf16.mxu1 %vm2617_vm0, %v9896_v16  ;;  %8083 = vmatpush3.bf16.xpose.msra.mxu1 %v2631_v37 }
 0x1b6   :  { %v1859_v48 = vpop.f32.mrb[36].mxu1 }
 0x1b7   :  { %v1861_v62 = vpop.f32.mrb[37].mxu1 }
 0x1b8   :  { %v1863_v10 = vpop.f32.mrb[38].mxu1 }
 0x1b9   :  { %v10016_v25 = vpack.c.bf16 %v1863_v10, %v1859_v48  ;;  %v1865_v44 = vpop.f32.mrb[39].mxu1 }
 0x1ba   :  { %v2602_v63 = vpack.c.bf16 %v1865_v44, %v1861_v62 }
 0x1bb   :  { %12330 = vst [vmem:[#allocation21_spill] sm:$0xff] %v10016_v25 }
 0x1bc   :  { %3200 = vrot.lane.b32.xlu1 %v2602_v63, %s9646_s2  ;;  %8691 = vmatprep.subr.msk.bf16.mxu1 %vm2617_vm0, %v2602_v63  ;;  %v2634_v18 = vsel %vm2617_vm0, %v2602_v63, 0 }
 0x1bd   :  { %8085 = vmatpush3.bf16.xpose.msra.mxu1 %v2634_v18 }
 0x1be   :  { %v1869_v2 = vpop.f32.mrb[40].mxu1 }
 0x1bf   :  { %v1871_v32 = vpop.f32.mrb[41].mxu1 }
 0x1c0   :  { %v1873_v29 = vpop.f32.mrb[42].mxu1 }
 0x1c1   :  { %v10021_v31 = vpack.c.bf16 %v1873_v29, %v1869_v2  ;;  %v1875_v33 = vpop.f32.mrb[43].mxu1 }
 0x1c2   :  { %v2603_v34 = vpack.c.bf16 %v1875_v33, %v1871_v32 }
 0x1c3   :  { %12331 = vst [vmem:[#allocation22_spill] sm:$0xff] %v10021_v31 }
 0x1c4   :  { %3202 = vrot.lane.b32.xlu0 %v2603_v34, %s9646_s2  ;;  %8692 = vmatprep.subr.msk.bf16.mxu1 %vm2617_vm0, %v2603_v34  ;;  %v2637_v35 = vsel %vm2617_vm0, %v2603_v34, 0 }
 0x1c5   :  { %8087 = vmatpush3.bf16.xpose.msra.mxu1 %v2637_v35 }
 0x1c6   :  { %v1879_v9 = vpop.f32.mrb[44].mxu1 }
 0x1c7   :  { %v1881_v40 = vpop.f32.mrb[45].mxu1 }
 0x1c8   :  { %v1883_v5 = vpop.f32.mrb[46].mxu1 }
 0x1c9   :  { %v10026_v11 = vpack.c.bf16 %v1883_v5, %v1879_v9  ;;  %v1885_v15 = vpop.f32.mrb[47].mxu1 }
 0x1ca   :  { %v2604_v42 = vpack.c.bf16 %v1885_v15, %v1881_v40 }
 0x1cb   :  { %12332 = vst [vmem:[#allocation23_spill] sm:$0xff] %v10026_v11 }
 0x1cc   :  { %3204 = vrot.lane.b32.xlu0 %v2604_v42, %s9646_s2  ;;  %8693 = vmatprep.subr.msk.bf16.mxu1 %vm2617_vm0, %v2604_v42  ;;  %v2640_v45 = vsel %vm2617_vm0, %v2604_v42, 0 }
 0x1cd   :  { %8089 = vmatpush3.bf16.xpose.msra.mxu1 %v2640_v45  ;;  %v2075_v49 = vpop.f32.mrb[32].mxu0 }
 0x1ce   :  { %v1889_v46 = vpop.f32.mrb[48].mxu1  ;;  %v2077_v55 = vpop.f32.mrb[33].mxu0 }
 0x1cf   :  { %v1891_v23 = vpop.f32.mrb[49].mxu1  ;;  %v2079_v39 = vpop.f32.mrb[34].mxu0 }
 0x1d0   :  { %v1893_v20 = vpop.f32.mrb[50].mxu1  ;;  %v10033_v30 = vpack.c.bf16 %v2079_v39, %v2075_v49  ;;  %v2081_v61 = vpop.f32.mrb[35].mxu0 }
 0x1d1   :  { %v10031_v26 = vpack.c.bf16 %v1893_v20, %v1889_v46  ;;  %v1895_v50 = vpop.f32.mrb[51].mxu1  ;;  %v10037_v6 = vpack.c.bf16 %v2081_v61, %v2077_v55 }
 0x1d2   :  { %v10035_v17 = vpack.c.bf16 %v1895_v50, %v1891_v23 }
 0x1d3   :  { %12333 = vst [vmem:[#allocation24_spill] sm:$0xff] %v10031_v26  ;;  %12334 = vst [vmem:[#allocation25_spill] sm:$0xff] %v10037_v6 }
 0x1d4   :  { %8091 = vmatmul.mubr.msk.bf16.vlgmr.msra.gmra.mrb[112].mxu1 %vm2617_vm0, %v9912_v38  ;;  %8694 = vmatprep.subr.msk.bf16.mxu0 %vm2617_vm0, %v10035_v17  ;;  %v2720_v41 = vsel %vm2617_vm0, %v10035_v17, 0 }
 0x1d5   :  { %8094 = vmatprep.mubr.msk.bf16.mxu1 %vm2617_vm0, %v9929_v52  ;;  %8099 = vmatpush3.bf16.xpose.msra.mxu0 %v2720_v41  ;;  %v2085_v47 = vpop.f32.mrb[36].mxu0 }
 0x1d6   :  { %v1899_v13 = vpop.f32.mrb[52].mxu1  ;;  %v2087_v53 = vpop.f32.mrb[37].mxu0 }
 0x1d7   :  { %v1901_v54 = vpop.f32.mrb[53].mxu1  ;;  %v2089_v43 = vpop.f32.mrb[38].mxu0 }
 0x1d8   :  { %v1903_v60 = vpop.f32.mrb[54].mxu1  ;;  %v10049_v14 = vpack.c.bf16 %v2089_v43, %v2085_v47  ;;  %v2091_v22 = vpop.f32.mrb[39].mxu0 }
 0x1d9   :  { %v10047_v58 = vpack.c.bf16 %v1903_v60, %v1899_v13  ;;  %v1905_v7 = vpop.f32.mrb[55].mxu1  ;;  %v10053_v37 = vpack.c.bf16 %v2091_v22, %v2087_v53 }
 0x1da   :  { %v10051_v24 = vpack.c.bf16 %v1905_v7, %v1901_v54 }
 0x1db   :  { %12335 = vst [vmem:[#allocation26_spill] sm:$0xff] %v10047_v58  ;;  %12336 = vst [vmem:[#allocation27_spill] sm:$0xff] %v10053_v37 }
 0x1dc   :  { %8095 = vmatmul.mubr.msk.bf16.gmra.mrb[116].mxu1 %vm2617_vm0, %v9949_v27  ;;  %8695 = vmatprep.subr.msk.bf16.mxu0 %vm2617_vm0, %v10051_v24  ;;  %v2723_v48 = vsel %vm2617_vm0, %v10051_v24, 0 }
 0x1dd   :  { %8101 = vmatpush3.bf16.xpose.msra.mxu0 %v2723_v48  ;;  %v2095_v10 = vpop.f32.mrb[40].mxu0 }
 0x1de   :  { %v1909_v62 = vpop.f32.mrb[56].mxu1  ;;  %v2097_v63 = vpop.f32.mrb[41].mxu0 }
 0x1df   :  { %v1911_v44 = vpop.f32.mrb[57].mxu1  ;;  %v2099_v2 = vpop.f32.mrb[42].mxu0 }
 0x1e0   :  { %v1913_v18 = vpop.f32.mrb[58].mxu1  ;;  %v10063_v33 = vpack.c.bf16 %v2099_v2, %v2095_v10  ;;  %v2101_v34 = vpop.f32.mrb[43].mxu0 }
 0x1e1   :  { %v10061_v32 = vpack.c.bf16 %v1913_v18, %v1909_v62  ;;  %v1915_v29 = vpop.f32.mrb[59].mxu1  ;;  %v10067_v9 = vpack.c.bf16 %v2101_v34, %v2097_v63 }
 0x1e2   :  { %v10065_v35 = vpack.c.bf16 %v1915_v29, %v1911_v44 }
 0x1e3   :  { %12337 = vst [vmem:[#allocation28_spill] sm:$0xff] %v10061_v32  ;;  %12338 = vst [vmem:[#allocation29_spill] sm:$0xff] %v10067_v9 }
 0x1e4   :  { %8696 = vmatprep.subr.msk.bf16.mxu0 %vm2617_vm0, %v10065_v35  ;;  %v2726_v40 = vsel %vm2617_vm0, %v10065_v35, 0 }
 0x1e5   :  { %8103 = vmatpush3.bf16.xpose.msra.mxu0 %v2726_v40  ;;  %v2105_v15 = vpop.f32.mrb[44].mxu0 }
 0x1e6   :  { %v1919_v5 = vpop.f32.mrb[60].mxu1  ;;  %v2107_v45 = vpop.f32.mrb[45].mxu0 }
 0x1e7   :  { %v1921_v42 = vpop.f32.mrb[61].mxu1  ;;  %v2109_v49 = vpop.f32.mrb[46].mxu0 }
 0x1e8   :  { %v1923_v46 = vpop.f32.mrb[62].mxu1  ;;  %v10075_v20 = vpack.c.bf16 %v2109_v49, %v2105_v15  ;;  %v2111_v39 = vpop.f32.mrb[47].mxu0 }
 0x1e9   :  { %v10073_v23 = vpack.c.bf16 %v1923_v46, %v1919_v5  ;;  %v1925_v55 = vpop.f32.mrb[63].mxu1  ;;  %v10079_v61 = vpack.c.bf16 %v2111_v39, %v2107_v45 }
 0x1ea   :  { %v10077_v50 = vpack.c.bf16 %v1925_v55, %v1921_v42 }
 0x1eb   :  { %12339 = vst [vmem:[#allocation30_spill] sm:$0xff] %v10073_v23  ;;  %12340 = vst [vmem:[#allocation31_spill] sm:$0xff] %v10079_v61 }
 0x1ec   :  { %8697 = vmatprep.subr.msk.bf16.mxu0 %vm2617_vm0, %v10077_v50  ;;  %v2729_v41 = vsel %vm2617_vm0, %v10077_v50, 0 }
 0x1ed   :  { %8105 = vmatpush3.bf16.xpose.msra.mxu0 %v2729_v41  ;;  %v2115_v13 = vpop.f32.mrb[48].mxu0 }
 0x1ee   :  { %v2117_v47 = vpop.f32.mrb[49].mxu0 }
 0x1ef   :  { %v2119_v54 = vpop.f32.mrb[50].mxu0 }
 0x1f0   :  { %v10085_v53 = vpack.c.bf16 %v2119_v54, %v2115_v13  ;;  %v2121_v60 = vpop.f32.mrb[51].mxu0 }
 0x1f1   :  { %v10087_v43 = vpack.c.bf16 %v2121_v60, %v2117_v47 }
 0x1f2   :  { %12341 = vst [vmem:[#allocation32_spill] sm:$0xff] %v10085_v53 }
 0x1f3   :  { %12342 = vst [vmem:[#allocation33_spill] sm:$0xff] %v10087_v43 }
 0x1f4   :  { %8107 = vmatmul.mubr.msk.bf16.vlgmr.msra.gmra.mrb[96].mxu0 %vm2617_vm0, %v9974_v51 }
 0x1f5   :  { %8110 = vmatprep.mubr.msk.bf16.mxu0 %vm2617_vm0, %v9984_v59  ;;  %v2125_v7 = vpop.f32.mrb[52].mxu0 }
 0x1f6   :  { %v2127_v22 = vpop.f32.mrb[53].mxu0 }
 0x1f7   :  { %v2129_v48 = vpop.f32.mrb[54].mxu0 }
 0x1f8   :  { %v10093_v62 = vpack.c.bf16 %v2129_v48, %v2125_v7  ;;  %v2131_v10 = vpop.f32.mrb[55].mxu0 }
 0x1f9   :  { %v10095_v44 = vpack.c.bf16 %v2131_v10, %v2127_v22 }
 0x1fa   :  { %12343 = vst [vmem:[#allocation34_spill] sm:$0xff] %v10093_v62 }
 0x1fb   :  { %12344 = vst [vmem:[#allocation35_spill] sm:$0xff] %v10095_v44 }
 0x1fc   :  { %8111 = vmatmul.mubr.msk.bf16.gmra.mrb[100].mxu0 %vm2617_vm0, %v9994_v19 }
 0x1fd   :  { %v2135_v63 = vpop.f32.mrb[56].mxu0 }
 0x1fe   :  { %v2137_v18 = vpop.f32.mrb[57].mxu0 }
 0x1ff   :  { %v2139_v2 = vpop.f32.mrb[58].mxu0 }
 0x200   :  { %v10099_v29 = vpack.c.bf16 %v2139_v2, %v2135_v63  ;;  %v2141_v34 = vpop.f32.mrb[59].mxu0 }
 0x201   :  { %v10101_v40 = vpack.c.bf16 %v2141_v34, %v2137_v18 }
 0x202   :  { %12345 = vst [vmem:[#allocation36_spill] sm:$0xff] %v10099_v29 }
 0x203   :  { %12346 = vst [vmem:[#allocation37_spill] sm:$0xff] %v10101_v40 }
 0x205   :  { %v2145_v5 = vpop.f32.mrb[60].mxu0 }
 0x206   :  { %v2147_v15 = vpop.f32.mrb[61].mxu0 }
 0x207   :  { %v2149_v42 = vpop.f32.mrb[62].mxu0 }
 0x208   :  { %v10103_v45 = vpack.c.bf16 %v2149_v42, %v2145_v5  ;;  %v2151_v46 = vpop.f32.mrb[63].mxu0 }
 0x209   :  { %v10105_v49 = vpack.c.bf16 %v2151_v46, %v2147_v15 }
 0x20a   :  { %12347 = vst [vmem:[#allocation38_spill] sm:$0xff] %v10103_v45 }
 0x20b   :  { %12348 = vst [vmem:[#allocation39_spill] sm:$0xff] %v10105_v49 }
 0x20d   :  { %v7714_v55 = vpop.f32.mrb[64].mxu0 }
 0x20e   :  { %v7715_v39 = vpop.f32.mrb[65].mxu0 }
 0x20f   :  { %v10107_v41 = vadd.f32 %v7715_v39, %v7714_v55  ;;  %v7717_v13 = vpop.f32.mrb[66].mxu0 }
 0x210   :  { %v7718_v47 = vpop.f32.mrb[67].mxu0 }
 0x211   :  { %v10109_v54 = vadd.f32 %v7718_v47, %v7717_v13 }
 0x215   :  { %v7720_v60 = vpop.f32.mrb[68].mxu0 }
 0x216   :  { %v7721_v7 = vpop.f32.mrb[69].mxu0 }
 0x217   :  { %v10111_v22 = vadd.f32 %v7721_v7, %v7720_v60  ;;  %v7723_v48 = vpop.f32.mrb[70].mxu0 }
 0x218   :  { %v7724_v10 = vpop.f32.mrb[71].mxu0 }
 0x219   :  { %v10113_v63 = vadd.f32 %v7724_v10, %v7723_v48 }
 0x21d   :  { %v7726_v18 = vpop.f32.mrb[72].mxu0 }
 0x21e   :  { %v7727_v2 = vpop.f32.mrb[73].mxu0 }
 0x21f   :  { %v10115_v34 = vadd.f32 %v7727_v2, %v7726_v18  ;;  %v7729_v5 = vpop.f32.mrb[74].mxu0 }
 0x220   :  { %v7730_v15 = vpop.f32.mrb[75].mxu0 }
 0x221   :  { %v10117_v42 = vadd.f32 %v7730_v15, %v7729_v5 }
 0x225   :  { %v7732_v46 = vpop.f32.mrb[76].mxu0 }
 0x226   :  { %v7733_v55 = vpop.f32.mrb[77].mxu0 }
 0x227   :  { %v10119_v39 = vadd.f32 %v7733_v55, %v7732_v46  ;;  %v7735_v13 = vpop.f32.mrb[78].mxu0 }
 0x228   :  { %v7736_v47 = vpop.f32.mrb[79].mxu0 }
 0x229   :  { %v10121_v60 = vadd.f32 %v7736_v47, %v7735_v13 }
 0x22d   :  { %v7738_v48 = vpop.f32.mrb[80].mxu0 }
 0x22e   :  { %v2301_v7 = vpop.f32.mrb[64].mxu1  ;;  %v7739_v23 = vpop.f32.mrb[81].mxu0 }
 0x22f   :  { %v2303_v0 = vpop.f32.mrb[65].mxu1  ;;  %v10125_v2 = vadd.f32 %v7739_v23, %v7738_v48  ;;  %v7741_v5 = vpop.f32.mrb[82].mxu0 }
 0x230   :  { %v2305_v10 = vpop.f32.mrb[66].mxu1  ;;  %v7742_v58 = vpop.f32.mrb[83].mxu0 }
 0x231   :  { %v10123_v32 = vpack.c.bf16 %v2305_v10, %v2301_v7  ;;  %v2307_v18 = vpop.f32.mrb[67].mxu1  ;;  %v10130_v46 = vadd.f32 %v7742_v58, %v7741_v5 }
 0x232   :  { %v10127_v15 = vpack.c.bf16 %v2307_v18, %v2303_v0 }
 0x233   :  { %8114 = vmatprep.subr.bf16.mxu0 %v10123_v32 }
 0x234   :  { %8115 = vmatpush3.bf16.msra.mxu0 %v10123_v32 }
 0x235   :  { %v7744_v47 = vpop.f32.mrb[84].mxu0 }
 0x236   :  { %v2311_v55 = vpop.f32.mrb[68].mxu1  ;;  %v7745_v49 = vpop.f32.mrb[85].mxu0 }
 0x237   :  { %v2313_v13 = vpop.f32.mrb[69].mxu1  ;;  %v10135_v23 = vadd.f32 %v7745_v49, %v7744_v47  ;;  %v7747_v48 = vpop.f32.mrb[86].mxu0 }
 0x238   :  { %v2315_v26 = vpop.f32.mrb[70].mxu1  ;;  %v7748_v18 = vpop.f32.mrb[87].mxu0 }
 0x239   :  { %v10133_v7 = vpack.c.bf16 %v2315_v26, %v2311_v55  ;;  %v2317_v10 = vpop.f32.mrb[71].mxu1  ;;  %v10140_v58 = vadd.f32 %v7748_v18, %v7747_v48 }
 0x23a   :  { %v10137_v0 = vpack.c.bf16 %v2317_v10, %v2313_v13 }
 0x23b   :  { %8116 = vmatprep.subr.bf16.mxu0 %v10133_v7 }
 0x23c   :  { %12349 = vst [vmem:[#allocation40_spill] sm:$0xff] %v10137_v0  ;;  %8117 = vmatpush3.bf16.msra.mxu0 %v10133_v7 }
 0x23d   :  { %v7750_v44 = vpop.f32.mrb[88].mxu0 }
 0x23e   :  { %v2321_v5 = vpop.f32.mrb[72].mxu1  ;;  %v7751_v11 = vpop.f32.mrb[89].mxu0 }
 0x23f   :  { %v2323_v40 = vpop.f32.mrb[73].mxu1  ;;  %v10145_v49 = vadd.f32 %v7751_v11, %v7750_v44  ;;  %v7753_v47 = vpop.f32.mrb[90].mxu0 }
 0x240   :  { %v2325_v43 = vpop.f32.mrb[74].mxu1  ;;  %v7754_v10 = vpop.f32.mrb[91].mxu0 }
 0x241   :  { %v10143_v26 = vpack.c.bf16 %v2325_v43, %v2321_v5  ;;  %v2327_v55 = vpop.f32.mrb[75].mxu1  ;;  %v10150_v48 = vadd.f32 %v7754_v10, %v7753_v47  ;;  %v10162_v47 = vpop.permute.xlu0 %3198 }
 0x242   :  { %v10147_v13 = vpack.c.bf16 %v2327_v55, %v2323_v40 }
 0x243   :  { %8118 = vmatprep.subr.bf16.mxu0 %v10143_v26 }
 0x244   :  { %12350 = vst [vmem:[#allocation41_spill] sm:$0xff] %v10147_v13  ;;  %8119 = vmatpush3.bf16.msra.mxu0 %v10143_v26 }
 0x245   :  { %v7756_v31 = vpop.f32.mrb[92].mxu0 }
 0x246   :  { %v2331_v18 = vpop.f32.mrb[76].mxu1  ;;  %v7757_v56 = vpop.f32.mrb[93].mxu0 }
 0x247   :  { %v2333_v25 = vpop.f32.mrb[77].mxu1  ;;  %v10153_v43 = vadd.f32 %v7757_v56, %v7756_v31  ;;  %v7759_v5 = vpop.f32.mrb[94].mxu0 }
 0x248   :  { %v2335_v61 = vpop.f32.mrb[78].mxu1  ;;  %v7760_v40 = vpop.f32.mrb[95].mxu0 }
 0x249   :  { %v10155_v11 = vpack.c.bf16 %v2335_v61, %v2331_v18  ;;  %v2337_v44 = vpop.f32.mrb[79].mxu1  ;;  %v10159_v9 = vadd.f32 %v7760_v40, %v7759_v5 }
 0x24a   :  { %v10157_v55 = vpack.c.bf16 %v2337_v44, %v2333_v25 }
 0x24b   :  { %8120 = vmatprep.subr.bf16.mxu0 %v10155_v11 }
 0x24c   :  { %12351 = vst [vmem:[#allocation42_spill] sm:$0xff] %v10157_v55  ;;  %8121 = vmatpush3.bf16.msra.mxu0 %v10155_v11 }
 0x24d   :  { %8698 = vmatprep.subr.msk.bf16.mxu0 %vm2617_vm0, %v10162_v47 }
 0x24e   :  { %v2341_v56 = vpop.f32.mrb[80].mxu1 }
 0x24f   :  { %v2343_v31 = vpop.f32.mrb[81].mxu1 }
 0x250   :  { %v2345_v10 = vpop.f32.mrb[82].mxu1 }
 0x251   :  { %v10167_v61 = vpack.c.bf16 %v2345_v10, %v2341_v56  ;;  %v2347_v18 = vpop.f32.mrb[83].mxu1 }
 0x252   :  { %v10169_v37 = vpack.c.bf16 %v2347_v18, %v2343_v31 }
 0x253   :  { %8130 = vmatprep.subr.bf16.mxu1 %v10167_v61 }
 0x254   :  { %12352 = vst [vmem:[#allocation43_spill] sm:$0xff] %v10169_v37  ;;  %8131 = vmatpush3.bf16.msra.mxu1 %v10167_v61 }
 0x256   :  { %v2351_v25 = vpop.f32.mrb[84].mxu1 }
 0x257   :  { %v2353_v5 = vpop.f32.mrb[85].mxu1 }
 0x258   :  { %v2355_v44 = vpop.f32.mrb[86].mxu1 }
 0x259   :  { %v10173_v40 = vpack.c.bf16 %v2355_v44, %v2351_v25  ;;  %v2357_v6 = vpop.f32.mrb[87].mxu1 }
 0x25a   :  { %v10175_v21 = vpack.c.bf16 %v2357_v6, %v2353_v5 }
 0x25b   :  { %8132 = vmatprep.subr.bf16.mxu1 %v10173_v40 }
 0x25c   :  { %12353 = vst [vmem:[#allocation44_spill] sm:$0xff] %v10175_v21  ;;  %8133 = vmatpush3.bf16.msra.mxu1 %v10173_v40 }
 0x25e   :  { %v2361_v56 = vpop.f32.mrb[88].mxu1 }
 0x25f   :  { %v2363_v10 = vpop.f32.mrb[89].mxu1 }
 0x260   :  { %v2365_v31 = vpop.f32.mrb[90].mxu1 }
 0x261   :  { %v10179_v18 = vpack.c.bf16 %v2365_v31, %v2361_v56  ;;  %v2367_v4 = vpop.f32.mrb[91].mxu1 }
 0x262   :  { %v10181_v36 = vpack.c.bf16 %v2367_v4, %v2363_v10 }
 0x263   :  { %8134 = vmatprep.subr.bf16.mxu1 %v10179_v18 }
 0x264   :  { %12354 = vst [vmem:[#allocation45_spill] sm:$0xff] %v10181_v36  ;;  %8135 = vmatpush3.bf16.msra.mxu1 %v10179_v18 }
 0x266   :  { %v2371_v25 = vpop.f32.mrb[92].mxu1 }
 0x267   :  { %v2373_v44 = vpop.f32.mrb[93].mxu1 }
 0x268   :  { %v2375_v6 = vpop.f32.mrb[94].mxu1 }
 0x269   :  { %v10185_v5 = vpack.c.bf16 %v2375_v6, %v2371_v25  ;;  %v2377_v21 = vpop.f32.mrb[95].mxu1 }
 0x26a   :  { %v10187_v3 = vpack.c.bf16 %v2377_v21, %v2373_v44 }
 0x26b   :  { %8136 = vmatprep.subr.bf16.mxu1 %v10185_v5 }
 0x26c   :  { %12355 = vst [vmem:[#allocation46_spill] sm:$0xff] %v10187_v3  ;;  %8137 = vmatpush3.bf16.msra.mxu1 %v10185_v5 }
 0x26e   :  { %v8068_v56 = vpop.f32.mrb[96].mxu1 }
 0x26f   :  { %v2511_v31 = vpop.f32.mrb[97].mxu1  ;;  %v2520_v4 = vadd.f32 %v8068_v56, %v10111_v22 }
 0x270   :  { %v8069_v10 = vpop.f32.mrb[98].mxu1  ;;  %v2512_v36 = vadd.f32 %v10107_v41, %v2511_v31 }
 0x271   :  { %v2514_v37 = vpop.f32.mrb[99].mxu1  ;;  %v2523_v45 = vadd.f32 %v8069_v10, %v10113_v63 }
 0x272   :  { %v2515_v25 = vadd.f32 %v10109_v54, %v2514_v37 }
 0x273   :  { %v10195_v6 = vpack.c.bf16 %v2523_v45, %v2520_v4 }
 0x274   :  { %v10197_v21 = vpack.c.bf16 %v2515_v25, %v2512_v36 }
 0x275   :  { %12356 = vst [vmem:[#allocation47_spill] sm:$0xff] %v10195_v6 }
 0x276   :  { %12357 = vst [vmem:[#allocation48_spill] sm:$0xff] %v10197_v21  ;;  %v8072_v44 = vpop.f32.mrb[100].mxu1 }
 0x277   :  { %v2527_v3 = vpop.f32.mrb[101].mxu1  ;;  %v2536_v29 = vadd.f32 %v8072_v44, %v10119_v39 }
 0x278   :  { %v8073_v62 = vpop.f32.mrb[102].mxu1  ;;  %v2528_v53 = vadd.f32 %v10115_v34, %v2527_v3 }
 0x279   :  { %v2530_v22 = vpop.f32.mrb[103].mxu1  ;;  %v2539_v56 = vadd.f32 %v8073_v62, %v10121_v60 }
 0x27a   :  { %v2531_v41 = vadd.f32 %v10117_v42, %v2530_v22 }
 0x27b   :  { %v10203_v31 = vpack.c.bf16 %v2539_v56, %v2536_v29 }
 0x27c   :  { %v10205_v63 = vpack.c.bf16 %v2531_v41, %v2528_v53 }
 0x27d   :  { %12358 = vst [vmem:[#allocation49_spill] sm:$0xff] %v10203_v31 }
 0x27e   :  { %12359 = vst [vmem:[#allocation50_spill] sm:$0xff] %v10205_v63  ;;  %v8076_v37 = vpop.f32.mrb[104].mxu1 }
 0x27f   :  { %v2543_v45 = vpop.f32.mrb[105].mxu1  ;;  %v2552_v36 = vadd.f32 %v8076_v37, %v10135_v23 }
 0x280   :  { %v8077_v54 = vpop.f32.mrb[106].mxu1  ;;  %v2544_v4 = vadd.f32 %v10125_v2, %v2543_v45 }
 0x281   :  { %v2546_v39 = vpop.f32.mrb[107].mxu1  ;;  %v2555_v10 = vadd.f32 %v8077_v54, %v10140_v58 }
 0x282   :  { %v2547_v3 = vadd.f32 %v10130_v46, %v2546_v39  ;;  %v2574_v46 = vlaneseq }
 0x283   :  { %v10211_v34 = vpack.c.bf16 %v2555_v10, %v2552_v36 }
 0x284   :  { %v10213_v62 = vpack.c.bf16 %v2547_v3, %v2544_v4  ;;  %v10223_v56 = vshrl.u32 %v2574_v46, 7  ;;  %v2584_v37 = vand.u32 127, %v2574_v46 }
 0x285   :  { %12360 = vst [vmem:[#allocation51_spill] sm:$0xff] %v10211_v34 }
 0x286   :  { %12361 = vst [vmem:[#allocation52_spill] sm:$0xff] %v10213_v62  ;;  %v8080_v29 = vpop.f32.mrb[108].mxu1  ;;  %12364 = vst [vmem:[#allocation55_spill] sm:$0xff] %v10223_v56  ;;  %v2577_v41 = vadd.s32 16, %v10223_v56  ;;  %v2576_v45 = vadd.s32 8, %v10223_v56  ;;  %vm10233_vm2 = vcmp.ge.s32.totalorder %v10223_v56, %v2584_v37 }
 0x287   :  { %v2559_v42 = vpop.f32.mrb[109].mxu1  ;;  %v2568_v53 = vadd.f32 %v8080_v29, %v10153_v43  ;;  %v2578_v43 = vadd.s32 24, %v10223_v56 }
 0x288   :  { %v8081_v60 = vpop.f32.mrb[110].mxu1  ;;  %v2560_v25 = vadd.f32 %v10145_v49, %v2559_v42  ;;  %vm10228_vm1 = vcmp.ge.s32.totalorder %v2577_v41, %v2584_v37  ;;  %vm10245_vm4 = vcmp.ge.s32.totalorder %v2576_v45, %v2584_v37  ;;  %v2581_v42 = vadd.s32 48, %v10223_v56 }
 0x289   :  { %v2562_v23 = vpop.f32.mrb[111].mxu1  ;;  %v2571_v44 = vadd.f32 %v8081_v60, %v10159_v9  ;;  %vm10237_vm3 = vcmp.ge.s32.totalorder %v2578_v43, %v2584_v37  ;;  %v2580_v43 = vadd.s32 40, %v10223_v56 }
 0x28a   :  { %v2563_v2 = vadd.f32 %v10150_v48, %v2562_v23  ;;  %vm10270_vm5 = vcmp.ge.s32.totalorder %v2581_v42, %v2584_v37 }
 0x28b   :  { %v10219_v22 = vpack.c.bf16 %v2571_v44, %v2568_v53  ;;  %v2582_v44 = vadd.s32 56, %v10223_v56  ;;  %vm10289_vm8 = vcmp.ge.s32.totalorder %v2580_v43, %v2584_v37 }
 0x28c   :  { %v10221_v58 = vpack.c.bf16 %v2563_v2, %v2560_v25  ;;  %v2579_v2 = vadd.s32 32, %v10223_v56 }
 0x28d   :  { %12362 = vst [vmem:[#allocation53_spill] sm:$0xff] %v10219_v22  ;;  %vm10277_vm6 = vcmp.ge.s32.totalorder %v2582_v44, %v2584_v37 }
 0x28e   :  { %12363 = vst [vmem:[#allocation54_spill] sm:$0xff] %v10221_v58  ;;  %vm10285_vm7 = vcmp.ge.s32.totalorder %v2579_v2, %v2584_v37 }
 0x2a7   :  { %v8092_v48 = vpop.f32.mrb[112].mxu1 }
 0x2a8   :  { %v10243_v54 = vsel %vm10228_vm1, %v8092_v48, -1e+30  ;;  %v2676_v4 = vpop.f32.mrb[113].mxu1 }
 0x2a9   :  { %v10251_v10 = vsel %vm10233_vm2, %v2676_v4, -1e+30  ;;  %v8093_v3 = vpop.f32.mrb[114].mxu1  ;;  %v2834_v29 = vsel %vm2617_vm0, %v10243_v54, -inf }
 0x2aa   :  { %v10258_v53 = vsel %vm10237_vm3, %v8093_v3, -1e+30  ;;  %2835 = vmax.xlane.f32.xlu1 %v2834_v29  ;;  %v2679_v60 = vpop.f32.mrb[115].mxu1  ;;  %v2828_v25 = vsel %vm2617_vm0, %v10251_v10, -inf }
 0x2ab   :  { %v10264_v23 = vsel %vm10245_vm4, %v2679_v60, -1e+30  ;;  %2829 = vmax.xlane.f32.xlu0 %v2828_v25  ;;  %v2837_v46 = vsel %vm2617_vm0, %v10258_v53, -inf }
 0x2ac   :  { %v2831_v45 = vsel %vm2617_vm0, %v10264_v23, -inf }
 0x2ae   :  { %2838 = vmax.xlane.f32.xlu1 %v2837_v46 }
 0x2af   :  { %2832 = vmax.xlane.f32.xlu0 %v2831_v45  ;;  %v8096_v48 = vpop.f32.mrb[116].mxu1 }
 0x2b0   :  { %v10283_v3 = vsel %vm10270_vm5, %v8096_v48, -1e+30  ;;  %v2692_v42 = vpop.f32.mrb[117].mxu1 }
 0x2b1   :  { %v8097_v60 = vpop.f32.mrb[118].mxu1  ;;  %v2846_v44 = vsel %vm2617_vm0, %v10283_v3, -inf  ;;  %v10301_v2 = vsel %vm10285_vm7, %v2692_v42, -1e+30 }
 0x2b2   :  { %v10297_v46 = vsel %vm10277_vm6, %v8097_v60, -1e+30  ;;  %v2695_v45 = vpop.f32.mrb[119].mxu1  ;;  %v2840_v43 = vsel %vm2617_vm0, %v10301_v2, -inf }
 0x2b3   :  { %2847 = vmax.xlane.f32.xlu0 %v2846_v44  ;;  %v2849_v48 = vsel %vm2617_vm0, %v10297_v46, -inf  ;;  %v10307_v37 = vsel %vm10289_vm8, %v2695_v45, -1e+30 }
 0x2b4   :  { %2850 = vmax.xlane.f32.xlu1 %v2849_v48  ;;  %v2843_v60 = vsel %vm2617_vm0, %v10307_v37, -inf }
 0x2b7   :  { %2841 = vmax.xlane.f32.xlu0 %v2840_v43 }
 0x2b8   :  { %2844 = vmax.xlane.f32.xlu1 %v2843_v60 }
 0x2c7   :  { %v8108_v56 = vpop.f32.mrb[96].mxu0 }
 0x2c8   :  { %v10315_v42 = vsel %vm10228_vm1, %v8108_v56, -1e+30  ;;  %v2765_v44 = vpop.f32.mrb[97].mxu0 }
 0x2c9   :  { %v8109_v22 = vpop.f32.mrb[98].mxu0  ;;  %v2858_v45 = vsel %vm2617_vm0, %v10315_v42, -inf  ;;  %v10321_v48 = vsel %vm10233_vm2, %v2765_v44, -1e+30 }
 0x2ca   :  { %v10325_v43 = vsel %vm10237_vm3, %v8109_v22, -1e+30  ;;  %2859 = vmax.xlane.f32.xlu0 %v2858_v45  ;;  %v2768_v60 = vpop.f32.mrb[99].mxu0  ;;  %v2852_v34 = vsel %vm2617_vm0, %v10321_v48, -inf }
 0x2cb   :  { %v2861_v58 = vsel %vm2617_vm0, %v10325_v43, -inf  ;;  %v10331_v56 = vsel %vm10245_vm4, %v2768_v60, -1e+30 }
 0x2cc   :  { %2862 = vmax.xlane.f32.xlu1 %v2861_v58  ;;  %v2855_v62 = vsel %vm2617_vm0, %v10331_v56, -inf }
 0x2ce   :  { %2853 = vmax.xlane.f32.xlu0 %v2852_v34 }
 0x2cf   :  { %v8112_v44 = vpop.f32.mrb[100].mxu0 }
 0x2d0   :  { %v10339_v22 = vsel %vm10270_vm5, %v8112_v44, -1e+30  ;;  %2856 = vmax.xlane.f32.xlu1 %v2855_v62  ;;  %v2781_v45 = vpop.f32.mrb[101].mxu0 }
 0x2d1   :  { %v8113_v31 = vpop.f32.mrb[102].mxu0  ;;  %v2870_v60 = vsel %vm2617_vm0, %v10339_v22, -inf  ;;  %v10345_v58 = vsel %vm10285_vm7, %v2781_v45, -1e+30 }
 0x2d2   :  { %2871 = vmax.xlane.f32.xlu0 %v2870_v60  ;;  %v2784_v34 = vpop.f32.mrb[103].mxu0  ;;  %v2864_v63 = vsel %vm2617_vm0, %v10345_v58, -inf  ;;  %v10359_v62 = vsel %vm10277_vm6, %v8113_v31, -1e+30 }
 0x2d3   :  { %v2873_v44 = vsel %vm2617_vm0, %v10359_v62, -inf }
 0x2d6   :  { %2865 = vmax.xlane.f32.xlu0 %v2864_v63  ;;  %v10365_v63 = vsel %vm10289_vm8, %v2784_v34, -1e+30 }
 0x2e1   :  { %3188 = vrot.lane.b32.xlu1 %v9912_v38, %s9646_s2  ;;  %v2867_v38 = vsel %vm2617_vm0, %v10365_v63, -inf }
 0x2e5   :  { %3311 = vrot.lane.b32.xlu1 %v10035_v17, %s9646_s2  ;;  %v10369_v17 = vpop.permute.xlu0 %3202 }
 0x2e9   :  { %3313 = vrot.lane.b32.xlu1 %v10051_v24, %s9646_s2  ;;  %v10371_v24 = vpop.permute.xlu1 %3200 }
 0x2ec   :  { %3186 = vrot.lane.b32.xlu0 %v9896_v16, %s9646_s2  ;;  %v10373_v16 = vpop.permute.xlu0 %3204 }
 0x30d   :  { %2874 = vmax.xlane.f32.xlu1 %v2873_v44 }
 0x311   :  { %2868 = vmax.xlane.f32.xlu1 %v2867_v38 }
 0x337   :  { %v2836_v31 = vpop.xlane.xlu1 %2835 }
 0x338   :  { %v2878_v45 = vsub.f32 %v10243_v54, %v2836_v31  ;;  %v2830_v60 = vpop.xlane.xlu0 %2829 }
 0x339   :  { %v2876_v6 = vsub.f32 %v10251_v10, %v2830_v60 }
 0x33a   :  { %v2896_v21 = vmul.f32 1.442695, %v2878_v45 }
 0x33b   :  { %v2892_v34 = vmul.f32 1.442695, %v2876_v6  ;;  %v2839_v55 = vpop.xlane.xlu1 %2838 }
 0x33c   :  { %9158 = vpow2.f32 %v2896_v21  ;;  %v2879_v44 = vsub.f32 %v10258_v53, %v2839_v55  ;;  %v2833_v1 = vpop.xlane.xlu0 %2832 }
 0x33d   :  { %v2877_v38 = vsub.f32 %v10264_v23, %v2833_v1  ;;  %9160 = vpow2.f32 %v2892_v34 }
 0x33e   :  { %v2898_v13 = vmul.f32 1.442695, %v2879_v44 }
 0x33f   :  { %v2894_v0 = vmul.f32 1.442695, %v2877_v38 }
 0x340   :  { %9162 = vpow2.f32 %v2898_v13  ;;  %v2848_v57 = vpop.xlane.xlu0 %2847 }
 0x341   :  { %v2882_v28 = vsub.f32 %v10283_v3, %v2848_v57  ;;  %v2851_v54 = vpop.xlane.xlu1 %2850  ;;  %9164 = vpow2.f32 %v2894_v0 }
 0x342   :  { %v2883_v10 = vsub.f32 %v10297_v46, %v2851_v54 }
 0x343   :  { %v2904_v31 = vmul.f32 1.442695, %v2882_v28 }
 0x344   :  { %v2906_v6 = vmul.f32 1.442695, %v2883_v10  ;;  %v2842_v45 = vpop.xlane.xlu0 %2841 }
 0x345   :  { %9166 = vpow2.f32 %v2904_v31  ;;  %v2880_v55 = vsub.f32 %v10301_v2, %v2842_v45  ;;  %v2845_v21 = vpop.xlane.xlu1 %2844 }
 0x346   :  { %v10382_v53 = vpop.eup %9158  ;;  %9168 = vpow2.f32 %v2906_v6  ;;  %v2881_v1 = vsub.f32 %v10307_v37, %v2845_v21 }
 0x347   :  { %v2900_v13 = vmul.f32 1.442695, %v2880_v55  ;;  %v2930_v57 = vsel %vm2617_vm0, %v10382_v53, 0.0  ;;  %v10387_v23 = vpop.eup %9160 }
 0x348   :  { %v2902_v0 = vmul.f32 1.442695, %v2881_v1  ;;  %2931 = vadd.xlane.f32.xlu0 %v2930_v57  ;;  %v2924_v3 = vsel %vm2617_vm0, %v10387_v23, 0.0 }
 0x349   :  { %9170 = vpow2.f32 %v2900_v13 }
 0x34a   :  { %v10389_v28 = vpop.eup %9162  ;;  %9172 = vpow2.f32 %v2902_v0 }
 0x34b   :  { %v2933_v46 = vsel %vm2617_vm0, %v10389_v28, 0.0  ;;  %v10395_v2 = vpop.eup %9164 }
 0x34c   :  { %2925 = vadd.xlane.f32.xlu0 %v2924_v3  ;;  %2934 = vadd.xlane.f32.xlu1 %v2933_v46  ;;  %v2927_v60 = vsel %vm2617_vm0, %v10395_v2, 0.0 }
 0x34f   :  { %v10397_v37 = vpop.eup %9166 }
 0x350   :  { %v10401_v34 = vpop.eup %9168  ;;  %2928 = vadd.xlane.f32.xlu1 %v2927_v60  ;;  %v2942_v44 = vsel %vm2617_vm0, %v10397_v37, 0.0 }
 0x351   :  { %2943 = vadd.xlane.f32.xlu0 %v2942_v44  ;;  %v2945_v54 = vsel %vm2617_vm0, %v10401_v34, 0.0 }
 0x353   :  { %v10405_v38 = vpop.eup %9170 }
 0x354   :  { %v10409_v10 = vpop.eup %9172  ;;  %2946 = vadd.xlane.f32.xlu1 %v2945_v54  ;;  %v2936_v31 = vsel %vm2617_vm0, %v10405_v38, 0.0 }
 0x355   :  { %2937 = vadd.xlane.f32.xlu0 %v2936_v31  ;;  %v2939_v45 = vsel %vm2617_vm0, %v10409_v10, 0.0 }
 0x357   :  { %v2860_v6 = vpop.xlane.xlu0 %2859 }
 0x358   :  { %v2886_v55 = vsub.f32 %v10315_v42, %v2860_v6  ;;  %2940 = vadd.xlane.f32.xlu1 %v2939_v45 }
 0x359   :  { %v2863_v21 = vpop.xlane.xlu1 %2862 }
 0x35a   :  { %v2912_v1 = vmul.f32 1.442695, %v2886_v55  ;;  %v2887_v13 = vsub.f32 %v10325_v43, %v2863_v21 }
 0x35b   :  { %v2854_v57 = vpop.xlane.xlu0 %2853 }
 0x35c   :  { %9174 = vpow2.f32 %v2912_v1  ;;  %v2884_v0 = vsub.f32 %v10321_v48, %v2854_v57  ;;  %v2914_v46 = vmul.f32 1.442695, %v2887_v13 }
 0x35d   :  { %v2857_v3 = vpop.xlane.xlu1 %2856 }
 0x35e   :  { %v2908_v60 = vmul.f32 1.442695, %v2884_v0  ;;  %v2885_v44 = vsub.f32 %v10331_v56, %v2857_v3 }
 0x35f   :  { %v2872_v55 = vpop.xlane.xlu0 %2871 }
 0x360   :  { %9176 = vpow2.f32 %v2908_v60  ;;  %v2910_v31 = vmul.f32 1.442695, %v2885_v44  ;;  %v2890_v57 = vsub.f32 %v10339_v22, %v2872_v55 }
 0x361   :  { %v10419_v54 = vpop.permute.xlu1 %3188  ;;  %9178 = vpow2.f32 %v2914_v46 }
 0x362   :  { %9180 = vpow2.f32 %v2910_v31  ;;  %v2920_v0 = vmul.f32 1.442695, %v2890_v57 }
 0x364   :  { %9182 = vpow2.f32 %v2920_v0 }
 0x365   :  { %v10421_v42 = vpop.permute.xlu1 %3311 }
 0x366   :  { %v10423_v6 = vpop.eup %9174  ;;  %8702 = vmatprep.subr.msk.bf16.mxu1 %vm2617_vm0, %v10421_v42 }
 0x367   :  { %v2954_v48 = vsel %vm2617_vm0, %v10423_v6, 0.0 }
 0x368   :  { %2955 = vadd.xlane.f32.xlu1 %v2954_v48 }
 0x369   :  { %v10455_v48 = vpop.permute.xlu1 %3313 }
 0x36a   :  { %v10429_v43 = vpop.eup %9176 }
 0x36b   :  { %3315 = vrot.lane.b32.xlu0 %v10065_v35, %s9646_s2  ;;  %v2948_v56 = vsel %vm2617_vm0, %v10429_v43, 0.0  ;;  %v10435_v45 = vpop.eup %9178  ;;  %v2866_v35 = vpop.xlane.xlu0 %2865 }
 0x36c   :  { %2949 = vadd.xlane.f32.xlu1 %v2948_v56  ;;  %v2957_v21 = vsel %vm2617_vm0, %v10435_v45, 0.0  ;;  %v10439_v1 = vpop.eup %9180  ;;  %v2888_v3 = vsub.f32 %v10345_v58, %v2866_v35 }
 0x36d   :  { %v2951_v13 = vsel %vm2617_vm0, %v10439_v1, 0.0 }
 0x36e   :  { %v2916_v46 = vmul.f32 1.442695, %v2888_v3  ;;  %v10447_v60 = vpop.eup %9182 }
 0x36f   :  { %v2966_v44 = vsel %vm2617_vm0, %v10447_v60, 0.0 }
 0x370   :  { %2958 = vadd.xlane.f32.xlu1 %v2957_v21  ;;  %9184 = vpow2.f32 %v2916_v46 }
 0x374   :  { %2952 = vadd.xlane.f32.xlu1 %v2951_v13 }
 0x37a   :  { %v10451_v31 = vpop.eup %9184 }
 0x37b   :  { %v2960_v22 = vsel %vm2617_vm0, %v10451_v31, 0.0 }
 0x385   :  { %3190 = vrot.lane.b32.xlu1 %v9929_v52, %s9646_s2 }
 0x38a   :  { %2967 = vadd.xlane.f32.xlu0 %v2966_v44 }
 0x38e   :  { %2961 = vadd.xlane.f32.xlu0 %v2960_v22 }
 0x39a   :  { %v2875_v58 = vpop.xlane.xlu1 %2874 }
 0x39b   :  { %v2891_v56 = vsub.f32 %v10359_v62, %v2875_v58  ;;  %v3187_v62 = vpop.permute.xlu0 %3186 }
 0x39d   :  { %v2922_v55 = vmul.f32 1.442695, %v2891_v56 }
 0x39e   :  { %v2869_v21 = vpop.xlane.xlu1 %2868 }
 0x39f   :  { %9186 = vpow2.f32 %v2922_v55  ;;  %v2889_v52 = vsub.f32 %v10365_v63, %v2869_v21 }
 0x3a1   :  { %v2918_v13 = vmul.f32 1.442695, %v2889_v52 }
 0x3a3   :  { %9188 = vpow2.f32 %v2918_v13 }
 0x3a9   :  { %v10459_v57 = vpop.eup %9186 }
 0x3aa   :  { %v2969_v35 = vsel %vm2617_vm0, %v10459_v57, 0.0 }
 0x3ab   :  { %2970 = vadd.xlane.f32.xlu0 %v2969_v35 }
 0x3ad   :  { %v10463_v0 = vpop.eup %9188 }
 0x3ae   :  { %v2963_v3 = vsel %vm2617_vm0, %v10463_v0, 0.0 }
 0x3af   :  { %2964 = vadd.xlane.f32.xlu1 %v2963_v3 }
 0x3c0   :  { %3317 = vrot.lane.b32.xlu1 %v10077_v50, %s9646_s2 }
 0x3c1   :  { %3192 = vrot.lane.b32.xlu0 %v9949_v27, %s9646_s2 }
 0x3c4   :  { %3301 = vrot.lane.b32.xlu1 %v9974_v51, %s9646_s2 }
 0x3c5   :  { %3299 = vrot.lane.b32.xlu0 %v9961_v12, %s9646_s2 }
 0x3c8   :  { %3305 = vrot.lane.b32.xlu1 %v9994_v19, %s9646_s2 }
 0x3c9   :  { %3303 = vrot.lane.b32.xlu0 %v9984_v59, %s9646_s2 }
 0x3d5   :  { %v2932_v63 = vpop.xlane.xlu0 %2931 }
 0x3d9   :  { %v2926_v46 = vpop.xlane.xlu0 %2925  ;;  %v2935_v44 = vpop.xlane.xlu1 %2934 }
 0x3da   :  { %9190 = vrcp.f32 %v2935_v44  ;;  %v3219_v44 = vsel %vm2617_vm0, %v10162_v47, 0  ;;  %v3222_v47 = vsel %vm2617_vm0, %v10371_v24, 0 }
 0x3db   :  { %9192 = vrcp.f32 %v2926_v46 }
 0x3dc   :  { %9194 = vrcp.f32 %v2932_v63 }
 0x3dd   :  { %v2929_v27 = vpop.xlane.xlu1 %2928 }
 0x3de   :  { %9196 = vrcp.f32 %v2929_v27  ;;  %v2944_v50 = vpop.xlane.xlu0 %2943 }
 0x3e1   :  { %v2947_v51 = vpop.xlane.xlu1 %2946 }
 0x3e2   :  { %v2938_v22 = vpop.xlane.xlu0 %2937  ;;  %9198 = vrcp.f32 %v2947_v51 }
 0x3e3   :  { %9200 = vrcp.f32 %v2938_v22 }
 0x3e4   :  { %v9191_v12 = vpop.eup %9190  ;;  %9202 = vrcp.f32 %v2944_v50 }
 0x3e5   :  { %v2941_v19 = vpop.xlane.xlu1 %2940  ;;  %v9193_v58 = vpop.eup %9192  ;;  %v2991_v55 = vmul.f32 %v9191_v12, %v10389_v28 }
 0x3e6   :  { %9204 = vrcp.f32 %v2941_v19  ;;  %v9195_v59 = vpop.eup %9194  ;;  %v2988_v21 = vmul.f32 %v9193_v58, %v10387_v23 }
 0x3e7   :  { %v2990_v13 = vmul.f32 %v9195_v59, %v10382_v53 }
 0x3e8   :  { %v9197_v56 = vpop.eup %9196 }
 0x3e9   :  { %v2989_v52 = vmul.f32 %v9197_v56, %v10395_v2  ;;  %v3005_v3 = vpack.c.bf16 %v2991_v55, %v2990_v13 }
 0x3eb   :  { %v3004_v35 = vpack.c.bf16 %v2989_v52, %v2988_v21 }
 0x3ec   :  { %v9199_v63 = vpop.eup %9198 }
 0x3ed   :  { %8122 = vmatprep.mubr.msk.bf16.mxu0 %vm2617_vm0, %v3004_v35  ;;  %v9201_v46 = vpop.eup %9200  ;;  %v2995_v23 = vmul.f32 %v9199_v63, %v10401_v34 }
 0x3ee   :  { %8123 = vmatmul.mubr.msk.bf16.vlgmr.msra.gmra.mrb[104].mxu0 %vm2617_vm0, %v3005_v3  ;;  %v9203_v27 = vpop.eup %9202  ;;  %v2992_v53 = vmul.f32 %v9201_v46, %v10405_v38 }
 0x3ef   :  { %8147 = vmatpush3.bf16.xpose.msra.mxu0 %v3219_v44  ;;  %v2994_v50 = vmul.f32 %v9203_v27, %v10397_v37  ;;  %v3225_v37 = vsel %vm2617_vm0, %v10369_v17, 0 }
 0x3f0   :  { %v9205_v28 = vpop.eup %9204  ;;  %8699 = vmatprep.subr.msk.bf16.mxu0 %vm2617_vm0, %v10371_v24  ;;  %v3228_v24 = vsel %vm2617_vm0, %v10373_v16, 0 }
 0x3f1   :  { %v2993_v2 = vmul.f32 %v9205_v28, %v10409_v10  ;;  %v3007_v22 = vpack.c.bf16 %v2995_v23, %v2994_v50 }
 0x3f3   :  { %v3006_v51 = vpack.c.bf16 %v2993_v2, %v2992_v53 }
 0x3f5   :  { %8126 = vmatprep.mubr.msk.bf16.mxu0 %vm2617_vm0, %v3006_v51  ;;  %v2956_v12 = vpop.xlane.xlu1 %2955 }
 0x3f6   :  { %8127 = vmatmul.mubr.msk.bf16.gmra.mrb[108].mxu0 %vm2617_vm0, %v3007_v22 }
 0x3f7   :  { %8149 = vmatpush3.bf16.xpose.msra.mxu0 %v3222_v47  ;;  %8154 = vmatprep.mubr.msk.bf16.mxu0 %vm2617_vm0, %v3187_v62 }
 0x3f8   :  { %8700 = vmatprep.subr.msk.bf16.mxu0 %vm2617_vm0, %v10369_v17 }
 0x3f9   :  { %v2950_v34 = vpop.xlane.xlu1 %2949 }
 0x3fd   :  { %v2959_v38 = vpop.xlane.xlu1 %2958 }
 0x3fe   :  { %9206 = vrcp.f32 %v2959_v38 }
 0x3ff   :  { %8151 = vmatpush3.bf16.xpose.msra.mxu0 %v3225_v37  ;;  %9208 = vrcp.f32 %v2950_v34 }
 0x400   :  { %8701 = vmatprep.subr.msk.bf16.mxu0 %vm2617_vm0, %v10373_v16  ;;  %9210 = vrcp.f32 %v2956_v12 }
 0x401   :  { %v2953_v10 = vpop.xlane.xlu1 %2952 }
 0x402   :  { %9212 = vrcp.f32 %v2953_v10 }
 0x405   :  { %v3191_v52 = vpop.permute.xlu1 %3190 }
 0x407   :  { %8153 = vmatpush3.bf16.xpose.msra.mxu0 %v3228_v24 }
 0x408   :  { %v9207_v62 = vpop.eup %9206 }
 0x409   :  { %v9209_v19 = vpop.eup %9208  ;;  %v2999_v56 = vmul.f32 %v9207_v62, %v10435_v45  ;;  %v3332_v45 = vsel %vm2617_vm0, %v10421_v42, 0 }
 0x40a   :  { %v9211_v58 = vpop.eup %9210  ;;  %v2996_v17 = vmul.f32 %v9209_v19, %v10429_v43  ;;  %v3316_v43 = vpop.permute.xlu0 %3315 }
 0x40b   :  { %v2998_v21 = vmul.f32 %v9211_v58, %v10423_v6  ;;  %v3335_v6 = vsel %vm2617_vm0, %v10455_v48, 0 }
 0x40c   :  { %v9213_v59 = vpop.eup %9212 }
 0x40d   :  { %v2997_v55 = vmul.f32 %v9213_v59, %v10439_v1  ;;  %v3009_v13 = vpack.c.bf16 %v2999_v56, %v2998_v21 }
 0x40e   :  { %8155 = vmatmul.mubr.msk.bf16.vlgmr.msra.gmra.mrb[112].mxu0 %vm2617_vm0, %v10419_v54  ;;  %v3338_v54 = vsel %vm2617_vm0, %v3316_v43, 0 }
 0x40f   :  { %8158 = vmatprep.mubr.msk.bf16.mxu0 %vm2617_vm0, %v3191_v52  ;;  %v3008_v16 = vpack.c.bf16 %v2997_v55, %v2996_v17 }
 0x411   :  { %8138 = vmatprep.mubr.msk.bf16.mxu1 %vm2617_vm0, %v3008_v16 }
 0x412   :  { %8139 = vmatmul.mubr.msk.bf16.vlgmr.msra.gmra.mrb[120].mxu1 %vm2617_vm0, %v3009_v13 }
 0x413   :  { %8163 = vmatpush3.bf16.xpose.msra.mxu1 %v3332_v45 }
 0x414   :  { %8703 = vmatprep.subr.msk.bf16.mxu1 %vm2617_vm0, %v10455_v48 }
 0x417   :  { %v2968_v1 = vpop.xlane.xlu0 %2967 }
 0x41b   :  { %8165 = vmatpush3.bf16.xpose.msra.mxu1 %v3335_v6  ;;  %v2962_v35 = vpop.xlane.xlu0 %2961 }
 0x41c   :  { %8704 = vmatprep.subr.msk.bf16.mxu1 %vm2617_vm0, %v3316_v43 }
 0x423   :  { %8167 = vmatpush3.bf16.xpose.msra.mxu1 %v3338_v54 }
 0x438   :  { %v2971_v3 = vpop.xlane.xlu0 %2970 }
 0x439   :  { %9214 = vrcp.f32 %v2971_v3 }
 0x43a   :  { %9216 = vrcp.f32 %v2962_v35 }
 0x43b   :  { %9218 = vrcp.f32 %v2968_v1 }
 0x43c   :  { %v3193_v42 = vpop.permute.xlu0 %3192  ;;  %v2965_v63 = vpop.xlane.xlu1 %2964 }
 0x43d   :  { %9220 = vrcp.f32 %v2965_v63  ;;  %8159 = vmatmul.mubr.msk.bf16.gmra.mrb[116].mxu0 %vm2617_vm0, %v3193_v42 }
 0x440   :  { %v3318_v46 = vpop.permute.xlu1 %3317  ;;  %v3300_v47 = vpop.permute.xlu0 %3299 }
 0x441   :  { %8705 = vmatprep.subr.msk.bf16.mxu1 %vm2617_vm0, %v3318_v46  ;;  %v3341_v48 = vsel %vm2617_vm0, %v3318_v46, 0 }
 0x442   :  { %8169 = vmatpush3.bf16.xpose.msra.mxu1 %v3341_v48 }
 0x443   :  { %v9215_v44 = vpop.eup %9214 }
 0x444   :  { %v9217_v27 = vpop.eup %9216  ;;  %v3003_v53 = vmul.f32 %v9215_v44, %v10459_v57  ;;  %v3302_v34 = vpop.permute.xlu1 %3301 }
 0x445   :  { %v9219_v28 = vpop.eup %9218  ;;  %v3000_v2 = vmul.f32 %v9217_v27, %v10451_v31  ;;  %v3304_v38 = vpop.permute.xlu0 %3303 }
 0x446   :  { %v3002_v51 = vmul.f32 %v9219_v28, %v10447_v60 }
 0x447   :  { %v9221_v23 = vpop.eup %9220 }
 0x448   :  { %v3001_v50 = vmul.f32 %v9221_v23, %v10463_v0  ;;  %v3011_v12 = vpack.c.bf16 %v3003_v53, %v3002_v51  ;;  %v3306_v31 = vpop.permute.xlu1 %3305 }
 0x44a   :  { %v3010_v22 = vpack.c.bf16 %v3001_v50, %v3000_v2 }
 0x44c   :  { %8142 = vmatprep.mubr.msk.bf16.mxu1 %vm2617_vm0, %v3010_v22 }
 0x44d   :  { %8143 = vmatmul.mubr.msk.bf16.gmra.mrb[124].mxu1 %vm2617_vm0, %v3011_v12 }
 0x44e   :  { %8170 = vmatprep.mubr.msk.bf16.mxu1 %vm2617_vm0, %v3300_v47 }
 0x455   :  { %8171 = vmatmul.mubr.msk.bf16.vlgmr.msra.gmra.mrb[128].mxu1 %vm2617_vm0, %v3302_v34 }
 0x456   :  { %8174 = vmatprep.mubr.msk.bf16.mxu1 %vm2617_vm0, %v3304_v38 }
 0x45d   :  { %8175 = vmatmul.mubr.msk.bf16.gmra.mrb[132].mxu1 %vm2617_vm0, %v3306_v31 }
 0x4c1   :  { %v8124_v57 = vpop.f32.mrb[104].mxu0 }
 0x4c2   :  { %v3058_v60 = vpop.f32.mrb[105].mxu0 }
 0x4c3   :  { %v8125_v0 = vpop.f32.mrb[106].mxu0 }
 0x4c4   :  { %v3167_v37 = vpack.c.bf16 %v8125_v0, %v8124_v57  ;;  %v3061_v10 = vpop.f32.mrb[107].mxu0 }
 0x4c5   :  { %v3166_v24 = vpack.c.bf16 %v3061_v10, %v3058_v60 }
 0x4c6   :  { %3175 = vst.msk [vmem:[#allocation2 + $0x18] sm:$0xff] %vm2617_vm0, %v3167_v37 }
 0x4c7   :  { %3174 = vst.msk [vmem:[#allocation2] sm:$0xff] %vm2617_vm0, %v3166_v24 }
 0x4c9   :  { %v8128_v62 = vpop.f32.mrb[108].mxu0 }
 0x4ca   :  { %v3074_v19 = vpop.f32.mrb[109].mxu0 }
 0x4cb   :  { %v8129_v58 = vpop.f32.mrb[110].mxu0 }
 0x4cc   :  { %v3169_v59 = vpack.c.bf16 %v8129_v58, %v8128_v62  ;;  %v3077_v56 = vpop.f32.mrb[111].mxu0 }
 0x4cd   :  { %v3168_v17 = vpack.c.bf16 %v3077_v56, %v3074_v19 }
 0x4ce   :  { %3177 = vst.msk [vmem:[#allocation2 + $0x48] sm:$0xff] %vm2617_vm0, %v3169_v59 }
 0x4cf   :  { %3176 = vst.msk [vmem:[#allocation2 + $0x30] sm:$0xff] %vm2617_vm0, %v3168_v17 }
 0x4e1   :  { %v8156_v55 = vpop.f32.mrb[112].mxu0 }
 0x4e2   :  { %v10542_v21 = vsel %vm10228_vm1, %v8156_v55, -1e+30  ;;  %v3264_v52 = vpop.f32.mrb[113].mxu0 }
 0x4e3   :  { %v8157_v16 = vpop.f32.mrb[114].mxu0  ;;  %v3430_v13 = vsel %vm2617_vm0, %v10542_v21, -inf  ;;  %v10548_v45 = vsel %vm10233_vm2, %v3264_v52, -1e+30 }
 0x4e4   :  { %3431 = vmax.xlane.f32.xlu0 %v3430_v13  ;;  %v3267_v6 = vpop.f32.mrb[115].mxu0  ;;  %v3424_v3 = vsel %vm2617_vm0, %v10548_v45, -inf  ;;  %v10560_v63 = vsel %vm10237_vm3, %v8157_v16, -1e+30 }
 0x4e5   :  { %v10552_v43 = vsel %vm10245_vm4, %v3267_v6, -1e+30  ;;  %v8140_v54 = vpop.f32.mrb[120].mxu1  ;;  %v3433_v27 = vsel %vm2617_vm0, %v10560_v63, -inf }
 0x4e6   :  { %v3427_v1 = vsel %vm2617_vm0, %v10552_v43, -inf  ;;  %v3135_v35 = vpop.f32.mrb[121].mxu1 }
 0x4e7   :  { %3428 = vmax.xlane.f32.xlu1 %v3427_v1  ;;  %v8141_v42 = vpop.f32.mrb[122].mxu1 }
 0x4e8   :  { %3425 = vmax.xlane.f32.xlu0 %v3424_v3  ;;  %v3171_v46 = vpack.c.bf16 %v8141_v42, %v8140_v54  ;;  %v3138_v48 = vpop.f32.mrb[123].mxu1 }
 0x4e9   :  { %v3170_v44 = vpack.c.bf16 %v3138_v48, %v3135_v35 }
 0x4ea   :  { %3179 = vst.msk [vmem:[#allocation2 + $0x78] sm:$0xff] %vm2617_vm0, %v3171_v46 }
 0x4eb   :  { %3178 = vst.msk [vmem:[#allocation2 + $0x60] sm:$0xff] %vm2617_vm0, %v3170_v44 }
 0x4ec   :  { %3434 = vmax.xlane.f32.xlu0 %v3433_v27 }
 0x510   :  { %v8160_v28 = vpop.f32.mrb[116].mxu0 }
 0x511   :  { %v10568_v23 = vsel %vm10270_vm5, %v8160_v28, -1e+30  ;;  %v3280_v53 = vpop.f32.mrb[117].mxu0 }
 0x512   :  { %v8161_v2 = vpop.f32.mrb[118].mxu0  ;;  %v3442_v50 = vsel %vm2617_vm0, %v10568_v23, -inf  ;;  %v10574_v51 = vsel %vm10285_vm7, %v3280_v53, -1e+30 }
 0x513   :  { %v10578_v22 = vsel %vm10277_vm6, %v8161_v2, -1e+30  ;;  %3443 = vmax.xlane.f32.xlu0 %v3442_v50  ;;  %v3283_v12 = vpop.f32.mrb[119].mxu0  ;;  %v3436_v38 = vsel %vm2617_vm0, %v10574_v51, -inf }
 0x514   :  { %v3445_v47 = vsel %vm2617_vm0, %v10578_v22, -inf  ;;  %v10584_v34 = vsel %vm10289_vm8, %v3283_v12, -1e+30 }
 0x515   :  { %3446 = vmax.xlane.f32.xlu1 %v3445_v47  ;;  %v3439_v31 = vsel %vm2617_vm0, %v10584_v34, -inf }
 0x517   :  { %3437 = vmax.xlane.f32.xlu0 %v3436_v38 }
 0x519   :  { %3440 = vmax.xlane.f32.xlu1 %v3439_v31 }
 0x520   :  { %v8144_v57 = vpop.f32.mrb[124].mxu1 }
 0x521   :  { %v3151_v60 = vpop.f32.mrb[125].mxu1 }
 0x522   :  { %v8145_v0 = vpop.f32.mrb[126].mxu1 }
 0x523   :  { %v3173_v37 = vpack.c.bf16 %v8145_v0, %v8144_v57  ;;  %v3154_v10 = vpop.f32.mrb[127].mxu1 }
 0x524   :  { %v3172_v24 = vpack.c.bf16 %v3154_v10, %v3151_v60 }
 0x525   :  { %3181 = vst.msk [vmem:[#allocation2 + $0xa8] sm:$0xff] %vm2617_vm0, %v3173_v37 }
 0x526   :  { %3180 = vst.msk [vmem:[#allocation2 + $0x90] sm:$0xff] %vm2617_vm0, %v3172_v24 }
 0x528   :  { %v8172_v62 = vpop.f32.mrb[128].mxu1 }
 0x529   :  { %v10594_v19 = vsel %vm10228_vm1, %v8172_v62, -1e+30  ;;  %v3377_v58 = vpop.f32.mrb[129].mxu1 }
 0x52a   :  { %3614 = vrot.lane.b32.xlu1 %v10133_v7, %s9646_s2  ;;  %v8173_v59 = vpop.f32.mrb[130].mxu1  ;;  %v3454_v56 = vsel %vm2617_vm0, %v10594_v19, -inf  ;;  %v10602_v17 = vsel %vm10233_vm2, %v3377_v58, -1e+30 }
 0x52b   :  { %3455 = vmax.xlane.f32.xlu0 %v3454_v56  ;;  %v3380_v55 = vpop.f32.mrb[131].mxu1  ;;  %v3448_v52 = vsel %vm2617_vm0, %v10602_v17, -inf  ;;  %v10614_v54 = vsel %vm10237_vm3, %v8173_v59, -1e+30 }
 0x52c   :  { %v10620_v1 = vsel %vm10245_vm4, %v3380_v55, -1e+30 }
 0x52e   :  { %3616 = vrot.lane.b32.xlu1 %v10143_v26, %s9646_s2  ;;  %v3457_v26 = vsel %vm2617_vm0, %v10614_v54, -inf }
 0x52f   :  { %3449 = vmax.xlane.f32.xlu0 %v3448_v52 }
 0x530   :  { %v8176_v16 = vpop.f32.mrb[132].mxu1 }
 0x531   :  { %v3393_v13 = vpop.f32.mrb[133].mxu1  ;;  %v10636_v42 = vsel %vm10270_vm5, %v8176_v16, -1e+30 }
 0x532   :  { %3618 = vrot.lane.b32.xlu1 %v10155_v11, %s9646_s2  ;;  %v8177_v7 = vpop.f32.mrb[134].mxu1  ;;  %v3451_v11 = vsel %vm2617_vm0, %v10620_v1, -inf  ;;  %v3466_v48 = vsel %vm2617_vm0, %v10636_v42, -inf  ;;  %v10644_v44 = vsel %vm10285_vm7, %v3393_v13, -1e+30 }
 0x533   :  { %v3396_v6 = vpop.f32.mrb[135].mxu1  ;;  %v10626_v35 = vsel %vm10277_vm6, %v8177_v7, -1e+30  ;;  %v3460_v27 = vsel %vm2617_vm0, %v10644_v44, -inf }
 0x534   :  { %v10632_v3 = vsel %vm10289_vm8, %v3396_v6, -1e+30 }
 0x535   :  { %v3463_v46 = vsel %vm2617_vm0, %v10632_v3, -inf }
 0x545   :  { %3612 = vrot.lane.b32.xlu0 %v10123_v32, %s9646_s2  ;;  %v3469_v32 = vsel %vm2617_vm0, %v10626_v35, -inf }
 0x556   :  { %3458 = vmax.xlane.f32.xlu1 %v3457_v26 }
 0x55a   :  { %3452 = vmax.xlane.f32.xlu1 %v3451_v11 }
 0x55e   :  { %3470 = vmax.xlane.f32.xlu1 %v3469_v32 }
 0x562   :  { %3464 = vmax.xlane.f32.xlu1 %v3463_v46 }
 0x564   :  { %3467 = vmax.xlane.f32.xlu0 %v3466_v48 }
 0x568   :  { %3461 = vmax.xlane.f32.xlu0 %v3460_v27 }
 0x571   :  { %v3432_v28 = vpop.xlane.xlu0 %3431 }
 0x572   :  { %v3474_v53 = vsub.f32 %v10542_v21, %v3432_v28 }
 0x574   :  { %v3492_v2 = vmul.f32 1.442695, %v3474_v53  ;;  %v3429_v50 = vpop.xlane.xlu1 %3428 }
 0x575   :  { %v3426_v12 = vpop.xlane.xlu0 %3425  ;;  %v3473_v38 = vsub.f32 %v10552_v43, %v3429_v50 }
 0x576   :  { %9222 = vpow2.f32 %v3492_v2  ;;  %v3472_v47 = vsub.f32 %v10548_v45, %v3426_v12 }
 0x577   :  { %v3490_v0 = vmul.f32 1.442695, %v3473_v38 }
 0x578   :  { %v3488_v31 = vmul.f32 1.442695, %v3472_v47 }
 0x579   :  { %v3435_v57 = vpop.xlane.xlu0 %3434 }
 0x57a   :  { %9224 = vpow2.f32 %v3488_v31  ;;  %v3475_v60 = vsub.f32 %v10560_v63, %v3435_v57 }
 0x57c   :  { %v3494_v37 = vmul.f32 1.442695, %v3475_v60 }
 0x57e   :  { %9226 = vpow2.f32 %v3494_v37 }
 0x57f   :  { %9228 = vpow2.f32 %v3490_v0 }
 0x580   :  { %v10652_v10 = vpop.eup %9222 }
 0x581   :  { %v3526_v21 = vsel %vm2617_vm0, %v10652_v10, 0.0 }
 0x582   :  { %3527 = vadd.xlane.f32.xlu0 %v3526_v21 }
 0x584   :  { %v10656_v24 = vpop.eup %9224 }
 0x585   :  { %v3520_v45 = vsel %vm2617_vm0, %v10656_v24, 0.0 }
 0x586   :  { %3521 = vadd.xlane.f32.xlu0 %v3520_v45 }
 0x588   :  { %v10660_v43 = vpop.eup %9226 }
 0x589   :  { %v3529_v63 = vsel %vm2617_vm0, %v10660_v43, 0.0  ;;  %v10664_v62 = vpop.eup %9228 }
 0x58a   :  { %3530 = vadd.xlane.f32.xlu1 %v3529_v63  ;;  %v3523_v58 = vsel %vm2617_vm0, %v10664_v62, 0.0 }
 0x58e   :  { %3524 = vadd.xlane.f32.xlu1 %v3523_v58 }
 0x5a0   :  { %v3444_v59 = vpop.xlane.xlu0 %3443 }
 0x5a1   :  { %v3478_v56 = vsub.f32 %v10568_v23, %v3444_v59 }
 0x5a2   :  { %v3447_v55 = vpop.xlane.xlu1 %3446 }
 0x5a3   :  { %v3500_v52 = vmul.f32 1.442695, %v3478_v56  ;;  %v3479_v16 = vsub.f32 %v10578_v22, %v3447_v55 }
 0x5a4   :  { %v3438_v13 = vpop.xlane.xlu0 %3437 }
 0x5a5   :  { %9230 = vpow2.f32 %v3500_v52  ;;  %v3476_v7 = vsub.f32 %v10574_v51, %v3438_v13  ;;  %v3502_v6 = vmul.f32 1.442695, %v3479_v16 }
 0x5a6   :  { %v3441_v26 = vpop.xlane.xlu1 %3440 }
 0x5a7   :  { %v3496_v11 = vmul.f32 1.442695, %v3476_v7  ;;  %v3477_v32 = vsub.f32 %v10584_v34, %v3441_v26 }
 0x5a9   :  { %9232 = vpow2.f32 %v3496_v11  ;;  %v3498_v46 = vmul.f32 1.442695, %v3477_v32 }
 0x5aa   :  { %9234 = vpow2.f32 %v3502_v6  ;;  %v3615_v31 = vpop.permute.xlu1 %3614 }
 0x5ab   :  { %9236 = vpow2.f32 %v3498_v46 }
 0x5ae   :  { %v3617_v0 = vpop.permute.xlu1 %3616 }
 0x5af   :  { %v10672_v48 = vpop.eup %9230 }
 0x5b0   :  { %v3538_v23 = vsel %vm2617_vm0, %v10672_v48, 0.0 }
 0x5b1   :  { %3539 = vadd.xlane.f32.xlu0 %v3538_v23 }
 0x5b3   :  { %v10676_v22 = vpop.eup %9232 }
 0x5b4   :  { %v10678_v27 = vpop.eup %9234  ;;  %v3532_v51 = vsel %vm2617_vm0, %v10676_v22, 0.0 }
 0x5b5   :  { %v10682_v28 = vpop.eup %9236  ;;  %3533 = vadd.xlane.f32.xlu0 %v3532_v51  ;;  %v3541_v2 = vsel %vm2617_vm0, %v10678_v27, 0.0 }
 0x5b6   :  { %v3535_v34 = vsel %vm2617_vm0, %v10682_v28, 0.0 }
 0x5b7   :  { %3536 = vadd.xlane.f32.xlu1 %v3535_v34 }
 0x5b8   :  { %v3456_v53 = vpop.xlane.xlu0 %3455 }
 0x5b9   :  { %v3482_v50 = vsub.f32 %v10594_v19, %v3456_v53  ;;  %3542 = vadd.xlane.f32.xlu0 %v3541_v2 }
 0x5bb   :  { %v3508_v12 = vmul.f32 1.442695, %v3482_v50 }
 0x5bc   :  { %v3450_v47 = vpop.xlane.xlu0 %3449 }
 0x5bd   :  { %9238 = vpow2.f32 %v3508_v12  ;;  %v3480_v38 = vsub.f32 %v10602_v17, %v3450_v47  ;;  %v3619_v17 = vpop.permute.xlu1 %3618 }
 0x5bf   :  { %v3504_v57 = vmul.f32 1.442695, %v3480_v38 }
 0x5c0   :  { %v3613_v60 = vpop.permute.xlu0 %3612 }
 0x5c1   :  { %9240 = vpow2.f32 %v3504_v57  ;;  %8178 = vmatprep.subr.bf16.mxu0 %v3613_v60 }
 0x5c2   :  { %8179 = vmatpush3.bf16.msra.mxu0 %v3613_v60 }
 0x5c3   :  { %8180 = vmatprep.subr.bf16.mxu0 %v3615_v31 }
 0x5c6   :  { %8181 = vmatpush3.bf16.msra.mxu0 %v3615_v31 }
 0x5c7   :  { %v10690_v37 = vpop.eup %9238  ;;  %8182 = vmatprep.subr.bf16.mxu0 %v3617_v0 }
 0x5c8   :  { %3707 = vrot.lane.b32.xlu1 %v10173_v40, %s9646_s2  ;;  %v3550_v19 = vsel %vm2617_vm0, %v10690_v37, 0.0 }
 0x5c9   :  { %3551 = vadd.xlane.f32.xlu0 %v3550_v19 }
 0x5ca   :  { %8183 = vmatpush3.bf16.msra.mxu0 %v3617_v0 }
 0x5cb   :  { %v10696_v21 = vpop.eup %9240  ;;  %8184 = vmatprep.subr.bf16.mxu0 %v3619_v17 }
 0x5cc   :  { %3709 = vrot.lane.b32.xlu1 %v10179_v18, %s9646_s2  ;;  %v3544_v45 = vsel %vm2617_vm0, %v10696_v21, 0.0 }
 0x5cd   :  { %3545 = vadd.xlane.f32.xlu0 %v3544_v45 }
 0x5ce   :  { %8185 = vmatpush3.bf16.msra.mxu0 %v3619_v17 }
 0x5cf   :  { %8706 = vmatprep.subr.msk.bf16.mxu0 %vm2617_vm0, %v10033_v30 }
 0x5e3   :  { %3705 = vrot.lane.b32.xlu0 %v10167_v61, %s9646_s2  ;;  %v3459_v40 = vpop.xlane.xlu1 %3458 }
 0x5e4   :  { %v3483_v63 = vsub.f32 %v10614_v54, %v3459_v40 }
 0x5e6   :  { %v3510_v58 = vmul.f32 1.442695, %v3483_v63 }
 0x5e7   :  { %v3453_v59 = vpop.xlane.xlu1 %3452 }
 0x5e8   :  { %9242 = vpow2.f32 %v3510_v58  ;;  %v3481_v56 = vsub.f32 %v10620_v1, %v3453_v59 }
 0x5ea   :  { %v3506_v18 = vmul.f32 1.442695, %v3481_v56  ;;  %v3889_v56 = vsel %vm2617_vm0, %v10075_v20, 0 }
 0x5eb   :  { %v3471_v61 = vpop.xlane.xlu1 %3470 }
 0x5ec   :  { %9244 = vpow2.f32 %v3506_v18  ;;  %v3487_v26 = vsub.f32 %v10626_v35, %v3471_v61 }
 0x5ee   :  { %v3518_v46 = vmul.f32 1.442695, %v3487_v26 }
 0x5ef   :  { %v3465_v2 = vpop.xlane.xlu1 %3464 }
 0x5f0   :  { %v3485_v50 = vsub.f32 %v10632_v3, %v3465_v2 }
 0x5f1   :  { %v3468_v55 = vpop.xlane.xlu0 %3467 }
 0x5f2   :  { %v10708_v52 = vpop.eup %9242  ;;  %v3486_v13 = vsub.f32 %v10636_v42, %v3468_v55  ;;  %v3514_v38 = vmul.f32 1.442695, %v3485_v50 }
 0x5f3   :  { %v3553_v16 = vsel %vm2617_vm0, %v10708_v52, 0.0 }
 0x5f4   :  { %3554 = vadd.xlane.f32.xlu1 %v3553_v16  ;;  %v3516_v11 = vmul.f32 1.442695, %v3486_v13 }
 0x5f5   :  { %v3462_v7 = vpop.xlane.xlu0 %3461 }
 0x5f6   :  { %v10713_v6 = vpop.eup %9244  ;;  %v3484_v54 = vsub.f32 %v10644_v44, %v3462_v7 }
 0x5f7   :  { %v3547_v1 = vsel %vm2617_vm0, %v10713_v6, 0.0 }
 0x5f8   :  { %v3512_v32 = vmul.f32 1.442695, %v3484_v54  ;;  %3548 = vadd.xlane.f32.xlu1 %v3547_v1 }
 0x5fa   :  { %9246 = vpow2.f32 %v3512_v32 }
 0x5fb   :  { %9248 = vpow2.f32 %v3516_v11 }
 0x5fc   :  { %9250 = vpow2.f32 %v3518_v46 }
 0x604   :  { %v10719_v42 = vpop.eup %9246 }
 0x605   :  { %v3556_v23 = vsel %vm2617_vm0, %v10719_v42, 0.0  ;;  %v10723_v51 = vpop.eup %9248 }
 0x606   :  { %3557 = vadd.xlane.f32.xlu0 %v3556_v23  ;;  %v3562_v35 = vsel %vm2617_vm0, %v10723_v51, 0.0  ;;  %v10729_v44 = vpop.eup %9250  ;;  %v12384_v23 = vld [vmem:[#allocation41_spill] sm:$0xff] }
 0x607   :  { %v3565_v34 = vsel %vm2617_vm0, %v10729_v44, 0.0 }
 0x609   :  { %3711 = vrot.lane.b32.xlu1 %v10185_v5, %s9646_s2 }
 0x60a   :  { %3563 = vadd.xlane.f32.xlu0 %v3562_v35 }
 0x60e   :  { %3566 = vadd.xlane.f32.xlu0 %v3565_v34  ;;  %v12385_v34 = vld [vmem:[#allocation15_spill] sm:$0xff] }
 0x60f   :  { %v3528_v53 = vpop.xlane.xlu0 %3527 }
 0x613   :  { %v3522_v12 = vpop.xlane.xlu0 %3521 }
 0x617   :  { %v3531_v47 = vpop.xlane.xlu1 %3530 }
 0x618   :  { %9252 = vrcp.f32 %v3531_v47  ;;  %v12387_v47 = vld [vmem:[#allocation32_spill] sm:$0xff] }
 0x619   :  { %9254 = vrcp.f32 %v3522_v12 }
 0x61a   :  { %9256 = vrcp.f32 %v3528_v53  ;;  %v12386_v53 = vld [vmem:[#allocation42_spill] sm:$0xff] }
 0x61b   :  { %v3525_v5 = vpop.xlane.xlu1 %3524 }
 0x61c   :  { %9258 = vrcp.f32 %v3525_v5 }
 0x61d   :  { %9260 = vpow2.f32 %v3514_v38 }
 0x622   :  { %v9253_v31 = vpop.eup %9252 }
 0x623   :  { %v9255_v57 = vpop.eup %9254  ;;  %v3587_v19 = vmul.f32 %v9253_v31, %v10660_v43  ;;  %v3880_v43 = vsel %vm2617_vm0, %v10033_v30, 0 }
 0x624   :  { %4431 = vrot.lane.b32.xlu0 %v10033_v30, %s9646_s2  ;;  %v9257_v60 = vpop.eup %9256  ;;  %v3584_v3 = vmul.f32 %v9255_v57, %v10656_v24  ;;  %v3883_v24 = vsel %vm2617_vm0, %v10049_v14, 0  ;;  %v3886_v30 = vsel %vm2617_vm0, %v10063_v33, 0 }
 0x625   :  { %v3586_v45 = vmul.f32 %v9257_v60, %v10652_v10 }
 0x626   :  { %v9259_v0 = vpop.eup %9258 }
 0x627   :  { %v3585_v17 = vmul.f32 %v9259_v0, %v10664_v62  ;;  %v10742_v40 = vpop.eup %9260  ;;  %v3601_v58 = vpack.c.bf16 %v3587_v19, %v3586_v45 }
 0x628   :  { %4435 = vrot.lane.b32.xlu0 %v10063_v33, %s9646_s2  ;;  %v3559_v10 = vsel %vm2617_vm0, %v10742_v40, 0.0 }
 0x629   :  { %v3600_v63 = vpack.c.bf16 %v3585_v17, %v3584_v3 }
 0x62b   :  { %8186 = vmatprep.mubr.msk.bf16.mxu0 %vm2617_vm0, %v3600_v63 }
 0x62c   :  { %8187 = vmatmul.mubr.msk.bf16.vlgmr.msra.gmra.mrb[120].mxu0 %vm2617_vm0, %v3601_v58  ;;  %4437 = vrot.lane.b32.xlu0 %v10075_v20, %s9646_s2  ;;  %v3969_v58 = vsel %vm2617_vm0, %v12387_v47, 0 }
 0x62d   :  { %8211 = vmatpush3.bf16.xpose.msra.mxu0 %v3880_v43  ;;  %3560 = vadd.xlane.f32.xlu1 %v3559_v10  ;;  %v12388_v10 = vld [vmem:[#allocation34_spill] sm:$0xff] }
 0x62e   :  { %8707 = vmatprep.subr.msk.bf16.mxu0 %vm2617_vm0, %v10049_v14 }
 0x635   :  { %8213 = vmatpush3.bf16.xpose.msra.mxu0 %v3883_v24 }
 0x636   :  { %8708 = vmatprep.subr.msk.bf16.mxu0 %vm2617_vm0, %v10063_v33 }
 0x63d   :  { %8215 = vmatpush3.bf16.xpose.msra.mxu0 %v3886_v30  ;;  %v12390_v30 = vld [vmem:[#allocation38_spill] sm:$0xff] }
 0x63e   :  { %8709 = vmatprep.subr.msk.bf16.mxu0 %vm2617_vm0, %v10075_v20  ;;  %v3540_v62 = vpop.xlane.xlu0 %3539  ;;  %4433 = vrot.lane.b32.xlu1 %v10049_v14, %s9646_s2 }
 0x642   :  { %v3534_v59 = vpop.xlane.xlu0 %3533 }
 0x643   :  { %9262 = vrcp.f32 %v3534_v59  ;;  %v12391_v59 = vld [vmem:[#allocation43_spill] sm:$0xff] }
 0x644   :  { %9264 = vrcp.f32 %v3540_v62  ;;  %v3537_v18 = vpop.xlane.xlu1 %3536  ;;  %v3978_v62 = vsel %vm2617_vm0, %v12390_v30, 0 }
 0x645   :  { %8217 = vmatpush3.bf16.xpose.msra.mxu0 %v3889_v56  ;;  %9266 = vrcp.f32 %v3537_v18 }
 0x646   :  { %8242 = vmatprep.subr.bf16.mxu0 %v10127_v15  ;;  %v3543_v33 = vpop.xlane.xlu0 %3542 }
 0x647   :  { %9268 = vrcp.f32 %v3543_v33 }
 0x64d   :  { %v9263_v55 = vpop.eup %9262 }
 0x64e   :  { %v9265_v16 = vpop.eup %9264  ;;  %v3588_v61 = vmul.f32 %v9263_v55, %v10676_v22  ;;  %v12381_v22 = vld [vmem:[#allocation13_spill] sm:$0xff] }
 0x64f   :  { %v9267_v13 = vpop.eup %9266  ;;  %v3590_v1 = vmul.f32 %v9265_v16, %v10672_v48  ;;  %v12382_v48 = vld [vmem:[#allocation14_spill] sm:$0xff] }
 0x650   :  { %v3589_v14 = vmul.f32 %v9267_v13, %v10682_v28  ;;  %v3708_v28 = vpop.permute.xlu1 %3707 }
 0x651   :  { %v9269_v7 = vpop.eup %9268 }
 0x652   :  { %v3602_v54 = vpack.c.bf16 %v3589_v14, %v3588_v61  ;;  %v3591_v20 = vmul.f32 %v9269_v7, %v10678_v27  ;;  %v12383_v27 = vld [vmem:[#allocation40_spill] sm:$0xff] }
 0x654   :  { %8190 = vmatprep.mubr.msk.bf16.mxu0 %vm2617_vm0, %v3602_v54  ;;  %v3603_v26 = vpack.c.bf16 %v3591_v20, %v3590_v1  ;;  %v3710_v35 = vpop.permute.xlu1 %3709  ;;  %v12392_v20 = vld [vmem:[#allocation16_spill] sm:$0xff] }
 0x656   :  { %v3552_v11 = vpop.xlane.xlu0 %3551  ;;  %8191 = vmatmul.mubr.msk.bf16.gmra.mrb[124].mxu0 %vm2617_vm0, %v3603_v26  ;;  %v12393_v26 = vld [vmem:[#allocation17_spill] sm:$0xff] }
 0x657   :  { %8218 = vmatprep.mubr.msk.bf16.mxu0 %vm2617_vm0, %v9900_v8 }
 0x65a   :  { %v3546_v32 = vpop.xlane.xlu0 %3545 }
 0x65e   :  { %v3706_v46 = vpop.permute.xlu0 %3705  ;;  %8219 = vmatmul.mubr.msk.bf16.vlgmr.msra.gmra.mrb[128].mxu0 %vm2617_vm0, %v12381_v22 }
 0x65f   :  { %8243 = vmatpush3.bf16.msra.mxu0 %v10127_v15  ;;  %8194 = vmatprep.subr.bf16.mxu1 %v3706_v46 }
 0x660   :  { %8222 = vmatprep.mubr.msk.bf16.mxu0 %vm2617_vm0, %v12382_v48  ;;  %8244 = vmatprep.subr.bf16.mxu0 %v12383_v27 }
 0x661   :  { %8195 = vmatpush3.bf16.msra.mxu1 %v3706_v46 }
 0x662   :  { %8196 = vmatprep.subr.bf16.mxu1 %v3708_v28 }
 0x663   :  { %8245 = vmatpush3.bf16.msra.mxu0 %v12383_v27 }
 0x664   :  { %8246 = vmatprep.subr.bf16.mxu0 %v12384_v23 }
 0x665   :  { %8197 = vmatpush3.bf16.msra.mxu1 %v3708_v28 }
 0x666   :  { %8198 = vmatprep.subr.bf16.mxu1 %v3710_v35  ;;  %8223 = vmatmul.mubr.msk.bf16.gmra.mrb[132].mxu0 %vm2617_vm0, %v12385_v34 }
 0x667   :  { %8247 = vmatpush3.bf16.msra.mxu0 %v12384_v23 }
 0x668   :  { %8248 = vmatprep.subr.bf16.mxu0 %v12386_v53 }
 0x669   :  { %8199 = vmatpush3.bf16.msra.mxu1 %v3710_v35 }
 0x66b   :  { %8249 = vmatpush3.bf16.msra.mxu0 %v12386_v53 }
 0x681   :  { %v3555_v2 = vpop.xlane.xlu1 %3554 }
 0x682   :  { %9270 = vrcp.f32 %v3555_v2 }
 0x683   :  { %9272 = vrcp.f32 %v3546_v32 }
 0x684   :  { %9274 = vrcp.f32 %v3552_v11  ;;  %v12398_v11 = vld [vmem:[#allocation46_spill] sm:$0xff] }
 0x685   :  { %v3549_v50 = vpop.xlane.xlu1 %3548 }
 0x686   :  { %9276 = vrcp.f32 %v3549_v50 }
 0x689   :  { %v3712_v12 = vpop.permute.xlu1 %3711 }
 0x68a   :  { %8200 = vmatprep.subr.bf16.mxu1 %v3712_v12 }
 0x68b   :  { %8201 = vmatpush3.bf16.msra.mxu1 %v3712_v12 }
 0x68c   :  { %8710 = vmatprep.subr.msk.bf16.mxu1 %vm2617_vm0, %v12387_v47  ;;  %v9271_v38 = vpop.eup %9270 }
 0x68d   :  { %v9273_v5 = vpop.eup %9272  ;;  %v3595_v60 = vmul.f32 %v9271_v38, %v10708_v52  ;;  %v3972_v52 = vsel %vm2617_vm0, %v12388_v10, 0 }
 0x68e   :  { %v9275_v31 = vpop.eup %9274  ;;  %v3592_v0 = vmul.f32 %v9273_v5, %v10696_v21 }
 0x68f   :  { %v3594_v3 = vmul.f32 %v9275_v31, %v10690_v37 }
 0x690   :  { %v9277_v57 = vpop.eup %9276 }
 0x691   :  { %v3593_v19 = vmul.f32 %v9277_v57, %v10713_v6  ;;  %v3605_v63 = vpack.c.bf16 %v3595_v60, %v3594_v3  ;;  %v12389_v6 = vld [vmem:[#allocation36_spill] sm:$0xff] }
 0x692   :  { %v3975_v24 = vsel %vm2617_vm0, %v12389_v6, 0 }
 0x693   :  { %v3558_v17 = vpop.xlane.xlu0 %3557  ;;  %v3604_v45 = vpack.c.bf16 %v3593_v19, %v3592_v0 }
 0x695   :  { %8202 = vmatprep.mubr.msk.bf16.mxu1 %vm2617_vm0, %v3604_v45 }
 0x696   :  { %8203 = vmatmul.mubr.msk.bf16.vlgmr.msra.gmra.mrb[136].mxu1 %vm2617_vm0, %v3605_v63 }
 0x697   :  { %8227 = vmatpush3.bf16.xpose.msra.mxu1 %v3969_v58  ;;  %v3564_v43 = vpop.xlane.xlu0 %3563 }
 0x698   :  { %8711 = vmatprep.subr.msk.bf16.mxu1 %vm2617_vm0, %v12388_v10 }
 0x69b   :  { %v3567_v21 = vpop.xlane.xlu0 %3566 }
 0x69c   :  { %9278 = vrcp.f32 %v3567_v21 }
 0x69d   :  { %9280 = vrcp.f32 %v3558_v17 }
 0x69e   :  { %9282 = vrcp.f32 %v3564_v43 }
 0x69f   :  { %8229 = vmatpush3.bf16.xpose.msra.mxu1 %v3972_v52  ;;  %v10802_v37 = vpop.permute.xlu0 %4431 }
 0x6a0   :  { %8712 = vmatprep.subr.msk.bf16.mxu1 %vm2617_vm0, %v12389_v6  ;;  %8714 = vmatprep.subr.msk.bf16.mxu0 %vm2617_vm0, %v10802_v37 }
 0x6a6   :  { %v9279_v18 = vpop.eup %9278 }
 0x6a7   :  { %8231 = vmatpush3.bf16.xpose.msra.mxu1 %v3975_v24  ;;  %v9281_v33 = vpop.eup %9280  ;;  %v3599_v13 = vmul.f32 %v9279_v18, %v10729_v44  ;;  %v12394_v44 = vld [vmem:[#allocation18_spill] sm:$0xff] }
 0x6a8   :  { %8713 = vmatprep.subr.msk.bf16.mxu1 %vm2617_vm0, %v12390_v30  ;;  %v9283_v55 = vpop.eup %9282  ;;  %v3596_v61 = vmul.f32 %v9281_v33, %v10719_v42  ;;  %v12395_v42 = vld [vmem:[#allocation44_spill] sm:$0xff] }
 0x6a9   :  { %v3598_v7 = vmul.f32 %v9283_v55, %v10723_v51  ;;  %v12396_v51 = vld [vmem:[#allocation45_spill] sm:$0xff] }
 0x6ab   :  { %v3607_v1 = vpack.c.bf16 %v3599_v13, %v3598_v7 }
 0x6af   :  { %8233 = vmatpush3.bf16.xpose.msra.mxu1 %v3978_v62 }
 0x6b0   :  { %8258 = vmatprep.subr.bf16.mxu1 %v12391_v59 }
 0x6ba   :  { %v3561_v56 = vpop.xlane.xlu1 %3560 }
 0x6bb   :  { %9284 = vrcp.f32 %v3561_v56 }
 0x6c5   :  { %v9285_v16 = vpop.eup %9284 }
 0x6c6   :  { %v3597_v14 = vmul.f32 %v9285_v16, %v10742_v40  ;;  %v12397_v40 = vld [vmem:[#allocation19_spill] sm:$0xff] }
 0x6c8   :  { %v3606_v54 = vpack.c.bf16 %v3597_v14, %v3596_v61 }
 0x6ca   :  { %8206 = vmatprep.mubr.msk.bf16.mxu1 %vm2617_vm0, %v3606_v54 }
 0x6cb   :  { %8207 = vmatmul.mubr.msk.bf16.gmra.mrb[140].mxu1 %vm2617_vm0, %v3607_v1 }
 0x6cc   :  { %8234 = vmatprep.mubr.msk.bf16.mxu1 %vm2617_vm0, %v12392_v20 }
 0x6d3   :  { %8235 = vmatmul.mubr.msk.bf16.vlgmr.msra.gmra.mrb[144].mxu1 %vm2617_vm0, %v12393_v26 }
 0x6d4   :  { %8259 = vmatpush3.bf16.msra.mxu1 %v12391_v59  ;;  %8238 = vmatprep.mubr.msk.bf16.mxu1 %vm2617_vm0, %v12394_v44 }
 0x6d5   :  { %8260 = vmatprep.subr.bf16.mxu1 %v12395_v42 }
 0x6d8   :  { %8261 = vmatpush3.bf16.msra.mxu1 %v12395_v42 }
 0x6d9   :  { %8262 = vmatprep.subr.bf16.mxu1 %v12396_v51 }
 0x6db   :  { %8239 = vmatmul.mubr.msk.bf16.gmra.mrb[148].mxu1 %vm2617_vm0, %v12397_v40 }
 0x6dc   :  { %8263 = vmatpush3.bf16.msra.mxu1 %v12396_v51 }
 0x6dd   :  { %8264 = vmatprep.subr.bf16.mxu1 %v12398_v11 }
 0x6e0   :  { %8265 = vmatpush3.bf16.msra.mxu1 %v12398_v11 }
 0x6ff   :  { %v10836_v32 = vpop.f32.mrb[120].mxu0 }
 0x700   :  { %12399 = vst [vmem:[#allocation13_spill] sm:$0xff] %v10836_v32  ;;  %v10838_v46 = vpop.f32.mrb[121].mxu0 }
 0x701   :  { %12400 = vst [vmem:[#allocation14_spill] sm:$0xff] %v10838_v46  ;;  %v10840_v28 = vpop.f32.mrb[122].mxu0 }
 0x702   :  { %12401 = vst [vmem:[#allocation40_spill] sm:$0xff] %v10840_v28  ;;  %v10844_v2 = vpop.f32.mrb[123].mxu0 }
 0x703   :  { %12402 = vst [vmem:[#allocation41_spill] sm:$0xff] %v10844_v2 }
 0x729   :  { %v10848_v12 = vpop.f32.mrb[124].mxu0 }
 0x72a   :  { %12403 = vst [vmem:[#allocation15_spill] sm:$0xff] %v10848_v12  ;;  %v10850_v38 = vpop.f32.mrb[125].mxu0 }
 0x72b   :  { %12404 = vst [vmem:[#allocation42_spill] sm:$0xff] %v10850_v38  ;;  %v10852_v5 = vpop.f32.mrb[126].mxu0 }
 0x72c   :  { %12405 = vst [vmem:[#allocation32_spill] sm:$0xff] %v10852_v5  ;;  %v10856_v57 = vpop.f32.mrb[127].mxu0 }
 0x72d   :  { %12406 = vst [vmem:[#allocation34_spill] sm:$0xff] %v10856_v57 }
 0x731   :  { %v8220_v0 = vpop.f32.mrb[128].mxu0 }
 0x732   :  { %v10862_v19 = vsel %vm10228_vm1, %v8220_v0, -1e+30  ;;  %v3925_v3 = vpop.f32.mrb[129].mxu0 }
 0x733   :  { %v8221_v17 = vpop.f32.mrb[130].mxu0  ;;  %v4067_v45 = vsel %vm2617_vm0, %v10862_v19, -inf  ;;  %v10868_v63 = vsel %vm10233_vm2, %v3925_v3, -1e+30 }
 0x734   :  { %v10872_v58 = vsel %vm10237_vm3, %v8221_v17, -1e+30  ;;  %4068 = vmax.xlane.f32.xlu0 %v4067_v45  ;;  %v3928_v43 = vpop.f32.mrb[131].mxu0  ;;  %v4061_v24 = vsel %vm2617_vm0, %v10868_v63, -inf }
 0x735   :  { %v4070_v21 = vsel %vm2617_vm0, %v10872_v58, -inf  ;;  %v10878_v52 = vsel %vm10245_vm4, %v3928_v43, -1e+30 }
 0x736   :  { %4071 = vmax.xlane.f32.xlu1 %v4070_v21  ;;  %v4064_v56 = vsel %vm2617_vm0, %v10878_v52, -inf }
 0x738   :  { %4062 = vmax.xlane.f32.xlu0 %v4061_v24 }
 0x739   :  { %v8224_v62 = vpop.f32.mrb[132].mxu0 }
 0x73a   :  { %v10886_v18 = vsel %vm10270_vm5, %v8224_v62, -1e+30  ;;  %4065 = vmax.xlane.f32.xlu1 %v4064_v56  ;;  %v3941_v33 = vpop.f32.mrb[133].mxu0 }
 0x73b   :  { %v4079_v55 = vsel %vm2617_vm0, %v10886_v18, -inf  ;;  %v8225_v16 = vpop.f32.mrb[134].mxu0  ;;  %v10892_v13 = vsel %vm10285_vm7, %v3941_v33, -1e+30 }
 0x73c   :  { %v10896_v61 = vsel %vm10277_vm6, %v8225_v16, -1e+30  ;;  %4080 = vmax.xlane.f32.xlu0 %v4079_v55  ;;  %v3944_v14 = vpop.f32.mrb[135].mxu0  ;;  %v4073_v1 = vsel %vm2617_vm0, %v10892_v13, -inf }
 0x73d   :  { %v4082_v7 = vsel %vm2617_vm0, %v10896_v61, -inf  ;;  %v10902_v54 = vsel %vm10289_vm8, %v3944_v14, -1e+30 }
 0x73e   :  { %4083 = vmax.xlane.f32.xlu1 %v4082_v7  ;;  %v4076_v0 = vsel %vm2617_vm0, %v10902_v54, -inf }
 0x740   :  { %4074 = vmax.xlane.f32.xlu0 %v4073_v1 }
 0x742   :  { %4077 = vmax.xlane.f32.xlu1 %v4076_v0 }
 0x769   :  { %v10908_v3 = vpop.f32.mrb[136].mxu1 }
 0x76a   :  { %12407 = vst [vmem:[#allocation36_spill] sm:$0xff] %v10908_v3  ;;  %v10910_v17 = vpop.f32.mrb[137].mxu1 }
 0x76b   :  { %12408 = vst [vmem:[#allocation38_spill] sm:$0xff] %v10910_v17  ;;  %v10912_v45 = vpop.f32.mrb[138].mxu1 }
 0x76c   :  { %12409 = vst [vmem:[#allocation43_spill] sm:$0xff] %v10912_v45  ;;  %v10916_v21 = vpop.f32.mrb[139].mxu1 }
 0x76d   :  { %12410 = vst [vmem:[#allocation16_spill] sm:$0xff] %v10916_v21 }
 0x79e   :  { %v10920_v62 = vpop.f32.mrb[140].mxu1 }
 0x79f   :  { %12411 = vst [vmem:[#allocation17_spill] sm:$0xff] %v10920_v62  ;;  %v10922_v56 = vpop.f32.mrb[141].mxu1 }
 0x7a0   :  { %12412 = vst [vmem:[#allocation18_spill] sm:$0xff] %v10922_v56  ;;  %v10924_v33 = vpop.f32.mrb[142].mxu1 }
 0x7a1   :  { %12413 = vst [vmem:[#allocation44_spill] sm:$0xff] %v10924_v33  ;;  %v10928_v16 = vpop.f32.mrb[143].mxu1 }
 0x7a2   :  { %12414 = vst [vmem:[#allocation45_spill] sm:$0xff] %v10928_v16 }
 0x7a6   :  { %v8236_v7 = vpop.f32.mrb[144].mxu1 }
 0x7a7   :  { %v10934_v1 = vsel %vm10228_vm1, %v8236_v7, -1e+30  ;;  %v4014_v0 = vpop.f32.mrb[145].mxu1 }
 0x7a8   :  { %v4091_v43 = vsel %vm2617_vm0, %v10934_v1, -inf  ;;  %v8237_v24 = vpop.f32.mrb[146].mxu1  ;;  %v10940_v31 = vsel %vm10233_vm2, %v4014_v0, -1e+30 }
 0x7a9   :  { %v10944_v55 = vsel %vm10237_vm3, %v8237_v24, -1e+30  ;;  %4092 = vmax.xlane.f32.xlu0 %v4091_v43  ;;  %v4017_v14 = vpop.f32.mrb[147].mxu1  ;;  %v4085_v35 = vsel %vm2617_vm0, %v10940_v31, -inf }
 0x7aa   :  { %v4094_v60 = vsel %vm2617_vm0, %v10944_v55, -inf  ;;  %v10950_v7 = vsel %vm10245_vm4, %v4017_v14, -1e+30 }
 0x7ab   :  { %4095 = vmax.xlane.f32.xlu1 %v4094_v60  ;;  %v4088_v0 = vsel %vm2617_vm0, %v10950_v7, -inf }
 0x7ad   :  { %4086 = vmax.xlane.f32.xlu0 %v4085_v35 }
 0x7ae   :  { %v8240_v50 = vpop.f32.mrb[148].mxu1 }
 0x7af   :  { %v10958_v43 = vsel %vm10270_vm5, %v8240_v50, -1e+30  ;;  %4089 = vmax.xlane.f32.xlu1 %v4088_v0  ;;  %v4030_v24 = vpop.f32.mrb[149].mxu1  ;;  %v10970_v50 = vpop.permute.xlu0 %4435 }
 0x7b0   :  { %v4103_v62 = vsel %vm2617_vm0, %v10958_v43, -inf  ;;  %v8241_v14 = vpop.f32.mrb[150].mxu1  ;;  %v10964_v60 = vsel %vm10285_vm7, %v4030_v24, -1e+30 }
 0x7b1   :  { %4104 = vmax.xlane.f32.xlu0 %v4103_v62  ;;  %v4033_v35 = vpop.f32.mrb[151].mxu1  ;;  %v4097_v33 = vsel %vm2617_vm0, %v10964_v60, -inf  ;;  %v10980_v62 = vpop.permute.xlu1 %4433 }
 0x7b3   :  { %v10974_v0 = vpop.permute.xlu0 %4437 }
 0x7b5   :  { %4098 = vmax.xlane.f32.xlu0 %v4097_v33 }
 0x7c0   :  { %4421 = vrot.lane.b32.xlu1 %v12381_v22, %s9646_s2 }
 0x7c1   :  { %v4069_v24 = vpop.xlane.xlu0 %4068 }
 0x7c2   :  { %v4111_v56 = vsub.f32 %v10862_v19, %v4069_v24 }
 0x7c3   :  { %v4072_v22 = vpop.xlane.xlu1 %4071 }
 0x7c4   :  { %4544 = vrot.lane.b32.xlu1 %v12387_v47, %s9646_s2  ;;  %v4129_v3 = vmul.f32 1.442695, %v4111_v56  ;;  %v4112_v12 = vsub.f32 %v10872_v58, %v4072_v22  ;;  %v10993_v58 = vsel %vm10277_vm6, %v8241_v14, -1e+30 }
 0x7c5   :  { %v4063_v33 = vpop.xlane.xlu0 %4062 }
 0x7c6   :  { %v4109_v45 = vsub.f32 %v10868_v63, %v4063_v33  ;;  %9286 = vpow2.f32 %v4129_v3  ;;  %v4131_v57 = vmul.f32 1.442695, %v4112_v12 }
 0x7c7   :  { %v4066_v47 = vpop.xlane.xlu1 %4065 }
 0x7c8   :  { %4546 = vrot.lane.b32.xlu1 %v12388_v10, %s9646_s2  ;;  %v4125_v17 = vmul.f32 1.442695, %v4109_v45  ;;  %v4110_v19 = vsub.f32 %v10878_v52, %v4066_v47 }
 0x7c9   :  { %v4081_v16 = vpop.xlane.xlu0 %4080 }
 0x7ca   :  { %v4115_v21 = vsub.f32 %v10886_v18, %v4081_v16  ;;  %9288 = vpow2.f32 %v4125_v17  ;;  %v4127_v63 = vmul.f32 1.442695, %v4110_v19 }
 0x7cb   :  { %4419 = vrot.lane.b32.xlu0 %v9900_v8, %s9646_s2  ;;  %v4084_v38 = vpop.xlane.xlu1 %4083 }
 0x7cc   :  { %v4137_v8 = vmul.f32 1.442695, %v4115_v21  ;;  %v4116_v3 = vsub.f32 %v10896_v61, %v4084_v38  ;;  %v11004_v38 = vsel %vm10289_vm8, %v4033_v35, -1e+30 }
 0x7cd   :  { %v4075_v10 = vpop.xlane.xlu0 %4074 }
 0x7ce   :  { %v4113_v5 = vsub.f32 %v10892_v13, %v4075_v10  ;;  %9290 = vpow2.f32 %v4137_v8  ;;  %v4139_v52 = vmul.f32 1.442695, %v4116_v3 }
 0x7cf   :  { %9292 = vpow2.f32 %v4131_v57  ;;  %v4078_v18 = vpop.xlane.xlu1 %4077  ;;  %v4106_v57 = vsel %vm2617_vm0, %v10993_v58, -inf }
 0x7d0   :  { %v4133_v56 = vmul.f32 1.442695, %v4113_v5  ;;  %v10988_v24 = vpop.eup %9286  ;;  %v4114_v5 = vsub.f32 %v10902_v54, %v4078_v18  ;;  %v4100_v54 = vsel %vm2617_vm0, %v11004_v38, -inf }
 0x7d1   :  { %v4163_v13 = vsel %vm2617_vm0, %v10988_v24, 0.0 }
 0x7d2   :  { %9294 = vpow2.f32 %v4133_v56  ;;  %v4135_v45 = vmul.f32 1.442695, %v4114_v5 }
 0x7d3   :  { %9296 = vpow2.f32 %v4127_v63 }
 0x7d4   :  { %v10997_v12 = vpop.eup %9288  ;;  %9298 = vpow2.f32 %v4139_v52 }
 0x7d5   :  { %v4157_v61 = vsel %vm2617_vm0, %v10997_v12, 0.0  ;;  %9300 = vpow2.f32 %v4135_v45 }
 0x7d8   :  { %v11008_v17 = vpop.eup %9290 }
 0x7d9   :  { %v11012_v21 = vpop.eup %9292  ;;  %v4175_v16 = vsel %vm2617_vm0, %v11008_v17, 0.0 }
 0x7da   :  { %v4166_v35 = vsel %vm2617_vm0, %v11012_v21, 0.0 }
 0x7dc   :  { %v11016_v14 = vpop.eup %9294 }
 0x7dd   :  { %v11020_v33 = vpop.eup %9296  ;;  %v4169_v22 = vsel %vm2617_vm0, %v11016_v14, 0.0 }
 0x7de   :  { %v4160_v47 = vsel %vm2617_vm0, %v11020_v33, 0.0  ;;  %v11026_v10 = vpop.eup %9298 }
 0x7df   :  { %v4178_v8 = vsel %vm2617_vm0, %v11026_v10, 0.0  ;;  %v11030_v19 = vpop.eup %9300 }
 0x7e0   :  { %v4172_v56 = vsel %vm2617_vm0, %v11030_v19, 0.0 }
 0x7ea   :  { %4164 = vadd.xlane.f32.xlu0 %v4163_v13 }
 0x7ec   :  { %4107 = vmax.xlane.f32.xlu1 %v4106_v57 }
 0x7ee   :  { %4158 = vadd.xlane.f32.xlu0 %v4157_v61 }
 0x7f0   :  { %4101 = vmax.xlane.f32.xlu1 %v4100_v54 }
 0x7f2   :  { %4176 = vadd.xlane.f32.xlu0 %v4175_v16 }
 0x7f4   :  { %4167 = vadd.xlane.f32.xlu1 %v4166_v35 }
 0x7f6   :  { %4170 = vadd.xlane.f32.xlu0 %v4169_v22 }
 0x7f8   :  { %4161 = vadd.xlane.f32.xlu1 %v4160_v47 }
 0x7fc   :  { %4179 = vadd.xlane.f32.xlu1 %v4178_v8 }
 0x800   :  { %4173 = vadd.xlane.f32.xlu1 %v4172_v56 }
 0x80c   :  { %4548 = vrot.lane.b32.xlu0 %v12389_v6, %s9646_s2 }
 0x836   :  { %v4093_v63 = vpop.xlane.xlu0 %4092 }
 0x837   :  { %v4119_v3 = vsub.f32 %v10934_v1, %v4093_v63 }
 0x838   :  { %v4096_v18 = vpop.xlane.xlu1 %4095 }
 0x839   :  { %v4145_v13 = vmul.f32 1.442695, %v4119_v3  ;;  %v4120_v52 = vsub.f32 %v10944_v55, %v4096_v18 }
 0x83a   :  { %v4087_v5 = vpop.xlane.xlu0 %4086 }
 0x83b   :  { %9302 = vpow2.f32 %v4145_v13  ;;  %v4117_v57 = vsub.f32 %v10940_v31, %v4087_v5  ;;  %v4147_v45 = vmul.f32 1.442695, %v4120_v52 }
 0x83c   :  { %v4090_v61 = vpop.xlane.xlu1 %4089 }
 0x83d   :  { %v4141_v54 = vmul.f32 1.442695, %v4117_v57  ;;  %v4118_v16 = vsub.f32 %v10950_v7, %v4090_v61 }
 0x83e   :  { %v4105_v35 = vpop.xlane.xlu0 %4104 }
 0x83f   :  { %9304 = vpow2.f32 %v4141_v54  ;;  %v4123_v6 = vsub.f32 %v10958_v43, %v4105_v35  ;;  %v4143_v1 = vmul.f32 1.442695, %v4118_v16 }
 0x840   :  { %v11041_v22 = vpop.permute.xlu1 %4421  ;;  %9306 = vpow2.f32 %v4147_v45 }
 0x841   :  { %v4153_v47 = vmul.f32 1.442695, %v4123_v6 }
 0x842   :  { %v4099_v8 = vpop.xlane.xlu0 %4098 }
 0x843   :  { %9308 = vpow2.f32 %v4153_v47  ;;  %v4121_v55 = vsub.f32 %v10964_v60, %v4099_v8 }
 0x844   :  { %v11044_v56 = vpop.permute.xlu1 %4544  ;;  %9310 = vpow2.f32 %v4143_v1 }
 0x845   :  { %v11046_v31 = vpop.eup %9302  ;;  %v4149_v63 = vmul.f32 1.442695, %v4121_v55  ;;  %8718 = vmatprep.subr.msk.bf16.mxu1 %vm2617_vm0, %v11044_v56 }
 0x846   :  { %v4187_v7 = vsel %vm2617_vm0, %v11046_v31, 0.0  ;;  %v11074_v54 = vpop.permute.xlu0 %4419 }
 0x847   :  { %9312 = vpow2.f32 %v4149_v63  ;;  %4188 = vadd.xlane.f32.xlu1 %v4187_v7 }
 0x848   :  { %v11076_v16 = vpop.permute.xlu1 %4546 }
 0x849   :  { %v11052_v43 = vpop.eup %9304 }
 0x84a   :  { %v4181_v3 = vsel %vm2617_vm0, %v11052_v43, 0.0  ;;  %v11056_v60 = vpop.eup %9306 }
 0x84b   :  { %4182 = vadd.xlane.f32.xlu1 %v4181_v3  ;;  %v4190_v52 = vsel %vm2617_vm0, %v11056_v60, 0.0 }
 0x84d   :  { %v11058_v18 = vpop.eup %9308 }
 0x84e   :  { %v4199_v13 = vsel %vm2617_vm0, %v11058_v18, 0.0  ;;  %v11064_v5 = vpop.eup %9310 }
 0x84f   :  { %4200 = vadd.xlane.f32.xlu0 %v4199_v13  ;;  %4191 = vadd.xlane.f32.xlu1 %v4190_v52  ;;  %v4184_v45 = vsel %vm2617_vm0, %v11064_v5, 0.0 }
 0x851   :  { %v11066_v57 = vpop.eup %9312 }
 0x852   :  { %v4193_v61 = vsel %vm2617_vm0, %v11066_v57, 0.0 }
 0x853   :  { %4194 = vadd.xlane.f32.xlu0 %v4193_v61  ;;  %4185 = vadd.xlane.f32.xlu1 %v4184_v45 }
 0x864   :  { %4423 = vrot.lane.b32.xlu1 %v12382_v48, %s9646_s2 }
 0x877   :  { %v4165_v35 = vpop.xlane.xlu0 %4164 }
 0x879   :  { %v4108_v6 = vpop.xlane.xlu1 %4107 }
 0x87a   :  { %v4124_v1 = vsub.f32 %v10993_v58, %v4108_v6 }
 0x87b   :  { %v4159_v8 = vpop.xlane.xlu0 %4158 }
 0x87c   :  { %v4155_v47 = vmul.f32 1.442695, %v4124_v1 }
 0x87d   :  { %v4102_v55 = vpop.xlane.xlu1 %4101 }
 0x87e   :  { %9314 = vpow2.f32 %v4155_v47  ;;  %v4122_v63 = vsub.f32 %v11004_v38, %v4102_v55 }
 0x87f   :  { %v4177_v13 = vpop.xlane.xlu0 %4176 }
 0x880   :  { %v4151_v7 = vmul.f32 1.442695, %v4122_v63 }
 0x881   :  { %v4168_v3 = vpop.xlane.xlu1 %4167 }
 0x882   :  { %9316 = vpow2.f32 %v4151_v7 }
 0x883   :  { %9318 = vrcp.f32 %v4168_v3  ;;  %v4171_v61 = vpop.xlane.xlu0 %4170 }
 0x884   :  { %9320 = vrcp.f32 %v4159_v8 }
 0x885   :  { %9322 = vrcp.f32 %v4165_v35  ;;  %v4162_v48 = vpop.xlane.xlu1 %4161 }
 0x886   :  { %9324 = vrcp.f32 %v4162_v48 }
 0x888   :  { %v11080_v52 = vpop.eup %9314 }
 0x889   :  { %v4180_v45 = vpop.xlane.xlu1 %4179  ;;  %v4202_v58 = vsel %vm2617_vm0, %v11080_v52, 0.0 }
 0x88a   :  { %4203 = vadd.xlane.f32.xlu0 %v4202_v58  ;;  %9326 = vrcp.f32 %v4180_v45 }
 0x88b   :  { %9328 = vrcp.f32 %v4171_v61 }
 0x88c   :  { %v11084_v6 = vpop.eup %9316  ;;  %9330 = vrcp.f32 %v4177_v13 }
 0x88d   :  { %v9319_v38 = vpop.eup %9318  ;;  %v4174_v1 = vpop.xlane.xlu1 %4173  ;;  %v4196_v35 = vsel %vm2617_vm0, %v11084_v6, 0.0 }
 0x88e   :  { %v9321_v47 = vpop.eup %9320  ;;  %9332 = vrcp.f32 %v4174_v1  ;;  %4197 = vadd.xlane.f32.xlu1 %v4196_v35  ;;  %v4224_v63 = vmul.f32 %v9319_v38, %v11012_v21  ;;  %v4452_v1 = vsel %vm2617_vm0, %v10802_v37, 0  ;;  %v4455_v37 = vsel %vm2617_vm0, %v10980_v62, 0 }
 0x88f   :  { %v9323_v8 = vpop.eup %9322  ;;  %v4221_v7 = vmul.f32 %v9321_v47, %v10997_v12 }
 0x890   :  { %v9325_v55 = vpop.eup %9324  ;;  %v4223_v48 = vmul.f32 %v9323_v8, %v10988_v24 }
 0x891   :  { %v4222_v3 = vmul.f32 %v9325_v55, %v11020_v33 }
 0x892   :  { %v4238_v45 = vpack.c.bf16 %v4224_v63, %v4223_v48 }
 0x893   :  { %v4237_v61 = vpack.c.bf16 %v4222_v3, %v4221_v7  ;;  %v4565_v7 = vsel %vm2617_vm0, %v11044_v56, 0 }
 0x894   :  { %v9327_v13 = vpop.eup %9326 }
 0x895   :  { %8250 = vmatprep.mubr.msk.bf16.mxu0 %vm2617_vm0, %v4237_v61  ;;  %v9329_v58 = vpop.eup %9328  ;;  %v4228_v12 = vmul.f32 %v9327_v13, %v11026_v10 }
 0x896   :  { %8251 = vmatmul.mubr.msk.bf16.vlgmr.msra.gmra.mrb[136].mxu0 %vm2617_vm0, %v4238_v45  ;;  %v9331_v35 = vpop.eup %9330  ;;  %v4225_v24 = vmul.f32 %v9329_v58, %v11016_v14 }
 0x897   :  { %8275 = vmatpush3.bf16.xpose.msra.mxu0 %v4452_v1  ;;  %v4227_v38 = vmul.f32 %v9331_v35, %v11008_v17 }
 0x898   :  { %v9333_v21 = vpop.eup %9332  ;;  %8715 = vmatprep.subr.msk.bf16.mxu0 %vm2617_vm0, %v10980_v62  ;;  %v4458_v62 = vsel %vm2617_vm0, %v10970_v50, 0 }
 0x899   :  { %v4226_v33 = vmul.f32 %v9333_v21, %v11030_v19  ;;  %v4240_v8 = vpack.c.bf16 %v4228_v12, %v4227_v38 }
 0x89b   :  { %v4239_v47 = vpack.c.bf16 %v4226_v33, %v4225_v24 }
 0x89d   :  { %8254 = vmatprep.mubr.msk.bf16.mxu0 %vm2617_vm0, %v4239_v47 }
 0x89e   :  { %8255 = vmatmul.mubr.msk.bf16.gmra.mrb[140].mxu0 %vm2617_vm0, %v4240_v8 }
 0x89f   :  { %8277 = vmatpush3.bf16.xpose.msra.mxu0 %v4455_v37  ;;  %4550 = vrot.lane.b32.xlu1 %v12390_v30, %s9646_s2 }
 0x8a0   :  { %8716 = vmatprep.subr.msk.bf16.mxu0 %vm2617_vm0, %v10970_v50  ;;  %8282 = vmatprep.mubr.msk.bf16.mxu0 %vm2617_vm0, %v11074_v54 }
 0x8a1   :  { %4425 = vrot.lane.b32.xlu0 %v12385_v34, %s9646_s2  ;;  %v4461_v34 = vsel %vm2617_vm0, %v10974_v0, 0 }
 0x8a3   :  { %4534 = vrot.lane.b32.xlu1 %v12393_v26, %s9646_s2 }
 0x8a5   :  { %4532 = vrot.lane.b32.xlu0 %v12392_v20, %s9646_s2 }
 0x8a7   :  { %8279 = vmatpush3.bf16.xpose.msra.mxu0 %v4458_v62  ;;  %4538 = vrot.lane.b32.xlu1 %v12397_v40, %s9646_s2 }
 0x8a8   :  { %8717 = vmatprep.subr.msk.bf16.mxu0 %vm2617_vm0, %v10974_v0 }
 0x8a9   :  { %4536 = vrot.lane.b32.xlu0 %v12394_v44, %s9646_s2 }
 0x8af   :  { %8281 = vmatpush3.bf16.xpose.msra.mxu0 %v4461_v34 }
 0x8b6   :  { %8283 = vmatmul.mubr.msk.bf16.vlgmr.msra.gmra.mrb[144].mxu0 %vm2617_vm0, %v11041_v22 }
 0x8d4   :  { %v4189_v30 = vpop.xlane.xlu1 %4188 }
 0x8d8   :  { %v4183_v20 = vpop.xlane.xlu1 %4182 }
 0x8dc   :  { %v4192_v26 = vpop.xlane.xlu1 %4191 }
 0x8dd   :  { %9334 = vrcp.f32 %v4192_v26 }
 0x8de   :  { %9336 = vrcp.f32 %v4183_v20 }
 0x8df   :  { %9338 = vrcp.f32 %v4189_v30 }
 0x8e0   :  { %v4186_v50 = vpop.xlane.xlu1 %4185 }
 0x8e1   :  { %9340 = vrcp.f32 %v4186_v50 }
 0x8e4   :  { %v4424_v40 = vpop.permute.xlu1 %4423 }
 0x8e5   :  { %8286 = vmatprep.mubr.msk.bf16.mxu0 %vm2617_vm0, %v4424_v40 }
 0x8e7   :  { %v9335_v17 = vpop.eup %9334 }
 0x8e8   :  { %v9337_v44 = vpop.eup %9336  ;;  %v4232_v0 = vmul.f32 %v9335_v17, %v11056_v60  ;;  %v4549_v60 = vpop.permute.xlu0 %4548 }
 0x8e9   :  { %v9339_v14 = vpop.eup %9338  ;;  %v4229_v19 = vmul.f32 %v9337_v44, %v11052_v43  ;;  %v4568_v43 = vsel %vm2617_vm0, %v11076_v16, 0 }
 0x8ea   :  { %v4231_v54 = vmul.f32 %v9339_v14, %v11046_v31  ;;  %v4571_v31 = vsel %vm2617_vm0, %v4549_v60, 0 }
 0x8eb   :  { %v9341_v10 = vpop.eup %9340 }
 0x8ec   :  { %v4230_v22 = vmul.f32 %v9341_v10, %v11064_v5  ;;  %v4242_v63 = vpack.c.bf16 %v4232_v0, %v4231_v54  ;;  %v4201_v5 = vpop.xlane.xlu0 %4200 }
 0x8ee   :  { %v4241_v55 = vpack.c.bf16 %v4230_v22, %v4229_v19 }
 0x8f0   :  { %8266 = vmatprep.mubr.msk.bf16.mxu1 %vm2617_vm0, %v4241_v55  ;;  %v4195_v3 = vpop.xlane.xlu0 %4194 }
 0x8f1   :  { %8267 = vmatmul.mubr.msk.bf16.vlgmr.msra.gmra.mrb[152].mxu1 %vm2617_vm0, %v4242_v63 }
 0x8f2   :  { %8291 = vmatpush3.bf16.xpose.msra.mxu1 %v4565_v7 }
 0x8f3   :  { %8719 = vmatprep.subr.msk.bf16.mxu1 %vm2617_vm0, %v11076_v16 }
 0x8fa   :  { %8293 = vmatpush3.bf16.xpose.msra.mxu1 %v4568_v43 }
 0x8fb   :  { %8720 = vmatprep.subr.msk.bf16.mxu1 %vm2617_vm0, %v4549_v60 }
 0x902   :  { %8295 = vmatpush3.bf16.xpose.msra.mxu1 %v4571_v31 }
 0x917   :  { %v4204_v48 = vpop.xlane.xlu0 %4203 }
 0x918   :  { %9342 = vrcp.f32 %v4204_v48 }
 0x919   :  { %9344 = vrcp.f32 %v4195_v3 }
 0x91a   :  { %9346 = vrcp.f32 %v4201_v5 }
 0x91b   :  { %v4426_v56 = vpop.permute.xlu0 %4425  ;;  %v4198_v61 = vpop.xlane.xlu1 %4197 }
 0x91c   :  { %9348 = vrcp.f32 %v4198_v61  ;;  %8287 = vmatmul.mubr.msk.bf16.gmra.mrb[148].mxu0 %vm2617_vm0, %v4426_v56 }
 0x91f   :  { %v4551_v45 = vpop.permute.xlu1 %4550  ;;  %v4533_v8 = vpop.permute.xlu0 %4532 }
 0x920   :  { %8721 = vmatprep.subr.msk.bf16.mxu1 %vm2617_vm0, %v4551_v45  ;;  %v4574_v16 = vsel %vm2617_vm0, %v4551_v45, 0 }
 0x921   :  { %8297 = vmatpush3.bf16.xpose.msra.mxu1 %v4574_v16 }
 0x922   :  { %v9343_v13 = vpop.eup %9342 }
 0x923   :  { %v9345_v58 = vpop.eup %9344  ;;  %v4236_v21 = vmul.f32 %v9343_v13, %v11080_v52  ;;  %v4535_v37 = vpop.permute.xlu1 %4534 }
 0x924   :  { %v9347_v1 = vpop.eup %9346  ;;  %v4233_v12 = vmul.f32 %v9345_v58, %v11066_v57  ;;  %v4537_v62 = vpop.permute.xlu0 %4536 }
 0x925   :  { %v4235_v33 = vmul.f32 %v9347_v1, %v11058_v18 }
 0x926   :  { %v9349_v35 = vpop.eup %9348 }
 0x927   :  { %v4234_v24 = vmul.f32 %v9349_v35, %v11084_v6  ;;  %v4244_v47 = vpack.c.bf16 %v4236_v21, %v4235_v33  ;;  %v4539_v57 = vpop.permute.xlu1 %4538 }
 0x929   :  { %v4243_v38 = vpack.c.bf16 %v4234_v24, %v4233_v12 }
 0x92b   :  { %8270 = vmatprep.mubr.msk.bf16.mxu1 %vm2617_vm0, %v4243_v38 }
 0x92c   :  { %8271 = vmatmul.mubr.msk.bf16.gmra.mrb[156].mxu1 %vm2617_vm0, %v4244_v47 }
 0x92d   :  { %8298 = vmatprep.mubr.msk.bf16.mxu1 %vm2617_vm0, %v4533_v8 }
 0x934   :  { %8299 = vmatmul.mubr.msk.bf16.vlgmr.msra.gmra.mrb[160].mxu1 %vm2617_vm0, %v4535_v37 }
 0x935   :  { %8302 = vmatprep.mubr.msk.bf16.mxu1 %vm2617_vm0, %v4537_v62 }
 0x93c   :  { %8303 = vmatmul.mubr.msk.bf16.gmra.mrb[164].mxu1 %vm2617_vm0, %v4539_v57 }
 0x969   :  { %v8252_v52 = vpop.f32.mrb[136].mxu0 }
 0x96a   :  { %v4291_v18 = vpop.f32.mrb[137].mxu0 }
 0x96b   :  { %v8253_v6 = vpop.f32.mrb[138].mxu0 }
 0x96c   :  { %v4400_v34 = vpack.c.bf16 %v8253_v6, %v8252_v52  ;;  %v4294_v30 = vpop.f32.mrb[139].mxu0 }
 0x96d   :  { %v4399_v20 = vpack.c.bf16 %v4294_v30, %v4291_v18 }
 0x96e   :  { %4408 = vst.msk [vmem:[#allocation2 + $0x20] sm:$0xff] %vm2617_vm0, %v4400_v34 }
 0x96f   :  { %4407 = vst.msk [vmem:[#allocation2 + $0x8] sm:$0xff] %vm2617_vm0, %v4399_v20 }
 0x971   :  { %v8256_v26 = vpop.f32.mrb[140].mxu0 }
 0x972   :  { %v4307_v50 = vpop.f32.mrb[141].mxu0 }
 0x973   :  { %v8257_v40 = vpop.f32.mrb[142].mxu0 }
 0x974   :  { %v4402_v17 = vpack.c.bf16 %v8257_v40, %v8256_v26  ;;  %v4310_v44 = vpop.f32.mrb[143].mxu0 }
 0x975   :  { %v4401_v14 = vpack.c.bf16 %v4310_v44, %v4307_v50 }
 0x976   :  { %4410 = vst.msk [vmem:[#allocation2 + $0x50] sm:$0xff] %vm2617_vm0, %v4402_v17 }
 0x977   :  { %4409 = vst.msk [vmem:[#allocation2 + $0x38] sm:$0xff] %vm2617_vm0, %v4401_v14 }
 0x989   :  { %v8284_v10 = vpop.f32.mrb[144].mxu0 }
 0x98a   :  { %v11164_v0 = vsel %vm10228_vm1, %v8284_v10, -1e+30  ;;  %v4497_v19 = vpop.f32.mrb[145].mxu0 }
 0x98b   :  { %v4663_v22 = vsel %vm2617_vm0, %v11164_v0, -inf  ;;  %v8285_v54 = vpop.f32.mrb[146].mxu0  ;;  %v11170_v55 = vsel %vm10233_vm2, %v4497_v19, -1e+30 }
 0x98c   :  { %4664 = vmax.xlane.f32.xlu0 %v4663_v22  ;;  %v4500_v63 = vpop.f32.mrb[147].mxu0  ;;  %v4657_v60 = vsel %vm2617_vm0, %v11170_v55, -inf  ;;  %v4644_v31 = vsel %vm10237_vm3, %v8285_v54, -1e+30 }
 0x98d   :  { %v11174_v7 = vsel %vm10245_vm4, %v4500_v63, -1e+30  ;;  %v4666_v5 = vsel %vm2617_vm0, %v4644_v31, -inf }
 0x98e   :  { %v4660_v43 = vsel %vm2617_vm0, %v11174_v7, -inf }
 0x98f   :  { %4661 = vmax.xlane.f32.xlu1 %v4660_v43 }
 0x990   :  { %4658 = vmax.xlane.f32.xlu0 %v4657_v60 }
 0x994   :  { %4667 = vmax.xlane.f32.xlu0 %v4666_v5 }
 0x9c4   :  { %v8268_v3 = vpop.f32.mrb[152].mxu1 }
 0x9c5   :  { %v4368_v48 = vpop.f32.mrb[153].mxu1 }
 0x9c6   :  { %v8269_v56 = vpop.f32.mrb[154].mxu1 }
 0x9c7   :  { %v4404_v61 = vpack.c.bf16 %v8269_v56, %v8268_v3  ;;  %v4371_v45 = vpop.f32.mrb[155].mxu1 }
 0x9c8   :  { %v4403_v16 = vpack.c.bf16 %v4371_v45, %v4368_v48 }
 0x9c9   :  { %4412 = vst.msk [vmem:[#allocation2 + $0x80] sm:$0xff] %vm2617_vm0, %v4404_v61 }
 0x9ca   :  { %4411 = vst.msk [vmem:[#allocation2 + $0x68] sm:$0xff] %vm2617_vm0, %v4403_v16 }
 0x9ef   :  { %v8288_v13 = vpop.f32.mrb[148].mxu0 }
 0x9f0   :  { %v11187_v58 = vsel %vm10270_vm5, %v8288_v13, -1e+30  ;;  %v4513_v1 = vpop.f32.mrb[149].mxu0 }
 0x9f1   :  { %v4675_v35 = vsel %vm2617_vm0, %v11187_v58, -inf  ;;  %v8289_v21 = vpop.f32.mrb[150].mxu0  ;;  %v11193_v12 = vsel %vm10285_vm7, %v4513_v1, -1e+30 }
 0x9f2   :  { %v11197_v24 = vsel %vm10277_vm6, %v8289_v21, -1e+30  ;;  %4676 = vmax.xlane.f32.xlu0 %v4675_v35  ;;  %v4516_v33 = vpop.f32.mrb[151].mxu0  ;;  %v4669_v8 = vsel %vm2617_vm0, %v11193_v12, -inf }
 0x9f3   :  { %v4678_v38 = vsel %vm2617_vm0, %v11197_v24, -inf  ;;  %v11203_v47 = vsel %vm10289_vm8, %v4516_v33, -1e+30 }
 0x9f4   :  { %4679 = vmax.xlane.f32.xlu1 %v4678_v38  ;;  %v4672_v37 = vsel %vm2617_vm0, %v11203_v47, -inf }
 0x9f6   :  { %4670 = vmax.xlane.f32.xlu0 %v4669_v8 }
 0x9f8   :  { %4673 = vmax.xlane.f32.xlu1 %v4672_v37 }
 0x9ff   :  { %v8272_v62 = vpop.f32.mrb[156].mxu1 }
 0xa00   :  { %v4384_v57 = vpop.f32.mrb[157].mxu1 }
 0xa01   :  { %v8273_v52 = vpop.f32.mrb[158].mxu1 }
 0xa02   :  { %v4406_v18 = vpack.c.bf16 %v8273_v52, %v8272_v62  ;;  %v4387_v6 = vpop.f32.mrb[159].mxu1 }
 0xa03   :  { %v4405_v34 = vpack.c.bf16 %v4387_v6, %v4384_v57 }
 0xa04   :  { %4414 = vst.msk [vmem:[#allocation2 + $0xb0] sm:$0xff] %vm2617_vm0, %v4406_v18 }
 0xa05   :  { %4413 = vst.msk [vmem:[#allocation2 + $0x98] sm:$0xff] %vm2617_vm0, %v4405_v34 }
 0xa07   :  { %v8300_v30 = vpop.f32.mrb[160].mxu1 }
 0xa08   :  { %v11213_v20 = vsel %vm10228_vm1, %v8300_v30, -1e+30  ;;  %v4610_v26 = vpop.f32.mrb[161].mxu1 }
 0xa09   :  { %v4687_v50 = vsel %vm2617_vm0, %v11213_v20, -inf  ;;  %4847 = vrot.lane.b32.xlu1 %v12383_v27, %s9646_s2  ;;  %v8301_v40 = vpop.f32.mrb[162].mxu1  ;;  %v11221_v17 = vsel %vm10233_vm2, %v4610_v26, -1e+30 }
 0xa0a   :  { %4688 = vmax.xlane.f32.xlu0 %v4687_v50  ;;  %v4613_v44 = vpop.f32.mrb[163].mxu1  ;;  %v4681_v14 = vsel %vm2617_vm0, %v11221_v17, -inf  ;;  %v11233_v3 = vsel %vm10237_vm3, %v8301_v40, -1e+30 }
 0xa0b   :  { %v11240_v56 = vsel %vm10245_vm4, %v4613_v44, -1e+30 }
 0xa0d   :  { %4849 = vrot.lane.b32.xlu1 %v12384_v23, %s9646_s2 }
 0xa0e   :  { %4682 = vmax.xlane.f32.xlu0 %v4681_v14 }
 0xa0f   :  { %v8304_v10 = vpop.f32.mrb[164].mxu1 }
 0xa10   :  { %v4626_v19 = vpop.f32.mrb[165].mxu1  ;;  %v11258_v35 = vsel %vm10270_vm5, %v8304_v10, -1e+30 }
 0xa11   :  { %4851 = vrot.lane.b32.xlu1 %v12386_v53, %s9646_s2  ;;  %v8305_v27 = vpop.f32.mrb[166].mxu1  ;;  %v4690_v53 = vsel %vm2617_vm0, %v11233_v3, -inf  ;;  %v4699_v33 = vsel %vm2617_vm0, %v11258_v35, -inf  ;;  %v11268_v38 = vsel %vm10285_vm7, %v4626_v19, -1e+30 }
 0xa12   :  { %v4629_v22 = vpop.f32.mrb[167].mxu1  ;;  %v11247_v45 = vsel %vm10277_vm6, %v8305_v27, -1e+30  ;;  %v4693_v62 = vsel %vm2617_vm0, %v11268_v38, -inf }
 0xa13   :  { %v4702_v13 = vsel %vm2617_vm0, %v11247_v45, -inf }
 0xa19   :  { %v4665_v54 = vpop.xlane.xlu0 %4664 }
 0xa1c   :  { %v4662_v5 = vpop.xlane.xlu1 %4661 }
 0xa1d   :  { %v4659_v63 = vpop.xlane.xlu0 %4658  ;;  %v4706_v23 = vsub.f32 %v11174_v7, %v4662_v5 }
 0xa1e   :  { %v4705_v16 = vsub.f32 %v11170_v55, %v4659_v63 }
 0xa1f   :  { %v4723_v61 = vmul.f32 1.442695, %v4706_v23 }
 0xa20   :  { %v4721_v1 = vmul.f32 1.442695, %v4705_v16 }
 0xa21   :  { %v4668_v43 = vpop.xlane.xlu0 %4667 }
 0xa22   :  { %v4708_v60 = vsub.f32 %v4644_v31, %v4668_v43  ;;  %v4684_v31 = vsel %vm2617_vm0, %v11240_v56, -inf }
 0xa24   :  { %4845 = vrot.lane.b32.xlu0 %v10127_v15, %s9646_s2  ;;  %v4727_v48 = vmul.f32 1.442695, %v4708_v60  ;;  %v4707_v15 = vsub.f32 %v11164_v0, %v4665_v54  ;;  %v11254_v0 = vsel %vm10289_vm8, %v4629_v22, -1e+30 }
 0xa25   :  { %v4696_v21 = vsel %vm2617_vm0, %v11254_v0, -inf }
 0xa26   :  { %9350 = vpow2.f32 %v4727_v48  ;;  %v4725_v7 = vmul.f32 1.442695, %v4707_v15 }
 0xa27   :  { %9352 = vpow2.f32 %v4723_v61 }
 0xa28   :  { %9354 = vpow2.f32 %v4725_v7 }
 0xa29   :  { %9356 = vpow2.f32 %v4721_v1 }
 0xa30   :  { %v11262_v55 = vpop.eup %9350 }
 0xa31   :  { %v4762_v8 = vsel %vm2617_vm0, %v11262_v55, 0.0  ;;  %v11272_v37 = vpop.eup %9352 }
 0xa32   :  { %v11276_v57 = vpop.eup %9354  ;;  %v4756_v52 = vsel %vm2617_vm0, %v11272_v37, 0.0 }
 0xa33   :  { %v4759_v18 = vsel %vm2617_vm0, %v11276_v57, 0.0  ;;  %v11282_v6 = vpop.eup %9356 }
 0xa34   :  { %v4753_v34 = vsel %vm2617_vm0, %v11282_v6, 0.0 }
 0xa35   :  { %4691 = vmax.xlane.f32.xlu1 %v4690_v53 }
 0xa39   :  { %4685 = vmax.xlane.f32.xlu1 %v4684_v31 }
 0xa3d   :  { %4703 = vmax.xlane.f32.xlu1 %v4702_v13 }
 0xa41   :  { %4697 = vmax.xlane.f32.xlu1 %v4696_v21 }
 0xa43   :  { %4700 = vmax.xlane.f32.xlu0 %v4699_v33 }
 0xa45   :  { %4763 = vadd.xlane.f32.xlu1 %v4762_v8 }
 0xa47   :  { %4694 = vmax.xlane.f32.xlu0 %v4693_v62  ;;  %v12415_v62 = vld [vmem:[#allocation25_spill] sm:$0xff] }
 0xa49   :  { %4757 = vadd.xlane.f32.xlu1 %v4756_v52 }
 0xa4b   :  { %4760 = vadd.xlane.f32.xlu0 %v4759_v18 }
 0xa4f   :  { %4754 = vadd.xlane.f32.xlu0 %v4753_v34 }
 0xa7f   :  { %v4677_v30 = vpop.xlane.xlu0 %4676 }
 0xa80   :  { %v4711_v26 = vsub.f32 %v11187_v58, %v4677_v30 }
 0xa81   :  { %v4680_v50 = vpop.xlane.xlu1 %4679 }
 0xa82   :  { %v4733_v40 = vmul.f32 1.442695, %v4711_v26  ;;  %v4712_v44 = vsub.f32 %v11197_v24, %v4680_v50 }
 0xa83   :  { %v4671_v14 = vpop.xlane.xlu0 %4670 }
 0xa84   :  { %9358 = vpow2.f32 %v4733_v40  ;;  %v4709_v10 = vsub.f32 %v11193_v12, %v4671_v14  ;;  %v4735_v19 = vmul.f32 1.442695, %v4712_v44 }
 0xa85   :  { %v4674_v27 = vpop.xlane.xlu1 %4673 }
 0xa86   :  { %v4729_v22 = vmul.f32 1.442695, %v4709_v10  ;;  %v4710_v54 = vsub.f32 %v11203_v47, %v4674_v27 }
 0xa88   :  { %9360 = vpow2.f32 %v4729_v22  ;;  %v4731_v63 = vmul.f32 1.442695, %v4710_v54 }
 0xa89   :  { %9362 = vpow2.f32 %v4735_v19  ;;  %v4848_v7 = vpop.permute.xlu1 %4847 }
 0xa8a   :  { %9364 = vpow2.f32 %v4731_v63 }
 0xa8d   :  { %v4850_v1 = vpop.permute.xlu1 %4849 }
 0xa8e   :  { %v11290_v43 = vpop.eup %9358 }
 0xa8f   :  { %v4771_v58 = vsel %vm2617_vm0, %v11290_v43, 0.0 }
 0xa90   :  { %4772 = vadd.xlane.f32.xlu0 %v4771_v58 }
 0xa92   :  { %v11294_v24 = vpop.eup %9360 }
 0xa93   :  { %v11296_v60 = vpop.eup %9362  ;;  %v4765_v12 = vsel %vm2617_vm0, %v11294_v24, 0.0 }
 0xa94   :  { %v11300_v5 = vpop.eup %9364  ;;  %4766 = vadd.xlane.f32.xlu0 %v4765_v12  ;;  %v4774_v48 = vsel %vm2617_vm0, %v11296_v60, 0.0 }
 0xa95   :  { %v4768_v47 = vsel %vm2617_vm0, %v11300_v5, 0.0 }
 0xa96   :  { %4769 = vadd.xlane.f32.xlu1 %v4768_v47 }
 0xa97   :  { %v4689_v23 = vpop.xlane.xlu0 %4688 }
 0xa98   :  { %v4715_v53 = vsub.f32 %v11213_v20, %v4689_v23  ;;  %4775 = vadd.xlane.f32.xlu0 %v4774_v48 }
 0xa9a   :  { %v4741_v15 = vmul.f32 1.442695, %v4715_v53 }
 0xa9b   :  { %v4683_v61 = vpop.xlane.xlu0 %4682 }
 0xa9c   :  { %9366 = vpow2.f32 %v4741_v15  ;;  %v4713_v31 = vsub.f32 %v11221_v17, %v4683_v61  ;;  %v4852_v17 = vpop.permute.xlu1 %4851 }
 0xa9e   :  { %v4737_v16 = vmul.f32 1.442695, %v4713_v31 }
 0xa9f   :  { %v4846_v13 = vpop.permute.xlu0 %4845 }
 0xaa0   :  { %9368 = vpow2.f32 %v4737_v16  ;;  %8306 = vmatprep.subr.bf16.mxu0 %v4846_v13 }
 0xaa1   :  { %8307 = vmatpush3.bf16.msra.mxu0 %v4846_v13 }
 0xaa2   :  { %8308 = vmatprep.subr.bf16.mxu0 %v4848_v7 }
 0xaa5   :  { %8309 = vmatpush3.bf16.msra.mxu0 %v4848_v7 }
 0xaa6   :  { %v11308_v21 = vpop.eup %9366  ;;  %8310 = vmatprep.subr.bf16.mxu0 %v4850_v1 }
 0xaa7   :  { %4940 = vrot.lane.b32.xlu1 %v12395_v42, %s9646_s2  ;;  %v4783_v20 = vsel %vm2617_vm0, %v11308_v21, 0.0 }
 0xaa8   :  { %4784 = vadd.xlane.f32.xlu0 %v4783_v20 }
 0xaa9   :  { %8311 = vmatpush3.bf16.msra.mxu0 %v4850_v1 }
 0xaaa   :  { %v11314_v33 = vpop.eup %9368  ;;  %8312 = vmatprep.subr.bf16.mxu0 %v4852_v17 }
 0xaab   :  { %4942 = vrot.lane.b32.xlu1 %v12396_v51, %s9646_s2  ;;  %v4777_v8 = vsel %vm2617_vm0, %v11314_v33, 0.0 }
 0xaac   :  { %4778 = vadd.xlane.f32.xlu0 %v4777_v8 }
 0xaad   :  { %8313 = vmatpush3.bf16.msra.mxu0 %v4852_v17 }
 0xaae   :  { %8722 = vmatprep.subr.msk.bf16.mxu0 %vm2617_vm0, %v12415_v62 }
 0xac2   :  { %4938 = vrot.lane.b32.xlu0 %v12391_v59, %s9646_s2  ;;  %v4692_v42 = vpop.xlane.xlu1 %4691 }
 0xac3   :  { %v4716_v52 = vsub.f32 %v11233_v3, %v4692_v42  ;;  %v12417_v42 = vld [vmem:[#allocation29_spill] sm:$0xff] }
 0xac5   :  { %v4743_v18 = vmul.f32 1.442695, %v4716_v52 }
 0xac6   :  { %v4686_v34 = vpop.xlane.xlu1 %4685 }
 0xac7   :  { %9370 = vpow2.f32 %v4743_v18  ;;  %v4714_v30 = vsub.f32 %v11240_v56, %v4686_v34  ;;  %v5118_v18 = vsel %vm2617_vm0, %v12417_v42, 0  ;;  %v12418_v34 = vld [vmem:[#allocation31_spill] sm:$0xff] }
 0xac9   :  { %v4739_v51 = vmul.f32 1.442695, %v4714_v30  ;;  %v5121_v30 = vsel %vm2617_vm0, %v12418_v34, 0 }
 0xaca   :  { %v4704_v26 = vpop.xlane.xlu1 %4703 }
 0xacb   :  { %9372 = vpow2.f32 %v4739_v51  ;;  %v4720_v54 = vsub.f32 %v11247_v45, %v4704_v26 }
 0xacd   :  { %v4751_v12 = vmul.f32 1.442695, %v4720_v54 }
 0xace   :  { %v4698_v50 = vpop.xlane.xlu1 %4697 }
 0xad0   :  { %v4701_v40 = vpop.xlane.xlu0 %4700 }
 0xad1   :  { %v11326_v44 = vpop.eup %9370  ;;  %v4719_v14 = vsub.f32 %v11258_v35, %v4701_v40 }
 0xad2   :  { %v4764_v10 = vpop.xlane.xlu1 %4763  ;;  %v4786_v59 = vsel %vm2617_vm0, %v11326_v44, 0.0 }
 0xad3   :  { %4787 = vadd.xlane.f32.xlu1 %v4786_v59  ;;  %v4749_v3 = vmul.f32 1.442695, %v4719_v14 }
 0xad4   :  { %v4695_v19 = vpop.xlane.xlu0 %4694 }
 0xad5   :  { %v11331_v27 = vpop.eup %9372  ;;  %v4717_v56 = vsub.f32 %v11268_v38, %v4695_v19  ;;  %9374 = vpow2.f32 %v4749_v3 }
 0xad6   :  { %v4780_v22 = vsel %vm2617_vm0, %v11331_v27, 0.0  ;;  %v4758_v35 = vpop.xlane.xlu1 %4757 }
 0xad7   :  { %v4745_v63 = vmul.f32 1.442695, %v4717_v56  ;;  %4781 = vadd.xlane.f32.xlu1 %v4780_v22 }
 0xad8   :  { %v4761_v58 = vpop.xlane.xlu0 %4760 }
 0xad9   :  { %9376 = vpow2.f32 %v4745_v63 }
 0xada   :  { %9378 = vrcp.f32 %v4761_v58 }
 0xadb   :  { %9380 = vrcp.f32 %v4758_v35 }
 0xadc   :  { %9382 = vrcp.f32 %v4764_v10  ;;  %v4755_v47 = vpop.xlane.xlu0 %4754 }
 0xadd   :  { %9384 = vrcp.f32 %v4755_v47  ;;  %v12420_v47 = vld [vmem:[#allocation20_spill] sm:$0xff] }
 0xade   :  { %9386 = vpow2.f32 %v4751_v12 }
 0xadf   :  { %v11337_v23 = vpop.eup %9374 }
 0xae0   :  { %v4795_v7 = vsel %vm2617_vm0, %v11337_v23, 0.0 }
 0xae3   :  { %v11339_v38 = vpop.eup %9376 }
 0xae4   :  { %v9379_v48 = vpop.eup %9378  ;;  %v4789_v45 = vsel %vm2617_vm0, %v11339_v38, 0.0 }
 0xae5   :  { %v9381_v53 = vpop.eup %9380  ;;  %4790 = vadd.xlane.f32.xlu0 %v4789_v45  ;;  %v4819_v31 = vmul.f32 %v9379_v48, %v11276_v57 }
 0xae6   :  { %v9383_v15 = vpop.eup %9382  ;;  %v4818_v13 = vmul.f32 %v9381_v53, %v11272_v37  ;;  %v12416_v37 = vld [vmem:[#allocation27_spill] sm:$0xff]  ;;  %v12424_v53 = vld [vmem:[#allocation50_spill] sm:$0xff] }
 0xae7   :  { %v9385_v61 = vpop.eup %9384  ;;  %v4820_v20 = vmul.f32 %v9383_v15, %v11262_v55  ;;  %v5115_v55 = vsel %vm2617_vm0, %v12416_v37, 0 }
 0xae8   :  { %4944 = vrot.lane.b32.xlu1 %v12398_v11, %s9646_s2  ;;  %v4817_v16 = vmul.f32 %v9385_v61, %v11282_v6  ;;  %v11350_v1 = vpop.eup %9386  ;;  %v5112_v11 = vsel %vm2617_vm0, %v12415_v62, 0  ;;  %v4718_v6 = vsub.f32 %v11254_v0, %v4698_v50  ;;  %v12419_v0 = vld [vmem:[#allocation48_spill] sm:$0xff]  ;;  %v12425_v61 = vld [vmem:[#allocation23_spill] sm:$0xff] }
 0xae9   :  { %4796 = vadd.xlane.f32.xlu0 %v4795_v7  ;;  %v4834_v8 = vpack.c.bf16 %v4820_v20, %v4819_v31  ;;  %v4798_v57 = vsel %vm2617_vm0, %v11350_v1, 0.0  ;;  %v12426_v31 = vld [vmem:[#allocation49_spill] sm:$0xff] }
 0xaea   :  { %v4833_v17 = vpack.c.bf16 %v4818_v13, %v4817_v16  ;;  %v4747_v52 = vmul.f32 1.442695, %v4718_v6  ;;  %v12427_v20 = vld [vmem:[#allocation33_spill] sm:$0xff] }
 0xaec   :  { %8314 = vmatprep.mubr.msk.bf16.mxu0 %vm2617_vm0, %v4833_v17  ;;  %9388 = vpow2.f32 %v4747_v52 }
 0xaed   :  { %4799 = vadd.xlane.f32.xlu0 %v4798_v57  ;;  %8315 = vmatmul.mubr.msk.bf16.vlgmr.msra.gmra.mrb[152].mxu0 %vm2617_vm0, %v4834_v8 }
 0xaee   :  { %8339 = vmatpush3.bf16.xpose.msra.mxu0 %v5112_v11 }
 0xaef   :  { %8723 = vmatprep.subr.msk.bf16.mxu0 %vm2617_vm0, %v12416_v37 }
 0xaf6   :  { %8341 = vmatpush3.bf16.xpose.msra.mxu0 %v5115_v55  ;;  %v11377_v51 = vpop.eup %9388 }
 0xaf7   :  { %8724 = vmatprep.subr.msk.bf16.mxu0 %vm2617_vm0, %v12417_v42  ;;  %v4792_v26 = vsel %vm2617_vm0, %v11377_v51, 0.0 }
 0xafe   :  { %8343 = vmatpush3.bf16.xpose.msra.mxu0 %v5118_v18 }
 0xaff   :  { %8725 = vmatprep.subr.msk.bf16.mxu0 %vm2617_vm0, %v12418_v34 }
 0xb03   :  { %5663 = vrot.lane.b32.xlu0 %v12415_v62, %s9646_s2 }
 0xb06   :  { %8345 = vmatpush3.bf16.xpose.msra.mxu0 %v5121_v30  ;;  %v5201_v30 = vsel %vm2617_vm0, %v12427_v20, 0 }
 0xb07   :  { %8370 = vmatprep.subr.bf16.mxu0 %v12419_v0  ;;  %5667 = vrot.lane.b32.xlu0 %v12417_v42, %s9646_s2 }
 0xb0b   :  { %5669 = vrot.lane.b32.xlu0 %v12418_v34, %s9646_s2 }
 0xb0c   :  { %4793 = vadd.xlane.f32.xlu1 %v4792_v26 }
 0xb1d   :  { %v4773_v50 = vpop.xlane.xlu0 %4772  ;;  %5665 = vrot.lane.b32.xlu1 %v12416_v37, %s9646_s2 }
 0xb21   :  { %v4767_v62 = vpop.xlane.xlu0 %4766 }
 0xb22   :  { %9390 = vrcp.f32 %v4767_v62 }
 0xb23   :  { %9392 = vrcp.f32 %v4773_v50  ;;  %v4770_v40 = vpop.xlane.xlu1 %4769  ;;  %v12428_v50 = vld [vmem:[#allocation35_spill] sm:$0xff] }
 0xb24   :  { %9394 = vrcp.f32 %v4770_v40  ;;  %v12430_v40 = vld [vmem:[#allocation39_spill] sm:$0xff] }
 0xb25   :  { %v4776_v14 = vpop.xlane.xlu0 %4775 }
 0xb26   :  { %9396 = vrcp.f32 %v4776_v14  ;;  %v5210_v14 = vsel %vm2617_vm0, %v12430_v40, 0 }
 0xb2c   :  { %v9391_v10 = vpop.eup %9390 }
 0xb2d   :  { %v9393_v59 = vpop.eup %9392  ;;  %v4821_v19 = vmul.f32 %v9391_v10, %v11294_v24  ;;  %v12421_v24 = vld [vmem:[#allocation21_spill] sm:$0xff]  ;;  %v12431_v10 = vld [vmem:[#allocation52_spill] sm:$0xff] }
 0xb2e   :  { %v9395_v3 = vpop.eup %9394  ;;  %v4823_v63 = vmul.f32 %v9393_v59, %v11290_v43  ;;  %v12422_v43 = vld [vmem:[#allocation22_spill] sm:$0xff] }
 0xb2f   :  { %v4822_v56 = vmul.f32 %v9395_v3, %v11300_v5  ;;  %v4941_v5 = vpop.permute.xlu1 %4940 }
 0xb30   :  { %v9397_v22 = vpop.eup %9396 }
 0xb31   :  { %v4835_v54 = vpack.c.bf16 %v4822_v56, %v4821_v19  ;;  %v4824_v35 = vmul.f32 %v9397_v22, %v11296_v60  ;;  %v12423_v60 = vld [vmem:[#allocation47_spill] sm:$0xff] }
 0xb33   :  { %8318 = vmatprep.mubr.msk.bf16.mxu0 %vm2617_vm0, %v4835_v54  ;;  %v4836_v58 = vpack.c.bf16 %v4824_v35, %v4823_v63  ;;  %v4943_v15 = vpop.permute.xlu1 %4942 }
 0xb35   :  { %v4785_v12 = vpop.xlane.xlu0 %4784  ;;  %8319 = vmatmul.mubr.msk.bf16.gmra.mrb[156].mxu0 %vm2617_vm0, %v4836_v58 }
 0xb36   :  { %8346 = vmatprep.mubr.msk.bf16.mxu0 %vm2617_vm0, %v12420_v47 }
 0xb39   :  { %v4779_v48 = vpop.xlane.xlu0 %4778 }
 0xb3d   :  { %v4939_v45 = vpop.permute.xlu0 %4938  ;;  %8347 = vmatmul.mubr.msk.bf16.vlgmr.msra.gmra.mrb[160].mxu0 %vm2617_vm0, %v12421_v24 }
 0xb3e   :  { %8371 = vmatpush3.bf16.msra.mxu0 %v12419_v0  ;;  %8322 = vmatprep.subr.bf16.mxu1 %v4939_v45 }
 0xb3f   :  { %8350 = vmatprep.mubr.msk.bf16.mxu0 %vm2617_vm0, %v12422_v43  ;;  %8372 = vmatprep.subr.bf16.mxu0 %v12423_v60 }
 0xb40   :  { %8323 = vmatpush3.bf16.msra.mxu1 %v4939_v45  ;;  %v12432_v45 = vld [vmem:[#allocation24_spill] sm:$0xff] }
 0xb41   :  { %8324 = vmatprep.subr.bf16.mxu1 %v4941_v5 }
 0xb42   :  { %8373 = vmatpush3.bf16.msra.mxu0 %v12423_v60 }
 0xb43   :  { %8374 = vmatprep.subr.bf16.mxu0 %v12424_v53 }
 0xb44   :  { %8325 = vmatpush3.bf16.msra.mxu1 %v4941_v5  ;;  %v12433_v5 = vld [vmem:[#allocation26_spill] sm:$0xff] }
 0xb45   :  { %8326 = vmatprep.subr.bf16.mxu1 %v4943_v15  ;;  %8351 = vmatmul.mubr.msk.bf16.gmra.mrb[164].mxu0 %vm2617_vm0, %v12425_v61 }
 0xb46   :  { %8375 = vmatpush3.bf16.msra.mxu0 %v12424_v53 }
 0xb47   :  { %8376 = vmatprep.subr.bf16.mxu0 %v12426_v31 }
 0xb48   :  { %8327 = vmatpush3.bf16.msra.mxu1 %v4943_v15  ;;  %v12438_v15 = vld [vmem:[#allocation53_spill] sm:$0xff] }
 0xb4a   :  { %8377 = vmatpush3.bf16.msra.mxu0 %v12426_v31 }
 0xb60   :  { %v4788_v7 = vpop.xlane.xlu1 %4787 }
 0xb61   :  { %9398 = vrcp.f32 %v4788_v7 }
 0xb62   :  { %9400 = vrcp.f32 %v4779_v48 }
 0xb63   :  { %9402 = vrcp.f32 %v4785_v12 }
 0xb64   :  { %v4782_v16 = vpop.xlane.xlu1 %4781 }
 0xb65   :  { %9404 = vrcp.f32 %v4782_v16 }
 0xb68   :  { %v4945_v13 = vpop.permute.xlu1 %4944 }
 0xb69   :  { %8328 = vmatprep.subr.bf16.mxu1 %v4945_v13 }
 0xb6a   :  { %8329 = vmatpush3.bf16.msra.mxu1 %v4945_v13 }
 0xb6b   :  { %8726 = vmatprep.subr.msk.bf16.mxu1 %vm2617_vm0, %v12427_v20  ;;  %v9399_v17 = vpop.eup %9398 }
 0xb6c   :  { %v9401_v8 = vpop.eup %9400  ;;  %v4828_v37 = vmul.f32 %v9399_v17, %v11326_v44  ;;  %v5204_v44 = vsel %vm2617_vm0, %v12428_v50, 0 }
 0xb6d   :  { %v9403_v57 = vpop.eup %9402  ;;  %v4825_v55 = vmul.f32 %v9401_v8, %v11314_v33 }
 0xb6e   :  { %v4827_v42 = vmul.f32 %v9403_v57, %v11308_v21 }
 0xb6f   :  { %v9405_v11 = vpop.eup %9404 }
 0xb70   :  { %v4826_v6 = vmul.f32 %v9405_v11, %v11331_v27  ;;  %v4838_v34 = vpack.c.bf16 %v4828_v37, %v4827_v42  ;;  %v12429_v27 = vld [vmem:[#allocation37_spill] sm:$0xff] }
 0xb71   :  { %v5207_v62 = vsel %vm2617_vm0, %v12429_v27, 0 }
 0xb72   :  { %v4791_v52 = vpop.xlane.xlu0 %4790  ;;  %v4837_v18 = vpack.c.bf16 %v4826_v6, %v4825_v55 }
 0xb74   :  { %8330 = vmatprep.mubr.msk.bf16.mxu1 %vm2617_vm0, %v4837_v18 }
 0xb75   :  { %8331 = vmatmul.mubr.msk.bf16.vlgmr.msra.gmra.mrb[168].mxu1 %vm2617_vm0, %v4838_v34 }
 0xb76   :  { %8355 = vmatpush3.bf16.xpose.msra.mxu1 %v5201_v30  ;;  %v4797_v26 = vpop.xlane.xlu0 %4796 }
 0xb77   :  { %8727 = vmatprep.subr.msk.bf16.mxu1 %vm2617_vm0, %v12428_v50 }
 0xb7a   :  { %v4800_v33 = vpop.xlane.xlu0 %4799 }
 0xb7b   :  { %9406 = vrcp.f32 %v4800_v33 }
 0xb7c   :  { %9408 = vrcp.f32 %v4791_v52 }
 0xb7d   :  { %9410 = vrcp.f32 %v4797_v26 }
 0xb7e   :  { %8357 = vmatpush3.bf16.xpose.msra.mxu1 %v5204_v44  ;;  %v11420_v21 = vpop.permute.xlu0 %5663 }
 0xb7f   :  { %8728 = vmatprep.subr.msk.bf16.mxu1 %vm2617_vm0, %v12429_v27  ;;  %8730 = vmatprep.subr.msk.bf16.mxu0 %vm2617_vm0, %v11420_v21 }
 0xb85   :  { %v9407_v3 = vpop.eup %9406 }
 0xb86   :  { %8359 = vmatpush3.bf16.xpose.msra.mxu1 %v5207_v62  ;;  %v9409_v19 = vpop.eup %9408  ;;  %v4832_v54 = vmul.f32 %v9407_v3, %v11350_v1  ;;  %v12434_v1 = vld [vmem:[#allocation28_spill] sm:$0xff] }
 0xb87   :  { %8729 = vmatprep.subr.msk.bf16.mxu1 %vm2617_vm0, %v12430_v40  ;;  %v9411_v56 = vpop.eup %9410  ;;  %v4829_v63 = vmul.f32 %v9409_v19, %v11339_v38  ;;  %v12435_v38 = vld [vmem:[#allocation51_spill] sm:$0xff] }
 0xb88   :  { %v4831_v58 = vmul.f32 %v9411_v56, %v11337_v23  ;;  %v12436_v23 = vld [vmem:[#allocation54_spill] sm:$0xff] }
 0xb8a   :  { %v4840_v48 = vpack.c.bf16 %v4832_v54, %v4831_v58 }
 0xb8e   :  { %8361 = vmatpush3.bf16.xpose.msra.mxu1 %v5210_v14 }
 0xb8f   :  { %8386 = vmatprep.subr.bf16.mxu1 %v12431_v10 }
 0xb99   :  { %v4794_v59 = vpop.xlane.xlu1 %4793 }
 0xb9a   :  { %9412 = vrcp.f32 %v4794_v59 }
 0xba4   :  { %v9413_v22 = vpop.eup %9412 }
 0xba5   :  { %v4830_v35 = vmul.f32 %v9413_v22, %v11377_v51  ;;  %v12437_v51 = vld [vmem:[#allocation30_spill] sm:$0xff] }
 0xba7   :  { %v4839_v12 = vpack.c.bf16 %v4830_v35, %v4829_v63 }
 0xba9   :  { %8334 = vmatprep.mubr.msk.bf16.mxu1 %vm2617_vm0, %v4839_v12 }
 0xbaa   :  { %8335 = vmatmul.mubr.msk.bf16.gmra.mrb[172].mxu1 %vm2617_vm0, %v4840_v48 }
 0xbab   :  { %8362 = vmatprep.mubr.msk.bf16.mxu1 %vm2617_vm0, %v12432_v45 }
 0xbb2   :  { %8363 = vmatmul.mubr.msk.bf16.vlgmr.msra.gmra.mrb[176].mxu1 %vm2617_vm0, %v12433_v5 }
 0xbb3   :  { %8387 = vmatpush3.bf16.msra.mxu1 %v12431_v10  ;;  %8366 = vmatprep.mubr.msk.bf16.mxu1 %vm2617_vm0, %v12434_v1 }
 0xbb4   :  { %8388 = vmatprep.subr.bf16.mxu1 %v12435_v38 }
 0xbb7   :  { %8389 = vmatpush3.bf16.msra.mxu1 %v12435_v38 }
 0xbb8   :  { %8390 = vmatprep.subr.bf16.mxu1 %v12436_v23 }
 0xbba   :  { %8367 = vmatmul.mubr.msk.bf16.gmra.mrb[180].mxu1 %vm2617_vm0, %v12437_v51 }
 0xbbb   :  { %8391 = vmatpush3.bf16.msra.mxu1 %v12436_v23 }
 0xbbc   :  { %8392 = vmatprep.subr.bf16.mxu1 %v12438_v15 }
 0xbbf   :  { %8393 = vmatpush3.bf16.msra.mxu1 %v12438_v15 }
 0xbc0   :  { %v11454_v7 = vpop.f32.mrb[152].mxu0 }
 0xbc1   :  { %v11456_v16 = vpop.f32.mrb[153].mxu0 }
 0xbc2   :  { %v11458_v13 = vpop.f32.mrb[154].mxu0 }
 0xbc3   :  { %v11462_v8 = vpop.f32.mrb[155].mxu0 }
 0xc08   :  { %v11466_v11 = vpop.f32.mrb[156].mxu0 }
 0xc09   :  { %12439 = vst [vmem:[#allocation19_spill] sm:$0xff] %v11466_v11  ;;  %v11468_v37 = vpop.f32.mrb[157].mxu0 }
 0xc0a   :  { %12440 = vst [vmem:[#allocation46_spill] sm:$0xff] %v11468_v37  ;;  %v11470_v55 = vpop.f32.mrb[158].mxu0 }
 0xc0b   :  { %12441 = vst [vmem:[#allocation25_spill] sm:$0xff] %v11470_v55  ;;  %v11474_v42 = vpop.f32.mrb[159].mxu0 }
 0xc0c   :  { %12442 = vst [vmem:[#allocation27_spill] sm:$0xff] %v11474_v42 }
 0xc10   :  { %v8348_v18 = vpop.f32.mrb[160].mxu0 }
 0xc11   :  { %v11480_v34 = vsel %vm10228_vm1, %v8348_v18, -1e+30  ;;  %v5157_v30 = vpop.f32.mrb[161].mxu0 }
 0xc12   :  { %v5299_v26 = vsel %vm2617_vm0, %v11480_v34, -inf  ;;  %v8349_v33 = vpop.f32.mrb[162].mxu0  ;;  %v11486_v44 = vsel %vm10233_vm2, %v5157_v30, -1e+30 }
 0xc13   :  { %v11490_v62 = vsel %vm10237_vm3, %v8349_v33, -1e+30  ;;  %5300 = vmax.xlane.f32.xlu0 %v5299_v26  ;;  %v5160_v14 = vpop.f32.mrb[163].mxu0  ;;  %v5293_v19 = vsel %vm2617_vm0, %v11486_v44, -inf }
 0xc14   :  { %v5302_v59 = vsel %vm2617_vm0, %v11490_v62, -inf  ;;  %v11496_v3 = vsel %vm10245_vm4, %v5160_v14, -1e+30 }
 0xc15   :  { %5303 = vmax.xlane.f32.xlu1 %v5302_v59  ;;  %v5296_v56 = vsel %vm2617_vm0, %v11496_v3, -inf }
 0xc17   :  { %5294 = vmax.xlane.f32.xlu0 %v5293_v19 }
 0xc18   :  { %v8352_v22 = vpop.f32.mrb[164].mxu0 }
 0xc19   :  { %v11504_v54 = vsel %vm10270_vm5, %v8352_v22, -1e+30  ;;  %5297 = vmax.xlane.f32.xlu1 %v5296_v56  ;;  %v5173_v63 = vpop.f32.mrb[165].mxu0 }
 0xc1a   :  { %v5311_v35 = vsel %vm2617_vm0, %v11504_v54, -inf  ;;  %v8353_v58 = vpop.f32.mrb[166].mxu0  ;;  %v11510_v12 = vsel %vm10285_vm7, %v5173_v63, -1e+30 }
 0xc1b   :  { %v11514_v48 = vsel %vm10277_vm6, %v8353_v58, -1e+30  ;;  %5312 = vmax.xlane.f32.xlu0 %v5311_v35  ;;  %v5176_v18 = vpop.f32.mrb[167].mxu0  ;;  %v5305_v33 = vsel %vm2617_vm0, %v11510_v12, -inf }
 0xc1c   :  { %v5314_v30 = vsel %vm2617_vm0, %v11514_v48, -inf  ;;  %v11520_v26 = vsel %vm10289_vm8, %v5176_v18, -1e+30 }
 0xc1d   :  { %5315 = vmax.xlane.f32.xlu1 %v5314_v30  ;;  %v5308_v14 = vsel %vm2617_vm0, %v11520_v26, -inf }
 0xc1f   :  { %5306 = vmax.xlane.f32.xlu0 %v5305_v33 }
 0xc21   :  { %5309 = vmax.xlane.f32.xlu1 %v5308_v14 }
 0xc48   :  { %v11526_v59 = vpop.f32.mrb[168].mxu1 }
 0xc49   :  { %12443 = vst [vmem:[#allocation29_spill] sm:$0xff] %v11526_v59  ;;  %v11528_v19 = vpop.f32.mrb[169].mxu1 }
 0xc4a   :  { %12444 = vst [vmem:[#allocation31_spill] sm:$0xff] %v11528_v19  ;;  %v11530_v56 = vpop.f32.mrb[170].mxu1 }
 0xc4b   :  { %12445 = vst [vmem:[#allocation48_spill] sm:$0xff] %v11530_v56  ;;  %v11534_v63 = vpop.f32.mrb[171].mxu1 }
 0xc4c   :  { %12446 = vst [vmem:[#allocation20_spill] sm:$0xff] %v11534_v63 }
 0xc7d   :  { %v11538_v58 = vpop.f32.mrb[172].mxu1 }
 0xc7e   :  { %12447 = vst [vmem:[#allocation21_spill] sm:$0xff] %v11538_v58  ;;  %v11540_v18 = vpop.f32.mrb[173].mxu1 }
 0xc7f   :  { %12448 = vst [vmem:[#allocation22_spill] sm:$0xff] %v11540_v18  ;;  %v11542_v30 = vpop.f32.mrb[174].mxu1 }
 0xc80   :  { %12449 = vst [vmem:[#allocation47_spill] sm:$0xff] %v11542_v30  ;;  %v11546_v14 = vpop.f32.mrb[175].mxu1 }
 0xc81   :  { %12450 = vst [vmem:[#allocation50_spill] sm:$0xff] %v11546_v14 }
 0xc85   :  { %v8364_v22 = vpop.f32.mrb[176].mxu1 }
 0xc86   :  { %v11552_v52 = vsel %vm10228_vm1, %v8364_v22, -1e+30  ;;  %v5246_v35 = vpop.f32.mrb[177].mxu1 }
 0xc87   :  { %v5323_v17 = vsel %vm2617_vm0, %v11552_v52, -inf  ;;  %v8365_v57 = vpop.f32.mrb[178].mxu1  ;;  %v11558_v59 = vsel %vm10233_vm2, %v5246_v35, -1e+30 }
 0xc88   :  { %v11562_v33 = vsel %vm10237_vm3, %v8365_v57, -1e+30  ;;  %5324 = vmax.xlane.f32.xlu0 %v5323_v17  ;;  %v5249_v6 = vpop.f32.mrb[179].mxu1  ;;  %v5317_v30 = vsel %vm2617_vm0, %v11558_v59, -inf }
 0xc89   :  { %v5326_v58 = vsel %vm2617_vm0, %v11562_v33, -inf  ;;  %v11568_v22 = vsel %vm10245_vm4, %v5249_v6, -1e+30 }
 0xc8a   :  { %5327 = vmax.xlane.f32.xlu1 %v5326_v58  ;;  %v5320_v35 = vsel %vm2617_vm0, %v11568_v22, -inf }
 0xc8c   :  { %5318 = vmax.xlane.f32.xlu0 %v5317_v30 }
 0xc8d   :  { %v8368_v18 = vpop.f32.mrb[180].mxu1 }
 0xc8e   :  { %v11576_v17 = vsel %vm10270_vm5, %v8368_v18, -1e+30  ;;  %5321 = vmax.xlane.f32.xlu1 %v5320_v35  ;;  %v5262_v57 = vpop.f32.mrb[181].mxu1  ;;  %v11588_v18 = vpop.permute.xlu0 %5667 }
 0xc8f   :  { %v5335_v14 = vsel %vm2617_vm0, %v11576_v17, -inf  ;;  %v8369_v6 = vpop.f32.mrb[182].mxu1  ;;  %v11582_v58 = vsel %vm10285_vm7, %v5262_v57, -1e+30 }
 0xc90   :  { %5336 = vmax.xlane.f32.xlu0 %v5335_v14  ;;  %v5265_v30 = vpop.f32.mrb[183].mxu1  ;;  %v5329_v56 = vsel %vm2617_vm0, %v11582_v58, -inf  ;;  %v11598_v14 = vpop.permute.xlu1 %5665 }
 0xc92   :  { %v11592_v35 = vpop.permute.xlu0 %5669 }
 0xc94   :  { %5330 = vmax.xlane.f32.xlu0 %v5329_v56 }
 0xc9f   :  { %5653 = vrot.lane.b32.xlu1 %v12421_v24, %s9646_s2 }
 0xca0   :  { %v5301_v57 = vpop.xlane.xlu0 %5300 }
 0xca1   :  { %v5343_v19 = vsub.f32 %v11480_v34, %v5301_v57 }
 0xca2   :  { %v5304_v24 = vpop.xlane.xlu1 %5303 }
 0xca3   :  { %5776 = vrot.lane.b32.xlu1 %v12427_v20, %s9646_s2  ;;  %v5361_v11 = vmul.f32 1.442695, %v5343_v19  ;;  %v5344_v37 = vsub.f32 %v11490_v62, %v5304_v24  ;;  %v11611_v62 = vsel %vm10277_vm6, %v8369_v6, -1e+30 }
 0xca4   :  { %v5295_v56 = vpop.xlane.xlu0 %5294 }
 0xca5   :  { %v5341_v55 = vsub.f32 %v11486_v44, %v5295_v56  ;;  %9414 = vpow2.f32 %v5361_v11  ;;  %v5363_v2 = vmul.f32 1.442695, %v5344_v37 }
 0xca6   :  { %v5298_v20 = vpop.xlane.xlu1 %5297 }
 0xca7   :  { %5778 = vrot.lane.b32.xlu1 %v12428_v50, %s9646_s2  ;;  %v5357_v32 = vmul.f32 1.442695, %v5341_v55  ;;  %v5342_v34 = vsub.f32 %v11496_v3, %v5298_v20 }
 0xca8   :  { %v5313_v63 = vpop.xlane.xlu0 %5312 }
 0xca9   :  { %v5347_v28 = vsub.f32 %v11504_v54, %v5313_v63  ;;  %9416 = vpow2.f32 %v5357_v32  ;;  %v5359_v11 = vmul.f32 1.442695, %v5342_v34 }
 0xcaa   :  { %5651 = vrot.lane.b32.xlu0 %v12420_v47, %s9646_s2  ;;  %v5316_v46 = vpop.xlane.xlu1 %5315 }
 0xcab   :  { %v5369_v47 = vmul.f32 1.442695, %v5347_v28  ;;  %v5348_v55 = vsub.f32 %v11514_v48, %v5316_v46  ;;  %v11622_v46 = vsel %vm10289_vm8, %v5265_v30, -1e+30 }
 0xcac   :  { %v5307_v50 = vpop.xlane.xlu0 %5306  ;;  %v5332_v48 = vsel %vm2617_vm0, %v11622_v46, -inf }
 0xcad   :  { %v5345_v42 = vsub.f32 %v11510_v12, %v5307_v50  ;;  %9418 = vpow2.f32 %v5369_v47  ;;  %v5371_v37 = vmul.f32 1.442695, %v5348_v55 }
 0xcae   :  { %9420 = vpow2.f32 %v5363_v2  ;;  %v5310_v44 = vpop.xlane.xlu1 %5309  ;;  %v5338_v2 = vsel %vm2617_vm0, %v11611_v62, -inf }
 0xcaf   :  { %v5365_v19 = vmul.f32 1.442695, %v5345_v42  ;;  %v11606_v57 = vpop.eup %9414  ;;  %v5346_v42 = vsub.f32 %v11520_v26, %v5310_v44 }
 0xcb0   :  { %v5395_v32 = vsel %vm2617_vm0, %v11606_v57, 0.0 }
 0xcb1   :  { %9422 = vpow2.f32 %v5365_v19  ;;  %v5367_v12 = vmul.f32 1.442695, %v5346_v42 }
 0xcb2   :  { %9424 = vpow2.f32 %v5359_v11 }
 0xcb3   :  { %v11615_v28 = vpop.eup %9416  ;;  %9426 = vpow2.f32 %v5371_v37 }
 0xcb4   :  { %v5389_v3 = vsel %vm2617_vm0, %v11615_v28, 0.0  ;;  %9428 = vpow2.f32 %v5367_v12 }
 0xcb7   :  { %v11626_v54 = vpop.eup %9418 }
 0xcb8   :  { %v11630_v26 = vpop.eup %9420  ;;  %v5407_v63 = vsel %vm2617_vm0, %v11626_v54, 0.0 }
 0xcb9   :  { %v5398_v30 = vsel %vm2617_vm0, %v11630_v26, 0.0 }
 0xcbb   :  { %v11634_v6 = vpop.eup %9422 }
 0xcbc   :  { %v11638_v56 = vpop.eup %9424  ;;  %v5401_v24 = vsel %vm2617_vm0, %v11634_v6, 0.0 }
 0xcbd   :  { %v5392_v20 = vsel %vm2617_vm0, %v11638_v56, 0.0  ;;  %v11644_v50 = vpop.eup %9426 }
 0xcbe   :  { %v5410_v47 = vsel %vm2617_vm0, %v11644_v50, 0.0  ;;  %v11648_v34 = vpop.eup %9428 }
 0xcbf   :  { %v5404_v19 = vsel %vm2617_vm0, %v11648_v34, 0.0 }
 0xcc9   :  { %5396 = vadd.xlane.f32.xlu0 %v5395_v32 }
 0xccb   :  { %5339 = vmax.xlane.f32.xlu1 %v5338_v2 }
 0xccd   :  { %5390 = vadd.xlane.f32.xlu0 %v5389_v3 }
 0xccf   :  { %5333 = vmax.xlane.f32.xlu1 %v5332_v48 }
 0xcd1   :  { %5408 = vadd.xlane.f32.xlu0 %v5407_v63 }
 0xcd3   :  { %5399 = vadd.xlane.f32.xlu1 %v5398_v30 }
 0xcd5   :  { %5402 = vadd.xlane.f32.xlu0 %v5401_v24 }
 0xcd7   :  { %5393 = vadd.xlane.f32.xlu1 %v5392_v20 }
 0xcdb   :  { %5411 = vadd.xlane.f32.xlu1 %v5410_v47 }
 0xcdf   :  { %5405 = vadd.xlane.f32.xlu1 %v5404_v19 }
 0xceb   :  { %5655 = vrot.lane.b32.xlu0 %v12422_v43, %s9646_s2 }
 0xd15   :  { %v5325_v11 = vpop.xlane.xlu0 %5324 }
 0xd16   :  { %v5351_v55 = vsub.f32 %v11552_v52, %v5325_v11 }
 0xd17   :  { %v5328_v44 = vpop.xlane.xlu1 %5327 }
 0xd18   :  { %v5377_v32 = vmul.f32 1.442695, %v5351_v55  ;;  %v5352_v37 = vsub.f32 %v11562_v33, %v5328_v44 }
 0xd19   :  { %v5319_v42 = vpop.xlane.xlu0 %5318 }
 0xd1a   :  { %9430 = vpow2.f32 %v5377_v32  ;;  %v5349_v2 = vsub.f32 %v11558_v59, %v5319_v42  ;;  %v5379_v12 = vmul.f32 1.442695, %v5352_v37 }
 0xd1b   :  { %v5322_v3 = vpop.xlane.xlu1 %5321 }
 0xd1c   :  { %v5373_v48 = vmul.f32 1.442695, %v5349_v2  ;;  %v5350_v63 = vsub.f32 %v11568_v22, %v5322_v3 }
 0xd1d   :  { %v5337_v30 = vpop.xlane.xlu0 %5336 }
 0xd1e   :  { %9432 = vpow2.f32 %v5373_v48  ;;  %v5355_v43 = vsub.f32 %v11576_v17, %v5337_v30  ;;  %v5375_v52 = vmul.f32 1.442695, %v5350_v63 }
 0xd1f   :  { %v11659_v24 = vpop.permute.xlu1 %5653  ;;  %9434 = vpow2.f32 %v5379_v12 }
 0xd20   :  { %v5385_v20 = vmul.f32 1.442695, %v5355_v43 }
 0xd21   :  { %v5331_v47 = vpop.xlane.xlu0 %5330 }
 0xd22   :  { %9436 = vpow2.f32 %v5385_v20  ;;  %v5353_v33 = vsub.f32 %v11582_v58, %v5331_v47 }
 0xd23   :  { %v11662_v19 = vpop.permute.xlu1 %5776  ;;  %9438 = vpow2.f32 %v5375_v52 }
 0xd24   :  { %v11664_v59 = vpop.eup %9430  ;;  %v5381_v11 = vmul.f32 1.442695, %v5353_v33  ;;  %8734 = vmatprep.subr.msk.bf16.mxu1 %vm2617_vm0, %v11662_v19 }
 0xd25   :  { %v5419_v22 = vsel %vm2617_vm0, %v11664_v59, 0.0  ;;  %v11692_v48 = vpop.permute.xlu0 %5651 }
 0xd26   :  { %9440 = vpow2.f32 %v5381_v11  ;;  %5420 = vadd.xlane.f32.xlu1 %v5419_v22 }
 0xd27   :  { %v11694_v63 = vpop.permute.xlu1 %5778 }
 0xd28   :  { %v11670_v17 = vpop.eup %9432 }
 0xd29   :  { %v5413_v55 = vsel %vm2617_vm0, %v11670_v17, 0.0  ;;  %v11674_v58 = vpop.eup %9434 }
 0xd2a   :  { %5414 = vadd.xlane.f32.xlu1 %v5413_v55  ;;  %v5422_v37 = vsel %vm2617_vm0, %v11674_v58, 0.0 }
 0xd2c   :  { %v11676_v44 = vpop.eup %9436 }
 0xd2d   :  { %v5431_v32 = vsel %vm2617_vm0, %v11676_v44, 0.0  ;;  %v11682_v42 = vpop.eup %9438 }
 0xd2e   :  { %5432 = vadd.xlane.f32.xlu0 %v5431_v32  ;;  %5423 = vadd.xlane.f32.xlu1 %v5422_v37  ;;  %v5416_v12 = vsel %vm2617_vm0, %v11682_v42, 0.0 }
 0xd30   :  { %v11684_v2 = vpop.eup %9440 }
 0xd31   :  { %v5425_v3 = vsel %vm2617_vm0, %v11684_v2, 0.0 }
 0xd32   :  { %5426 = vadd.xlane.f32.xlu0 %v5425_v3  ;;  %5417 = vadd.xlane.f32.xlu1 %v5416_v12 }
 0xd43   :  { %5657 = vrot.lane.b32.xlu1 %v12425_v61, %s9646_s2 }
 0xd56   :  { %v5397_v30 = vpop.xlane.xlu0 %5396 }
 0xd58   :  { %v5340_v43 = vpop.xlane.xlu1 %5339 }
 0xd59   :  { %v5356_v52 = vsub.f32 %v11611_v62, %v5340_v43 }
 0xd5a   :  { %v5391_v47 = vpop.xlane.xlu0 %5390 }
 0xd5b   :  { %v5387_v20 = vmul.f32 1.442695, %v5356_v52 }
 0xd5c   :  { %v5334_v33 = vpop.xlane.xlu1 %5333 }
 0xd5d   :  { %9442 = vpow2.f32 %v5387_v20  ;;  %v5354_v11 = vsub.f32 %v11622_v46, %v5334_v33 }
 0xd5e   :  { %v5409_v32 = vpop.xlane.xlu0 %5408 }
 0xd5f   :  { %v5383_v22 = vmul.f32 1.442695, %v5354_v11 }
 0xd60   :  { %v5400_v55 = vpop.xlane.xlu1 %5399 }
 0xd61   :  { %9444 = vpow2.f32 %v5383_v22 }
 0xd62   :  { %9446 = vrcp.f32 %v5400_v55  ;;  %v5403_v3 = vpop.xlane.xlu0 %5402 }
 0xd63   :  { %9448 = vrcp.f32 %v5391_v47 }
 0xd64   :  { %9450 = vrcp.f32 %v5397_v30  ;;  %v5394_v61 = vpop.xlane.xlu1 %5393 }
 0xd65   :  { %9452 = vrcp.f32 %v5394_v61 }
 0xd67   :  { %v11698_v37 = vpop.eup %9442 }
 0xd68   :  { %v5412_v12 = vpop.xlane.xlu1 %5411  ;;  %v5434_v62 = vsel %vm2617_vm0, %v11698_v37, 0.0 }
 0xd69   :  { %5435 = vadd.xlane.f32.xlu0 %v5434_v62  ;;  %9454 = vrcp.f32 %v5412_v12 }
 0xd6a   :  { %9456 = vrcp.f32 %v5403_v3 }
 0xd6b   :  { %v11702_v43 = vpop.eup %9444  ;;  %9458 = vrcp.f32 %v5409_v32 }
 0xd6c   :  { %v9447_v46 = vpop.eup %9446  ;;  %v5406_v52 = vpop.xlane.xlu1 %5405  ;;  %v5428_v30 = vsel %vm2617_vm0, %v11702_v43, 0.0 }
 0xd6d   :  { %v9449_v20 = vpop.eup %9448  ;;  %9460 = vrcp.f32 %v5406_v52  ;;  %5429 = vadd.xlane.f32.xlu1 %v5428_v30  ;;  %v5456_v11 = vmul.f32 %v9447_v46, %v11630_v26  ;;  %v5684_v52 = vsel %vm2617_vm0, %v11420_v21, 0  ;;  %v5687_v21 = vsel %vm2617_vm0, %v11598_v14, 0 }
 0xd6e   :  { %v9451_v47 = vpop.eup %9450  ;;  %v5453_v22 = vmul.f32 %v9449_v20, %v11615_v28 }
 0xd6f   :  { %v9453_v33 = vpop.eup %9452  ;;  %v5455_v61 = vmul.f32 %v9451_v47, %v11606_v57 }
 0xd70   :  { %v5454_v55 = vmul.f32 %v9453_v33, %v11638_v56 }
 0xd71   :  { %v5470_v12 = vpack.c.bf16 %v5456_v11, %v5455_v61 }
 0xd72   :  { %v5469_v3 = vpack.c.bf16 %v5454_v55, %v5453_v22  ;;  %v5797_v22 = vsel %vm2617_vm0, %v11662_v19, 0 }
 0xd73   :  { %v9455_v32 = vpop.eup %9454 }
 0xd74   :  { %8378 = vmatprep.mubr.msk.bf16.mxu0 %vm2617_vm0, %v5469_v3  ;;  %v9457_v62 = vpop.eup %9456  ;;  %v5460_v28 = vmul.f32 %v9455_v32, %v11644_v50 }
 0xd75   :  { %8379 = vmatmul.mubr.msk.bf16.vlgmr.msra.gmra.mrb[168].mxu0 %vm2617_vm0, %v5470_v12  ;;  %v9459_v30 = vpop.eup %9458  ;;  %v5457_v57 = vmul.f32 %v9457_v62, %v11634_v6 }
 0xd76   :  { %8403 = vmatpush3.bf16.xpose.msra.mxu0 %v5684_v52  ;;  %v5459_v46 = vmul.f32 %v9459_v30, %v11626_v54 }
 0xd77   :  { %v9461_v26 = vpop.eup %9460  ;;  %8731 = vmatprep.subr.msk.bf16.mxu0 %vm2617_vm0, %v11598_v14  ;;  %v5690_v14 = vsel %vm2617_vm0, %v11588_v18, 0 }
 0xd78   :  { %v5458_v56 = vmul.f32 %v9461_v26, %v11648_v34  ;;  %v5472_v47 = vpack.c.bf16 %v5460_v28, %v5459_v46 }
 0xd7a   :  { %v5471_v20 = vpack.c.bf16 %v5458_v56, %v5457_v57 }
 0xd7c   :  { %8382 = vmatprep.mubr.msk.bf16.mxu0 %vm2617_vm0, %v5471_v20 }
 0xd7d   :  { %8383 = vmatmul.mubr.msk.bf16.gmra.mrb[172].mxu0 %vm2617_vm0, %v5472_v47 }
 0xd7e   :  { %8405 = vmatpush3.bf16.xpose.msra.mxu0 %v5687_v21  ;;  %5782 = vrot.lane.b32.xlu1 %v12430_v40, %s9646_s2  ;;  %v5656_v40 = vpop.permute.xlu0 %5655 }
 0xd7f   :  { %8732 = vmatprep.subr.msk.bf16.mxu0 %vm2617_vm0, %v11588_v18  ;;  %8410 = vmatprep.mubr.msk.bf16.mxu0 %vm2617_vm0, %v11692_v48 }
 0xd80   :  { %5780 = vrot.lane.b32.xlu0 %v12429_v27, %s9646_s2  ;;  %v5693_v27 = vsel %vm2617_vm0, %v11592_v35, 0 }
 0xd82   :  { %5766 = vrot.lane.b32.xlu1 %v12433_v5, %s9646_s2 }
 0xd84   :  { %5764 = vrot.lane.b32.xlu0 %v12432_v45, %s9646_s2 }
 0xd86   :  { %8407 = vmatpush3.bf16.xpose.msra.mxu0 %v5690_v14  ;;  %5770 = vrot.lane.b32.xlu1 %v12437_v51, %s9646_s2 }
 0xd87   :  { %8733 = vmatprep.subr.msk.bf16.mxu0 %vm2617_vm0, %v11592_v35 }
 0xd88   :  { %5768 = vrot.lane.b32.xlu0 %v12434_v1, %s9646_s2 }
 0xd8c   :  { %6077 = vrot.lane.b32.xlu0 %v12419_v0, %s9646_s2 }
 0xd8e   :  { %8409 = vmatpush3.bf16.xpose.msra.mxu0 %v5693_v27 }
 0xd95   :  { %8411 = vmatmul.mubr.msk.bf16.vlgmr.msra.gmra.mrb[176].mxu0 %vm2617_vm0, %v11659_v24 }
 0xd96   :  { %8414 = vmatprep.mubr.msk.bf16.mxu0 %vm2617_vm0, %v5656_v40 }
 0xdb3   :  { %v5421_v45 = vpop.xlane.xlu1 %5420 }
 0xdb7   :  { %v5415_v5 = vpop.xlane.xlu1 %5414 }
 0xdbb   :  { %v5424_v51 = vpop.xlane.xlu1 %5423 }
 0xdbc   :  { %9462 = vrcp.f32 %v5424_v51 }
 0xdbd   :  { %9464 = vrcp.f32 %v5415_v5 }
 0xdbe   :  { %9466 = vrcp.f32 %v5421_v45 }
 0xdbf   :  { %v5418_v18 = vpop.xlane.xlu1 %5417 }
 0xdc0   :  { %9468 = vrcp.f32 %v5418_v18 }
 0xdc3   :  { %v5658_v1 = vpop.permute.xlu1 %5657 }
 0xdc4   :  { %8415 = vmatmul.mubr.msk.bf16.gmra.mrb[180].mxu0 %vm2617_vm0, %v5658_v1 }
 0xdc6   :  { %v9463_v0 = vpop.eup %9462 }
 0xdc7   :  { %v9465_v35 = vpop.eup %9464  ;;  %v5464_v50 = vmul.f32 %v9463_v0, %v11674_v58  ;;  %v5433_v58 = vpop.xlane.xlu0 %5432 }
 0xdc8   :  { %v9467_v54 = vpop.eup %9466  ;;  %v5461_v34 = vmul.f32 %v9465_v35, %v11670_v17  ;;  %v5800_v17 = vsel %vm2617_vm0, %v11694_v63, 0 }
 0xdc9   :  { %v5463_v48 = vmul.f32 %v9467_v54, %v11664_v59 }
 0xdca   :  { %v9469_v6 = vpop.eup %9468 }
 0xdcb   :  { %v5462_v24 = vmul.f32 %v9469_v6, %v11682_v42  ;;  %v5474_v11 = vpack.c.bf16 %v5464_v50, %v5463_v48  ;;  %v5427_v42 = vpop.xlane.xlu0 %5426 }
 0xdcd   :  { %v5473_v33 = vpack.c.bf16 %v5462_v24, %v5461_v34 }
 0xdcf   :  { %8394 = vmatprep.mubr.msk.bf16.mxu1 %vm2617_vm0, %v5473_v33 }
 0xdd0   :  { %8395 = vmatmul.mubr.msk.bf16.vlgmr.msra.gmra.mrb[184].mxu1 %vm2617_vm0, %v5474_v11 }
 0xdd1   :  { %8419 = vmatpush3.bf16.xpose.msra.mxu1 %v5797_v22 }
 0xdd2   :  { %8735 = vmatprep.subr.msk.bf16.mxu1 %vm2617_vm0, %v11694_v63 }
 0xdd9   :  { %8421 = vmatpush3.bf16.xpose.msra.mxu1 %v5800_v17 }
 0xdf6   :  { %v5436_v59 = vpop.xlane.xlu0 %5435 }
 0xdf7   :  { %9470 = vrcp.f32 %v5436_v59 }
 0xdf8   :  { %9472 = vrcp.f32 %v5427_v42 }
 0xdf9   :  { %9474 = vrcp.f32 %v5433_v58 }
 0xdfa   :  { %v5781_v55 = vpop.permute.xlu0 %5780  ;;  %v5430_v61 = vpop.xlane.xlu1 %5429 }
 0xdfb   :  { %v5803_v19 = vsel %vm2617_vm0, %v5781_v55, 0  ;;  %9476 = vrcp.f32 %v5430_v61  ;;  %8736 = vmatprep.subr.msk.bf16.mxu1 %vm2617_vm0, %v5781_v55 }
 0xdfc   :  { %8423 = vmatpush3.bf16.xpose.msra.mxu1 %v5803_v19 }
 0xdfe   :  { %v5765_v3 = vpop.permute.xlu0 %5764  ;;  %v5783_v12 = vpop.permute.xlu1 %5782 }
 0xdff   :  { %8737 = vmatprep.subr.msk.bf16.mxu1 %vm2617_vm0, %v5783_v12  ;;  %v5806_v52 = vsel %vm2617_vm0, %v5783_v12, 0 }
 0xe01   :  { %v9471_v63 = vpop.eup %9470 }
 0xe02   :  { %v5769_v32 = vpop.permute.xlu0 %5768  ;;  %v9473_v62 = vpop.eup %9472  ;;  %v5468_v28 = vmul.f32 %v9471_v63, %v11698_v37 }
 0xe03   :  { %v9475_v30 = vpop.eup %9474  ;;  %v5465_v56 = vmul.f32 %v9473_v62, %v11684_v2  ;;  %v5767_v14 = vpop.permute.xlu1 %5766 }
 0xe04   :  { %8425 = vmatpush3.bf16.xpose.msra.mxu1 %v5806_v52  ;;  %v5467_v20 = vmul.f32 %v9475_v30, %v11676_v44 }
 0xe05   :  { %v9477_v26 = vpop.eup %9476 }
 0xe06   :  { %v6078_v57 = vpop.permute.xlu0 %6077  ;;  %v5466_v46 = vmul.f32 %v9477_v26, %v11702_v43  ;;  %v5476_v21 = vpack.c.bf16 %v5468_v28, %v5467_v20 }
 0xe07   :  { %8434 = vmatprep.subr.bf16.mxu0 %v6078_v57  ;;  %v5771_v2 = vpop.permute.xlu1 %5770 }
 0xe08   :  { %8435 = vmatpush3.bf16.msra.mxu0 %v6078_v57  ;;  %v5475_v47 = vpack.c.bf16 %v5466_v46, %v5465_v56 }
 0xe0a   :  { %8398 = vmatprep.mubr.msk.bf16.mxu1 %vm2617_vm0, %v5475_v47 }
 0xe0b   :  { %8399 = vmatmul.mubr.msk.bf16.gmra.mrb[188].mxu1 %vm2617_vm0, %v5476_v21 }
 0xe0c   :  { %8426 = vmatprep.mubr.msk.bf16.mxu1 %vm2617_vm0, %v5765_v3 }
 0xe13   :  { %8427 = vmatmul.mubr.msk.bf16.vlgmr.msra.gmra.mrb[192].mxu1 %vm2617_vm0, %v5767_v14 }
 0xe14   :  { %8430 = vmatprep.mubr.msk.bf16.mxu1 %vm2617_vm0, %v5769_v32 }
 0xe1b   :  { %8431 = vmatmul.mubr.msk.bf16.gmra.mrb[196].mxu1 %vm2617_vm0, %v5771_v2 }
 0xe48   :  { %v8380_v37 = vpop.f32.mrb[168].mxu0 }
 0xe49   :  { %v5523_v43 = vpop.f32.mrb[169].mxu0 }
 0xe4a   :  { %v8381_v44 = vpop.f32.mrb[170].mxu0 }
 0xe4b   :  { %v5632_v27 = vpack.c.bf16 %v8381_v44, %v8380_v37  ;;  %v5526_v40 = vpop.f32.mrb[171].mxu0 }
 0xe4c   :  { %v5631_v45 = vpack.c.bf16 %v5526_v40, %v5523_v43 }
 0xe4d   :  { %5640 = vst.msk [vmem:[#allocation2 + $0x28] sm:$0xff] %vm2617_vm0, %v5632_v27 }
 0xe4e   :  { %5639 = vst.msk [vmem:[#allocation2 + $0x10] sm:$0xff] %vm2617_vm0, %v5631_v45 }
 0xe50   :  { %v8384_v5 = vpop.f32.mrb[172].mxu0 }
 0xe51   :  { %v5539_v51 = vpop.f32.mrb[173].mxu0 }
 0xe52   :  { %v8385_v18 = vpop.f32.mrb[174].mxu0 }
 0xe53   :  { %v5634_v1 = vpack.c.bf16 %v8385_v18, %v8384_v5  ;;  %v5542_v0 = vpop.f32.mrb[175].mxu0 }
 0xe54   :  { %v5633_v35 = vpack.c.bf16 %v5542_v0, %v5539_v51 }
 0xe55   :  { %5642 = vst.msk [vmem:[#allocation2 + $0x58] sm:$0xff] %vm2617_vm0, %v5634_v1 }
 0xe56   :  { %5641 = vst.msk [vmem:[#allocation2 + $0x40] sm:$0xff] %vm2617_vm0, %v5633_v35 }
 0xe68   :  { %v8412_v54 = vpop.f32.mrb[176].mxu0 }
 0xe69   :  { %v11784_v6 = vsel %vm10228_vm1, %v8412_v54, -1e+30  ;;  %v5729_v50 = vpop.f32.mrb[177].mxu0 }
 0xe6a   :  { %v5895_v34 = vsel %vm2617_vm0, %v11784_v6, -inf  ;;  %v8413_v24 = vpop.f32.mrb[178].mxu0  ;;  %v11790_v48 = vsel %vm10233_vm2, %v5729_v50, -1e+30 }
 0xe6b   :  { %5896 = vmax.xlane.f32.xlu0 %v5895_v34  ;;  %v5732_v33 = vpop.f32.mrb[179].mxu0  ;;  %v5889_v17 = vsel %vm2617_vm0, %v11790_v48, -inf  ;;  %v11802_v58 = vsel %vm10237_vm3, %v8413_v24, -1e+30 }
 0xe6c   :  { %v11794_v11 = vsel %vm10245_vm4, %v5732_v33, -1e+30  ;;  %v5898_v42 = vsel %vm2617_vm0, %v11802_v58, -inf }
 0xe6d   :  { %v5892_v22 = vsel %vm2617_vm0, %v11794_v11, -inf }
 0xe6e   :  { %5893 = vmax.xlane.f32.xlu1 %v5892_v22 }
 0xe6f   :  { %5890 = vmax.xlane.f32.xlu0 %v5889_v17 }
 0xe73   :  { %5899 = vmax.xlane.f32.xlu0 %v5898_v42 }
 0xe97   :  { %v8416_v59 = vpop.f32.mrb[180].mxu0 }
 0xe98   :  { %v11808_v55 = vsel %vm10270_vm5, %v8416_v59, -1e+30  ;;  %v5745_v61 = vpop.f32.mrb[181].mxu0 }
 0xe99   :  { %v5907_v19 = vsel %vm2617_vm0, %v11808_v55, -inf  ;;  %v8417_v3 = vpop.f32.mrb[182].mxu0  ;;  %v11814_v12 = vsel %vm10285_vm7, %v5745_v61, -1e+30 }
 0xe9a   :  { %v11818_v63 = vsel %vm10277_vm6, %v8417_v3, -1e+30  ;;  %5908 = vmax.xlane.f32.xlu0 %v5907_v19  ;;  %v5748_v32 = vpop.f32.mrb[183].mxu0  ;;  %v5901_v30 = vsel %vm2617_vm0, %v11814_v12, -inf }
 0xe9b   :  { %v5910_v62 = vsel %vm2617_vm0, %v11818_v63, -inf  ;;  %v11824_v52 = vsel %vm10289_vm8, %v5748_v32, -1e+30 }
 0xe9c   :  { %5911 = vmax.xlane.f32.xlu1 %v5910_v62  ;;  %v5904_v26 = vsel %vm2617_vm0, %v11824_v52, -inf }
 0xe9e   :  { %5902 = vmax.xlane.f32.xlu0 %v5901_v30 }
 0xea0   :  { %5905 = vmax.xlane.f32.xlu1 %v5904_v26 }
 0xea3   :  { %v8396_v28 = vpop.f32.mrb[184].mxu1 }
 0xea4   :  { %v5600_v57 = vpop.f32.mrb[185].mxu1 }
 0xea5   :  { %v8397_v56 = vpop.f32.mrb[186].mxu1 }
 0xea6   :  { %v5636_v46 = vpack.c.bf16 %v8397_v56, %v8396_v28  ;;  %v5603_v20 = vpop.f32.mrb[187].mxu1 }
 0xea7   :  { %v5635_v47 = vpack.c.bf16 %v5603_v20, %v5600_v57 }
 0xea8   :  { %5644 = vst.msk [vmem:[#allocation2 + $0x88] sm:$0xff] %vm2617_vm0, %v5636_v46 }
 0xea9   :  { %5643 = vst.msk [vmem:[#allocation2 + $0x70] sm:$0xff] %vm2617_vm0, %v5635_v47 }
 0xede   :  { %v8400_v21 = vpop.f32.mrb[188].mxu1 }
 0xedf   :  { %v5616_v14 = vpop.f32.mrb[189].mxu1 }
 0xee0   :  { %v8401_v2 = vpop.f32.mrb[190].mxu1 }
 0xee1   :  { %v5638_v37 = vpack.c.bf16 %v8401_v2, %v8400_v21  ;;  %v5619_v43 = vpop.f32.mrb[191].mxu1 }
 0xee2   :  { %v5637_v44 = vpack.c.bf16 %v5619_v43, %v5616_v14 }
 0xee3   :  { %5646 = vst.msk [vmem:[#allocation2 + $0xb8] sm:$0xff] %vm2617_vm0, %v5638_v37 }
 0xee4   :  { %5645 = vst.msk [vmem:[#allocation2 + $0xa0] sm:$0xff] %vm2617_vm0, %v5637_v44 }
 0xee6   :  { %v8428_v27 = vpop.f32.mrb[192].mxu1 }
 0xee7   :  { %v11836_v40 = vsel %vm10228_vm1, %v8428_v27, -1e+30  ;;  %v5842_v45 = vpop.f32.mrb[193].mxu1 }
 0xee8   :  { %v5919_v5 = vsel %vm2617_vm0, %v11836_v40, -inf  ;;  %v8429_v51 = vpop.f32.mrb[194].mxu1  ;;  %v11842_v18 = vsel %vm10233_vm2, %v5842_v45, -1e+30 }
 0xee9   :  { %v11846_v1 = vsel %vm10237_vm3, %v8429_v51, -1e+30  ;;  %5920 = vmax.xlane.f32.xlu0 %v5919_v5  ;;  %v5845_v0 = vpop.f32.mrb[195].mxu1  ;;  %v5913_v54 = vsel %vm2617_vm0, %v11842_v18, -inf }
 0xeea   :  { %v5922_v49 = vsel %vm2617_vm0, %v11846_v1, -inf  ;;  %v11852_v35 = vsel %vm10245_vm4, %v5845_v0, -1e+30 }
 0xeeb   :  { %5923 = vmax.xlane.f32.xlu1 %v5922_v49  ;;  %v5916_v9 = vsel %vm2617_vm0, %v11852_v35, -inf }
 0xeed   :  { %5914 = vmax.xlane.f32.xlu0 %v5913_v54 }
 0xeee   :  { %v8432_v36 = vpop.f32.mrb[196].mxu1 }
 0xeef   :  { %v11860_v50 = vsel %vm10270_vm5, %v8432_v36, -1e+30  ;;  %5917 = vmax.xlane.f32.xlu1 %v5916_v9  ;;  %v5858_v34 = vpop.f32.mrb[197].mxu1 }
 0xef0   :  { %v5931_v39 = vsel %vm2617_vm0, %v11860_v50, -inf  ;;  %v8433_v24 = vpop.f32.mrb[198].mxu1  ;;  %v11866_v33 = vsel %vm10285_vm7, %v5858_v34, -1e+30 }
 0xef1   :  { %v11870_v22 = vsel %vm10277_vm6, %v8433_v24, -1e+30  ;;  %5932 = vmax.xlane.f32.xlu0 %v5931_v39  ;;  %v5861_v17 = vpop.f32.mrb[199].mxu1  ;;  %v5925_v59 = vsel %vm2617_vm0, %v11866_v33, -inf }
 0xef2   :  { %v5934_v41 = vsel %vm2617_vm0, %v11870_v22, -inf  ;;  %v11876_v42 = vsel %vm10289_vm8, %v5861_v17, -1e+30 }
 0xef3   :  { %5935 = vmax.xlane.f32.xlu1 %v5934_v41  ;;  %v5928_v29 = vsel %vm2617_vm0, %v11876_v42, -inf }
 0xef5   :  { %5926 = vmax.xlane.f32.xlu0 %v5925_v59 }
 0xef7   :  { %5929 = vmax.xlane.f32.xlu1 %v5928_v29 }
 0xef8   :  { %v5897_v4 = vpop.xlane.xlu0 %5896 }
 0xef9   :  { %v5939_v32 = vsub.f32 %v11784_v6, %v5897_v4 }
 0xefb   :  { %v5894_v3 = vpop.xlane.xlu1 %5893  ;;  %v5957_v26 = vmul.f32 1.442695, %v5939_v32 }
 0xefc   :  { %v5891_v61 = vpop.xlane.xlu0 %5890  ;;  %v5938_v62 = vsub.f32 %v11794_v11, %v5894_v3 }
 0xefd   :  { %v5937_v28 = vsub.f32 %v11790_v48, %v5891_v61 }
 0xf00   :  { %v5900_v25 = vpop.xlane.xlu0 %5899 }
 0xf01   :  { %v5940_v19 = vsub.f32 %v11802_v58, %v5900_v25 }
 0xf03   :  { %v5959_v30 = vmul.f32 1.442695, %v5940_v19 }
 0xf05   :  { %9478 = vpow2.f32 %v5959_v30 }
 0xf06   :  { %9480 = vpow2.f32 %v5957_v26 }
 0xf08   :  { %6079 = vrot.lane.b32.xlu1 %v12423_v60, %s9646_s2  ;;  %v5955_v60 = vmul.f32 1.442695, %v5938_v62 }
 0xf0a   :  { %9482 = vpow2.f32 %v5955_v60 }
 0xf0b   :  { %6081 = vrot.lane.b32.xlu0 %v12424_v53, %s9646_s2  ;;  %v5953_v53 = vmul.f32 1.442695, %v5937_v28 }
 0xf0d   :  { %9484 = vpow2.f32 %v5953_v53 }
 0xf0f   :  { %6083 = vrot.lane.b32.xlu0 %v12426_v31, %s9646_s2  ;;  %v11892_v31 = vpop.eup %9478 }
 0xf10   :  { %v11895_v46 = vpop.eup %9480  ;;  %v5994_v48 = vsel %vm2617_vm0, %v11892_v31, 0.0 }
 0xf14   :  { %v11900_v47 = vpop.eup %9482 }
 0xf15   :  { %v5988_v44 = vsel %vm2617_vm0, %v11900_v47, 0.0 }
 0xf17   :  { %v11905_v2 = vpop.eup %9484 }
 0xf27   :  { %v5909_v57 = vpop.xlane.xlu0 %5908 }
 0xf28   :  { %v5943_v58 = vsub.f32 %v11808_v55, %v5909_v57  ;;  %v5991_v55 = vsel %vm2617_vm0, %v11895_v46, 0.0 }
 0xf29   :  { %v5912_v56 = vpop.xlane.xlu1 %5911 }
 0xf2a   :  { %v5965_v6 = vmul.f32 1.442695, %v5943_v58  ;;  %v5944_v11 = vsub.f32 %v11818_v63, %v5912_v56 }
 0xf2b   :  { %v5903_v20 = vpop.xlane.xlu0 %5902 }
 0xf2c   :  { %9486 = vpow2.f32 %v5965_v6  ;;  %v5941_v21 = vsub.f32 %v11814_v12, %v5903_v20  ;;  %5995 = vadd.xlane.f32.xlu1 %v5994_v48  ;;  %v5967_v37 = vmul.f32 1.442695, %v5944_v11  ;;  %v5985_v12 = vsel %vm2617_vm0, %v11905_v2, 0.0 }
 0xf2d   :  { %v5906_v14 = vpop.xlane.xlu1 %5905 }
 0xf2e   :  { %v5961_v43 = vmul.f32 1.442695, %v5941_v21  ;;  %v5942_v63 = vsub.f32 %v11824_v52, %v5906_v14  ;;  %5992 = vadd.xlane.f32.xlu0 %v5991_v55  ;;  %v9064_v21 = vld [vmem:[#allocation8 + $0x4] ss:$12 sps:$4 sm:$0xff]  }
 0xf30   :  { %9488 = vpow2.f32 %v5961_v43  ;;  %5989 = vadd.xlane.f32.xlu1 %v5988_v44  ;;  %v5963_v27 = vmul.f32 1.442695, %v5942_v63 }
 0xf31   :  { %9490 = vpow2.f32 %v5967_v37 }
 0xf32   :  { %5986 = vadd.xlane.f32.xlu0 %v5985_v12  ;;  %9492 = vpow2.f32 %v5963_v27  ;;  %v12451_v27 = vpack.c.bf16 %v11462_v8, %v11456_v16  ;;  %v12459_v16 = vld [vmem:[#allocation40_spill] sm:$0xff]  ;;  %v12460_v8 = vld [vmem:[#allocation13_spill] sm:$0xff] }
 0xf36   :  { %v11912_v45 = vpop.eup %9486 }
 0xf37   :  { %v6003_v5 = vsel %vm2617_vm0, %v11912_v45, 0.0 }
 0xf38   :  { %6004 = vadd.xlane.f32.xlu1 %v6003_v5  ;;  %v12452_v5 = vpack.c.bf16 %v11458_v13, %v11454_v7 }
 0xf3a   :  { %v11916_v52 = vpop.eup %9488 }
 0xf3b   :  { %v5997_v51 = vsel %vm2617_vm0, %v11916_v52, 0.0  ;;  %v11920_v0 = vpop.eup %9490 }
 0xf3c   :  { %5998 = vadd.xlane.f32.xlu1 %v5997_v51  ;;  %v6006_v49 = vsel %vm2617_vm0, %v11920_v0, 0.0  ;;  %v11924_v54 = vpop.eup %9492  ;;  %v12453_v51 = vld [vmem:[#allocation41_spill] sm:$0xff] }
 0xf3d   :  { %v6000_v9 = vsel %vm2617_vm0, %v11924_v54, 0.0 }
 0xf40   :  { %6007 = vadd.xlane.f32.xlu1 %v6006_v49  ;;  %v12454_v49 = vld [vmem:[#allocation14_spill] sm:$0xff] }
 0xf44   :  { %6001 = vadd.xlane.f32.xlu1 %v6000_v9  ;;  %v12457_v9 = vld [vmem:[#allocation46_spill] sm:$0xff] }
 0xf48   :  { %6170 = vrot.lane.b32.xlu0 %v12431_v10, %s9646_s2 }
 0xf76   :  { %v5921_v36 = vpop.xlane.xlu0 %5920 }
 0xf77   :  { %v5947_v34 = vsub.f32 %v11836_v40, %v5921_v36 }
 0xf78   :  { %v5924_v39 = vpop.xlane.xlu1 %5923 }
 0xf79   :  { %v5973_v24 = vmul.f32 1.442695, %v5947_v34  ;;  %v5948_v17 = vsub.f32 %v11846_v1, %v5924_v39  ;;  %v12461_v34 = vpack.c.bf16 %v12459_v16, %v12460_v8  ;;  %v12463_v39 = vld [vmem:[#allocation19_spill] sm:$0xff] }
 0xf7a   :  { %v5915_v41 = vpop.xlane.xlu0 %5914 }
 0xf7b   :  { %9494 = vpow2.f32 %v5973_v24  ;;  %v5945_v59 = vsub.f32 %v11842_v18, %v5915_v41  ;;  %v5975_v29 = vmul.f32 1.442695, %v5948_v17  ;;  %v12465_v24 = vld [vmem:[#allocation34_spill] sm:$0xff] }
 0xf7c   :  { %v5918_v4 = vpop.xlane.xlu1 %5917  ;;  %v12466_v17 = vld [vmem:[#allocation42_spill] sm:$0xff] }
 0xf7d   :  { %v5969_v61 = vmul.f32 1.442695, %v5945_v59  ;;  %v5946_v25 = vsub.f32 %v11852_v35, %v5918_v4  ;;  %v12467_v41 = vpack.c.bf16 %v12465_v24, %v12466_v17  ;;  %v12469_v4 = vld [vmem:[#allocation31_spill] sm:$0xff]  ;;  %v9073_v17 = vld [vmem:[#allocation8 + $0x4c] ss:$12 sps:$4 sm:$0xff]  }
 0xf7e   :  { %v5933_v19 = vpop.xlane.xlu0 %5932  ;;  %v9068_v24 = vld [vmem:[#allocation8 + $0x30] ss:$12 sps:$4 sm:$0xff]  }
 0xf7f   :  { %9496 = vpow2.f32 %v5969_v61  ;;  %v5971_v3 = vmul.f32 1.442695, %v5946_v25  ;;  %v5951_v10 = vsub.f32 %v11860_v50, %v5933_v19  ;;  %v12471_v19 = vld [vmem:[#allocation32_spill] sm:$0xff] }
 0xf80   :  { %9498 = vpow2.f32 %v5975_v29  ;;  %v5936_v40 = vpop.xlane.xlu1 %5935  ;;  %v12468_v29 = vld [vmem:[#allocation20_spill] sm:$0xff] }
 0xf81   :  { %9500 = vpow2.f32 %v5971_v3  ;;  %v5981_v32 = vmul.f32 1.442695, %v5951_v10  ;;  %v5952_v1 = vsub.f32 %v11870_v22, %v5936_v40  ;;  %v12470_v61 = vpack.c.bf16 %v12468_v29, %v12469_v4  ;;  %v12472_v3 = vld [vmem:[#allocation15_spill] sm:$0xff] }
 0xf82   :  { %v5927_v62 = vpop.xlane.xlu0 %5926  ;;  %v12473_v10 = vpack.c.bf16 %v12471_v19, %v12472_v3  ;;  %v9076_v4 = vld [vmem:[#allocation8 + $0x64] ss:$12 sps:$4 sm:$0xff]  }
 0xf83   :  { %9502 = vpow2.f32 %v5981_v32  ;;  %v5949_v18 = vsub.f32 %v11866_v33, %v5927_v62  ;;  %v5983_v60 = vmul.f32 1.442695, %v5952_v1  ;;  %v12474_v32 = vld [vmem:[#allocation48_spill] sm:$0xff]  ;;  %v12475_v62 = vld [vmem:[#allocation29_spill] sm:$0xff] }
 0xf84   :  { %v5930_v30 = vpop.xlane.xlu1 %5929  ;;  %v12476_v1 = vpack.c.bf16 %v12474_v32, %v12475_v62  ;;  %v9079_v62 = vld [vmem:[#allocation8 + $0x7c] ss:$12 sps:$4 sm:$0xff]  }
 0xf85   :  { %v11937_v26 = vpop.eup %9494  ;;  %v5977_v28 = vmul.f32 1.442695, %v5949_v18  ;;  %v5950_v50 = vsub.f32 %v11876_v42, %v5930_v30  ;;  %v12477_v18 = vld [vmem:[#allocation16_spill] sm:$0xff]  ;;  %v12478_v30 = vld [vmem:[#allocation38_spill] sm:$0xff] }
 0xf86   :  { %v6015_v35 = vsel %vm2617_vm0, %v11937_v26, 0.0  ;;  %v6082_v53 = vpop.permute.xlu0 %6081 }
 0xf87   :  { %9504 = vpow2.f32 %v5977_v28  ;;  %6016 = vadd.xlane.f32.xlu0 %v6015_v35  ;;  %v5979_v6 = vmul.f32 1.442695, %v5950_v50  ;;  %v12479_v28 = vpack.c.bf16 %v12477_v18, %v12478_v30  ;;  %v12481_v50 = vld [vmem:[#allocation22_spill] sm:$0xff]  ;;  %v9077_v30 = vld [vmem:[#allocation8 + $0x78] ss:$12 sps:$4 sm:$0xff]  }
 0xf88   :  { %v6080_v57 = vpop.permute.xlu1 %6079  ;;  %9506 = vpow2.f32 %v5983_v60  ;;  %v12480_v60 = vld [vmem:[#allocation50_spill] sm:$0xff] }
 0xf89   :  { %v11942_v58 = vpop.eup %9496  ;;  %8436 = vmatprep.subr.bf16.mxu0 %v6080_v57  ;;  %9508 = vpow2.f32 %v5979_v6  ;;  %v12484_v6 = vld [vmem:[#allocation36_spill] sm:$0xff] }
 0xf8a   :  { %v11944_v22 = vpop.eup %9498  ;;  %8437 = vmatpush3.bf16.msra.mxu0 %v6080_v57  ;;  %v6009_v33 = vsel %vm2617_vm0, %v11942_v58, 0.0  ;;  %v6084_v20 = vpop.permute.xlu0 %6083 }
 0xf8b   :  { %v11948_v56 = vpop.eup %9500  ;;  %6010 = vadd.xlane.f32.xlu0 %v6009_v33  ;;  %8438 = vmatprep.subr.bf16.mxu0 %v6082_v53  ;;  %v6018_v48 = vsel %vm2617_vm0, %v11944_v22, 0.0  ;;  %v12483_v33 = vld [vmem:[#allocation43_spill] sm:$0xff] }
 0xf8c   :  { %v6012_v42 = vsel %vm2617_vm0, %v11948_v56, 0.0 }
 0xf8d   :  { %v11952_v11 = vpop.eup %9502  ;;  %6013 = vadd.xlane.f32.xlu1 %v6012_v42  ;;  %v12485_v42 = vpack.c.bf16 %v12483_v33, %v12484_v6  ;;  %v9097_v33 = vld [vmem:[#allocation8 + $0x10c] ss:$12 sps:$4 sm:$0xff]   ;;  %v9095_v6 = vld [vmem:[#allocation8 + $0x108] ss:$12 sps:$4 sm:$0xff]  }
 0xf8e   :  { %8439 = vmatpush3.bf16.msra.mxu0 %v6082_v53  ;;  %v6027_v14 = vsel %vm2617_vm0, %v11952_v11, 0.0  ;;  %v12482_v53 = vpack.c.bf16 %v12480_v60, %v12481_v50  ;;  %v9091_v60 = vld [vmem:[#allocation8 + $0xdc] ss:$12 sps:$4 sm:$0xff]   ;;  %v9089_v50 = vld [vmem:[#allocation8 + $0xd8] ss:$12 sps:$4 sm:$0xff]  }
 0xf8f   :  { %6019 = vadd.xlane.f32.xlu0 %v6018_v48  ;;  %8440 = vmatprep.subr.bf16.mxu0 %v6084_v20 }
 0xf91   :  { %v11958_v55 = vpop.eup %9504  ;;  %6028 = vadd.xlane.f32.xlu1 %v6027_v14  ;;  %v12486_v14 = vld [vmem:[#allocation47_spill] sm:$0xff] }
 0xf92   :  { %8441 = vmatpush3.bf16.msra.mxu0 %v6084_v20  ;;  %v6021_v37 = vsel %vm2617_vm0, %v11958_v55, 0.0  ;;  %v11962_v43 = vpop.eup %9506 }
 0xf93   :  { %6828 = vmatprep.subr.bf16.mxu0 %v9064_v21  ;;  %v6030_v63 = vsel %vm2617_vm0, %v11962_v43, 0.0  ;;  %v11966_v44 = vpop.eup %9508 }
 0xf94   :  { %v6024_v12 = vsel %vm2617_vm0, %v11966_v44, 0.0 }
 0xf95   :  { %6022 = vadd.xlane.f32.xlu1 %v6021_v37  ;;  %v12487_v37 = vld [vmem:[#allocation21_spill] sm:$0xff] }
 0xf99   :  { %6031 = vadd.xlane.f32.xlu1 %v6030_v63  ;;  %v12488_v63 = vpack.c.bf16 %v12486_v14, %v12487_v37  ;;  %v9106_v14 = vld [vmem:[#allocation8 + $0x154] ss:$12 sps:$4 sm:$0xff]   ;;  %v9104_v37 = vld [vmem:[#allocation8 + $0x150] ss:$12 sps:$4 sm:$0xff]  }
 0xf9d   :  { %6025 = vadd.xlane.f32.xlu1 %v6024_v12 }
 0xfa5   :  { %6174 = vrot.lane.b32.xlu0 %v12436_v23, %s9646_s2  ;;  %v12455_v23 = vpack.c.bf16 %v12453_v51, %v12454_v49  ;;  %v12489_v51 = vld [vmem:[#allocation45_spill] sm:$0xff]  ;;  %v12490_v49 = vld [vmem:[#allocation18_spill] sm:$0xff] }
 0xfa9   :  { %6176 = vrot.lane.b32.xlu0 %v12438_v15, %s9646_s2  ;;  %v12456_v15 = vld [vmem:[#allocation27_spill] sm:$0xff] }
 0xfaa   :  { %v12458_v36 = vpack.c.bf16 %v12456_v15, %v12457_v9 }
 0xfad   :  { %5043 = vrot.lane.b32.xlu0 %v12451_v27, %s9646_s2 }
 0xfae   :  { %6172 = vrot.lane.b32.xlu1 %v12435_v38, %s9646_s2  ;;  %v12462_v38 = vld [vmem:[#allocation25_spill] sm:$0xff] }
 0xfaf   :  { %v12464_v7 = vpack.c.bf16 %v12462_v38, %v12463_v39  ;;  %v12492_v39 = vld [vmem:[#allocation44_spill] sm:$0xff] }
 0xfb1   :  { %5045 = vrot.lane.b32.xlu0 %v12452_v5, %s9646_s2 }
 0xfb2   :  { %3810 = vrot.lane.b32.xlu1 %v12455_v23, %s9646_s2  ;;  %v12491_v23 = vpack.c.bf16 %v12489_v51, %v12490_v49 }
 0xfb5   :  { %5047 = vrot.lane.b32.xlu0 %v12458_v36, %s9646_s2 }
 0xfb6   :  { %3812 = vrot.lane.b32.xlu1 %v12461_v34, %s9646_s2  ;;  %v9062_v34 = vld [vmem:[#allocation8] ss:$12 sps:$4 sm:$0xff]  }
 0xfb9   :  { %5049 = vrot.lane.b32.xlu0 %v12464_v7, %s9646_s2  ;;  %v5996_v13 = vpop.xlane.xlu1 %5995  ;;  %v12493_v7 = vld [vmem:[#allocation17_spill] sm:$0xff] }
 0xfba   :  { %3814 = vrot.lane.b32.xlu1 %v12467_v41, %s9646_s2 }
 0xfbb   :  { %v5993_v59 = vpop.xlane.xlu0 %5992 }
 0xfbc   :  { %9510 = vrcp.f32 %v5993_v59  ;;  %v9071_v59 = vld [vmem:[#allocation8 + $0x48] ss:$12 sps:$4 sm:$0xff]  }
 0xfbd   :  { %5051 = vrot.lane.b32.xlu0 %v12470_v61, %s9646_s2  ;;  %v5990_v25 = vpop.xlane.xlu1 %5989 }
 0xfbe   :  { %9512 = vrcp.f32 %v5990_v25  ;;  %3816 = vrot.lane.b32.xlu1 %v12473_v10, %s9646_s2 }
 0xfbf   :  { %9514 = vrcp.f32 %v5996_v13  ;;  %v5987_v40 = vpop.xlane.xlu0 %5986  ;;  %v12494_v13 = vpack.c.bf16 %v12492_v39, %v12493_v7 }
 0xfc0   :  { %9516 = vrcp.f32 %v5987_v40  ;;  %v9074_v40 = vld [vmem:[#allocation8 + $0x60] ss:$12 sps:$4 sm:$0xff]  }
 0xfc1   :  { %5053 = vrot.lane.b32.xlu0 %v12476_v1, %s9646_s2 }
 0xfc2   :  { %3818 = vrot.lane.b32.xlu1 %v12479_v28, %s9646_s2  ;;  %v9083_v28 = vld [vmem:[#allocation8 + $0xa8] ss:$12 sps:$4 sm:$0xff]  }
 0xfc3   :  { %v6171_v35 = vpop.permute.xlu0 %6170 }
 0xfc4   :  { %8450 = vmatprep.subr.bf16.mxu1 %v6171_v35 }
 0xfc5   :  { %8451 = vmatpush3.bf16.msra.mxu1 %v6171_v35  ;;  %5055 = vrot.lane.b32.xlu0 %v12482_v53, %s9646_s2  ;;  %v6005_v57 = vpop.xlane.xlu1 %6004  ;;  %v9086_v35 = vld [vmem:[#allocation8 + $0xc0] ss:$12 sps:$4 sm:$0xff]  }
 0xfc6   :  { %3820 = vrot.lane.b32.xlu1 %v12485_v42, %s9646_s2  ;;  %v9511_v20 = vpop.eup %9510  ;;  %v9094_v53 = vld [vmem:[#allocation8 + $0xf4] ss:$12 sps:$4 sm:$0xff]   ;;  %v9100_v42 = vld [vmem:[#allocation8 + $0x124] ss:$12 sps:$4 sm:$0xff]  }
 0xfc7   :  { %v6051_v5 = vmul.f32 %v9511_v20, %v11895_v46  ;;  %v9067_v46 = vld [vmem:[#allocation8 + $0x1c] ss:$12 sps:$4 sm:$0xff]   ;;  %v9098_v20 = vld [vmem:[#allocation8 + $0x120] ss:$12 sps:$4 sm:$0xff]  }
 0xfc8   :  { %v9513_v48 = vpop.eup %9512 }
 0xfc9   :  { %v9515_v21 = vpop.eup %9514  ;;  %5057 = vrot.lane.b32.xlu0 %v12488_v63, %s9646_s2  ;;  %v5999_v12 = vpop.xlane.xlu1 %5998  ;;  %v6050_v9 = vmul.f32 %v9513_v48, %v11900_v47  ;;  %v9103_v48 = vld [vmem:[#allocation8 + $0x13c] ss:$12 sps:$4 sm:$0xff]   ;;  %v9109_v63 = vld [vmem:[#allocation8 + $0x16c] ss:$12 sps:$4 sm:$0xff]  }
 0xfca   :  { %v9517_v27 = vpop.eup %9516  ;;  %3822 = vrot.lane.b32.xlu1 %v12491_v23, %s9646_s2  ;;  %v6052_v36 = vmul.f32 %v9515_v21, %v11892_v31  ;;  %v9065_v31 = vld [vmem:[#allocation8 + $0x18] ss:$12 sps:$4 sm:$0xff]  }
 0xfcb   :  { %v6049_v15 = vmul.f32 %v9517_v27, %v11905_v2  ;;  %v9070_v2 = vld [vmem:[#allocation8 + $0x34] ss:$12 sps:$4 sm:$0xff]   ;;  %v9101_v21 = vld [vmem:[#allocation8 + $0x138] ss:$12 sps:$4 sm:$0xff]  }
 0xfcc   :  { %v6066_v38 = vpack.c.bf16 %v6052_v36, %v6051_v5 }
 0xfcd   :  { %v6008_v16 = vpop.xlane.xlu1 %6007  ;;  %v6065_v8 = vpack.c.bf16 %v6050_v9, %v6049_v15 }
 0xfce   :  { %3824 = vrot.lane.b32.xlu1 %v12494_v13, %s9646_s2  ;;  %9518 = vrcp.f32 %v6008_v16 }
 0xfcf   :  { %8442 = vmatprep.mubr.msk.bf16.mxu0 %vm2617_vm0, %v6065_v8  ;;  %9520 = vrcp.f32 %v5999_v12  ;;  %v9107_v12 = vld [vmem:[#allocation8 + $0x168] ss:$12 sps:$4 sm:$0xff]  }
 0xfd0   :  { %8443 = vmatmul.mubr.msk.bf16.vlgmr.msra.gmra.mrb[184].mxu0 %vm2617_vm0, %v6066_v38  ;;  %9522 = vrcp.f32 %v6005_v57  ;;  %v9092_v57 = vld [vmem:[#allocation8 + $0xf0] ss:$12 sps:$4 sm:$0xff]  }
 0xfd1   :  { %v6002_v47 = vpop.xlane.xlu1 %6001  ;;  %6829 = vmatpush1.bf16.msra.mxu0 %v9062_v34 }
 0xfd2   :  { %9524 = vrcp.f32 %v6002_v47  ;;  %6830 = vmatprep.subr.bf16.mxu0 %v9067_v46 }
 0xfd5   :  { %6831 = vmatpush1.bf16.msra.mxu0 %v9065_v31 }
 0xfd6   :  { %6832 = vmatprep.subr.bf16.mxu0 %v9070_v2 }
 0xfd8   :  { %v9519_v41 = vpop.eup %9518 }
 0xfd9   :  { %6833 = vmatpush1.bf16.msra.mxu0 %v9068_v24  ;;  %v9521_v29 = vpop.eup %9520  ;;  %v6056_v19 = vmul.f32 %v9519_v41, %v11920_v0  ;;  %v9082_v0 = vld [vmem:[#allocation8 + $0x94] ss:$12 sps:$4 sm:$0xff]  }
 0xfda   :  { %6834 = vmatprep.subr.bf16.mxu0 %v9073_v17  ;;  %v9523_v61 = vpop.eup %9522  ;;  %v6053_v3 = vmul.f32 %v9521_v29, %v11916_v52  ;;  %v9080_v52 = vld [vmem:[#allocation8 + $0x90] ss:$12 sps:$4 sm:$0xff]  }
 0xfdb   :  { %v6055_v32 = vmul.f32 %v9523_v61, %v11912_v45  ;;  %v9088_v45 = vld [vmem:[#allocation8 + $0xc4] ss:$12 sps:$4 sm:$0xff]   ;;  %v9110_v61 = vld [vmem:[#allocation8 + $0xc8] ss:$12 sps:$4 sm:$0xff]  }
 0xfdc   :  { %v9525_v25 = vpop.eup %9524 }
 0xfdd   :  { %v6054_v10 = vmul.f32 %v9525_v25, %v11924_v54  ;;  %6835 = vmatpush1.bf16.msra.mxu0 %v9071_v59  ;;  %v6068_v18 = vpack.c.bf16 %v6056_v19, %v6055_v32  ;;  %v9085_v54 = vld [vmem:[#allocation8 + $0xac] ss:$12 sps:$4 sm:$0xff]  }
 0xfde   :  { %6836 = vmatprep.subr.bf16.mxu0 %v9076_v4 }
 0xfdf   :  { %v6067_v1 = vpack.c.bf16 %v6054_v10, %v6053_v3 }
 0xfe1   :  { %8446 = vmatprep.mubr.msk.bf16.mxu0 %vm2617_vm0, %v6067_v1  ;;  %6837 = vmatpush1.bf16.msra.mxu0 %v9074_v40 }
 0xfe2   :  { %8447 = vmatmul.mubr.msk.bf16.gmra.mrb[188].mxu0 %vm2617_vm0, %v6068_v18  ;;  %6838 = vmatprep.subr.bf16.mxu0 %v9079_v62 }
 0xfe5   :  { %6839 = vmatpush1.bf16.msra.mxu0 %v9077_v30 }
 0xfe6   :  { %6840 = vmatprep.subr.bf16.mxu0 %v9082_v0  ;;  %v9112_v0 = vld [vmem:[#allocation8 + $0xe0] ss:$12 sps:$4 sm:$0xff]  }
 0xfe9   :  { %6841 = vmatpush1.bf16.msra.mxu0 %v9080_v52 }
 0xfea   :  { %6842 = vmatprep.subr.bf16.mxu0 %v9085_v54 }
 0xfed   :  { %6843 = vmatpush1.bf16.msra.mxu0 %v9083_v28  ;;  %v9132_v28 = vld [vmem:[#allocation8 + $0x19c] ss:$12 sps:$4 sm:$0xff]  }
 0xfee   :  { %6844 = vmatprep.subr.bf16.mxu0 %v9088_v45  ;;  %v9113_v45 = vld [vmem:[#allocation8 + $0x20] ss:$12 sps:$4 sm:$0xff]  }
 0xff1   :  { %6845 = vmatpush1.bf16.msra.mxu0 %v9086_v35 }
 0xff2   :  { %6846 = vmatprep.subr.bf16.mxu0 %v9091_v60 }
 0xff5   :  { %6847 = vmatpush1.bf16.msra.mxu0 %v9089_v50  ;;  %v9114_v50 = vld [vmem:[#allocation8 + $0xf8] ss:$12 sps:$4 sm:$0xff]  }
 0xff6   :  { %6848 = vmatprep.subr.bf16.mxu0 %v9094_v53  ;;  %v9130_v53 = vld [vmem:[#allocation8 + $0x198] ss:$12 sps:$4 sm:$0xff]  }
 0xff9   :  { %6849 = vmatpush1.bf16.msra.mxu0 %v9092_v57 }
 0xffa   :  { %6850 = vmatprep.subr.bf16.mxu0 %v9097_v33 }
 0xffd   :  { %6851 = vmatpush1.bf16.msra.mxu0 %v9095_v6 }
 0xffe   :  { %6852 = vmatprep.subr.bf16.mxu0 %v9100_v42  ;;  %v9115_v42 = vld [vmem:[#allocation8 + $0x38] ss:$12 sps:$4 sm:$0xff]  }
0x1001   :  { %6853 = vmatpush1.bf16.msra.mxu0 %v9098_v20  ;;  %v9136_v20 = vld [vmem:[#allocation8 + $0x1b4] ss:$12 sps:$4 sm:$0xff]  }
0x1002   :  { %6854 = vmatprep.subr.bf16.mxu0 %v9103_v48 }
0x1005   :  { %6855 = vmatpush1.bf16.msra.mxu0 %v9101_v21  ;;  %v9116_v21 = vld [vmem:[#allocation8 + $0x110] ss:$12 sps:$4 sm:$0xff]  }
0x1006   :  { %6856 = vmatprep.subr.bf16.mxu0 %v9106_v14  ;;  %v9134_v14 = vld [vmem:[#allocation8 + $0x1b0] ss:$12 sps:$4 sm:$0xff]  }
0x1009   :  { %6857 = vmatpush1.bf16.msra.mxu0 %v9104_v37 }
0x100a   :  { %6858 = vmatprep.subr.bf16.mxu0 %v9109_v63  ;;  %v9117_v63 = vld [vmem:[#allocation8 + $0x50] ss:$12 sps:$4 sm:$0xff]  }
0x100d   :  { %6859 = vmatpush1.bf16.msra.mxu0 %v9107_v12 }
0x1014   :  { %v6017_v27 = vpop.xlane.xlu0 %6016 }
0x1018   :  { %v6011_v5 = vpop.xlane.xlu0 %6010 }
0x1019   :  { %9526 = vrcp.f32 %v6011_v5  ;;  %v9119_v5 = vld [vmem:[#allocation8 + $0x68] ss:$12 sps:$4 sm:$0xff]  }
0x101a   :  { %v6014_v51 = vpop.xlane.xlu1 %6013 }
0x101b   :  { %9528 = vrcp.f32 %v6014_v51 }
0x101c   :  { %v6020_v49 = vpop.xlane.xlu0 %6019 }
0x101d   :  { %9530 = vrcp.f32 %v6020_v49 }
0x101e   :  { %v6029_v23 = vpop.xlane.xlu1 %6028  ;;  %9532 = vrcp.f32 %v6017_v27  ;;  %v9118_v27 = vld [vmem:[#allocation8 + $0x128] ss:$12 sps:$4 sm:$0xff]  }
0x1020   :  { %v6175_v15 = vpop.permute.xlu0 %6174 }
0x1022   :  { %v6023_v9 = vpop.xlane.xlu1 %6022 }
0x1023   :  { %v9527_v36 = vpop.eup %9526  ;;  %9534 = vrcp.f32 %v6023_v9  ;;  %v9121_v9 = vld [vmem:[#allocation8 + $0x80] ss:$12 sps:$4 sm:$0xff]  }
0x1024   :  { %v6177_v16 = vpop.permute.xlu0 %6176  ;;  %v6057_v38 = vmul.f32 %v9527_v36, %v11942_v58 }
0x1025   :  { %v9529_v8 = vpop.eup %9528 }
0x1026   :  { %v6032_v34 = vpop.xlane.xlu1 %6031  ;;  %v6058_v39 = vmul.f32 %v9529_v8, %v11948_v56  ;;  %v9123_v8 = vld [vmem:[#allocation8 + $0x98] ss:$12 sps:$4 sm:$0xff]  }
0x1027   :  { %v9531_v2 = vpop.eup %9530 }
0x1028   :  { %v5044_v7 = vpop.permute.xlu0 %5043  ;;  %v6069_v13 = vpack.c.bf16 %v6058_v39, %v6057_v38  ;;  %v9533_v17 = vpop.eup %9532  ;;  %v6060_v4 = vmul.f32 %v9531_v2, %v11944_v22  ;;  %v9111_v22 = vld [vmem:[#allocation8 + $0x8] ss:$12 sps:$4 sm:$0xff]   ;;  %v9124_v38 = vld [vmem:[#allocation8 + $0x170] ss:$12 sps:$4 sm:$0xff]  }
0x1029   :  { %5067 = vst.msk [vmem:[#allocation2 + $0x8] sm:$0xff] %vm3834_vm9, %v5044_v7  ;;  %v6059_v3 = vmul.f32 %v9533_v17, %v11937_v26  ;;  %v9125_v7 = vld [vmem:[#allocation8 + $0xb0] ss:$12 sps:$4 sm:$0xff]  }
0x102a   :  { %8458 = vmatprep.mubr.msk.bf16.mxu1 %vm2617_vm0, %v6069_v13  ;;  %v6026_v46 = vpop.xlane.xlu1 %6025  ;;  %v9129_v13 = vld [vmem:[#allocation8 + $0x188] ss:$12 sps:$4 sm:$0xff]  }
0x102b   :  { %9536 = vrcp.f32 %v6026_v46  ;;  %v6070_v32 = vpack.c.bf16 %v6060_v4, %v6059_v3  ;;  %v9138_v4 = vld [vmem:[#allocation8 + $0x1c8] ss:$12 sps:$4 sm:$0xff]  }
0x102c   :  { %v5046_v47 = vpop.permute.xlu0 %5045  ;;  %9538 = vrcp.f32 %v6032_v34  ;;  %v9145_v3 = vld [vmem:[#allocation8 + $0x1e8] ss:$12 sps:$4 sm:$0xff]  }
0x102d   :  { %5068 = vst.msk [vmem:[#allocation2 + $0x20] sm:$0xff] %vm3834_vm9, %v5046_v47  ;;  %9540 = vrcp.f32 %v6029_v23  ;;  %v9535_v41 = vpop.eup %9534  ;;  %v9120_v23 = vld [vmem:[#allocation8 + $0x140] ss:$12 sps:$4 sm:$0xff]  }
0x102e   :  { %v6173_v31 = vpop.permute.xlu1 %6172  ;;  %v6061_v40 = vmul.f32 %v9535_v41, %v11958_v55  ;;  %v9126_v55 = vld [vmem:[#allocation8 + $0x180] ss:$12 sps:$4 sm:$0xff]  }
0x102f   :  { %8452 = vmatprep.subr.bf16.mxu1 %v6173_v31  ;;  %v9133_v47 = vld [vmem:[#allocation8 + $0x1a0] ss:$12 sps:$4 sm:$0xff]  }
0x1030   :  { %v5048_v58 = vpop.permute.xlu0 %5047  ;;  %8453 = vmatpush3.bf16.msra.mxu1 %v6173_v31  ;;  %v12057_v56 = vld [vmem:[#allocation2 + $0x8] sm:$0xff] }
0x1031   :  { %5069 = vst.msk [vmem:[#allocation2 + $0x38] sm:$0xff] %vm3834_vm9, %v5048_v58  ;;  %8454 = vmatprep.subr.bf16.mxu1 %v6175_v15  ;;  %6860 = vmatprep.mubr.bf16.mxu0 %v12057_v56  ;;  %v9137_v58 = vld [vmem:[#allocation8 + $0x1b8] ss:$12 sps:$4 sm:$0xff]  }
0x1032   :  { %v3811_v24 = vpop.permute.xlu1 %3810 }
0x1033   :  { %3835 = vst.msk [vmem:[#allocation2] sm:$0xff] %vm3834_vm9, %v3811_v24 }
0x1034   :  { %v5050_v59 = vpop.permute.xlu0 %5049  ;;  %8455 = vmatpush3.bf16.msra.mxu1 %v6175_v15  ;;  %v12074_v26 = vld [vmem:[#allocation2 + $0x20] sm:$0xff] }
0x1035   :  { %v9537_v29 = vpop.eup %9536  ;;  %5070 = vst.msk [vmem:[#allocation2 + $0x50] sm:$0xff] %vm3834_vm9, %v5050_v59  ;;  %8456 = vmatprep.subr.bf16.mxu1 %v6177_v16  ;;  %v12495_v59 = vmov 0  }
0x1036   :  { %v3813_v25 = vpop.permute.xlu1 %3812  ;;  %v6062_v19 = vmul.f32 %v9537_v29, %v11966_v44  ;;  %v9539_v62 = vpop.eup %9538  ;;  %v9128_v44 = vld [vmem:[#allocation8 + $0x184] ss:$12 sps:$4 sm:$0xff]   ;;  %v9140_v29 = vld [vmem:[#allocation8 + $0x1cc] ss:$12 sps:$4 sm:$0xff]  }
0x1037   :  { %3836 = vst.msk [vmem:[#allocation2 + $0x18] sm:$0xff] %vm3834_vm9, %v3813_v25  ;;  %v9541_v52 = vpop.eup %9540  ;;  %v6064_v35 = vmul.f32 %v9539_v62, %v11962_v43  ;;  %6941 = vmatprep.subr.bf16.mxu0 %v9128_v44  ;;  %v9142_v25 = vld [vmem:[#allocation8 + $0x1e0] ss:$12 sps:$4 sm:$0xff]  }
0x1038   :  { %v5052_v10 = vpop.permute.xlu0 %5051  ;;  %8457 = vmatpush3.bf16.msra.mxu1 %v6177_v16  ;;  %v6071_v30 = vpack.c.bf16 %v6062_v19, %v6061_v40  ;;  %v6063_v57 = vmul.f32 %v9541_v52, %v11952_v11  ;;  %v6314_v11 = vld [vmem:[#allocation2 + $0x38] sm:$0xff]  ;;  %v9144_v19 = vld [vmem:[#allocation8 + $0x1e4] ss:$12 sps:$4 sm:$0xff]   ;;  %v9152_v62 = vld [vmem:[#allocation8 + $0x214] ss:$12 sps:$4 sm:$0xff]  }
0x1039   :  { %5071 = vst.msk [vmem:[#allocation2 + $0x68] sm:$0xff] %vm3834_vm9, %v5052_v10  ;;  %7970 = vmatprep.subr.bf16.mxu1 %v9110_v61  ;;  %v9122_v16 = vld [vmem:[#allocation8 + $0x158] ss:$12 sps:$4 sm:$0xff]   ;;  %v9141_v61 = vld [vmem:[#allocation8 + $0x1d0] ss:$12 sps:$4 sm:$0xff]  }
0x103a   :  { %v3815_v1 = vpop.permute.xlu1 %3814  ;;  %v12069_v18 = vld [vmem:[#allocation2] sm:$0xff]  ;;  %v6072_v6 = vpack.c.bf16 %v6064_v35, %v6063_v57  ;;  %v9148_v10 = vld [vmem:[#allocation8 + $0x1fc] ss:$12 sps:$4 sm:$0xff]  }
0x103b   :  { %3837 = vst.msk [vmem:[#allocation2 + $0x30] sm:$0xff] %vm3834_vm9, %v3815_v1  ;;  %8459 = vmatmul.mubr.msk.bf16.vlgmr.msra.gmra.mrb[200].mxu1 %vm2617_vm0, %v6070_v32  ;;  %6861 = vmatmul.mubr.bf16.vlgmr.msra.gmra.mrb[192].mxu0 %v12069_v18  ;;  %v9146_v40 = vld [vmem:[#allocation8 + $0x1f8] ss:$12 sps:$4 sm:$0xff]   ;;  %v9149_v32 = vld [vmem:[#allocation8 + $0x200] ss:$12 sps:$4 sm:$0xff]  }
0x103c   :  { %v5054_v54 = vpop.permute.xlu0 %5053  ;;  %8462 = vmatprep.mubr.msk.bf16.mxu1 %vm2617_vm0, %v6071_v30  ;;  %6870 = vmatprep.mubr.bf16.mxu0 %v12074_v26  ;;  %v6317_v15 = vld [vmem:[#allocation2 + $0x50] sm:$0xff]  ;;  %v9153_v1 = vld [vmem:[#allocation8 + $0x218] ss:$12 sps:$4 sm:$0xff]  }
0x103d   :  { %5072 = vst.msk [vmem:[#allocation2 + $0x80] sm:$0xff] %vm3834_vm9, %v5054_v54  ;;  %7971 = vmatpush3.bf16.msra.mxu1 %v9111_v22  ;;  %6942 = vmatpush1.bf16.msra.mxu0 %v9126_v55  ;;  %v9150_v22 = vld [vmem:[#allocation8 + $0x210] ss:$12 sps:$4 sm:$0xff]  }
0x103e   :  { %v3817_v60 = vpop.permute.xlu1 %3816  ;;  %7972 = vmatprep.subr.bf16.mxu1 %v9112_v0  ;;  %6943 = vmatprep.subr.bf16.mxu0 %v9132_v28  ;;  %v12083_v43 = vld [vmem:[#allocation2 + $0x18] sm:$0xff]  ;;  %v9154_v0 = vld [vmem:[#allocation8 + $0x228] ss:$12 sps:$4 sm:$0xff]  }
0x103f   :  { %3838 = vst.msk [vmem:[#allocation2 + $0x48] sm:$0xff] %vm3834_vm9, %v3817_v60  ;;  %v9157_v30 = vld [vmem:[#allocation8 + $0x230] ss:$12 sps:$4 sm:$0xff]  }
0x1040   :  { %v5056_v33 = vpop.permute.xlu0 %5055  ;;  %v6320_v39 = vld [vmem:[#allocation2 + $0x68] sm:$0xff] }
0x1041   :  { %5073 = vst.msk [vmem:[#allocation2 + $0x98] sm:$0xff] %vm3834_vm9, %v5056_v33  ;;  %7973 = vmatpush3.bf16.msra.mxu1 %v9113_v45  ;;  %6944 = vmatpush1.bf16.msra.mxu0 %v9130_v53 }
0x1042   :  { %v3819_v48 = vpop.permute.xlu1 %3818  ;;  %7974 = vmatprep.subr.bf16.mxu1 %v9114_v50  ;;  %6945 = vmatprep.subr.bf16.mxu0 %v9136_v20  ;;  %v6313_v49 = vld [vmem:[#allocation2 + $0x30] sm:$0xff] }
0x1043   :  { %3839 = vst.msk [vmem:[#allocation2 + $0x60] sm:$0xff] %vm3834_vm9, %v3819_v48  ;;  %8463 = vmatmul.mubr.msk.bf16.gmra.mrb[204].mxu1 %vm2617_vm0, %v6072_v6  ;;  %6871 = vmatmul.mubr.bf16.gmra.mrb[196].mxu0 %v12083_v43 }
0x1044   :  { %v5058_v37 = vpop.permute.xlu0 %5057  ;;  %6880 = vmatprep.mubr.bf16.mxu0 %v6314_v11  ;;  %7086 = vmatprep.mubr.bf16.mxu1 %v12057_v56  ;;  %v6323_v31 = vld [vmem:[#allocation2 + $0x80] sm:$0xff] }
0x1045   :  { %5074 = vst.msk [vmem:[#allocation2 + $0xb0] sm:$0xff] %vm3834_vm9, %v5058_v37  ;;  %7975 = vmatpush3.bf16.msra.mxu1 %v9115_v42  ;;  %6946 = vmatpush1.bf16.msra.mxu0 %v9134_v14 }
0x1046   :  { %v3821_v12 = vpop.permute.xlu1 %3820  ;;  %7976 = vmatprep.subr.bf16.mxu1 %v9116_v21  ;;  %v6316_v34 = vld [vmem:[#allocation2 + $0x48] sm:$0xff]  ;;  %6947 = vmatprep.subr.bf16.mxu0 %v9140_v29 }
0x1047   :  { %3840 = vst.msk [vmem:[#allocation2 + $0x78] sm:$0xff] %vm3834_vm9, %v3821_v12 }
0x1048   :  { %v6326_v2 = vld [vmem:[#allocation2 + $0x98] sm:$0xff] }
0x1049   :  { %7977 = vmatpush3.bf16.msra.mxu1 %v9117_v63  ;;  %6948 = vmatpush1.bf16.msra.mxu0 %v9138_v4 }
0x104a   :  { %v3823_v51 = vpop.permute.xlu1 %3822  ;;  %7978 = vmatprep.subr.bf16.mxu1 %v9118_v27  ;;  %v6319_v46 = vld [vmem:[#allocation2 + $0x60] sm:$0xff]  ;;  %6949 = vmatprep.subr.bf16.mxu0 %v9144_v19 }
0x104b   :  { %3841 = vst.msk [vmem:[#allocation2 + $0x90] sm:$0xff] %vm3834_vm9, %v3823_v51  ;;  %6881 = vmatmul.mubr.bf16.gmra.mrb[200].mxu0 %v6313_v49 }
0x104c   :  { %6890 = vmatprep.mubr.bf16.mxu0 %v6317_v15  ;;  %v6329_v17 = vld [vmem:[#allocation2 + $0xb0] sm:$0xff] }
0x104d   :  { %7979 = vmatpush3.bf16.msra.mxu1 %v9119_v5  ;;  %6950 = vmatpush1.bf16.msra.mxu0 %v9142_v25 }
0x104e   :  { %v3825_v36 = vpop.permute.xlu1 %3824  ;;  %7980 = vmatprep.subr.bf16.mxu1 %v9120_v23  ;;  %v6322_v56 = vld [vmem:[#allocation2 + $0x78] sm:$0xff]  ;;  %6951 = vmatprep.subr.bf16.mxu0 %v9148_v10 }
0x104f   :  { %3842 = vst.msk [vmem:[#allocation2 + $0xa8] sm:$0xff] %vm3834_vm9, %v3825_v36 }
0x1051   :  { %7981 = vmatpush3.bf16.msra.mxu1 %v9121_v9  ;;  %6952 = vmatpush1.bf16.msra.mxu0 %v9146_v40 }
0x1052   :  { %7982 = vmatprep.subr.bf16.mxu1 %v9122_v16  ;;  %v6325_v24 = vld [vmem:[#allocation2 + $0x90] sm:$0xff]  ;;  %6953 = vmatprep.subr.bf16.mxu0 %v9152_v62  ;;  %v6427_v62 = vld [vmem:[%s12246_s3] sm:$0x7]  ;;  %s9647_s3 = smov [#allocation9]  }
0x1053   :  { %6891 = vmatmul.mubr.bf16.gmra.mrb[204].mxu0 %v6316_v34  ;;  %s7301_s5 = sshll.u32 %s9647_s3, 4  ;;  %s7302_s5 = int_to_ptr.vmem [resolvable:$true] %s7301_s5 }
0x1054   :  { %6900 = vmatprep.mubr.bf16.mxu0 %v6320_v39  ;;  %s9608_s6 = scalar_lea.vmem %s7302_s5, 6144  ;;  %p9613_p11 = scmp.lt.s32.totalorder %s7302_s5, %s7302_s5 }
0x1055   :  { %7983 = vmatpush3.bf16.msra.mxu1 %v9123_v8  ;;  %6954 = vmatpush1.bf16.msra.mxu0 %v9150_v22  ;;  %p9609_p10 = scmp.ne.s32.totalorder %s7302_s5, %s9608_s6  ;;  %p9614_p12 = scmp.lt.s32.totalorder %s9608_s6, %s9608_s6 }
0x1056   :  { %7984 = vmatprep.subr.bf16.mxu1 %v9124_v38  ;;  %v6328_v41 = vld [vmem:[#allocation2 + $0xa8] sm:$0xff] }
0x1057   :  { %p9615_p13 = por %p9614_p12, %p9613_p11 }
0x1059   :  { %7985 = vmatpush3.bf16.msra.mxu1 %v9125_v7  ;;  %p9616_p0 = pnand %p9615_p13, %p9609_p10 }
0x105a   :  { %8466 = vmatprep.subr.bf16.mxu1 %v9129_v13 }
0x105b   :  { %6901 = vmatmul.mubr.bf16.gmra.mrb[208].mxu0 %v6319_v46 }
0x105c   :  { %7087 = vmatmul.mubr.bf16.vlgmr.msra.gmra.mrb[208].mxu1 %v12069_v18  ;;  %6910 = vmatprep.mubr.bf16.mxu0 %v6323_v31  ;;  %v9156_v18 = vld [vmem:[#allocation8 + $0x22c] ss:$12 sps:$4 sm:$0xff]  }
0x105d   :  { %7094 = vmatprep.mubr.bf16.mxu1 %v12074_v26  ;;  %8467 = vmatpush3.bf16.msra.mxu1 %v9129_v13 }
0x105e   :  { %8468 = vmatprep.subr.bf16.mxu1 %v9133_v47  ;;  %6955 = vmatprep.subr.bf16.mxu0 %v9156_v18 }
0x105f   :  { %6956 = vmatpush1.bf16.msra.mxu0 %v9154_v0 }
0x1061   :  { %8469 = vmatpush3.bf16.msra.mxu1 %v9133_v47 }
0x1062   :  { %8470 = vmatprep.subr.bf16.mxu1 %v9137_v58 }
0x1063   :  { %6911 = vmatmul.mubr.bf16.gmra.mrb[212].mxu0 %v6322_v56 }
0x1064   :  { %7095 = vmatmul.mubr.bf16.gmra.mrb[212].mxu1 %v12083_v43  ;;  %6920 = vmatprep.mubr.bf16.mxu0 %v6326_v2 }
0x1065   :  { %7102 = vmatprep.mubr.bf16.mxu1 %v6314_v11  ;;  %8471 = vmatpush3.bf16.msra.mxu1 %v9137_v58 }
0x1066   :  { %8472 = vmatprep.subr.bf16.mxu1 %v9141_v61 }
0x1069   :  { %8473 = vmatpush3.bf16.msra.mxu1 %v9141_v61 }
0x106a   :  { %8474 = vmatprep.subr.bf16.mxu1 %v9145_v3 }
0x106b   :  { %6921 = vmatmul.mubr.bf16.gmra.mrb[216].mxu0 %v6325_v24 }
0x106c   :  { %7103 = vmatmul.mubr.bf16.gmra.mrb[216].mxu1 %v6313_v49  ;;  %6930 = vmatprep.mubr.bf16.mxu0 %v6329_v17 }
0x106d   :  { %7110 = vmatprep.mubr.bf16.mxu1 %v6317_v15  ;;  %8475 = vmatpush3.bf16.msra.mxu1 %v9145_v3 }
0x106e   :  { %8476 = vmatprep.subr.bf16.mxu1 %v9149_v32 }
0x1071   :  { %8477 = vmatpush3.bf16.msra.mxu1 %v9149_v32  ;;  %v12496_v32 = vld [vmem:[#allocation55_spill] sm:$0xff] }
0x1072   :  { %8478 = vmatprep.subr.bf16.mxu1 %v9153_v1  ;;  %v6439_v22 = vsub.s32 2, %v12496_v32 }
0x1073   :  { %6931 = vmatmul.mubr.bf16.gmra.mrb[220].mxu0 %v6328_v41 }
0x1074   :  { %7111 = vmatmul.mubr.bf16.gmra.mrb[220].mxu1 %v6316_v34  ;;  %6973 = vmatprep.mubr.bf16.mxu0 %v12495_v59 }
0x1075   :  { %7118 = vmatprep.mubr.bf16.mxu1 %v6320_v39  ;;  %8479 = vmatpush3.bf16.msra.mxu1 %v9153_v1 }
0x1076   :  { %8480 = vmatprep.subr.bf16.mxu1 %v9157_v30 }
0x1079   :  { %8481 = vmatpush3.bf16.msra.mxu1 %v9157_v30 }
0x107c   :  { %7119 = vmatmul.mubr.bf16.gmra.mrb[224].mxu1 %v6319_v46 }
0x107d   :  { %7126 = vmatprep.mubr.bf16.mxu1 %v6323_v31 }
0x1084   :  { %7127 = vmatmul.mubr.bf16.gmra.mrb[228].mxu1 %v6322_v56 }
0x1085   :  { %7134 = vmatprep.mubr.bf16.mxu1 %v6326_v2 }
0x108c   :  { %7135 = vmatmul.mubr.bf16.gmra.mrb[232].mxu1 %v6325_v24 }
0x108d   :  { %7142 = vmatprep.mubr.bf16.mxu1 %v6329_v17 }
0x1094   :  { %7143 = vmatmul.mubr.bf16.gmra.mrb[236].mxu1 %v6328_v41 }
0x10a3   :  { %v8444_v26 = vpop.f32.mrb[184].mxu0 }
0x10a4   :  { %v6135_v55 = vpop.f32.mrb[185].mxu0 }
0x10a5   :  { %v8445_v44 = vpop.f32.mrb[186].mxu0 }
0x10a6   :  { %v6260_v52 = vpack.c.bf16 %v8445_v44, %v8444_v26  ;;  %v6138_v54 = vpop.f32.mrb[187].mxu0  ;;  %v12133_v26 = vrot.slane %v6427_v62, %v6439_v22 }
0x10a7   :  { %v6259_v28 = vpack.c.bf16 %v6138_v54, %v6135_v55 }
0x10a8   :  { %6277 = vrot.lane.b32.xlu1 %v6260_v52, %s9646_s2 }
0x10a9   :  { %6275 = vrot.lane.b32.xlu0 %v6259_v28, %s9646_s2 }
0x10b5   :  { %v8448_v45 = vpop.f32.mrb[188].mxu0 }
0x10b6   :  { %v6151_v35 = vpop.f32.mrb[189].mxu0 }
0x10b7   :  { %v8449_v60 = vpop.f32.mrb[190].mxu0 }
0x10b8   :  { %v6262_v50 = vpack.c.bf16 %v8449_v60, %v8448_v45  ;;  %v6154_v53 = vpop.f32.mrb[191].mxu0 }
0x10b9   :  { %v6261_v57 = vpack.c.bf16 %v6154_v53, %v6151_v35 }
0x10ba   :  { %6281 = vrot.lane.b32.xlu1 %v6262_v50, %s9646_s2 }
0x10bb   :  { %6279 = vrot.lane.b32.xlu0 %v6261_v57, %s9646_s2 }
0x110e   :  { %v8460_v33 = vpop.f32.mrb[200].mxu1 }
0x110f   :  { %v6228_v6 = vpop.f32.mrb[201].mxu1 }
0x1110   :  { %v8461_v42 = vpop.f32.mrb[202].mxu1 }
0x1111   :  { %v6264_v20 = vpack.c.bf16 %v8461_v42, %v8460_v33  ;;  %v6231_v48 = vpop.f32.mrb[203].mxu1 }
0x1112   :  { %v6263_v43 = vpack.c.bf16 %v6231_v48, %v6228_v6 }
0x1113   :  { %6285 = vrot.lane.b32.xlu1 %v6264_v20, %s9646_s2 }
0x1114   :  { %6283 = vrot.lane.b32.xlu0 %v6263_v43, %s9646_s2 }
0x1116   :  { %v8464_v21 = vpop.f32.mrb[204].mxu1 }
0x1117   :  { %v6244_v14 = vpop.f32.mrb[205].mxu1 }
0x1118   :  { %v8465_v11 = vpop.f32.mrb[206].mxu1 }
0x1119   :  { %v6266_v37 = vpack.c.bf16 %v8465_v11, %v8464_v21  ;;  %v6247_v63 = vpop.f32.mrb[207].mxu1 }
0x111a   :  { %v6265_v12 = vpack.c.bf16 %v6247_v63, %v6244_v14  ;;  %v6278_v27 = vpop.permute.xlu1 %6277 }
0x111b   :  { %6300 = vst.msk [vmem:[#allocation2 + $0x28] sm:$0xff] %vm3834_vm9, %v6278_v27  ;;  %v6276_v5 = vpop.permute.xlu0 %6275  ;;  %6289 = vrot.lane.b32.xlu1 %v6266_v37, %s9646_s2 }
0x111c   :  { %6299 = vst.msk [vmem:[#allocation2 + $0x10] sm:$0xff] %vm3834_vm9, %v6276_v5  ;;  %6287 = vrot.lane.b32.xlu0 %v6265_v12, %s9646_s2 }
0x1122   :  { %v6312_v49 = vld [vmem:[#allocation2 + $0x28] sm:$0xff] }
0x1123   :  { %v6309_v51 = vld [vmem:[#allocation2 + $0x10] sm:$0xff] }
0x1124   :  { %6974 = vmatmul.mubr.bf16.vlgmr.msra.gmra.mrb[192].mxu0 %v6309_v51  ;;  %8482 = vmatprep.mubr.bf16.mxu1 %v6309_v51 }
0x1125   :  { %8483 = vmatmul.mubr.bf16.vlgmr.msra.gmra.mrb[240].mxu1 %v6312_v49  ;;  %6983 = vmatprep.mubr.bf16.mxu0 %v12495_v59 }
0x112c   :  { %6984 = vmatmul.mubr.bf16.gmra.mrb[196].mxu0 %v6312_v49  ;;  %v6282_v23 = vpop.permute.xlu1 %6281 }
0x112d   :  { %6302 = vst.msk [vmem:[#allocation2 + $0x58] sm:$0xff] %vm3834_vm9, %v6282_v23  ;;  %v6280_v15 = vpop.permute.xlu0 %6279  ;;  %6993 = vmatprep.mubr.bf16.mxu0 %v12495_v59 }
0x112e   :  { %6301 = vst.msk [vmem:[#allocation2 + $0x40] sm:$0xff] %vm3834_vm9, %v6280_v15 }
0x112f   :  { %v7986_v9 = vpop.f32.mrb[208].mxu1 }
0x1130   :  { %v7987_v36 = vpop.f32.mrb[209].mxu1 }
0x1131   :  { %v12111_v16 = vadd.f32 %v7987_v36, %v7986_v9  ;;  %v7989_v8 = vpop.f32.mrb[210].mxu1 }
0x1132   :  { %v7990_v34 = vpop.f32.mrb[211].mxu1 }
0x1133   :  { %v12113_v38 = vadd.f32 %v7990_v34, %v7989_v8 }
0x1134   :  { %v6318_v7 = vld [vmem:[#allocation2 + $0x58] sm:$0xff] }
0x1135   :  { %v6315_v39 = vld [vmem:[#allocation2 + $0x40] sm:$0xff] }
0x1136   :  { %6994 = vmatmul.mubr.bf16.gmra.mrb[200].mxu0 %v6315_v39  ;;  %8486 = vmatprep.mubr.bf16.mxu1 %v6315_v39 }
0x1137   :  { %v7992_v13 = vpop.f32.mrb[212].mxu1  ;;  %8487 = vmatmul.mubr.bf16.gmra.mrb[244].mxu1 %v6318_v7  ;;  %7003 = vmatprep.mubr.bf16.mxu0 %v12495_v59 }
0x1138   :  { %v7993_v46 = vpop.f32.mrb[213].mxu1 }
0x1139   :  { %v12116_v47 = vadd.f32 %v7993_v46, %v7992_v13  ;;  %v7995_v31 = vpop.f32.mrb[214].mxu1  ;;  %v6431_v46 = vsub.s32 0, %v12496_v32 }
0x113a   :  { %v7996_v58 = vpop.f32.mrb[215].mxu1 }
0x113b   :  { %v12118_v56 = vadd.f32 %v7996_v58, %v7995_v31  ;;  %v6435_v31 = vsub.s32 1, %v12496_v32  ;;  %v12168_v58 = vrot.slane %v6427_v62, %v6431_v46 }
0x113e   :  { %7004 = vmatmul.mubr.bf16.gmra.mrb[204].mxu0 %v6318_v7 }
0x113f   :  { %v7998_v2 = vpop.f32.mrb[216].mxu1  ;;  %7013 = vmatprep.mubr.bf16.mxu0 %v12495_v59 }
0x1140   :  { %v7999_v24 = vpop.f32.mrb[217].mxu1 }
0x1141   :  { %v12121_v17 = vadd.f32 %v7999_v24, %v7998_v2  ;;  %v8001_v41 = vpop.f32.mrb[218].mxu1  ;;  %v12170_v2 = vrot.slane %v6427_v62, %v6435_v31  ;;  %v7100_v62 = vadd.f32 %v12118_v56, %v12133_v26 }
0x1142   :  { %v8002_v29 = vpop.f32.mrb[219].mxu1 }
0x1143   :  { %v12123_v4 = vadd.f32 %v8002_v29, %v8001_v41  ;;  %v7097_v41 = vadd.f32 %v12116_v47, %v12133_v26 }
0x1147   :  { %v8004_v61 = vpop.f32.mrb[220].mxu1 }
0x1148   :  { %v8005_v25 = vpop.f32.mrb[221].mxu1 }
0x1149   :  { %v12125_v19 = vadd.f32 %v8005_v25, %v8004_v61  ;;  %v8007_v3 = vpop.f32.mrb[222].mxu1 }
0x114a   :  { %v8008_v10 = vpop.f32.mrb[223].mxu1 }
0x114b   :  { %v12127_v40 = vadd.f32 %v8008_v10, %v8007_v3 }
0x114f   :  { %v8010_v1 = vpop.f32.mrb[224].mxu1 }
0x1150   :  { %v8011_v18 = vpop.f32.mrb[225].mxu1 }
0x1151   :  { %v8012_v30 = vadd.f32 %v8011_v18, %v8010_v1  ;;  %v8013_v0 = vpop.f32.mrb[226].mxu1 }
0x1152   :  { %v8014_v55 = vpop.f32.mrb[227].mxu1 }
0x1153   :  { %v8015_v44 = vadd.f32 %v8014_v55, %v8013_v0  ;;  %v12136_v52 = vadd.f32 %v8012_v30, %v12133_v26  ;;  %v7092_v0 = vadd.f32 %v12113_v38, %v12133_v26 }
0x1155   :  { %v12139_v54 = vadd.f32 %v8015_v44, %v12133_v26 }
0x1157   :  { %v8016_v28 = vpop.f32.mrb[228].mxu1 }
0x1158   :  { %v8017_v45 = vpop.f32.mrb[229].mxu1 }
0x1159   :  { %v8018_v35 = vadd.f32 %v8017_v45, %v8016_v28  ;;  %v8019_v60 = vpop.f32.mrb[230].mxu1 }
0x115a   :  { %v8020_v50 = vpop.f32.mrb[231].mxu1 }
0x115b   :  { %v8021_v53 = vadd.f32 %v8020_v50, %v8019_v60  ;;  %v12142_v57 = vadd.f32 %v8018_v35, %v12133_v26 }
0x115d   :  { %v12145_v33 = vadd.f32 %v8021_v53, %v12133_v26 }
0x115f   :  { %v8022_v6 = vpop.f32.mrb[232].mxu1 }
0x1160   :  { %v8023_v42 = vpop.f32.mrb[233].mxu1 }
0x1161   :  { %v8024_v20 = vadd.f32 %v8023_v42, %v8022_v6  ;;  %v8025_v48 = vpop.f32.mrb[234].mxu1 }
0x1162   :  { %v8026_v43 = vpop.f32.mrb[235].mxu1 }
0x1163   :  { %v8027_v21 = vadd.f32 %v8026_v43, %v8025_v48  ;;  %v12148_v14 = vadd.f32 %v8024_v20, %v12133_v26  ;;  %v7113_v20 = vadd.f32 %v12125_v19, %v12133_v26 }
0x1165   :  { %v12151_v11 = vadd.f32 %v8027_v21, %v12133_v26 }
0x1167   :  { %v8028_v37 = vpop.f32.mrb[236].mxu1 }
0x1168   :  { %v8029_v63 = vpop.f32.mrb[237].mxu1 }
0x1169   :  { %v8030_v12 = vadd.f32 %v8029_v63, %v8028_v37  ;;  %v8031_v27 = vpop.f32.mrb[238].mxu1  ;;  %v7105_v37 = vadd.f32 %v12121_v17, %v12133_v26 }
0x116a   :  { %v8032_v5 = vpop.f32.mrb[239].mxu1 }
0x116b   :  { %v8033_v51 = vadd.f32 %v8032_v5, %v8031_v27  ;;  %v12154_v49 = vadd.f32 %v8030_v12, %v12133_v26 }
0x116d   :  { %v12157_v23 = vadd.f32 %v8033_v51, %v12133_v26  ;;  %v7116_v51 = vadd.f32 %v12127_v40, %v12133_v26 }
0x1185   :  { %v6286_v15 = vpop.permute.xlu1 %6285 }
0x1186   :  { %6304 = vst.msk [vmem:[#allocation2 + $0x88] sm:$0xff] %vm3834_vm9, %v6286_v15  ;;  %v6284_v9 = vpop.permute.xlu0 %6283 }
0x1187   :  { %6303 = vst.msk [vmem:[#allocation2 + $0x70] sm:$0xff] %vm3834_vm9, %v6284_v9 }
0x118d   :  { %v6290_v36 = vpop.permute.xlu1 %6289  ;;  %v6324_v39 = vld [vmem:[#allocation2 + $0x88] sm:$0xff] }
0x118e   :  { %6306 = vst.msk [vmem:[#allocation2 + $0xb8] sm:$0xff] %vm3834_vm9, %v6290_v36  ;;  %v6288_v8 = vpop.permute.xlu0 %6287  ;;  %v6321_v34 = vld [vmem:[#allocation2 + $0x70] sm:$0xff] }
0x118f   :  { %6305 = vst.msk [vmem:[#allocation2 + $0xa0] sm:$0xff] %vm3834_vm9, %v6288_v8  ;;  %7014 = vmatmul.mubr.bf16.gmra.mrb[208].mxu0 %v6321_v34  ;;  %8490 = vmatprep.mubr.bf16.mxu1 %v6321_v34  ;;  %v7108_v8 = vadd.f32 %v12123_v4, %v12133_v26 }
0x1190   :  { %8491 = vmatmul.mubr.bf16.gmra.mrb[248].mxu1 %v6324_v39  ;;  %7023 = vmatprep.mubr.bf16.mxu0 %v12495_v59 }
0x1195   :  { %v6330_v13 = vld [vmem:[#allocation2 + $0xb8] sm:$0xff] }
0x1196   :  { %v6327_v7 = vld [vmem:[#allocation2 + $0xa0] sm:$0xff] }
0x1197   :  { %7024 = vmatmul.mubr.bf16.gmra.mrb[212].mxu0 %v6324_v39  ;;  %8494 = vmatprep.mubr.bf16.mxu1 %v6327_v7 }
0x1198   :  { %8495 = vmatmul.mubr.bf16.gmra.mrb[252].mxu1 %v6330_v13  ;;  %7033 = vmatprep.mubr.bf16.mxu0 %v12495_v59 }
0x119f   :  { %7034 = vmatmul.mubr.bf16.gmra.mrb[216].mxu0 %v6327_v7 }
0x11a0   :  { %7043 = vmatprep.mubr.bf16.mxu0 %v12495_v59  ;;  %v7089_v59 = vadd.f32 %v12111_v16, %v12133_v26 }
0x11a7   :  { %7044 = vmatmul.mubr.bf16.gmra.mrb[220].mxu0 %v6330_v13 }
0x11f7   :  { %v6975_v24 = vpop.f32.mrb[192].mxu0 }
0x11f8   :  { %v8530_v29 = vadd.f32 %v6975_v24, %v12168_v58  ;;  %v6977_v61 = vpop.f32.mrb[193].mxu0  ;;  %v8484_v25 = vpop.f32.mrb[240].mxu1 }
0x11f9   :  { %v8531_v3 = vadd.f32 %v6977_v61, %v12170_v2  ;;  %v7194_v10 = vadd.f32 %v8484_v25, %v7097_v41  ;;  %v6979_v22 = vpop.f32.mrb[194].mxu0  ;;  %v7185_v32 = vpop.f32.mrb[241].mxu1 }
0x11fa   :  { %7248 = vst [vmem:[#allocation9] sm:$0xff] %v8530_v29  ;;  %v8532_v1 = vadd.f32 %v6979_v22, %v12168_v58  ;;  %v7186_v18 = vadd.f32 %v7185_v32, %v7089_v59  ;;  %v6981_v47 = vpop.f32.mrb[195].mxu0  ;;  %v8485_v30 = vpop.f32.mrb[242].mxu1 }
0x11fb   :  { %7249 = vst [vmem:[#allocation9 + $0x8] sm:$0xff] %v8531_v3  ;;  %7256 = vst [vmem:[#allocation9 + $0x40] sm:$0xff] %v7194_v10  ;;  %v8533_v16 = vadd.f32 %v6981_v47, %v12170_v2  ;;  %v7197_v55 = vadd.f32 %v8485_v30, %v7100_v62  ;;  %v7188_v44 = vpop.f32.mrb[243].mxu1 }
0x11fc   :  { %7251 = vst [vmem:[#allocation9 + $0x18] sm:$0xff] %v8532_v1  ;;  %7250 = vst [vmem:[#allocation9 + $0x10] sm:$0xff] %v7186_v18  ;;  %v7189_v28 = vadd.f32 %v7188_v44, %v7092_v0 }
0x11fd   :  { %7252 = vst [vmem:[#allocation9 + $0x20] sm:$0xff] %v8533_v16  ;;  %7259 = vst [vmem:[#allocation9 + $0x58] sm:$0xff] %v7197_v55 }
0x11fe   :  { %7253 = vst [vmem:[#allocation9 + $0x28] sm:$0xff] %v7189_v28 }
0x11ff   :  { %v6985_v56 = vpop.f32.mrb[196].mxu0 }
0x1200   :  { %v8534_v45 = vadd.f32 %v6985_v56, %v12168_v58  ;;  %v6987_v35 = vpop.f32.mrb[197].mxu0 }
0x1201   :  { %v8535_v60 = vadd.f32 %v6987_v35, %v12170_v2  ;;  %v6989_v50 = vpop.f32.mrb[198].mxu0 }
0x1202   :  { %7254 = vst [vmem:[#allocation9 + $0x30] sm:$0xff] %v8534_v45  ;;  %v8536_v38 = vadd.f32 %v6989_v50, %v12168_v58  ;;  %v6991_v53 = vpop.f32.mrb[199].mxu0 }
0x1203   :  { %7255 = vst [vmem:[#allocation9 + $0x38] sm:$0xff] %v8535_v60  ;;  %v8537_v6 = vadd.f32 %v6991_v53, %v12170_v2 }
0x1204   :  { %7257 = vst [vmem:[#allocation9 + $0x48] sm:$0xff] %v8536_v38 }
0x1205   :  { %7258 = vst [vmem:[#allocation9 + $0x50] sm:$0xff] %v8537_v6 }
0x1209   :  { %v6995_v42 = vpop.f32.mrb[200].mxu0 }
0x120a   :  { %v8538_v48 = vadd.f32 %v6995_v42, %v12168_v58  ;;  %v6997_v43 = vpop.f32.mrb[201].mxu0  ;;  %v8488_v21 = vpop.f32.mrb[244].mxu1 }
0x120b   :  { %v8539_v63 = vadd.f32 %v6997_v43, %v12170_v2  ;;  %v7210_v12 = vadd.f32 %v8488_v21, %v7113_v20  ;;  %v6999_v27 = vpop.f32.mrb[202].mxu0  ;;  %v7201_v5 = vpop.f32.mrb[245].mxu1 }
0x120c   :  { %7260 = vst [vmem:[#allocation9 + $0x60] sm:$0xff] %v8538_v48  ;;  %v8540_v15 = vadd.f32 %v6999_v27, %v12168_v58  ;;  %v7202_v9 = vadd.f32 %v7201_v5, %v7105_v37  ;;  %v7001_v19 = vpop.f32.mrb[203].mxu0  ;;  %v8489_v36 = vpop.f32.mrb[246].mxu1 }
0x120d   :  { %7261 = vst [vmem:[#allocation9 + $0x68] sm:$0xff] %v8539_v63  ;;  %7268 = vst [vmem:[#allocation9 + $0xa0] sm:$0xff] %v7210_v12  ;;  %v8541_v17 = vadd.f32 %v7001_v19, %v12170_v2  ;;  %v7213_v34 = vadd.f32 %v8489_v36, %v7116_v51  ;;  %v7204_v39 = vpop.f32.mrb[247].mxu1 }
0x120e   :  { %7263 = vst [vmem:[#allocation9 + $0x78] sm:$0xff] %v8540_v15  ;;  %7262 = vst [vmem:[#allocation9 + $0x70] sm:$0xff] %v7202_v9  ;;  %v7205_v7 = vadd.f32 %v7204_v39, %v7108_v8 }
0x120f   :  { %7264 = vst [vmem:[#allocation9 + $0x80] sm:$0xff] %v8541_v17  ;;  %7271 = vst [vmem:[#allocation9 + $0xb8] sm:$0xff] %v7213_v34 }
0x1210   :  { %7265 = vst [vmem:[#allocation9 + $0x88] sm:$0xff] %v7205_v7 }
0x1211   :  { %v7005_v40 = vpop.f32.mrb[204].mxu0 }
0x1212   :  { %v8542_v13 = vadd.f32 %v7005_v40, %v12168_v58  ;;  %v7007_v46 = vpop.f32.mrb[205].mxu0 }
0x1213   :  { %v8543_v31 = vadd.f32 %v7007_v46, %v12170_v2  ;;  %v7009_v24 = vpop.f32.mrb[206].mxu0 }
0x1214   :  { %7266 = vst [vmem:[#allocation9 + $0x90] sm:$0xff] %v8542_v13  ;;  %v8544_v4 = vadd.f32 %v7009_v24, %v12168_v58  ;;  %v7011_v26 = vpop.f32.mrb[207].mxu0 }
0x1215   :  { %7267 = vst [vmem:[#allocation9 + $0x98] sm:$0xff] %v8543_v31  ;;  %v8545_v41 = vadd.f32 %v7011_v26, %v12170_v2 }
0x1216   :  { %7269 = vst [vmem:[#allocation9 + $0xa8] sm:$0xff] %v8544_v4 }
0x1217   :  { %7270 = vst [vmem:[#allocation9 + $0xb0] sm:$0xff] %v8545_v41 }
0x1262   :  { %v7015_v29 = vpop.f32.mrb[208].mxu0 }
0x1263   :  { %v8546_v61 = vadd.f32 %v7015_v29, %v12168_v58  ;;  %v7017_v25 = vpop.f32.mrb[209].mxu0  ;;  %v8492_v59 = vpop.f32.mrb[248].mxu1 }
0x1264   :  { %v8547_v3 = vadd.f32 %v7017_v25, %v12170_v2  ;;  %v7226_v10 = vadd.f32 %v8492_v59, %v12142_v57  ;;  %v7019_v22 = vpop.f32.mrb[210].mxu0  ;;  %v7217_v32 = vpop.f32.mrb[249].mxu1 }
0x1265   :  { %7272 = vst [vmem:[#allocation9 + $0xc0] sm:$0xff] %v8546_v61  ;;  %v8548_v62 = vadd.f32 %v7019_v22, %v12168_v58  ;;  %v7218_v1 = vadd.f32 %v7217_v32, %v12136_v52  ;;  %v7021_v18 = vpop.f32.mrb[211].mxu0  ;;  %v8493_v47 = vpop.f32.mrb[250].mxu1 }
0x1266   :  { %7273 = vst [vmem:[#allocation9 + $0xc8] sm:$0xff] %v8547_v3  ;;  %7280 = vst [vmem:[#allocation9 + $0x100] sm:$0xff] %v7226_v10  ;;  %v8549_v30 = vadd.f32 %v7021_v18, %v12170_v2  ;;  %v7229_v0 = vadd.f32 %v8493_v47, %v12145_v33  ;;  %v7220_v16 = vpop.f32.mrb[251].mxu1 }
0x1267   :  { %7275 = vst [vmem:[#allocation9 + $0xd8] sm:$0xff] %v8548_v62  ;;  %7274 = vst [vmem:[#allocation9 + $0xd0] sm:$0xff] %v7218_v1  ;;  %v7221_v57 = vadd.f32 %v7220_v16, %v12139_v54 }
0x1268   :  { %7276 = vst [vmem:[#allocation9 + $0xe0] sm:$0xff] %v8549_v30  ;;  %7283 = vst [vmem:[#allocation9 + $0x118] sm:$0xff] %v7229_v0 }
0x1269   :  { %7277 = vst [vmem:[#allocation9 + $0xe8] sm:$0xff] %v7221_v57 }
0x126a   :  { %v7025_v55 = vpop.f32.mrb[212].mxu0 }
0x126b   :  { %v8550_v44 = vadd.f32 %v7025_v55, %v12168_v58  ;;  %v7027_v52 = vpop.f32.mrb[213].mxu0  ;;  %v8496_v28 = vpop.f32.mrb[252].mxu1 }
0x126c   :  { %v8551_v56 = vadd.f32 %v7027_v52, %v12170_v2  ;;  %v7242_v45 = vadd.f32 %v8496_v28, %v12154_v49  ;;  %v7029_v35 = vpop.f32.mrb[214].mxu0  ;;  %v7233_v60 = vpop.f32.mrb[253].mxu1 }
0x126d   :  { %7278 = vst [vmem:[#allocation9 + $0xf0] sm:$0xff] %v8550_v44  ;;  %v8552_v33 = vadd.f32 %v7029_v35, %v12168_v58  ;;  %v7234_v50 = vadd.f32 %v7233_v60, %v12148_v14  ;;  %v7031_v54 = vpop.f32.mrb[215].mxu0  ;;  %v8497_v38 = vpop.f32.mrb[254].mxu1 }
0x126e   :  { %7279 = vst [vmem:[#allocation9 + $0xf8] sm:$0xff] %v8551_v56  ;;  %7292 = vst [vmem:[#allocation9 + $0x160] sm:$0xff] %v7242_v45  ;;  %v8553_v53 = vadd.f32 %v7031_v54, %v12170_v2  ;;  %v7245_v6 = vadd.f32 %v8497_v38, %v12157_v23  ;;  %v7236_v42 = vpop.f32.mrb[255].mxu1 }
0x126f   :  { %7281 = vst [vmem:[#allocation9 + $0x108] sm:$0xff] %v8552_v33  ;;  %7286 = vst [vmem:[#allocation9 + $0x130] sm:$0xff] %v7234_v50  ;;  %v7237_v49 = vadd.f32 %v7236_v42, %v12151_v11 }
0x1270   :  { %7282 = vst [vmem:[#allocation9 + $0x110] sm:$0xff] %v8553_v53  ;;  %7295 = vst [vmem:[#allocation9 + $0x178] sm:$0xff] %v7245_v6 }
0x1271   :  { %7289 = vst [vmem:[#allocation9 + $0x148] sm:$0xff] %v7237_v49 }
0x1272   :  { %v7035_v20 = vpop.f32.mrb[216].mxu0 }
0x1273   :  { %v8554_v48 = vadd.f32 %v7035_v20, %v12168_v58  ;;  %v7037_v14 = vpop.f32.mrb[217].mxu0 }
0x1274   :  { %v8555_v43 = vadd.f32 %v7037_v14, %v12170_v2  ;;  %v7039_v21 = vpop.f32.mrb[218].mxu0 }
0x1275   :  { %7284 = vst [vmem:[#allocation9 + $0x120] sm:$0xff] %v8554_v48  ;;  %v8556_v37 = vadd.f32 %v7039_v21, %v12168_v58  ;;  %v7041_v63 = vpop.f32.mrb[219].mxu0 }
0x1276   :  { %7285 = vst [vmem:[#allocation9 + $0x128] sm:$0xff] %v8555_v43  ;;  %v8557_v23 = vadd.f32 %v7041_v63, %v12170_v2 }
0x1277   :  { %7287 = vst [vmem:[#allocation9 + $0x138] sm:$0xff] %v8556_v37 }
0x1278   :  { %7288 = vst [vmem:[#allocation9 + $0x140] sm:$0xff] %v8557_v23 }
0x127a   :  { %v7045_v11 = vpop.f32.mrb[220].mxu0 }
0x127b   :  { %v8558_v12 = vadd.f32 %v7045_v11, %v12168_v58  ;;  %v7047_v27 = vpop.f32.mrb[221].mxu0 }
0x127c   :  { %v8559_v5 = vadd.f32 %v7047_v27, %v12170_v2  ;;  %v7049_v51 = vpop.f32.mrb[222].mxu0 }
0x127d   :  { %7290 = vst [vmem:[#allocation9 + $0x150] sm:$0xff] %v8558_v12  ;;  %v8560_v15 = vadd.f32 %v7049_v51, %v12168_v58  ;;  %v7051_v9 = vpop.f32.mrb[223].mxu0 }
0x127e   :  { %7291 = vst [vmem:[#allocation9 + $0x158] sm:$0xff] %v8559_v5  ;;  %v8561_v19 = vadd.f32 %v7051_v9, %v12170_v2 }
0x127f   :  { %7293 = vst [vmem:[#allocation9 + $0x168] sm:$0xff] %v8560_v15 }
0x1280   :  { %7294 = vst [vmem:[#allocation9 + $0x170] sm:$0xff] %v8561_v19 }
0x1281   :  { %9619 = shalt.err (!%p9616_p0)
}
0x1282   :  { %s9620_s9 = scalar_lea.hbm %s12247_s4, 6144 }
0x1283   :  { %p9621_p1 = scmp.ne.s32.totalorder %s12247_s4, %s9620_s9  ;;  %p9624_p2 = scmp.lt.u32.totalorder %s9620_s9, %s12247_s4 }
0x1285   :  { %p9626_p3 = pnand %p9624_p2, %p9621_p1 }
0x1287   :  { %9629 = shalt.err (!%p9626_p3)
}
0x1288   :  { %7307 = dma.vmem_to_hbm [thread:$0]  %s7302_s5, 6144, %s12247_s4, [#allocation5], %s9640_s1, %s9640_s1, %s9641_s13  }
0x1289   :  { %9634 = dma.done.wait [#allocation5], 6144  }
0x128a   :  { %9635 = vsyncadd [#allocation5], 4294961152 }
0x128b   :  { %7311 = vsyncpa [#allocation4], 1 }
0x128c   :  { %7312 = vsyncpa [#allocation7], 1 }
0x128d   :  { %7313 = vsyncpa [#allocation5], 1 }

</bundles_post_ra>
